<compile_context>
chip_gen: v7x
topology: tpu7x:2x2x1
jax: 0.10.0
libtpu: 0.0.40
codegen_flags: <defaults>
</compile_context>

<pallas_src>
import functools

import jax
import jax.numpy as jnp
from jax.experimental import pallas as pl
from jax.experimental.pallas import tpu as pltpu

BN_EPS = 1e-5
LANE = 128
_VMEM_LIMIT = 48 * 1024 * 1024    # scoped VMEM: safe on v7x (64 MiB), generous on v5e/v6e
_VMEM_BUDGET = 16 * 1024 * 1024   # working-set budget used by the tile pickers


# ----------------------------------------------------------------------------
# Pallas kernels
# ----------------------------------------------------------------------------
def _gemm_stats_kernel(*refs, apply_affine, needs_mask, m_valid, tm):
    """1x1 conv as GEMM (bf16 in / bf16 out, f32 accumulate).

    Optionally applies the producer layer's folded-BN affine + ReLU to the
    input tile; writes this tile's per-channel sum / sum-of-squares partials
    (reduced across tiles in plain JAX -> training-mode BN stats).
    """
    if apply_affine:
        x_ref, s_ref, t_ref, w_ref, y_ref, sum_ref, ssq_ref = refs
    else:
        x_ref, w_ref, y_ref, sum_ref, ssq_ref = refs

    x = x_ref[...]                                      # (tm, K) bf16
    if apply_affine:                                    # fused producer BN + ReLU
        x = jnp.maximum(x.astype(jnp.float32) * s_ref[...] + t_ref[...], 0.0)
        x = x.astype(jnp.bfloat16)

    y = jnp.dot(x, w_ref[...], preferred_element_type=jnp.float32)   # (tm, C) f32
    y_ref[...] = y.astype(y_ref.dtype)                  # bf16 activation store

    c = y.shape[1]
    sum_ref[...] = jnp.sum(y, axis=0).reshape(1, 1, c)
    ssq_ref[...] = jnp.sum(y * y, axis=0).reshape(1, 1, c)

    if needs_mask:
        # Only the last tile owns padded M rows: recompute its stat partials
        # with the pad rows zeroed (steady-state tiles pay nothing).
        i = pl.program_id(0)

        @pl.when(i == pl.num_programs(0) - 1)
        def _():
            row = jax.lax.broadcasted_iota(jnp.int32, (tm, 1), 0) + i * tm
            yv = jnp.where(row < m_valid, y, 0.0)
            sum_ref[...] = jnp.sum(yv, axis=0).reshape(1, 1, c)
            ssq_ref[...] = jnp.sum(yv * yv, axis=0).reshape(1, 1, c)


def _conv3x3_stats_kernel(*refs, stride, th, wo, nb, n_phases, c, c_out):
    """3x3 conv as a 9-tap accumulating GEMM over stride-phase-split, spatially
    padded activations.

    Tap loads are dense `pl.ds` slices only (stride handled by the wrapper-side
    phase decomposition).  Accumulates into a VMEM f32 scratch, stores bf16
    output and per-block BN-stat partials.
    """
    phases = refs[:n_phases]                  # each (nb, hph, wph, C) bf16
    w_ref = refs[n_phases]                    # (9, C, Cout) bf16
    y_ref, sum_ref, ssq_ref = refs[n_phases + 1:n_phases + 4]
    acc_ref = refs[n_phases + 4]              # (nb*th*wo, Cout) f32 scratch

    ho0 = pl.program_id(1) * th
    rows = nb * th * wo
    first = True
    for dy in range(3):
        for dx in range(3):
            p = (dy % stride) * stride + (dx % stride)   # static phase index
            r0 = ho0 + dy // stride                       # dense row start
            c0 = dx // stride                             # static col start
            tap = phases[p][:, pl.ds(r0, th), pl.ds(c0, wo), :]
            tap = tap.reshape(rows, c)
            contrib = jnp.dot(tap, w_ref[dy * 3 + dx],
                              preferred_element_type=jnp.float32)
            if first:
                acc_ref[...] = contrib
                first = False
            else:
                acc_ref[...] += contrib

    acc = acc_ref[...]
    y_ref[...] = acc.reshape(1, 1, rows, c_out).astype(y_ref.dtype)
    sum_ref[...] = jnp.sum(acc, axis=0).reshape(1, 1, 1, c_out)
    ssq_ref[...] = jnp.sum(acc * acc, axis=0).reshape(1, 1, 1, c_out)


def _bn_res_relu_kernel(y_ref, s_ref, t_ref, r_ref, rs_ref, rt_ref, o_ref):
    """relu( BN(y) + BN(residual) ): first block, downsample BN folded in."""
    y = y_ref[...].astype(jnp.float32)
    r = r_ref[...].astype(jnp.float32)
    o = jnp.maximum(y * s_ref[...] + t_ref[...] + r * rs_ref[...] + rt_ref[...], 0.0)
    o_ref[...] = o.astype(o_ref.dtype)


def _bn_idres_relu_kernel(y_ref, s_ref, t_ref, r_ref, o_ref):
    """relu( BN(y) + residual ): identity-residual CommonBlocks (no extra FMA)."""
    y = y_ref[...].astype(jnp.float32)
    o = jnp.maximum(y * s_ref[...] + t_ref[...] + r_ref[...].astype(jnp.float32), 0.0)
    o_ref[...] = o.astype(o_ref.dtype)


# ----------------------------------------------------------------------------
# Tiling helpers
# ----------------------------------------------------------------------------
def _round_up(c, to=LANE):
    return ((c + to - 1) // to) * to


def _largest_divisor_le(n, limit):
    limit = max(1, min(n, limit))
    for d in range(limit, 0, -1):
        if n % d == 0:
            return d
    return 1


def _pick_tm(m, k, c):
    """Largest power-of-two row tile whose double-buffered bf16 (tm,K)+(tm,C)
    blocks plus resident weights / params fit the VMEM budget."""
    resident = k * c * 2 + 2 * k * 4 + 4 * c * 4
    tm = 1024
    while tm > 8 and 2 * tm * (k + c) * 2 + resident > _VMEM_BUDGET:
        tm //= 2
    while tm > 8 and tm > m:
        tm //= 2
    return tm


def _pick_tiles_3x3(n, ho, wo, c, c_out, hph, wph, n_phases):
    """Output-row tile th and images-per-block nb for the 3x3 kernel.

    Targets >= 256 (up to ~2048) GEMM rows per dot; when a whole image is small
    it batches several images per grid step (nb > 1 only when th == ho, so the
    output stays contiguous in NHWC order)."""
    target = 2048
    th = _largest_divisor_le(ho, max(1, target // max(wo, 1)))
    nb = 1
    if th == ho:
        nb = _largest_divisor_le(n, max(1, target // max(ho * wo, 1)))

    def fits(th_, nb_):
        rows = nb_ * th_ * wo
        blk = (2 * nb_ * n_phases * hph * wph * c * 2   # double-buffered phase blocks
               + 2 * rows * c_out * 2                   # double-buffered bf16 y block
               + rows * c_out * 4                       # f32 accumulator scratch
               + 9 * c * c_out * 2)                     # resident 9-tap weights
        return blk <= _VMEM_BUDGET

    while nb > 1 and not fits(th, nb):
        nb = _largest_divisor_le(n, nb - 1)
    while th > 1 and not fits(th, nb):
        th = _largest_divisor_le(ho, th - 1)
    # TODO(synk): if ho has no small divisor this can still degrade to th=1;
    # a masked partial row block would be better for such shapes.
    return th, nb


# ----------------------------------------------------------------------------
# Pallas wrappers
# ----------------------------------------------------------------------------
def conv1x1_stats(x_flat, w, scale_in=None, shift_in=None):
    """Fused (optional input affine+ReLU) + GEMM + BN-stat partial reduction.

    x_flat: (M, K) bf16, w: (K, C) bf16.  Returns y (M, C) bf16 and per-channel
    sum / sum-of-squares (1, C) f32 (partials summed in plain JAX)."""
    m, k = x_flat.shape
    c = w.shape[1]
    tm = _pick_tm(m, k, c)
    g = pl.cdiv(m, tm)
    mp = g * tm
    if mp != m:
        x_flat = jnp.pad(x_flat, ((0, mp - m), (0, 0)))

    apply_affine = scale_in is not None
    args = [x_flat]
    in_specs = [pl.BlockSpec((tm, k), lambda i: (i, 0))]
    if apply_affine:
        args += [scale_in, shift_in]
        in_specs += [pl.BlockSpec((1, k), lambda i: (0, 0)),
                     pl.BlockSpec((1, k), lambda i: (0, 0))]
    args.append(w)
    in_specs.append(pl.BlockSpec((k, c), lambda i: (0, 0)))      # resident weights

    kern = functools.partial(_gemm_stats_kernel, apply_affine=apply_affine,
                             needs_mask=(mp != m), m_valid=m, tm=tm)
    y, psum, pssq = pl.pallas_call(
        kern,
        out_shape=(jax.ShapeDtypeStruct((mp, c), jnp.bfloat16),
                   jax.ShapeDtypeStruct((g, 1, c), jnp.float32),
                   jax.ShapeDtypeStruct((g, 1, c), jnp.float32)),
        grid=(g,),
        in_specs=in_specs,
        out_specs=(pl.BlockSpec((tm, c), lambda i: (i, 0)),
                   pl.BlockSpec((1, 1, c), lambda i: (i, 0, 0)),   # per-tile partials
                   pl.BlockSpec((1, 1, c), lambda i: (i, 0, 0))),
        compiler_params=pltpu.CompilerParams(
            dimension_semantics=("parallel",),                     # megacore-friendly
            vmem_limit_bytes=_VMEM_LIMIT),
    )(*args)

    ssum = jnp.sum(psum, axis=0)      # (1, C)
    ssq = jnp.sum(pssq, axis=0)
    if mp != m:
        y = y[:m]
    return y, ssum, ssq


def conv3x3_stats(phases, w9, stride, ho, wo):
    """3x3 conv (pad=1, given stride) via in-kernel 9-tap GEMM on stride-phase
    arrays.  Returns y (N*Ho*Wo, Cout) bf16 and BN-stat sums (1, Cout) f32."""
    n, hph, wph, c = phases[0].shape
    c_out = w9.shape[2]
    n_ph = len(phases)
    th, nb = _pick_tiles_3x3(n, ho, wo, c, c_out, hph, wph, n_ph)
    rows = nb * th * wo
    nb_blocks = n // nb
    hb_blocks = ho // th

    kern = functools.partial(_conv3x3_stats_kernel, stride=stride, th=th, wo=wo,
                             nb=nb, n_phases=n_ph, c=c, c_out=c_out)
    in_specs = [pl.BlockSpec((nb, hph, wph, c), lambda b, hb: (b, 0, 0, 0))
                for _ in range(n_ph)]
    in_specs.append(pl.BlockSpec((9, c, c_out), lambda b, hb: (0, 0, 0)))

    y, psum, pssq = pl.pallas_call(
        kern,
        out_shape=(jax.ShapeDtypeStruct((nb_blocks, hb_blocks, rows, c_out),
                                        jnp.bfloat16),
                   jax.ShapeDtypeStruct((nb_blocks, hb_blocks, 1, c_out), jnp.float32),
                   jax.ShapeDtypeStruct((nb_blocks, hb_blocks, 1, c_out), jnp.float32)),
        grid=(nb_blocks, hb_blocks),
        in_specs=in_specs,
        out_specs=(pl.BlockSpec((1, 1, rows, c_out), lambda b, hb: (b, hb, 0, 0)),
                   pl.BlockSpec((1, 1, 1, c_out), lambda b, hb: (b, hb, 0, 0)),
                   pl.BlockSpec((1, 1, 1, c_out), lambda b, hb: (b, hb, 0, 0))),
        scratch_shapes=[pltpu.VMEM((rows, c_out), jnp.float32)],
        compiler_params=pltpu.CompilerParams(
            dimension_semantics=("parallel", "parallel"),
            vmem_limit_bytes=_VMEM_LIMIT),
    )(*phases, w9)

    ssum = jnp.sum(psum, axis=(0, 1)).reshape(1, c_out)
    ssq = jnp.sum(pssq, axis=(0, 1)).reshape(1, c_out)
    # nb > 1 only when hb_blocks == 1, so this reshape matches NHWC row-major
    # ordering with no transpose.
    y_flat = y.reshape(n * ho * wo, c_out)
    return y_flat, ssum, ssq


def bn_add_relu(y, s, t, r, rs=None, rt=None):
    """relu(y*s + t + residual); residual gets its own affine only when rs/rt
    are given (downsample path).  y, r: (M, C) bf16; params (1, C) f32."""
    m, c = y.shape
    tm = _pick_tm(m, c, c)
    g = pl.cdiv(m, tm)
    mp = g * tm
    if mp != m:
        y = jnp.pad(y, ((0, mp - m), (0, 0)))
        r = jnp.pad(r, ((0, mp - m), (0, 0)))

    row_spec = pl.BlockSpec((tm, c), lambda i: (i, 0))
    vec_spec = pl.BlockSpec((1, c), lambda i: (0, 0))
    if rs is not None:
        kern, args = _bn_res_relu_kernel, (y, s, t, r, rs, rt)
        in_specs = [row_spec, vec_spec, vec_spec, row_spec, vec_spec, vec_spec]
    else:
        kern, args = _bn_idres_relu_kernel, (y, s, t, r)
        in_specs = [row_spec, vec_spec, vec_spec, row_spec]

    out = pl.pallas_call(
        kern,
        out_shape=jax.ShapeDtypeStruct((mp, c), jnp.bfloat16),
        grid=(g,),
        in_specs=in_specs,
        out_specs=row_spec,
        compiler_params=pltpu.CompilerParams(
            dimension_semantics=("parallel",),
            vmem_limit_bytes=_VMEM_LIMIT),
    )(*args)
    return out[:m] if mp != m else out


# ----------------------------------------------------------------------------
# Glue: BN fold, padded / phase-split 3x3 input prep
# ----------------------------------------------------------------------------
def bn_fold_stats(ssum, ssq, m, gamma, beta):
    # TODO(synk): tiny (1,C) scalar fold kept in plain JAX (negligible traffic).
    mean = ssum / m
    var = jnp.maximum(ssq / m - mean * mean, 0.0)   # biased variance (training BN)
    scale = gamma / jnp.sqrt(var + BN_EPS)
    shift = beta - mean * scale
    return scale, shift


def _affine_relu_pad_phases(y_flat, scale, shift, n, h, w, stride):
    """BN affine + ReLU + spatial zero-pad + stride-phase split, all bf16.

    Returns `stride*stride` phase arrays of uniform shape (N, hph, wph, C) so
    the 3x3 kernel only does dense tap loads (no strided in-kernel slicing).
    TODO(synk): full fusion of this pass into the 3x3 kernel would need
    in-kernel border masking of the implicit zero pad.
    """
    a = jnp.maximum(y_flat.astype(jnp.float32) * scale + shift, 0.0)
    a = a.astype(jnp.bfloat16).reshape(n, h, w, -1)
    a = jnp.pad(a, ((0, 0), (1, 1), (1, 1), (0, 0)))
    hp, wp = h + 2, w + 2
    ho = (hp - 3) // stride + 1
    wo = (wp - 3) // stride + 1
    hph = ho + 2 // stride
    wph = wo + 2 // stride
    phases = []
    for py in range(stride):
        for px in range(stride):
            ph = a[:, py::stride, px::stride, :][:, :hph, :wph, :]
            pad_h, pad_w = hph - ph.shape[1], wph - ph.shape[2]
            if pad_h or pad_w:
                ph = jnp.pad(ph, ((0, 0), (0, pad_h), (0, pad_w), (0, 0)))
            phases.append(ph)
    return phases, (ho, wo)


# ----------------------------------------------------------------------------
# Parameter init (deterministic, synthetic, lane-padded, bf16 weights)
# ----------------------------------------------------------------------------
def _pad_vec(v, cp):
    return jnp.pad(v, (0, cp - v.shape[0])).reshape(1, cp).astype(jnp.float32)


def _pad_mat_bf16(w, kp, cp):
    return jnp.pad(w, ((0, kp - w.shape[0]), (0, cp - w.shape[1]))).astype(jnp.bfloat16)


def _init_bottleneck(key, cin, cmid, cout, cin_p, cmid_p, cout_p):
    ks = jax.random.split(key, 9)
    w1 = 0.2 * jax.random.normal(ks[0], (cin, cmid), jnp.float32)
    g1 = 1.0 + 0.05 * jax.random.normal(ks[1], (cmid,), jnp.float32)
    b1 = 0.05 * jax.random.normal(ks[2], (cmid,), jnp.float32)
    # 3x3 weight in (kH, kW, Cin, Cout) order; real PyTorch (Cout,Cin,kH,kW)
    # weights would need transpose(2, 3, 1, 0) before the reshape below.
    w2 = 0.2 * jax.random.normal(ks[3], (3, 3, cmid, cmid), jnp.float32)
    g2 = 1.0 + 0.05 * jax.random.normal(ks[4], (cmid,), jnp.float32)
    b2 = 0.05 * jax.random.normal(ks[5], (cmid,), jnp.float32)
    w3 = 0.2 * jax.random.normal(ks[6], (cmid, cout), jnp.float32)
    g3 = 1.0 + 0.05 * jax.random.normal(ks[7], (cout,), jnp.float32)
    b3 = 0.05 * jax.random.normal(ks[8], (cout,), jnp.float32)
    w2p = jnp.pad(w2, ((0, 0), (0, 0), (0, cmid_p - cmid), (0, cmid_p - cmid)))
    return {
        "w1": _pad_mat_bf16(w1, cin_p, cmid_p),
        "g1": _pad_vec(g1, cmid_p), "be1": _pad_vec(b1, cmid_p),
        "w2": w2p.reshape(9, cmid_p, cmid_p).astype(jnp.bfloat16),
        "g2": _pad_vec(g2, cmid_p), "be2": _pad_vec(b2, cmid_p),
        "w3": _pad_mat_bf16(w3, cmid_p, cout_p),
        "g3": _pad_vec(g3, cout_p), "be3": _pad_vec(b3, cout_p),
    }


def init_block_group(key, cin, cmid, cout, repetitions):
    cin_p, cmid_p, cout_p = _round_up(cin), _round_up(cmid), _round_up(cout)
    k_down, k_first, k_rest = jax.random.split(key, 3)
    kd = jax.random.split(k_down, 3)
    wd = 0.2 * jax.random.normal(kd[0], (cin, cout), jnp.float32)
    gd = 1.0 + 0.05 * jax.random.normal(kd[1], (cout,), jnp.float32)
    bd = 0.05 * jax.random.normal(kd[2], (cout,), jnp.float32)
    return {
        "down": {"w": _pad_mat_bf16(wd, cin_p, cout_p),
                 "g": _pad_vec(gd, cout_p), "be": _pad_vec(bd, cout_p)},
        "first": _init_bottleneck(k_first, cin, cmid, cout, cin_p, cmid_p, cout_p),
        "blocks": [
            _init_bottleneck(k, cout, cmid, cout, cout_p, cmid_p, cout_p)
            for k in jax.random.split(k_rest, max(repetitions - 1, 1))[: repetitions - 1]
        ],
    }


# ----------------------------------------------------------------------------
# Forward pass
# ----------------------------------------------------------------------------
def _bottleneck_branch(x_nhwc, p, stride):
    """conv1x1+BN+ReLU -> conv3x3(stride)+BN+ReLU -> conv1x1 (BN folded later).

    Returns the pre-BN conv3 output (bf16), its folded BN scale/shift and the
    output spatial shape, so the caller fuses BN + residual + ReLU in one pass.
    """
    n, h, w, _ = x_nhwc.shape
    m_in = n * h * w
    # conv1 (1x1) + fused BN-stat partials
    y1, s1, q1 = conv1x1_stats(x_nhwc.reshape(m_in, -1), p["w1"])
    sc1, sh1 = bn_fold_stats(s1, q1, m_in, p["g1"], p["be1"])
    # BN1 affine + ReLU + pad + stride-phase split (single fused XLA pass, bf16)
    phases, (ho, wo) = _affine_relu_pad_phases(y1, sc1, sh1, n, h, w, stride)
    # conv2 (3x3, stride, pad=1) + fused BN stats, no im2col materialization
    y2, s2, q2 = conv3x3_stats(phases, p["w2"], stride, ho, wo)
    m_out = n * ho * wo
    sc2, sh2 = bn_fold_stats(s2, q2, m_out, p["g2"], p["be2"])
    # conv3 (1x1): BN2 affine + ReLU fused into the GEMM input, + BN stats
    y3, s3, q3 = conv1x1_stats(y2, p["w3"], sc2, sh2)
    sc3, sh3 = bn_fold_stats(s3, q3, m_out, p["g3"], p["be3"])
    return y3, sc3, sh3, (n, ho, wo)


def block_group_forward(x_nchw, params, *, stride, out_channels):
    x = jnp.transpose(x_nchw, (0, 2, 3, 1))              # NCHW -> NHWC (f32)
    n, h, w, cin = x.shape
    cin_p = params["first"]["w1"].shape[0]
    # Downsample input: spatial subsample BEFORE channel lane-pad / bf16 cast.
    # TODO(synk): the strided spatial subsample stays in plain JAX glue.
    xs = x[:, ::stride, ::stride, :] if stride > 1 else x
    pad_c = ((0, 0), (0, 0), (0, 0), (0, cin_p - cin))
    x = jnp.pad(x, pad_c).astype(jnp.bfloat16)
    xs = jnp.pad(xs, pad_c).astype(jnp.bfloat16)

    nd, hd, wd, _ = xs.shape
    yd, sd, qd = conv1x1_stats(xs.reshape(nd * hd * wd, -1), params["down"]["w"])
    scd, shd = bn_fold_stats(sd, qd, nd * hd * wd,
                             params["down"]["g"], params["down"]["be"])

    # first block: relu(BN3(conv3) + BN_down(down)) fused in one pass
    y3, sc3, sh3, (n_, ho, wo) = _bottleneck_branch(x, params["first"], stride)
    out = bn_add_relu(y3, sc3, sh3, yd, scd, shd)
    out_nhwc = out.reshape(n_, ho, wo, -1)

    # CommonBlocks: relu(BN3(conv3) + identity residual), cheap epilogue variant
    for p in params["blocks"]:
        y3, sc3, sh3, _ = _bottleneck_branch(out_nhwc, p, 1)
        out = bn_add_relu(y3, sc3, sh3, out_nhwc.reshape(n_ * ho * wo, -1))
        out_nhwc = out.reshape(n_, ho, wo, -1)

    out_nhwc = out_nhwc[..., :out_channels].astype(jnp.float32)   # drop lane pad
    return jnp.transpose(out_nhwc, (0, 3, 1, 2))                  # back to NCHW


# ----------------------------------------------------------------------------
if __name__ == "__main__":
    input_channel = 4
    block_channel = 4
    output_channel = 8
    stride = 2
    repetitions = 2

    key = jax.random.PRNGKey(0)
    k_x, k_p = jax.random.split(key)
    x = jax.random.normal(k_x, (2, input_channel, 16, 16), jnp.float32)  # NCHW
    params = init_block_group(k_p, input_channel, block_channel, output_channel,
                              repetitions)

    fwd = jax.jit(functools.partial(block_group_forward, stride=stride,
                                    out_channels=output_channel))
    out = fwd(x, params)
    out = jax.block_until_ready(out)
    assert out.shape == (2, output_channel, 8, 8), out.shape
    assert bool(jnp.all(jnp.isfinite(out)))
    print("KERNEL_OK")
</pallas_src>

<mosaic_0001>
module attributes {stable_mosaic.version = 11 : i64} {
  func.func @_gemm_stats_kernel(%arg0: i32, %arg1: memref<512x128xbf16, #tpu.memory_space<vmem>>, %arg2: memref<128x128xbf16, #tpu.memory_space<vmem>>, %arg3: memref<512x128xbf16, #tpu.memory_space<vmem>>, %arg4: memref<1x1x128xf32, #tpu.memory_space<vmem>>, %arg5: memref<1x1x128xf32, #tpu.memory_space<vmem>>) attributes {dimension_semantics = [#tpu.dimension_semantics<parallel>], iteration_bounds = array<i64: 1>, scalar_prefetch = 0 : i64, scratch_operands = 0 : i64, tpu.core_type = #tpu.core_type<tc>, window_params = [{transform_indices = @transform_0, window_bounds = array<i64: 512, 128>}, {pipeline_mode = #tpu.pipeline_mode<synchronous>, transform_indices = @transform_1, window_bounds = array<i64: 128, 128>}, {transform_indices = @transform_2, window_bounds = array<i64: 512, 128>}, {transform_indices = @transform_3, window_bounds = array<i64: 1, 1, 128>}, {transform_indices = @transform_4, window_bounds = array<i64: 1, 1, 128>}]} {
    %c0 = arith.constant 0 : index
    %c0_0 = arith.constant 0 : index
    %0 = vector.load %arg1[%c0, %c0_0] : memref<512x128xbf16, #tpu.memory_space<vmem>>, vector<512x128xbf16>
    %c0_1 = arith.constant 0 : index
    %c0_2 = arith.constant 0 : index
    %1 = vector.load %arg2[%c0_1, %c0_2] : memref<128x128xbf16, #tpu.memory_space<vmem>>, vector<128x128xbf16>
    %cst = arith.constant dense<0.000000e+00> : vector<512x128xf32>
    %2 = tpu.matmul %0, %1, %cst {dimension_numbers = #tpu.dot_dimension_numbers<[1], [0], [0], [1], [0, 0, 1, 1], [], []>} : vector<512x128xbf16>, vector<128x128xbf16>, vector<512x128xf32> -> vector<512x128xf32>
    %3 = arith.truncf %2 : vector<512x128xf32> to vector<512x128xbf16>
    %c0_3 = arith.constant 0 : index
    %c0_4 = arith.constant 0 : index
    %4 = vector.load %arg3[%c0_3, %c0_4] : memref<512x128xbf16, #tpu.memory_space<vmem>>, vector<512x128xbf16>
    tpu.vector_store %arg3[%c0_3, %c0_4], %3 {strides = array<i32>} : memref<512x128xbf16, #tpu.memory_space<vmem>>, vector<512x128xbf16>,
    %cst_5 = arith.constant dense<0.000000e+00> : vector<128xf32>
    %5 = vector.multi_reduction <add>, %2, %cst_5 [0] : vector<512x128xf32> to vector<128xf32>
    %6 = vector.shape_cast %5 : vector<128xf32> to vector<1x1x128xf32>
    %c0_6 = arith.constant 0 : index
    %c0_7 = arith.constant 0 : index
    %c0_8 = arith.constant 0 : index
    %7 = vector.load %arg4[%c0_6, %c0_7, %c0_8] : memref<1x1x128xf32, #tpu.memory_space<vmem>>, vector<1x1x128xf32>
    tpu.vector_store %arg4[%c0_6, %c0_7, %c0_8], %6 {strides = array<i32>} : memref<1x1x128xf32, #tpu.memory_space<vmem>>, vector<1x1x128xf32>,
    %8 = arith.mulf %2, %2 : vector<512x128xf32>
    %cst_9 = arith.constant dense<0.000000e+00> : vector<128xf32>
    %9 = vector.multi_reduction <add>, %8, %cst_9 [0] : vector<512x128xf32> to vector<128xf32>
    %10 = vector.shape_cast %9 : vector<128xf32> to vector<1x1x128xf32>
    %c0_10 = arith.constant 0 : index
    %c0_11 = arith.constant 0 : index
    %c0_12 = arith.constant 0 : index
    %11 = vector.load %arg5[%c0_10, %c0_11, %c0_12] : memref<1x1x128xf32, #tpu.memory_space<vmem>>, vector<1x1x128xf32>
    tpu.vector_store %arg5[%c0_10, %c0_11, %c0_12], %10 {strides = array<i32>} : memref<1x1x128xf32, #tpu.memory_space<vmem>>, vector<1x1x128xf32>,
    return
  }
  func.func @transform_0(%arg0: i32) -> (i32, i32) {
    %c0_i32 = arith.constant 0 : i32
    %c0_i32_0 = arith.constant 0 : i32
    return %arg0, %c0_i32 : i32, i32
  }
  func.func @transform_1(%arg0: i32) -> (i32, i32) {
    %c0_i32 = arith.constant 0 : i32
    %c0_i32_0 = arith.constant 0 : i32
    %c0_i32_1 = arith.constant 0 : i32
    return %c0_i32, %c0_i32_0 : i32, i32
  }
  func.func @transform_2(%arg0: i32) -> (i32, i32) {
    %c0_i32 = arith.constant 0 : i32
    %c0_i32_0 = arith.constant 0 : i32
    return %arg0, %c0_i32 : i32, i32
  }
  func.func @transform_3(%arg0: i32) -> (i32, i32, i32) {
    %c0_i32 = arith.constant 0 : i32
    %c0_i32_0 = arith.constant 0 : i32
    %c0_i32_1 = arith.constant 0 : i32
    return %arg0, %c0_i32, %c0_i32_0 : i32, i32, i32
  }
  func.func @transform_4(%arg0: i32) -> (i32, i32, i32) {
    %c0_i32 = arith.constant 0 : i32
    %c0_i32_0 = arith.constant 0 : i32
    %c0_i32_1 = arith.constant 0 : i32
    return %arg0, %c0_i32, %c0_i32_0 : i32, i32, i32
  }
}

module attributes {stable_mosaic.version = 11 : i64} {
  func.func @_conv3x3_stats_kernel(%arg0: i32, %arg1: i32, %arg2: memref<2x9x9x128xbf16, #tpu.memory_space<vmem>>, %arg3: memref<2x9x9x128xbf16, #tpu.memory_space<vmem>>, %arg4: memref<2x9x9x128xbf16, #tpu.memory_space<vmem>>, %arg5: memref<2x9x9x128xbf16, #tpu.memory_space<vmem>>, %arg6: memref<9x128x128xbf16, #tpu.memory_space<vmem>>, %arg7: memref<1x1x128x128xbf16, #tpu.memory_space<vmem>>, %arg8: memref<1x1x1x128xf32, #tpu.memory_space<vmem>>, %arg9: memref<1x1x1x128xf32, #tpu.memory_space<vmem>>, %arg10: memref<128x128xf32, #tpu.memory_space<vmem>>) attributes {dimension_semantics = [#tpu.dimension_semantics<parallel>, #tpu.dimension_semantics<parallel>], iteration_bounds = array<i64: 1, 1>, scalar_prefetch = 0 : i64, scratch_operands = 1 : i64, tpu.core_type = #tpu.core_type<tc>, window_params = [{transform_indices = @transform_0, window_bounds = array<i64: 2, 9, 9, 128>}, {transform_indices = @transform_1, window_bounds = array<i64: 2, 9, 9, 128>}, {transform_indices = @transform_2, window_bounds = array<i64: 2, 9, 9, 128>}, {transform_indices = @transform_3, window_bounds = array<i64: 2, 9, 9, 128>}, {pipeline_mode = #tpu.pipeline_mode<synchronous>, transform_indices = @transform_4, window_bounds = array<i64: 9, 128, 128>}, {transform_indices = @transform_5, window_bounds = array<i64: 1, 1, 128, 128>}, {transform_indices = @transform_6, window_bounds = array<i64: 1, 1, 1, 128>}, {transform_indices = @transform_7, window_bounds = array<i64: 1, 1, 1, 128>}]} {
    %c8_i32 = arith.constant 8 : i32
    %0 = arith.muli %arg1, %c8_i32 : i32
    %c0_i32 = arith.constant 0 : i32
    %1 = arith.addi %0, %c0_i32 : i32
    %c0 = arith.constant 0 : index
    %2 = arith.index_cast %1 : i32 to index
    %c0_0 = arith.constant 0 : index
    %c0_1 = arith.constant 0 : index
    %3 = vector.load %arg2[%c0, %2, %c0_0, %c0_1] : memref<2x9x9x128xbf16, #tpu.memory_space<vmem>>, vector<2x8x8x128xbf16>
    %4 = vector.shape_cast %3 : vector<2x8x8x128xbf16> to vector<128x128xbf16>
    %c0_2 = arith.constant 0 : index
    %c0_3 = arith.constant 0 : index
    %c0_4 = arith.constant 0 : index
    %5 = vector.load %arg6[%c0_2, %c0_3, %c0_4] : memref<9x128x128xbf16, #tpu.memory_space<vmem>>, vector<1x128x128xbf16>
    %6 = vector.shape_cast %5 : vector<1x128x128xbf16> to vector<128x128xbf16>
    %cst = arith.constant dense<0.000000e+00> : vector<128x128xf32>
    %7 = tpu.matmul %4, %6, %cst {dimension_numbers = #tpu.dot_dimension_numbers<[1], [0], [0], [1], [0, 0, 1, 1], [], []>} : vector<128x128xbf16>, vector<128x128xbf16>, vector<128x128xf32> -> vector<128x128xf32>
    %c0_5 = arith.constant 0 : index
    %c0_6 = arith.constant 0 : index
    %8 = vector.load %arg10[%c0_5, %c0_6] : memref<128x128xf32, #tpu.memory_space<vmem>>, vector<128x128xf32>
    tpu.vector_store %arg10[%c0_5, %c0_6], %7 {strides = array<i32>} : memref<128x128xf32, #tpu.memory_space<vmem>>, vector<128x128xf32>,
    %c0_i32_7 = arith.constant 0 : i32
    %9 = arith.addi %0, %c0_i32_7 : i32
    %c0_8 = arith.constant 0 : index
    %10 = arith.index_cast %9 : i32 to index
    %c0_9 = arith.constant 0 : index
    %c0_10 = arith.constant 0 : index
    %11 = vector.load %arg3[%c0_8, %10, %c0_9, %c0_10] : memref<2x9x9x128xbf16, #tpu.memory_space<vmem>>, vector<2x8x8x128xbf16>
    %12 = vector.shape_cast %11 : vector<2x8x8x128xbf16> to vector<128x128xbf16>
    %c1 = arith.constant 1 : index
    %c0_11 = arith.constant 0 : index
    %c0_12 = arith.constant 0 : index
    %13 = vector.load %arg6[%c1, %c0_11, %c0_12] : memref<9x128x128xbf16, #tpu.memory_space<vmem>>, vector<1x128x128xbf16>
    %14 = vector.shape_cast %13 : vector<1x128x128xbf16> to vector<128x128xbf16>
    %cst_13 = arith.constant dense<0.000000e+00> : vector<128x128xf32>
    %15 = tpu.matmul %12, %14, %cst_13 {dimension_numbers = #tpu.dot_dimension_numbers<[1], [0], [0], [1], [0, 0, 1, 1], [], []>} : vector<128x128xbf16>, vector<128x128xbf16>, vector<128x128xf32> -> vector<128x128xf32>
    %c0_14 = arith.constant 0 : index
    %c0_15 = arith.constant 0 : index
    %16 = vector.load %arg10[%c0_14, %c0_15] : memref<128x128xf32, #tpu.memory_space<vmem>>, vector<128x128xf32>
    %17 = arith.addf %16, %15 : vector<128x128xf32>
    %c0_16 = arith.constant 0 : index
    %c0_17 = arith.constant 0 : index
    %18 = vector.load %arg10[%c0_16, %c0_17] : memref<128x128xf32, #tpu.memory_space<vmem>>, vector<128x128xf32>
    tpu.vector_store %arg10[%c0_16, %c0_17], %17 {strides = array<i32>} : memref<128x128xf32, #tpu.memory_space<vmem>>, vector<128x128xf32>,
    %c0_i32_18 = arith.constant 0 : i32
    %19 = arith.addi %0, %c0_i32_18 : i32
    %c0_19 = arith.constant 0 : index
    %20 = arith.index_cast %19 : i32 to index
    %c1_20 = arith.constant 1 : index
    %c0_21 = arith.constant 0 : index
    %21 = vector.load %arg2[%c0_19, %20, %c1_20, %c0_21] : memref<2x9x9x128xbf16, #tpu.memory_space<vmem>>, vector<2x8x8x128xbf16>
    %22 = vector.shape_cast %21 : vector<2x8x8x128xbf16> to vector<128x128xbf16>
    %c2 = arith.constant 2 : index
    %c0_22 = arith.constant 0 : index
    %c0_23 = arith.constant 0 : index
    %23 = vector.load %arg6[%c2, %c0_22, %c0_23] : memref<9x128x128xbf16, #tpu.memory_space<vmem>>, vector<1x128x128xbf16>
    %24 = vector.shape_cast %23 : vector<1x128x128xbf16> to vector<128x128xbf16>
    %cst_24 = arith.constant dense<0.000000e+00> : vector<128x128xf32>
    %25 = tpu.matmul %22, %24, %cst_24 {dimension_numbers = #tpu.dot_dimension_numbers<[1], [0], [0], [1], [0, 0, 1, 1], [], []>} : vector<128x128xbf16>, vector<128x128xbf16>, vector<128x128xf32> -> vector<128x128xf32>
    %c0_25 = arith.constant 0 : index
    %c0_26 = arith.constant 0 : index
    %26 = vector.load %arg10[%c0_25, %c0_26] : memref<128x128xf32, #tpu.memory_space<vmem>>, vector<128x128xf32>
    %27 = arith.addf %26, %25 : vector<128x128xf32>
    %c0_27 = arith.constant 0 : index
    %c0_28 = arith.constant 0 : index
    %28 = vector.load %arg10[%c0_27, %c0_28] : memref<128x128xf32, #tpu.memory_space<vmem>>, vector<128x128xf32>
    tpu.vector_store %arg10[%c0_27, %c0_28], %27 {strides = array<i32>} : memref<128x128xf32, #tpu.memory_space<vmem>>, vector<128x128xf32>,
    %c0_i32_29 = arith.constant 0 : i32
    %29 = arith.addi %0, %c0_i32_29 : i32
    %c0_30 = arith.constant 0 : index
    %30 = arith.index_cast %29 : i32 to index
    %c0_31 = arith.constant 0 : index
    %c0_32 = arith.constant 0 : index
    %31 = vector.load %arg4[%c0_30, %30, %c0_31, %c0_32] : memref<2x9x9x128xbf16, #tpu.memory_space<vmem>>, vector<2x8x8x128xbf16>
    %32 = vector.shape_cast %31 : vector<2x8x8x128xbf16> to vector<128x128xbf16>
    %c3 = arith.constant 3 : index
    %c0_33 = arith.constant 0 : index
    %c0_34 = arith.constant 0 : index
    %33 = vector.load %arg6[%c3, %c0_33, %c0_34] : memref<9x128x128xbf16, #tpu.memory_space<vmem>>, vector<1x128x128xbf16>
    %34 = vector.shape_cast %33 : vector<1x128x128xbf16> to vector<128x128xbf16>
    %cst_35 = arith.constant dense<0.000000e+00> : vector<128x128xf32>
    %35 = tpu.matmul %32, %34, %cst_35 {dimension_numbers = #tpu.dot_dimension_numbers<[1], [0], [0], [1], [0, 0, 1, 1], [], []>} : vector<128x128xbf16>, vector<128x128xbf16>, vector<128x128xf32> -> vector<128x128xf32>
    %c0_36 = arith.constant 0 : index
    %c0_37 = arith.constant 0 : index
    %36 = vector.load %arg10[%c0_36, %c0_37] : memref<128x128xf32, #tpu.memory_space<vmem>>, vector<128x128xf32>
    %37 = arith.addf %36, %35 : vector<128x128xf32>
    %c0_38 = arith.constant 0 : index
    %c0_39 = arith.constant 0 : index
    %38 = vector.load %arg10[%c0_38, %c0_39] : memref<128x128xf32, #tpu.memory_space<vmem>>, vector<128x128xf32>
    tpu.vector_store %arg10[%c0_38, %c0_39], %37 {strides = array<i32>} : memref<128x128xf32, #tpu.memory_space<vmem>>, vector<128x128xf32>,
    %c0_i32_40 = arith.constant 0 : i32
    %39 = arith.addi %0, %c0_i32_40 : i32
    %c0_41 = arith.constant 0 : index
    %40 = arith.index_cast %39 : i32 to index
    %c0_42 = arith.constant 0 : index
    %c0_43 = arith.constant 0 : index
    %41 = vector.load %arg5[%c0_41, %40, %c0_42, %c0_43] : memref<2x9x9x128xbf16, #tpu.memory_space<vmem>>, vector<2x8x8x128xbf16>
    %42 = vector.shape_cast %41 : vector<2x8x8x128xbf16> to vector<128x128xbf16>
    %c4 = arith.constant 4 : index
    %c0_44 = arith.constant 0 : index
    %c0_45 = arith.constant 0 : index
    %43 = vector.load %arg6[%c4, %c0_44, %c0_45] : memref<9x128x128xbf16, #tpu.memory_space<vmem>>, vector<1x128x128xbf16>
    %44 = vector.shape_cast %43 : vector<1x128x128xbf16> to vector<128x128xbf16>
    %cst_46 = arith.constant dense<0.000000e+00> : vector<128x128xf32>
    %45 = tpu.matmul %42, %44, %cst_46 {dimension_numbers = #tpu.dot_dimension_numbers<[1], [0], [0], [1], [0, 0, 1, 1], [], []>} : vector<128x128xbf16>, vector<128x128xbf16>, vector<128x128xf32> -> vector<128x128xf32>
    %c0_47 = arith.constant 0 : index
    %c0_48 = arith.constant 0 : index
    %46 = vector.load %arg10[%c0_47, %c0_48] : memref<128x128xf32, #tpu.memory_space<vmem>>, vector<128x128xf32>
    %47 = arith.addf %46, %45 : vector<128x128xf32>
    %c0_49 = arith.constant 0 : index
    %c0_50 = arith.constant 0 : index
    %48 = vector.load %arg10[%c0_49, %c0_50] : memref<128x128xf32, #tpu.memory_space<vmem>>, vector<128x128xf32>
    tpu.vector_store %arg10[%c0_49, %c0_50], %47 {strides = array<i32>} : memref<128x128xf32, #tpu.memory_space<vmem>>, vector<128x128xf32>,
    %c0_i32_51 = arith.constant 0 : i32
    %49 = arith.addi %0, %c0_i32_51 : i32
    %c0_52 = arith.constant 0 : index
    %50 = arith.index_cast %49 : i32 to index
    %c1_53 = arith.constant 1 : index
    %c0_54 = arith.constant 0 : index
    %51 = vector.load %arg4[%c0_52, %50, %c1_53, %c0_54] : memref<2x9x9x128xbf16, #tpu.memory_space<vmem>>, vector<2x8x8x128xbf16>
    %52 = vector.shape_cast %51 : vector<2x8x8x128xbf16> to vector<128x128xbf16>
    %c5 = arith.constant 5 : index
    %c0_55 = arith.constant 0 : index
    %c0_56 = arith.constant 0 : index
    %53 = vector.load %arg6[%c5, %c0_55, %c0_56] : memref<9x128x128xbf16, #tpu.memory_space<vmem>>, vector<1x128x128xbf16>
    %54 = vector.shape_cast %53 : vector<1x128x128xbf16> to vector<128x128xbf16>
    %cst_57 = arith.constant dense<0.000000e+00> : vector<128x128xf32>
    %55 = tpu.matmul %52, %54, %cst_57 {dimension_numbers = #tpu.dot_dimension_numbers<[1], [0], [0], [1], [0, 0, 1, 1], [], []>} : vector<128x128xbf16>, vector<128x128xbf16>, vector<128x128xf32> -> vector<128x128xf32>
    %c0_58 = arith.constant 0 : index
    %c0_59 = arith.constant 0 : index
    %56 = vector.load %arg10[%c0_58, %c0_59] : memref<128x128xf32, #tpu.memory_space<vmem>>, vector<128x128xf32>
    %57 = arith.addf %56, %55 : vector<128x128xf32>
    %c0_60 = arith.constant 0 : index
    %c0_61 = arith.constant 0 : index
    %58 = vector.load %arg10[%c0_60, %c0_61] : memref<128x128xf32, #tpu.memory_space<vmem>>, vector<128x128xf32>
    tpu.vector_store %arg10[%c0_60, %c0_61], %57 {strides = array<i32>} : memref<128x128xf32, #tpu.memory_space<vmem>>, vector<128x128xf32>,
    %c1_i32 = arith.constant 1 : i32
    %59 = arith.addi %0, %c1_i32 : i32
    %c0_62 = arith.constant 0 : index
    %60 = arith.index_cast %59 : i32 to index
    %c0_63 = arith.constant 0 : index
    %c0_64 = arith.constant 0 : index
    %61 = vector.load %arg2[%c0_62, %60, %c0_63, %c0_64] : memref<2x9x9x128xbf16, #tpu.memory_space<vmem>>, vector<2x8x8x128xbf16>
    %62 = vector.shape_cast %61 : vector<2x8x8x128xbf16> to vector<128x128xbf16>
    %c6 = arith.constant 6 : index
    %c0_65 = arith.constant 0 : index
    %c0_66 = arith.constant 0 : index
    %63 = vector.load %arg6[%c6, %c0_65, %c0_66] : memref<9x128x128xbf16, #tpu.memory_space<vmem>>, vector<1x128x128xbf16>
    %64 = vector.shape_cast %63 : vector<1x128x128xbf16> to vector<128x128xbf16>
    %cst_67 = arith.constant dense<0.000000e+00> : vector<128x128xf32>
    %65 = tpu.matmul %62, %64, %cst_67 {dimension_numbers = #tpu.dot_dimension_numbers<[1], [0], [0], [1], [0, 0, 1, 1], [], []>} : vector<128x128xbf16>, vector<128x128xbf16>, vector<128x128xf32> -> vector<128x128xf32>
    %c0_68 = arith.constant 0 : index
    %c0_69 = arith.constant 0 : index
    %66 = vector.load %arg10[%c0_68, %c0_69] : memref<128x128xf32, #tpu.memory_space<vmem>>, vector<128x128xf32>
    %67 = arith.addf %66, %65 : vector<128x128xf32>
    %c0_70 = arith.constant 0 : index
    %c0_71 = arith.constant 0 : index
    %68 = vector.load %arg10[%c0_70, %c0_71] : memref<128x128xf32, #tpu.memory_space<vmem>>, vector<128x128xf32>
    tpu.vector_store %arg10[%c0_70, %c0_71], %67 {strides = array<i32>} : memref<128x128xf32, #tpu.memory_space<vmem>>, vector<128x128xf32>,
    %c1_i32_72 = arith.constant 1 : i32
    %69 = arith.addi %0, %c1_i32_72 : i32
    %c0_73 = arith.constant 0 : index
    %70 = arith.index_cast %69 : i32 to index
    %c0_74 = arith.constant 0 : index
    %c0_75 = arith.constant 0 : index
    %71 = vector.load %arg3[%c0_73, %70, %c0_74, %c0_75] : memref<2x9x9x128xbf16, #tpu.memory_space<vmem>>, vector<2x8x8x128xbf16>
    %72 = vector.shape_cast %71 : vector<2x8x8x128xbf16> to vector<128x128xbf16>
    %c7 = arith.constant 7 : index
    %c0_76 = arith.constant 0 : index
    %c0_77 = arith.constant 0 : index
    %73 = vector.load %arg6[%c7, %c0_76, %c0_77] : memref<9x128x128xbf16, #tpu.memory_space<vmem>>, vector<1x128x128xbf16>
    %74 = vector.shape_cast %73 : vector<1x128x128xbf16> to vector<128x128xbf16>
    %cst_78 = arith.constant dense<0.000000e+00> : vector<128x128xf32>
    %75 = tpu.matmul %72, %74, %cst_78 {dimension_numbers = #tpu.dot_dimension_numbers<[1], [0], [0], [1], [0, 0, 1, 1], [], []>} : vector<128x128xbf16>, vector<128x128xbf16>, vector<128x128xf32> -> vector<128x128xf32>
    %c0_79 = arith.constant 0 : index
    %c0_80 = arith.constant 0 : index
    %76 = vector.load %arg10[%c0_79, %c0_80] : memref<128x128xf32, #tpu.memory_space<vmem>>, vector<128x128xf32>
    %77 = arith.addf %76, %75 : vector<128x128xf32>
    %c0_81 = arith.constant 0 : index
    %c0_82 = arith.constant 0 : index
    %78 = vector.load %arg10[%c0_81, %c0_82] : memref<128x128xf32, #tpu.memory_space<vmem>>, vector<128x128xf32>
    tpu.vector_store %arg10[%c0_81, %c0_82], %77 {strides = array<i32>} : memref<128x128xf32, #tpu.memory_space<vmem>>, vector<128x128xf32>,
    %c1_i32_83 = arith.constant 1 : i32
    %79 = arith.addi %0, %c1_i32_83 : i32
    %c0_84 = arith.constant 0 : index
    %80 = arith.index_cast %79 : i32 to index
    %c1_85 = arith.constant 1 : index
    %c0_86 = arith.constant 0 : index
    %81 = vector.load %arg2[%c0_84, %80, %c1_85, %c0_86] : memref<2x9x9x128xbf16, #tpu.memory_space<vmem>>, vector<2x8x8x128xbf16>
    %82 = vector.shape_cast %81 : vector<2x8x8x128xbf16> to vector<128x128xbf16>
    %c8 = arith.constant 8 : index
    %c0_87 = arith.constant 0 : index
    %c0_88 = arith.constant 0 : index
    %83 = vector.load %arg6[%c8, %c0_87, %c0_88] : memref<9x128x128xbf16, #tpu.memory_space<vmem>>, vector<1x128x128xbf16>
    %84 = vector.shape_cast %83 : vector<1x128x128xbf16> to vector<128x128xbf16>
    %cst_89 = arith.constant dense<0.000000e+00> : vector<128x128xf32>
    %85 = tpu.matmul %82, %84, %cst_89 {dimension_numbers = #tpu.dot_dimension_numbers<[1], [0], [0], [1], [0, 0, 1, 1], [], []>} : vector<128x128xbf16>, vector<128x128xbf16>, vector<128x128xf32> -> vector<128x128xf32>
    %c0_90 = arith.constant 0 : index
    %c0_91 = arith.constant 0 : index
    %86 = vector.load %arg10[%c0_90, %c0_91] : memref<128x128xf32, #tpu.memory_space<vmem>>, vector<128x128xf32>
    %87 = arith.addf %86, %85 : vector<128x128xf32>
    %c0_92 = arith.constant 0 : index
    %c0_93 = arith.constant 0 : index
    %88 = vector.load %arg10[%c0_92, %c0_93] : memref<128x128xf32, #tpu.memory_space<vmem>>, vector<128x128xf32>
    tpu.vector_store %arg10[%c0_92, %c0_93], %87 {strides = array<i32>} : memref<128x128xf32, #tpu.memory_space<vmem>>, vector<128x128xf32>,
    %c0_94 = arith.constant 0 : index
    %c0_95 = arith.constant 0 : index
    %89 = vector.load %arg10[%c0_94, %c0_95] : memref<128x128xf32, #tpu.memory_space<vmem>>, vector<128x128xf32>
    %90 = vector.shape_cast %89 : vector<128x128xf32> to vector<1x1x128x128xf32>
    %91 = arith.truncf %90 : vector<1x1x128x128xf32> to vector<1x1x128x128xbf16>
    %c0_96 = arith.constant 0 : index
    %c0_97 = arith.constant 0 : index
    %c0_98 = arith.constant 0 : index
    %c0_99 = arith.constant 0 : index
    %92 = vector.load %arg7[%c0_96, %c0_97, %c0_98, %c0_99] : memref<1x1x128x128xbf16, #tpu.memory_space<vmem>>, vector<1x1x128x128xbf16>
    tpu.vector_store %arg7[%c0_96, %c0_97, %c0_98, %c0_99], %91 {strides = array<i32>} : memref<1x1x128x128xbf16, #tpu.memory_space<vmem>>, vector<1x1x128x128xbf16>,
    %cst_100 = arith.constant dense<0.000000e+00> : vector<128xf32>
    %93 = vector.multi_reduction <add>, %89, %cst_100 [0] : vector<128x128xf32> to vector<128xf32>
    %94 = vector.shape_cast %93 : vector<128xf32> to vector<1x1x1x128xf32>
    %c0_101 = arith.constant 0 : index
    %c0_102 = arith.constant 0 : index
    %c0_103 = arith.constant 0 : index
    %c0_104 = arith.constant 0 : index
    %95 = vector.load %arg8[%c0_101, %c0_102, %c0_103, %c0_104] : memref<1x1x1x128xf32, #tpu.memory_space<vmem>>, vector<1x1x1x128xf32>
    tpu.vector_store %arg8[%c0_101, %c0_102, %c0_103, %c0_104], %94 {strides = array<i32>} : memref<1x1x1x128xf32, #tpu.memory_space<vmem>>, vector<1x1x1x128xf32>,
    %96 = arith.mulf %89, %89 : vector<128x128xf32>
    %cst_105 = arith.constant dense<0.000000e+00> : vector<128xf32>
    %97 = vector.multi_reduction <add>, %96, %cst_105 [0] : vector<128x128xf32> to vector<128xf32>
    %98 = vector.shape_cast %97 : vector<128xf32> to vector<1x1x1x128xf32>
    %c0_106 = arith.constant 0 : index
    %c0_107 = arith.constant 0 : index
    %c0_108 = arith.constant 0 : index
    %c0_109 = arith.constant 0 : index
    %99 = vector.load %arg9[%c0_106, %c0_107, %c0_108, %c0_109] : memref<1x1x1x128xf32, #tpu.memory_space<vmem>>, vector<1x1x1x128xf32>
    tpu.vector_store %arg9[%c0_106, %c0_107, %c0_108, %c0_109], %98 {strides = array<i32>} : memref<1x1x1x128xf32, #tpu.memory_space<vmem>>, vector<1x1x1x128xf32>,
    return
  }
  func.func @transform_0(%arg0: i32, %arg1: i32) -> (i32, i32, i32, i32) {
    %c0_i32 = arith.constant 0 : i32
    %c0_i32_0 = arith.constant 0 : i32
    %c0_i32_1 = arith.constant 0 : i32
    %c0_i32_2 = arith.constant 0 : i32
    return %arg0, %c0_i32, %c0_i32_0, %c0_i32_1 : i32, i32, i32, i32
  }
  func.func @transform_1(%arg0: i32, %arg1: i32) -> (i32, i32, i32, i32) {
    %c0_i32 = arith.constant 0 : i32
    %c0_i32_0 = arith.constant 0 : i32
    %c0_i32_1 = arith.constant 0 : i32
    %c0_i32_2 = arith.constant 0 : i32
    return %arg0, %c0_i32, %c0_i32_0, %c0_i32_1 : i32, i32, i32, i32
  }
  func.func @transform_2(%arg0: i32, %arg1: i32) -> (i32, i32, i32, i32) {
    %c0_i32 = arith.constant 0 : i32
    %c0_i32_0 = arith.constant 0 : i32
    %c0_i32_1 = arith.constant 0 : i32
    %c0_i32_2 = arith.constant 0 : i32
    return %arg0, %c0_i32, %c0_i32_0, %c0_i32_1 : i32, i32, i32, i32
  }
  func.func @transform_3(%arg0: i32, %arg1: i32) -> (i32, i32, i32, i32) {
    %c0_i32 = arith.constant 0 : i32
    %c0_i32_0 = arith.constant 0 : i32
    %c0_i32_1 = arith.constant 0 : i32
    %c0_i32_2 = arith.constant 0 : i32
    return %arg0, %c0_i32, %c0_i32_0, %c0_i32_1 : i32, i32, i32, i32
  }
  func.func @transform_4(%arg0: i32, %arg1: i32) -> (i32, i32, i32) {
    %c0_i32 = arith.constant 0 : i32
    %c0_i32_0 = arith.constant 0 : i32
    %c0_i32_1 = arith.constant 0 : i32
    %c0_i32_2 = arith.constant 0 : i32
    return %c0_i32, %c0_i32_0, %c0_i32_1 : i32, i32, i32
  }
  func.func @transform_5(%arg0: i32, %arg1: i32) -> (i32, i32, i32, i32) {
    %c0_i32 = arith.constant 0 : i32
    %c0_i32_0 = arith.constant 0 : i32
    %c0_i32_1 = arith.constant 0 : i32
    return %arg0, %arg1, %c0_i32, %c0_i32_0 : i32, i32, i32, i32
  }
  func.func @transform_6(%arg0: i32, %arg1: i32) -> (i32, i32, i32, i32) {
    %c0_i32 = arith.constant 0 : i32
    %c0_i32_0 = arith.constant 0 : i32
    %c0_i32_1 = arith.constant 0 : i32
    return %arg0, %arg1, %c0_i32, %c0_i32_0 : i32, i32, i32, i32
  }
  func.func @transform_7(%arg0: i32, %arg1: i32) -> (i32, i32, i32, i32) {
    %c0_i32 = arith.constant 0 : i32
    %c0_i32_0 = arith.constant 0 : i32
    %c0_i32_1 = arith.constant 0 : i32
    return %arg0, %arg1, %c0_i32, %c0_i32_0 : i32, i32, i32, i32
  }
}

module attributes {stable_mosaic.version = 11 : i64} {
  func.func @_gemm_stats_kernel(%arg0: i32, %arg1: memref<128x128xbf16, #tpu.memory_space<vmem>>, %arg2: memref<1x128xf32, #tpu.memory_space<vmem>>, %arg3: memref<1x128xf32, #tpu.memory_space<vmem>>, %arg4: memref<128x128xbf16, #tpu.memory_space<vmem>>, %arg5: memref<128x128xbf16, #tpu.memory_space<vmem>>, %arg6: memref<1x1x128xf32, #tpu.memory_space<vmem>>, %arg7: memref<1x1x128xf32, #tpu.memory_space<vmem>>) attributes {dimension_semantics = [#tpu.dimension_semantics<parallel>], iteration_bounds = array<i64: 1>, scalar_prefetch = 0 : i64, scratch_operands = 0 : i64, tpu.core_type = #tpu.core_type<tc>, window_params = [{transform_indices = @transform_0, window_bounds = array<i64: 128, 128>}, {pipeline_mode = #tpu.pipeline_mode<synchronous>, transform_indices = @transform_1, window_bounds = array<i64: 1, 128>}, {pipeline_mode = #tpu.pipeline_mode<synchronous>, transform_indices = @transform_2, window_bounds = array<i64: 1, 128>}, {pipeline_mode = #tpu.pipeline_mode<synchronous>, transform_indices = @transform_3, window_bounds = array<i64: 128, 128>}, {transform_indices = @transform_4, window_bounds = array<i64: 128, 128>}, {transform_indices = @transform_5, window_bounds = array<i64: 1, 1, 128>}, {transform_indices = @transform_6, window_bounds = array<i64: 1, 1, 128>}]} {
    %c0 = arith.constant 0 : index
    %c0_0 = arith.constant 0 : index
    %0 = vector.load %arg1[%c0, %c0_0] : memref<128x128xbf16, #tpu.memory_space<vmem>>, vector<128x128xbf16>
    %1 = arith.extf %0 : vector<128x128xbf16> to vector<128x128xf32>
    %c0_1 = arith.constant 0 : index
    %c0_2 = arith.constant 0 : index
    %2 = vector.load %arg2[%c0_1, %c0_2] : memref<1x128xf32, #tpu.memory_space<vmem>>, vector<1x128xf32>
    %3 = vector.broadcast %2 : vector<1x128xf32> to vector<128x128xf32>
    %4 = arith.mulf %1, %3 : vector<128x128xf32>
    %c0_3 = arith.constant 0 : index
    %c0_4 = arith.constant 0 : index
    %5 = vector.load %arg3[%c0_3, %c0_4] : memref<1x128xf32, #tpu.memory_space<vmem>>, vector<1x128xf32>
    %6 = vector.broadcast %5 : vector<1x128xf32> to vector<128x128xf32>
    %7 = arith.addf %4, %6 : vector<128x128xf32>
    %cst = arith.constant 0.000000e+00 : f32
    %8 = vector.broadcast %cst : f32 to vector<128x128xf32>
    %9 = arith.maximumf %7, %8 : vector<128x128xf32>
    %10 = arith.truncf %9 : vector<128x128xf32> to vector<128x128xbf16>
    %c0_5 = arith.constant 0 : index
    %c0_6 = arith.constant 0 : index
    %11 = vector.load %arg4[%c0_5, %c0_6] : memref<128x128xbf16, #tpu.memory_space<vmem>>, vector<128x128xbf16>
    %cst_7 = arith.constant dense<0.000000e+00> : vector<128x128xf32>
    %12 = tpu.matmul %10, %11, %cst_7 {dimension_numbers = #tpu.dot_dimension_numbers<[1], [0], [0], [1], [0, 0, 1, 1], [], []>} : vector<128x128xbf16>, vector<128x128xbf16>, vector<128x128xf32> -> vector<128x128xf32>
    %13 = arith.truncf %12 : vector<128x128xf32> to vector<128x128xbf16>
    %c0_8 = arith.constant 0 : index
    %c0_9 = arith.constant 0 : index
    %14 = vector.load %arg5[%c0_8, %c0_9] : memref<128x128xbf16, #tpu.memory_space<vmem>>, vector<128x128xbf16>
    tpu.vector_store %arg5[%c0_8, %c0_9], %13 {strides = array<i32>} : memref<128x128xbf16, #tpu.memory_space<vmem>>, vector<128x128xbf16>,
    %cst_10 = arith.constant dense<0.000000e+00> : vector<128xf32>
    %15 = vector.multi_reduction <add>, %12, %cst_10 [0] : vector<128x128xf32> to vector<128xf32>
    %16 = vector.shape_cast %15 : vector<128xf32> to vector<1x1x128xf32>
    %c0_11 = arith.constant 0 : index
    %c0_12 = arith.constant 0 : index
    %c0_13 = arith.constant 0 : index
    %17 = vector.load %arg6[%c0_11, %c0_12, %c0_13] : memref<1x1x128xf32, #tpu.memory_space<vmem>>, vector<1x1x128xf32>
    tpu.vector_store %arg6[%c0_11, %c0_12, %c0_13], %16 {strides = array<i32>} : memref<1x1x128xf32, #tpu.memory_space<vmem>>, vector<1x1x128xf32>,
    %18 = arith.mulf %12, %12 : vector<128x128xf32>
    %cst_14 = arith.constant dense<0.000000e+00> : vector<128xf32>
    %19 = vector.multi_reduction <add>, %18, %cst_14 [0] : vector<128x128xf32> to vector<128xf32>
    %20 = vector.shape_cast %19 : vector<128xf32> to vector<1x1x128xf32>
    %c0_15 = arith.constant 0 : index
    %c0_16 = arith.constant 0 : index
    %c0_17 = arith.constant 0 : index
    %21 = vector.load %arg7[%c0_15, %c0_16, %c0_17] : memref<1x1x128xf32, #tpu.memory_space<vmem>>, vector<1x1x128xf32>
    tpu.vector_store %arg7[%c0_15, %c0_16, %c0_17], %20 {strides = array<i32>} : memref<1x1x128xf32, #tpu.memory_space<vmem>>, vector<1x1x128xf32>,
    return
  }
  func.func @transform_0(%arg0: i32) -> (i32, i32) {
    %c0_i32 = arith.constant 0 : i32
    %c0_i32_0 = arith.constant 0 : i32
    return %arg0, %c0_i32 : i32, i32
  }
  func.func @transform_1(%arg0: i32) -> (i32, i32) {
    %c0_i32 = arith.constant 0 : i32
    %c0_i32_0 = arith.constant 0 : i32
    %c0_i32_1 = arith.constant 0 : i32
    return %c0_i32, %c0_i32_0 : i32, i32
  }
  func.func @transform_2(%arg0: i32) -> (i32, i32) {
    %c0_i32 = arith.constant 0 : i32
    %c0_i32_0 = arith.constant 0 : i32
    %c0_i32_1 = arith.constant 0 : i32
    return %c0_i32, %c0_i32_0 : i32, i32
  }
  func.func @transform_3(%arg0: i32) -> (i32, i32) {
    %c0_i32 = arith.constant 0 : i32
    %c0_i32_0 = arith.constant 0 : i32
    %c0_i32_1 = arith.constant 0 : i32
    return %c0_i32, %c0_i32_0 : i32, i32
  }
  func.func @transform_4(%arg0: i32) -> (i32, i32) {
    %c0_i32 = arith.constant 0 : i32
    %c0_i32_0 = arith.constant 0 : i32
    return %arg0, %c0_i32 : i32, i32
  }
  func.func @transform_5(%arg0: i32) -> (i32, i32, i32) {
    %c0_i32 = arith.constant 0 : i32
    %c0_i32_0 = arith.constant 0 : i32
    %c0_i32_1 = arith.constant 0 : i32
    return %arg0, %c0_i32, %c0_i32_0 : i32, i32, i32
  }
  func.func @transform_6(%arg0: i32) -> (i32, i32, i32) {
    %c0_i32 = arith.constant 0 : i32
    %c0_i32_0 = arith.constant 0 : i32
    %c0_i32_1 = arith.constant 0 : i32
    return %arg0, %c0_i32, %c0_i32_0 : i32, i32, i32
  }
}

module attributes {stable_mosaic.version = 11 : i64} {
  func.func @_bn_res_relu_kernel(%arg0: i32, %arg1: memref<128x128xbf16, #tpu.memory_space<vmem>>, %arg2: memref<1x128xf32, #tpu.memory_space<vmem>>, %arg3: memref<1x128xf32, #tpu.memory_space<vmem>>, %arg4: memref<128x128xbf16, #tpu.memory_space<vmem>>, %arg5: memref<1x128xf32, #tpu.memory_space<vmem>>, %arg6: memref<1x128xf32, #tpu.memory_space<vmem>>, %arg7: memref<128x128xbf16, #tpu.memory_space<vmem>>) attributes {dimension_semantics = [#tpu.dimension_semantics<parallel>], iteration_bounds = array<i64: 1>, scalar_prefetch = 0 : i64, scratch_operands = 0 : i64, tpu.core_type = #tpu.core_type<tc>, window_params = [{transform_indices = @transform_0, window_bounds = array<i64: 128, 128>}, {pipeline_mode = #tpu.pipeline_mode<synchronous>, transform_indices = @transform_1, window_bounds = array<i64: 1, 128>}, {pipeline_mode = #tpu.pipeline_mode<synchronous>, transform_indices = @transform_2, window_bounds = array<i64: 1, 128>}, {transform_indices = @transform_3, window_bounds = array<i64: 128, 128>}, {pipeline_mode = #tpu.pipeline_mode<synchronous>, transform_indices = @transform_4, window_bounds = array<i64: 1, 128>}, {pipeline_mode = #tpu.pipeline_mode<synchronous>, transform_indices = @transform_5, window_bounds = array<i64: 1, 128>}, {transform_indices = @transform_6, window_bounds = array<i64: 128, 128>}]} {
    %c0 = arith.constant 0 : index
    %c0_0 = arith.constant 0 : index
    %0 = vector.load %arg1[%c0, %c0_0] : memref<128x128xbf16, #tpu.memory_space<vmem>>, vector<128x128xbf16>
    %1 = arith.extf %0 : vector<128x128xbf16> to vector<128x128xf32>
    %c0_1 = arith.constant 0 : index
    %c0_2 = arith.constant 0 : index
    %2 = vector.load %arg4[%c0_1, %c0_2] : memref<128x128xbf16, #tpu.memory_space<vmem>>, vector<128x128xbf16>
    %3 = arith.extf %2 : vector<128x128xbf16> to vector<128x128xf32>
    %c0_3 = arith.constant 0 : index
    %c0_4 = arith.constant 0 : index
    %4 = vector.load %arg2[%c0_3, %c0_4] : memref<1x128xf32, #tpu.memory_space<vmem>>, vector<1x128xf32>
    %5 = vector.broadcast %4 : vector<1x128xf32> to vector<128x128xf32>
    %6 = arith.mulf %1, %5 : vector<128x128xf32>
    %c0_5 = arith.constant 0 : index
    %c0_6 = arith.constant 0 : index
    %7 = vector.load %arg3[%c0_5, %c0_6] : memref<1x128xf32, #tpu.memory_space<vmem>>, vector<1x128xf32>
    %8 = vector.broadcast %7 : vector<1x128xf32> to vector<128x128xf32>
    %9 = arith.addf %6, %8 : vector<128x128xf32>
    %c0_7 = arith.constant 0 : index
    %c0_8 = arith.constant 0 : index
    %10 = vector.load %arg5[%c0_7, %c0_8] : memref<1x128xf32, #tpu.memory_space<vmem>>, vector<1x128xf32>
    %11 = vector.broadcast %10 : vector<1x128xf32> to vector<128x128xf32>
    %12 = arith.mulf %3, %11 : vector<128x128xf32>
    %13 = arith.addf %9, %12 : vector<128x128xf32>
    %c0_9 = arith.constant 0 : index
    %c0_10 = arith.constant 0 : index
    %14 = vector.load %arg6[%c0_9, %c0_10] : memref<1x128xf32, #tpu.memory_space<vmem>>, vector<1x128xf32>
    %15 = vector.broadcast %14 : vector<1x128xf32> to vector<128x128xf32>
    %16 = arith.addf %13, %15 : vector<128x128xf32>
    %cst = arith.constant 0.000000e+00 : f32
    %17 = vector.broadcast %cst : f32 to vector<128x128xf32>
    %18 = arith.maximumf %16, %17 : vector<128x128xf32>
    %19 = arith.truncf %18 : vector<128x128xf32> to vector<128x128xbf16>
    %c0_11 = arith.constant 0 : index
    %c0_12 = arith.constant 0 : index
    %20 = vector.load %arg7[%c0_11, %c0_12] : memref<128x128xbf16, #tpu.memory_space<vmem>>, vector<128x128xbf16>
    tpu.vector_store %arg7[%c0_11, %c0_12], %19 {strides = array<i32>} : memref<128x128xbf16, #tpu.memory_space<vmem>>, vector<128x128xbf16>,
    return
  }
  func.func @transform_0(%arg0: i32) -> (i32, i32) {
    %c0_i32 = arith.constant 0 : i32
    %c0_i32_0 = arith.constant 0 : i32
    return %arg0, %c0_i32 : i32, i32
  }
  func.func @transform_1(%arg0: i32) -> (i32, i32) {
    %c0_i32 = arith.constant 0 : i32
    %c0_i32_0 = arith.constant 0 : i32
    %c0_i32_1 = arith.constant 0 : i32
    return %c0_i32, %c0_i32_0 : i32, i32
  }
  func.func @transform_2(%arg0: i32) -> (i32, i32) {
    %c0_i32 = arith.constant 0 : i32
    %c0_i32_0 = arith.constant 0 : i32
    %c0_i32_1 = arith.constant 0 : i32
    return %c0_i32, %c0_i32_0 : i32, i32
  }
  func.func @transform_3(%arg0: i32) -> (i32, i32) {
    %c0_i32 = arith.constant 0 : i32
    %c0_i32_0 = arith.constant 0 : i32
    return %arg0, %c0_i32 : i32, i32
  }
  func.func @transform_4(%arg0: i32) -> (i32, i32) {
    %c0_i32 = arith.constant 0 : i32
    %c0_i32_0 = arith.constant 0 : i32
    %c0_i32_1 = arith.constant 0 : i32
    return %c0_i32, %c0_i32_0 : i32, i32
  }
  func.func @transform_5(%arg0: i32) -> (i32, i32) {
    %c0_i32 = arith.constant 0 : i32
    %c0_i32_0 = arith.constant 0 : i32
    %c0_i32_1 = arith.constant 0 : i32
    return %c0_i32, %c0_i32_0 : i32, i32
  }
  func.func @transform_6(%arg0: i32) -> (i32, i32) {
    %c0_i32 = arith.constant 0 : i32
    %c0_i32_0 = arith.constant 0 : i32
    return %arg0, %c0_i32 : i32, i32
  }
}

module attributes {stable_mosaic.version = 11 : i64} {
  func.func @_gemm_stats_kernel(%arg0: i32, %arg1: memref<128x128xbf16, #tpu.memory_space<vmem>>, %arg2: memref<128x128xbf16, #tpu.memory_space<vmem>>, %arg3: memref<128x128xbf16, #tpu.memory_space<vmem>>, %arg4: memref<1x1x128xf32, #tpu.memory_space<vmem>>, %arg5: memref<1x1x128xf32, #tpu.memory_space<vmem>>) attributes {dimension_semantics = [#tpu.dimension_semantics<parallel>], iteration_bounds = array<i64: 1>, scalar_prefetch = 0 : i64, scratch_operands = 0 : i64, tpu.core_type = #tpu.core_type<tc>, window_params = [{transform_indices = @transform_0, window_bounds = array<i64: 128, 128>}, {pipeline_mode = #tpu.pipeline_mode<synchronous>, transform_indices = @transform_1, window_bounds = array<i64: 128, 128>}, {transform_indices = @transform_2, window_bounds = array<i64: 128, 128>}, {transform_indices = @transform_3, window_bounds = array<i64: 1, 1, 128>}, {transform_indices = @transform_4, window_bounds = array<i64: 1, 1, 128>}]} {
    %c0 = arith.constant 0 : index
    %c0_0 = arith.constant 0 : index
    %0 = vector.load %arg1[%c0, %c0_0] : memref<128x128xbf16, #tpu.memory_space<vmem>>, vector<128x128xbf16>
    %c0_1 = arith.constant 0 : index
    %c0_2 = arith.constant 0 : index
    %1 = vector.load %arg2[%c0_1, %c0_2] : memref<128x128xbf16, #tpu.memory_space<vmem>>, vector<128x128xbf16>
    %cst = arith.constant dense<0.000000e+00> : vector<128x128xf32>
    %2 = tpu.matmul %0, %1, %cst {dimension_numbers = #tpu.dot_dimension_numbers<[1], [0], [0], [1], [0, 0, 1, 1], [], []>} : vector<128x128xbf16>, vector<128x128xbf16>, vector<128x128xf32> -> vector<128x128xf32>
    %3 = arith.truncf %2 : vector<128x128xf32> to vector<128x128xbf16>
    %c0_3 = arith.constant 0 : index
    %c0_4 = arith.constant 0 : index
    %4 = vector.load %arg3[%c0_3, %c0_4] : memref<128x128xbf16, #tpu.memory_space<vmem>>, vector<128x128xbf16>
    tpu.vector_store %arg3[%c0_3, %c0_4], %3 {strides = array<i32>} : memref<128x128xbf16, #tpu.memory_space<vmem>>, vector<128x128xbf16>,
    %cst_5 = arith.constant dense<0.000000e+00> : vector<128xf32>
    %5 = vector.multi_reduction <add>, %2, %cst_5 [0] : vector<128x128xf32> to vector<128xf32>
    %6 = vector.shape_cast %5 : vector<128xf32> to vector<1x1x128xf32>
    %c0_6 = arith.constant 0 : index
    %c0_7 = arith.constant 0 : index
    %c0_8 = arith.constant 0 : index
    %7 = vector.load %arg4[%c0_6, %c0_7, %c0_8] : memref<1x1x128xf32, #tpu.memory_space<vmem>>, vector<1x1x128xf32>
    tpu.vector_store %arg4[%c0_6, %c0_7, %c0_8], %6 {strides = array<i32>} : memref<1x1x128xf32, #tpu.memory_space<vmem>>, vector<1x1x128xf32>,
    %8 = arith.mulf %2, %2 : vector<128x128xf32>
    %cst_9 = arith.constant dense<0.000000e+00> : vector<128xf32>
    %9 = vector.multi_reduction <add>, %8, %cst_9 [0] : vector<128x128xf32> to vector<128xf32>
    %10 = vector.shape_cast %9 : vector<128xf32> to vector<1x1x128xf32>
    %c0_10 = arith.constant 0 : index
    %c0_11 = arith.constant 0 : index
    %c0_12 = arith.constant 0 : index
    %11 = vector.load %arg5[%c0_10, %c0_11, %c0_12] : memref<1x1x128xf32, #tpu.memory_space<vmem>>, vector<1x1x128xf32>
    tpu.vector_store %arg5[%c0_10, %c0_11, %c0_12], %10 {strides = array<i32>} : memref<1x1x128xf32, #tpu.memory_space<vmem>>, vector<1x1x128xf32>,
    return
  }
  func.func @transform_0(%arg0: i32) -> (i32, i32) {
    %c0_i32 = arith.constant 0 : i32
    %c0_i32_0 = arith.constant 0 : i32
    return %arg0, %c0_i32 : i32, i32
  }
  func.func @transform_1(%arg0: i32) -> (i32, i32) {
    %c0_i32 = arith.constant 0 : i32
    %c0_i32_0 = arith.constant 0 : i32
    %c0_i32_1 = arith.constant 0 : i32
    return %c0_i32, %c0_i32_0 : i32, i32
  }
  func.func @transform_2(%arg0: i32) -> (i32, i32) {
    %c0_i32 = arith.constant 0 : i32
    %c0_i32_0 = arith.constant 0 : i32
    return %arg0, %c0_i32 : i32, i32
  }
  func.func @transform_3(%arg0: i32) -> (i32, i32, i32) {
    %c0_i32 = arith.constant 0 : i32
    %c0_i32_0 = arith.constant 0 : i32
    %c0_i32_1 = arith.constant 0 : i32
    return %arg0, %c0_i32, %c0_i32_0 : i32, i32, i32
  }
  func.func @transform_4(%arg0: i32) -> (i32, i32, i32) {
    %c0_i32 = arith.constant 0 : i32
    %c0_i32_0 = arith.constant 0 : i32
    %c0_i32_1 = arith.constant 0 : i32
    return %arg0, %c0_i32, %c0_i32_0 : i32, i32, i32
  }
}

module attributes {stable_mosaic.version = 11 : i64} {
  func.func @_conv3x3_stats_kernel(%arg0: i32, %arg1: i32, %arg2: memref<2x10x10x128xbf16, #tpu.memory_space<vmem>>, %arg3: memref<9x128x128xbf16, #tpu.memory_space<vmem>>, %arg4: memref<1x1x128x128xbf16, #tpu.memory_space<vmem>>, %arg5: memref<1x1x1x128xf32, #tpu.memory_space<vmem>>, %arg6: memref<1x1x1x128xf32, #tpu.memory_space<vmem>>, %arg7: memref<128x128xf32, #tpu.memory_space<vmem>>) attributes {dimension_semantics = [#tpu.dimension_semantics<parallel>, #tpu.dimension_semantics<parallel>], iteration_bounds = array<i64: 1, 1>, scalar_prefetch = 0 : i64, scratch_operands = 1 : i64, tpu.core_type = #tpu.core_type<tc>, window_params = [{transform_indices = @transform_0, window_bounds = array<i64: 2, 10, 10, 128>}, {pipeline_mode = #tpu.pipeline_mode<synchronous>, transform_indices = @transform_1, window_bounds = array<i64: 9, 128, 128>}, {transform_indices = @transform_2, window_bounds = array<i64: 1, 1, 128, 128>}, {transform_indices = @transform_3, window_bounds = array<i64: 1, 1, 1, 128>}, {transform_indices = @transform_4, window_bounds = array<i64: 1, 1, 1, 128>}]} {
    %c8_i32 = arith.constant 8 : i32
    %0 = arith.muli %arg1, %c8_i32 : i32
    %c0_i32 = arith.constant 0 : i32
    %1 = arith.addi %0, %c0_i32 : i32
    %c0 = arith.constant 0 : index
    %2 = arith.index_cast %1 : i32 to index
    %c0_0 = arith.constant 0 : index
    %c0_1 = arith.constant 0 : index
    %3 = vector.load %arg2[%c0, %2, %c0_0, %c0_1] : memref<2x10x10x128xbf16, #tpu.memory_space<vmem>>, vector<2x8x8x128xbf16>
    %4 = vector.shape_cast %3 : vector<2x8x8x128xbf16> to vector<128x128xbf16>
    %c0_2 = arith.constant 0 : index
    %c0_3 = arith.constant 0 : index
    %c0_4 = arith.constant 0 : index
    %5 = vector.load %arg3[%c0_2, %c0_3, %c0_4] : memref<9x128x128xbf16, #tpu.memory_space<vmem>>, vector<1x128x128xbf16>
    %6 = vector.shape_cast %5 : vector<1x128x128xbf16> to vector<128x128xbf16>
    %cst = arith.constant dense<0.000000e+00> : vector<128x128xf32>
    %7 = tpu.matmul %4, %6, %cst {dimension_numbers = #tpu.dot_dimension_numbers<[1], [0], [0], [1], [0, 0, 1, 1], [], []>} : vector<128x128xbf16>, vector<128x128xbf16>, vector<128x128xf32> -> vector<128x128xf32>
    %c0_5 = arith.constant 0 : index
    %c0_6 = arith.constant 0 : index
    %8 = vector.load %arg7[%c0_5, %c0_6] : memref<128x128xf32, #tpu.memory_space<vmem>>, vector<128x128xf32>
    tpu.vector_store %arg7[%c0_5, %c0_6], %7 {strides = array<i32>} : memref<128x128xf32, #tpu.memory_space<vmem>>, vector<128x128xf32>,
    %c0_i32_7 = arith.constant 0 : i32
    %9 = arith.addi %0, %c0_i32_7 : i32
    %c0_8 = arith.constant 0 : index
    %10 = arith.index_cast %9 : i32 to index
    %c1 = arith.constant 1 : index
    %c0_9 = arith.constant 0 : index
    %11 = vector.load %arg2[%c0_8, %10, %c1, %c0_9] : memref<2x10x10x128xbf16, #tpu.memory_space<vmem>>, vector<2x8x8x128xbf16>
    %12 = vector.shape_cast %11 : vector<2x8x8x128xbf16> to vector<128x128xbf16>
    %c1_10 = arith.constant 1 : index
    %c0_11 = arith.constant 0 : index
    %c0_12 = arith.constant 0 : index
    %13 = vector.load %arg3[%c1_10, %c0_11, %c0_12] : memref<9x128x128xbf16, #tpu.memory_space<vmem>>, vector<1x128x128xbf16>
    %14 = vector.shape_cast %13 : vector<1x128x128xbf16> to vector<128x128xbf16>
    %cst_13 = arith.constant dense<0.000000e+00> : vector<128x128xf32>
    %15 = tpu.matmul %12, %14, %cst_13 {dimension_numbers = #tpu.dot_dimension_numbers<[1], [0], [0], [1], [0, 0, 1, 1], [], []>} : vector<128x128xbf16>, vector<128x128xbf16>, vector<128x128xf32> -> vector<128x128xf32>
    %c0_14 = arith.constant 0 : index
    %c0_15 = arith.constant 0 : index
    %16 = vector.load %arg7[%c0_14, %c0_15] : memref<128x128xf32, #tpu.memory_space<vmem>>, vector<128x128xf32>
    %17 = arith.addf %16, %15 : vector<128x128xf32>
    %c0_16 = arith.constant 0 : index
    %c0_17 = arith.constant 0 : index
    %18 = vector.load %arg7[%c0_16, %c0_17] : memref<128x128xf32, #tpu.memory_space<vmem>>, vector<128x128xf32>
    tpu.vector_store %arg7[%c0_16, %c0_17], %17 {strides = array<i32>} : memref<128x128xf32, #tpu.memory_space<vmem>>, vector<128x128xf32>,
    %c0_i32_18 = arith.constant 0 : i32
    %19 = arith.addi %0, %c0_i32_18 : i32
    %c0_19 = arith.constant 0 : index
    %20 = arith.index_cast %19 : i32 to index
    %c2 = arith.constant 2 : index
    %c0_20 = arith.constant 0 : index
    %21 = vector.load %arg2[%c0_19, %20, %c2, %c0_20] : memref<2x10x10x128xbf16, #tpu.memory_space<vmem>>, vector<2x8x8x128xbf16>
    %22 = vector.shape_cast %21 : vector<2x8x8x128xbf16> to vector<128x128xbf16>
    %c2_21 = arith.constant 2 : index
    %c0_22 = arith.constant 0 : index
    %c0_23 = arith.constant 0 : index
    %23 = vector.load %arg3[%c2_21, %c0_22, %c0_23] : memref<9x128x128xbf16, #tpu.memory_space<vmem>>, vector<1x128x128xbf16>
    %24 = vector.shape_cast %23 : vector<1x128x128xbf16> to vector<128x128xbf16>
    %cst_24 = arith.constant dense<0.000000e+00> : vector<128x128xf32>
    %25 = tpu.matmul %22, %24, %cst_24 {dimension_numbers = #tpu.dot_dimension_numbers<[1], [0], [0], [1], [0, 0, 1, 1], [], []>} : vector<128x128xbf16>, vector<128x128xbf16>, vector<128x128xf32> -> vector<128x128xf32>
    %c0_25 = arith.constant 0 : index
    %c0_26 = arith.constant 0 : index
    %26 = vector.load %arg7[%c0_25, %c0_26] : memref<128x128xf32, #tpu.memory_space<vmem>>, vector<128x128xf32>
    %27 = arith.addf %26, %25 : vector<128x128xf32>
    %c0_27 = arith.constant 0 : index
    %c0_28 = arith.constant 0 : index
    %28 = vector.load %arg7[%c0_27, %c0_28] : memref<128x128xf32, #tpu.memory_space<vmem>>, vector<128x128xf32>
    tpu.vector_store %arg7[%c0_27, %c0_28], %27 {strides = array<i32>} : memref<128x128xf32, #tpu.memory_space<vmem>>, vector<128x128xf32>,
    %c1_i32 = arith.constant 1 : i32
    %29 = arith.addi %0, %c1_i32 : i32
    %c0_29 = arith.constant 0 : index
    %30 = arith.index_cast %29 : i32 to index
    %c0_30 = arith.constant 0 : index
    %c0_31 = arith.constant 0 : index
    %31 = vector.load %arg2[%c0_29, %30, %c0_30, %c0_31] : memref<2x10x10x128xbf16, #tpu.memory_space<vmem>>, vector<2x8x8x128xbf16>
    %32 = vector.shape_cast %31 : vector<2x8x8x128xbf16> to vector<128x128xbf16>
    %c3 = arith.constant 3 : index
    %c0_32 = arith.constant 0 : index
    %c0_33 = arith.constant 0 : index
    %33 = vector.load %arg3[%c3, %c0_32, %c0_33] : memref<9x128x128xbf16, #tpu.memory_space<vmem>>, vector<1x128x128xbf16>
    %34 = vector.shape_cast %33 : vector<1x128x128xbf16> to vector<128x128xbf16>
    %cst_34 = arith.constant dense<0.000000e+00> : vector<128x128xf32>
    %35 = tpu.matmul %32, %34, %cst_34 {dimension_numbers = #tpu.dot_dimension_numbers<[1], [0], [0], [1], [0, 0, 1, 1], [], []>} : vector<128x128xbf16>, vector<128x128xbf16>, vector<128x128xf32> -> vector<128x128xf32>
    %c0_35 = arith.constant 0 : index
    %c0_36 = arith.constant 0 : index
    %36 = vector.load %arg7[%c0_35, %c0_36] : memref<128x128xf32, #tpu.memory_space<vmem>>, vector<128x128xf32>
    %37 = arith.addf %36, %35 : vector<128x128xf32>
    %c0_37 = arith.constant 0 : index
    %c0_38 = arith.constant 0 : index
    %38 = vector.load %arg7[%c0_37, %c0_38] : memref<128x128xf32, #tpu.memory_space<vmem>>, vector<128x128xf32>
    tpu.vector_store %arg7[%c0_37, %c0_38], %37 {strides = array<i32>} : memref<128x128xf32, #tpu.memory_space<vmem>>, vector<128x128xf32>,
    %c1_i32_39 = arith.constant 1 : i32
    %39 = arith.addi %0, %c1_i32_39 : i32
    %c0_40 = arith.constant 0 : index
    %40 = arith.index_cast %39 : i32 to index
    %c1_41 = arith.constant 1 : index
    %c0_42 = arith.constant 0 : index
    %41 = vector.load %arg2[%c0_40, %40, %c1_41, %c0_42] : memref<2x10x10x128xbf16, #tpu.memory_space<vmem>>, vector<2x8x8x128xbf16>
    %42 = vector.shape_cast %41 : vector<2x8x8x128xbf16> to vector<128x128xbf16>
    %c4 = arith.constant 4 : index
    %c0_43 = arith.constant 0 : index
    %c0_44 = arith.constant 0 : index
    %43 = vector.load %arg3[%c4, %c0_43, %c0_44] : memref<9x128x128xbf16, #tpu.memory_space<vmem>>, vector<1x128x128xbf16>
    %44 = vector.shape_cast %43 : vector<1x128x128xbf16> to vector<128x128xbf16>
    %cst_45 = arith.constant dense<0.000000e+00> : vector<128x128xf32>
    %45 = tpu.matmul %42, %44, %cst_45 {dimension_numbers = #tpu.dot_dimension_numbers<[1], [0], [0], [1], [0, 0, 1, 1], [], []>} : vector<128x128xbf16>, vector<128x128xbf16>, vector<128x128xf32> -> vector<128x128xf32>
    %c0_46 = arith.constant 0 : index
    %c0_47 = arith.constant 0 : index
    %46 = vector.load %arg7[%c0_46, %c0_47] : memref<128x128xf32, #tpu.memory_space<vmem>>, vector<128x128xf32>
    %47 = arith.addf %46, %45 : vector<128x128xf32>
    %c0_48 = arith.constant 0 : index
    %c0_49 = arith.constant 0 : index
    %48 = vector.load %arg7[%c0_48, %c0_49] : memref<128x128xf32, #tpu.memory_space<vmem>>, vector<128x128xf32>
    tpu.vector_store %arg7[%c0_48, %c0_49], %47 {strides = array<i32>} : memref<128x128xf32, #tpu.memory_space<vmem>>, vector<128x128xf32>,
    %c1_i32_50 = arith.constant 1 : i32
    %49 = arith.addi %0, %c1_i32_50 : i32
    %c0_51 = arith.constant 0 : index
    %50 = arith.index_cast %49 : i32 to index
    %c2_52 = arith.constant 2 : index
    %c0_53 = arith.constant 0 : index
    %51 = vector.load %arg2[%c0_51, %50, %c2_52, %c0_53] : memref<2x10x10x128xbf16, #tpu.memory_space<vmem>>, vector<2x8x8x128xbf16>
    %52 = vector.shape_cast %51 : vector<2x8x8x128xbf16> to vector<128x128xbf16>
    %c5 = arith.constant 5 : index
    %c0_54 = arith.constant 0 : index
    %c0_55 = arith.constant 0 : index
    %53 = vector.load %arg3[%c5, %c0_54, %c0_55] : memref<9x128x128xbf16, #tpu.memory_space<vmem>>, vector<1x128x128xbf16>
    %54 = vector.shape_cast %53 : vector<1x128x128xbf16> to vector<128x128xbf16>
    %cst_56 = arith.constant dense<0.000000e+00> : vector<128x128xf32>
    %55 = tpu.matmul %52, %54, %cst_56 {dimension_numbers = #tpu.dot_dimension_numbers<[1], [0], [0], [1], [0, 0, 1, 1], [], []>} : vector<128x128xbf16>, vector<128x128xbf16>, vector<128x128xf32> -> vector<128x128xf32>
    %c0_57 = arith.constant 0 : index
    %c0_58 = arith.constant 0 : index
    %56 = vector.load %arg7[%c0_57, %c0_58] : memref<128x128xf32, #tpu.memory_space<vmem>>, vector<128x128xf32>
    %57 = arith.addf %56, %55 : vector<128x128xf32>
    %c0_59 = arith.constant 0 : index
    %c0_60 = arith.constant 0 : index
    %58 = vector.load %arg7[%c0_59, %c0_60] : memref<128x128xf32, #tpu.memory_space<vmem>>, vector<128x128xf32>
    tpu.vector_store %arg7[%c0_59, %c0_60], %57 {strides = array<i32>} : memref<128x128xf32, #tpu.memory_space<vmem>>, vector<128x128xf32>,
    %c2_i32 = arith.constant 2 : i32
    %59 = arith.addi %0, %c2_i32 : i32
    %c0_61 = arith.constant 0 : index
    %60 = arith.index_cast %59 : i32 to index
    %c0_62 = arith.constant 0 : index
    %c0_63 = arith.constant 0 : index
    %61 = vector.load %arg2[%c0_61, %60, %c0_62, %c0_63] : memref<2x10x10x128xbf16, #tpu.memory_space<vmem>>, vector<2x8x8x128xbf16>
    %62 = vector.shape_cast %61 : vector<2x8x8x128xbf16> to vector<128x128xbf16>
    %c6 = arith.constant 6 : index
    %c0_64 = arith.constant 0 : index
    %c0_65 = arith.constant 0 : index
    %63 = vector.load %arg3[%c6, %c0_64, %c0_65] : memref<9x128x128xbf16, #tpu.memory_space<vmem>>, vector<1x128x128xbf16>
    %64 = vector.shape_cast %63 : vector<1x128x128xbf16> to vector<128x128xbf16>
    %cst_66 = arith.constant dense<0.000000e+00> : vector<128x128xf32>
    %65 = tpu.matmul %62, %64, %cst_66 {dimension_numbers = #tpu.dot_dimension_numbers<[1], [0], [0], [1], [0, 0, 1, 1], [], []>} : vector<128x128xbf16>, vector<128x128xbf16>, vector<128x128xf32> -> vector<128x128xf32>
    %c0_67 = arith.constant 0 : index
    %c0_68 = arith.constant 0 : index
    %66 = vector.load %arg7[%c0_67, %c0_68] : memref<128x128xf32, #tpu.memory_space<vmem>>, vector<128x128xf32>
    %67 = arith.addf %66, %65 : vector<128x128xf32>
    %c0_69 = arith.constant 0 : index
    %c0_70 = arith.constant 0 : index
    %68 = vector.load %arg7[%c0_69, %c0_70] : memref<128x128xf32, #tpu.memory_space<vmem>>, vector<128x128xf32>
    tpu.vector_store %arg7[%c0_69, %c0_70], %67 {strides = array<i32>} : memref<128x128xf32, #tpu.memory_space<vmem>>, vector<128x128xf32>,
    %c2_i32_71 = arith.constant 2 : i32
    %69 = arith.addi %0, %c2_i32_71 : i32
    %c0_72 = arith.constant 0 : index
    %70 = arith.index_cast %69 : i32 to index
    %c1_73 = arith.constant 1 : index
    %c0_74 = arith.constant 0 : index
    %71 = vector.load %arg2[%c0_72, %70, %c1_73, %c0_74] : memref<2x10x10x128xbf16, #tpu.memory_space<vmem>>, vector<2x8x8x128xbf16>
    %72 = vector.shape_cast %71 : vector<2x8x8x128xbf16> to vector<128x128xbf16>
    %c7 = arith.constant 7 : index
    %c0_75 = arith.constant 0 : index
    %c0_76 = arith.constant 0 : index
    %73 = vector.load %arg3[%c7, %c0_75, %c0_76] : memref<9x128x128xbf16, #tpu.memory_space<vmem>>, vector<1x128x128xbf16>
    %74 = vector.shape_cast %73 : vector<1x128x128xbf16> to vector<128x128xbf16>
    %cst_77 = arith.constant dense<0.000000e+00> : vector<128x128xf32>
    %75 = tpu.matmul %72, %74, %cst_77 {dimension_numbers = #tpu.dot_dimension_numbers<[1], [0], [0], [1], [0, 0, 1, 1], [], []>} : vector<128x128xbf16>, vector<128x128xbf16>, vector<128x128xf32> -> vector<128x128xf32>
    %c0_78 = arith.constant 0 : index
    %c0_79 = arith.constant 0 : index
    %76 = vector.load %arg7[%c0_78, %c0_79] : memref<128x128xf32, #tpu.memory_space<vmem>>, vector<128x128xf32>
    %77 = arith.addf %76, %75 : vector<128x128xf32>
    %c0_80 = arith.constant 0 : index
    %c0_81 = arith.constant 0 : index
    %78 = vector.load %arg7[%c0_80, %c0_81] : memref<128x128xf32, #tpu.memory_space<vmem>>, vector<128x128xf32>
    tpu.vector_store %arg7[%c0_80, %c0_81], %77 {strides = array<i32>} : memref<128x128xf32, #tpu.memory_space<vmem>>, vector<128x128xf32>,
    %c2_i32_82 = arith.constant 2 : i32
    %79 = arith.addi %0, %c2_i32_82 : i32
    %c0_83 = arith.constant 0 : index
    %80 = arith.index_cast %79 : i32 to index
    %c2_84 = arith.constant 2 : index
    %c0_85 = arith.constant 0 : index
    %81 = vector.load %arg2[%c0_83, %80, %c2_84, %c0_85] : memref<2x10x10x128xbf16, #tpu.memory_space<vmem>>, vector<2x8x8x128xbf16>
    %82 = vector.shape_cast %81 : vector<2x8x8x128xbf16> to vector<128x128xbf16>
    %c8 = arith.constant 8 : index
    %c0_86 = arith.constant 0 : index
    %c0_87 = arith.constant 0 : index
    %83 = vector.load %arg3[%c8, %c0_86, %c0_87] : memref<9x128x128xbf16, #tpu.memory_space<vmem>>, vector<1x128x128xbf16>
    %84 = vector.shape_cast %83 : vector<1x128x128xbf16> to vector<128x128xbf16>
    %cst_88 = arith.constant dense<0.000000e+00> : vector<128x128xf32>
    %85 = tpu.matmul %82, %84, %cst_88 {dimension_numbers = #tpu.dot_dimension_numbers<[1], [0], [0], [1], [0, 0, 1, 1], [], []>} : vector<128x128xbf16>, vector<128x128xbf16>, vector<128x128xf32> -> vector<128x128xf32>
    %c0_89 = arith.constant 0 : index
    %c0_90 = arith.constant 0 : index
    %86 = vector.load %arg7[%c0_89, %c0_90] : memref<128x128xf32, #tpu.memory_space<vmem>>, vector<128x128xf32>
    %87 = arith.addf %86, %85 : vector<128x128xf32>
    %c0_91 = arith.constant 0 : index
    %c0_92 = arith.constant 0 : index
    %88 = vector.load %arg7[%c0_91, %c0_92] : memref<128x128xf32, #tpu.memory_space<vmem>>, vector<128x128xf32>
    tpu.vector_store %arg7[%c0_91, %c0_92], %87 {strides = array<i32>} : memref<128x128xf32, #tpu.memory_space<vmem>>, vector<128x128xf32>,
    %c0_93 = arith.constant 0 : index
    %c0_94 = arith.constant 0 : index
    %89 = vector.load %arg7[%c0_93, %c0_94] : memref<128x128xf32, #tpu.memory_space<vmem>>, vector<128x128xf32>
    %90 = vector.shape_cast %89 : vector<128x128xf32> to vector<1x1x128x128xf32>
    %91 = arith.truncf %90 : vector<1x1x128x128xf32> to vector<1x1x128x128xbf16>
    %c0_95 = arith.constant 0 : index
    %c0_96 = arith.constant 0 : index
    %c0_97 = arith.constant 0 : index
    %c0_98 = arith.constant 0 : index
    %92 = vector.load %arg4[%c0_95, %c0_96, %c0_97, %c0_98] : memref<1x1x128x128xbf16, #tpu.memory_space<vmem>>, vector<1x1x128x128xbf16>
    tpu.vector_store %arg4[%c0_95, %c0_96, %c0_97, %c0_98], %91 {strides = array<i32>} : memref<1x1x128x128xbf16, #tpu.memory_space<vmem>>, vector<1x1x128x128xbf16>,
    %cst_99 = arith.constant dense<0.000000e+00> : vector<128xf32>
    %93 = vector.multi_reduction <add>, %89, %cst_99 [0] : vector<128x128xf32> to vector<128xf32>
    %94 = vector.shape_cast %93 : vector<128xf32> to vector<1x1x1x128xf32>
    %c0_100 = arith.constant 0 : index
    %c0_101 = arith.constant 0 : index
    %c0_102 = arith.constant 0 : index
    %c0_103 = arith.constant 0 : index
    %95 = vector.load %arg5[%c0_100, %c0_101, %c0_102, %c0_103] : memref<1x1x1x128xf32, #tpu.memory_space<vmem>>, vector<1x1x1x128xf32>
    tpu.vector_store %arg5[%c0_100, %c0_101, %c0_102, %c0_103], %94 {strides = array<i32>} : memref<1x1x1x128xf32, #tpu.memory_space<vmem>>, vector<1x1x1x128xf32>,
    %96 = arith.mulf %89, %89 : vector<128x128xf32>
    %cst_104 = arith.constant dense<0.000000e+00> : vector<128xf32>
    %97 = vector.multi_reduction <add>, %96, %cst_104 [0] : vector<128x128xf32> to vector<128xf32>
    %98 = vector.shape_cast %97 : vector<128xf32> to vector<1x1x1x128xf32>
    %c0_105 = arith.constant 0 : index
    %c0_106 = arith.constant 0 : index
    %c0_107 = arith.constant 0 : index
    %c0_108 = arith.constant 0 : index
    %99 = vector.load %arg6[%c0_105, %c0_106, %c0_107, %c0_108] : memref<1x1x1x128xf32, #tpu.memory_space<vmem>>, vector<1x1x1x128xf32>
    tpu.vector_store %arg6[%c0_105, %c0_106, %c0_107, %c0_108], %98 {strides = array<i32>} : memref<1x1x1x128xf32, #tpu.memory_space<vmem>>, vector<1x1x1x128xf32>,
    return
  }
  func.func @transform_0(%arg0: i32, %arg1: i32) -> (i32, i32, i32, i32) {
    %c0_i32 = arith.constant 0 : i32
    %c0_i32_0 = arith.constant 0 : i32
    %c0_i32_1 = arith.constant 0 : i32
    %c0_i32_2 = arith.constant 0 : i32
    return %arg0, %c0_i32, %c0_i32_0, %c0_i32_1 : i32, i32, i32, i32
  }
  func.func @transform_1(%arg0: i32, %arg1: i32) -> (i32, i32, i32) {
    %c0_i32 = arith.constant 0 : i32
    %c0_i32_0 = arith.constant 0 : i32
    %c0_i32_1 = arith.constant 0 : i32
    %c0_i32_2 = arith.constant 0 : i32
    return %c0_i32, %c0_i32_0, %c0_i32_1 : i32, i32, i32
  }
  func.func @transform_2(%arg0: i32, %arg1: i32) -> (i32, i32, i32, i32) {
    %c0_i32 = arith.constant 0 : i32
    %c0_i32_0 = arith.constant 0 : i32
    %c0_i32_1 = arith.constant 0 : i32
    return %arg0, %arg1, %c0_i32, %c0_i32_0 : i32, i32, i32, i32
  }
  func.func @transform_3(%arg0: i32, %arg1: i32) -> (i32, i32, i32, i32) {
    %c0_i32 = arith.constant 0 : i32
    %c0_i32_0 = arith.constant 0 : i32
    %c0_i32_1 = arith.constant 0 : i32
    return %arg0, %arg1, %c0_i32, %c0_i32_0 : i32, i32, i32, i32
  }
  func.func @transform_4(%arg0: i32, %arg1: i32) -> (i32, i32, i32, i32) {
    %c0_i32 = arith.constant 0 : i32
    %c0_i32_0 = arith.constant 0 : i32
    %c0_i32_1 = arith.constant 0 : i32
    return %arg0, %arg1, %c0_i32, %c0_i32_0 : i32, i32, i32, i32
  }
}

module attributes {stable_mosaic.version = 11 : i64} {
  func.func @_bn_idres_relu_kernel(%arg0: i32, %arg1: memref<128x128xbf16, #tpu.memory_space<vmem>>, %arg2: memref<1x128xf32, #tpu.memory_space<vmem>>, %arg3: memref<1x128xf32, #tpu.memory_space<vmem>>, %arg4: memref<128x128xbf16, #tpu.memory_space<vmem>>, %arg5: memref<128x128xbf16, #tpu.memory_space<vmem>>) attributes {dimension_semantics = [#tpu.dimension_semantics<parallel>], iteration_bounds = array<i64: 1>, scalar_prefetch = 0 : i64, scratch_operands = 0 : i64, tpu.core_type = #tpu.core_type<tc>, window_params = [{transform_indices = @transform_0, window_bounds = array<i64: 128, 128>}, {pipeline_mode = #tpu.pipeline_mode<synchronous>, transform_indices = @transform_1, window_bounds = array<i64: 1, 128>}, {pipeline_mode = #tpu.pipeline_mode<synchronous>, transform_indices = @transform_2, window_bounds = array<i64: 1, 128>}, {transform_indices = @transform_3, window_bounds = array<i64: 128, 128>}, {transform_indices = @transform_4, window_bounds = array<i64: 128, 128>}]} {
    %c0 = arith.constant 0 : index
    %c0_0 = arith.constant 0 : index
    %0 = vector.load %arg1[%c0, %c0_0] : memref<128x128xbf16, #tpu.memory_space<vmem>>, vector<128x128xbf16>
    %1 = arith.extf %0 : vector<128x128xbf16> to vector<128x128xf32>
    %c0_1 = arith.constant 0 : index
    %c0_2 = arith.constant 0 : index
    %2 = vector.load %arg2[%c0_1, %c0_2] : memref<1x128xf32, #tpu.memory_space<vmem>>, vector<1x128xf32>
    %3 = vector.broadcast %2 : vector<1x128xf32> to vector<128x128xf32>
    %4 = arith.mulf %1, %3 : vector<128x128xf32>
    %c0_3 = arith.constant 0 : index
    %c0_4 = arith.constant 0 : index
    %5 = vector.load %arg3[%c0_3, %c0_4] : memref<1x128xf32, #tpu.memory_space<vmem>>, vector<1x128xf32>
    %6 = vector.broadcast %5 : vector<1x128xf32> to vector<128x128xf32>
    %7 = arith.addf %4, %6 : vector<128x128xf32>
    %c0_5 = arith.constant 0 : index
    %c0_6 = arith.constant 0 : index
    %8 = vector.load %arg4[%c0_5, %c0_6] : memref<128x128xbf16, #tpu.memory_space<vmem>>, vector<128x128xbf16>
    %9 = arith.extf %8 : vector<128x128xbf16> to vector<128x128xf32>
    %10 = arith.addf %7, %9 : vector<128x128xf32>
    %cst = arith.constant 0.000000e+00 : f32
    %11 = vector.broadcast %cst : f32 to vector<128x128xf32>
    %12 = arith.maximumf %10, %11 : vector<128x128xf32>
    %13 = arith.truncf %12 : vector<128x128xf32> to vector<128x128xbf16>
    %c0_7 = arith.constant 0 : index
    %c0_8 = arith.constant 0 : index
    %14 = vector.load %arg5[%c0_7, %c0_8] : memref<128x128xbf16, #tpu.memory_space<vmem>>, vector<128x128xbf16>
    tpu.vector_store %arg5[%c0_7, %c0_8], %13 {strides = array<i32>} : memref<128x128xbf16, #tpu.memory_space<vmem>>, vector<128x128xbf16>,
    return
  }
  func.func @transform_0(%arg0: i32) -> (i32, i32) {
    %c0_i32 = arith.constant 0 : i32
    %c0_i32_0 = arith.constant 0 : i32
    return %arg0, %c0_i32 : i32, i32
  }
  func.func @transform_1(%arg0: i32) -> (i32, i32) {
    %c0_i32 = arith.constant 0 : i32
    %c0_i32_0 = arith.constant 0 : i32
    %c0_i32_1 = arith.constant 0 : i32
    return %c0_i32, %c0_i32_0 : i32, i32
  }
  func.func @transform_2(%arg0: i32) -> (i32, i32) {
    %c0_i32 = arith.constant 0 : i32
    %c0_i32_0 = arith.constant 0 : i32
    %c0_i32_1 = arith.constant 0 : i32
    return %c0_i32, %c0_i32_0 : i32, i32
  }
  func.func @transform_3(%arg0: i32) -> (i32, i32) {
    %c0_i32 = arith.constant 0 : i32
    %c0_i32_0 = arith.constant 0 : i32
    return %arg0, %c0_i32 : i32, i32
  }
  func.func @transform_4(%arg0: i32) -> (i32, i32) {
    %c0_i32 = arith.constant 0 : i32
    %c0_i32_0 = arith.constant 0 : i32
    return %arg0, %c0_i32 : i32, i32
  }
}

</mosaic_0001>

<bundles_post_ra>
// kernel: block_group_forward.10
= control target key start
LH: loop header
LB: loop body
LE: loop exit
PB: predicated region body
PF: predicated region fallthrough
CT: control target
= control target key end

     0   :  { %s2134_s1 = inlined_call_operand.vmem [shape: bf16[128,128], index: 1, kind: input, shape index: {}]   ;;  %s2135_s0 = inlined_call_operand.vmem [shape: bf16[512,128], index: 0, kind: input, shape index: {}]   ;;  %s2136_s2 = inlined_call_operand.vmem [shape: bf16[512,128], index: 2, kind: output, shape index: {0}]   ;;  %s2137_s3 = inlined_call_operand.vmem [shape: f32[1,1,128], index: 3, kind: output, shape index: {1}]   ;;  %s2138_s4 = inlined_call_operand.vmem [shape: f32[1,1,128], index: 4, kind: output, shape index: {2}]  }
   0x1   :  { %v1655_v0 = vld [vmem:[%s2134_s1] sm:$0xff]   ;;  %v1656_v1 = vld [vmem:[%s2134_s1 + $0x8] sm:$0xff]   ;;  %v1657_v2 = vld [vmem:[%s2134_s1 + $0x10] sm:$0xff]  }
   0x2   :  { %1559 = vmatprep.subr.bf16.mxu0 %v1655_v0  ;;  %1639 = vmatprep.subr.bf16.mxu1 %v1655_v0  ;;  %v1658_v3 = vld [vmem:[%s2134_s1 + $0x18] sm:$0xff]   ;;  %v1663_v4 = vld [vmem:[%s2135_s0] sm:$0xff]   ;;  %v1660_v6 = vld [vmem:[%s2134_s1 + $0x28] sm:$0xff]  }
   0x3   :  { %1560 = vmatpush3.bf16.msra.mxu0 %v1655_v0  ;;  %1647 = vmatpush3.bf16.msra.mxu1 %v1655_v0  ;;  %v1659_v5 = vld [vmem:[%s2134_s1 + $0x20] sm:$0xff]   ;;  %v1661_v7 = vld [vmem:[%s2134_s1 + $0x30] sm:$0xff]   ;;  %v1662_v8 = vld [vmem:[%s2134_s1 + $0x38] sm:$0xff]  }
   0x4   :  { %1561 = vmatprep.subr.bf16.mxu0 %v1656_v1  ;;  %1640 = vmatprep.subr.bf16.mxu1 %v1656_v1  ;;  %v1679_v9 = vld [vmem:[%s2135_s0 + $0x80] sm:$0xff]   ;;  %v1664_v10 = vld [vmem:[%s2135_s0 + $0x8] sm:$0xff]   ;;  %v1665_v11 = vld [vmem:[%s2135_s0 + $0x10] sm:$0xff]  }
   0x5   :  { %1575 = vmatprep.mubr.bf16.mxu0 %v1663_v4  ;;  %1607 = vmatprep.mubr.bf16.mxu1 %v1679_v9  ;;  %v1680_v12 = vld [vmem:[%s2135_s0 + $0x88] sm:$0xff]   ;;  %v1681_v13 = vld [vmem:[%s2135_s0 + $0x90] sm:$0xff]   ;;  %v1666_v14 = vld [vmem:[%s2135_s0 + $0x18] sm:$0xff]  }
   0x6   :  { %v1667_v15 = vld [vmem:[%s2135_s0 + $0x20] sm:$0xff]   ;;  %v1682_v16 = vld [vmem:[%s2135_s0 + $0x98] sm:$0xff]   ;;  %v1668_v18 = vld [vmem:[%s2135_s0 + $0x28] sm:$0xff]  }
   0x7   :  { %1562 = vmatpush3.bf16.msra.mxu0 %v1656_v1  ;;  %1648 = vmatpush3.bf16.msra.mxu1 %v1656_v1  ;;  %v1683_v17 = vld [vmem:[%s2135_s0 + $0xa0] sm:$0xff]   ;;  %v1684_v19 = vld [vmem:[%s2135_s0 + $0xa8] sm:$0xff]   ;;  %v1669_v20 = vld [vmem:[%s2135_s0 + $0x30] sm:$0xff]  }
   0x8   :  { %1563 = vmatprep.subr.bf16.mxu0 %v1657_v2  ;;  %1641 = vmatprep.subr.bf16.mxu1 %v1657_v2  ;;  %v1685_v21 = vld [vmem:[%s2135_s0 + $0xb0] sm:$0xff]   ;;  %v1670_v22 = vld [vmem:[%s2135_s0 + $0x38] sm:$0xff]   ;;  %v1671_v24 = vld [vmem:[%s2135_s0 + $0x40] sm:$0xff]  }
   0x9   :  { %v1686_v23 = vld [vmem:[%s2135_s0 + $0xb8] sm:$0xff]   ;;  %v1687_v25 = vld [vmem:[%s2135_s0 + $0xc0] sm:$0xff]   ;;  %v1672_v26 = vld [vmem:[%s2135_s0 + $0x48] sm:$0xff]  }
   0xa   :  { %v1688_v27 = vld [vmem:[%s2135_s0 + $0xc8] sm:$0xff]   ;;  %v1673_v28 = vld [vmem:[%s2135_s0 + $0x50] sm:$0xff]   ;;  %v1674_v30 = vld [vmem:[%s2135_s0 + $0x58] sm:$0xff]  }
   0xb   :  { %1564 = vmatpush3.bf16.msra.mxu0 %v1657_v2  ;;  %1649 = vmatpush3.bf16.msra.mxu1 %v1657_v2  ;;  %v1689_v29 = vld [vmem:[%s2135_s0 + $0xd0] sm:$0xff]   ;;  %v1690_v31 = vld [vmem:[%s2135_s0 + $0xd8] sm:$0xff]   ;;  %v1675_v32 = vld [vmem:[%s2135_s0 + $0x60] sm:$0xff]  }
   0xc   :  { %1565 = vmatprep.subr.bf16.mxu0 %v1658_v3  ;;  %1642 = vmatprep.subr.bf16.mxu1 %v1658_v3  ;;  %v1691_v33 = vld [vmem:[%s2135_s0 + $0xe0] sm:$0xff]   ;;  %v1676_v34 = vld [vmem:[%s2135_s0 + $0x68] sm:$0xff]   ;;  %v1677_v36 = vld [vmem:[%s2135_s0 + $0x70] sm:$0xff]  }
   0xd   :  { %v1692_v35 = vld [vmem:[%s2135_s0 + $0xe8] sm:$0xff]   ;;  %v1693_v37 = vld [vmem:[%s2135_s0 + $0xf0] sm:$0xff]   ;;  %v1678_v38 = vld [vmem:[%s2135_s0 + $0x78] sm:$0xff]  }
   0xe   :  { %v1694_v39 = vld [vmem:[%s2135_s0 + $0xf8] sm:$0xff]  }
   0xf   :  { %1566 = vmatpush3.bf16.msra.mxu0 %v1658_v3  ;;  %1650 = vmatpush3.bf16.msra.mxu1 %v1658_v3 }
  0x10   :  { %1567 = vmatprep.subr.bf16.mxu0 %v1659_v5  ;;  %1643 = vmatprep.subr.bf16.mxu1 %v1659_v5 }
  0x13   :  { %1568 = vmatpush3.bf16.msra.mxu0 %v1659_v5  ;;  %1651 = vmatpush3.bf16.msra.mxu1 %v1659_v5 }
  0x14   :  { %1569 = vmatprep.subr.bf16.mxu0 %v1660_v6  ;;  %1644 = vmatprep.subr.bf16.mxu1 %v1660_v6 }
  0x17   :  { %1570 = vmatpush3.bf16.msra.mxu0 %v1660_v6  ;;  %1652 = vmatpush3.bf16.msra.mxu1 %v1660_v6 }
  0x18   :  { %1571 = vmatprep.subr.bf16.mxu0 %v1661_v7  ;;  %1645 = vmatprep.subr.bf16.mxu1 %v1661_v7 }
  0x1b   :  { %1572 = vmatpush3.bf16.msra.mxu0 %v1661_v7  ;;  %1653 = vmatpush3.bf16.msra.mxu1 %v1661_v7 }
  0x1c   :  { %1573 = vmatprep.subr.bf16.mxu0 %v1662_v8  ;;  %1646 = vmatprep.subr.bf16.mxu1 %v1662_v8 }
  0x1f   :  { %1574 = vmatpush3.bf16.msra.mxu0 %v1662_v8  ;;  %1654 = vmatpush3.bf16.msra.mxu1 %v1662_v8 }
  0x22   :  { %1576 = vmatmul.mubr.bf16.vlgmr.msra.gmra.mrb[0].mxu0 %v1664_v10  ;;  %1608 = vmatmul.mubr.bf16.vlgmr.msra.gmra.mrb[0].mxu1 %v1680_v12 }
  0x23   :  { %1579 = vmatprep.mubr.bf16.mxu0 %v1665_v11  ;;  %1611 = vmatprep.mubr.bf16.mxu1 %v1681_v13 }
  0x2a   :  { %1580 = vmatmul.mubr.bf16.gmra.mrb[4].mxu0 %v1666_v14  ;;  %1612 = vmatmul.mubr.bf16.gmra.mrb[4].mxu1 %v1682_v16 }
  0x2b   :  { %1583 = vmatprep.mubr.bf16.mxu0 %v1667_v15  ;;  %1615 = vmatprep.mubr.bf16.mxu1 %v1683_v17 }
  0x32   :  { %1584 = vmatmul.mubr.bf16.gmra.mrb[8].mxu0 %v1668_v18  ;;  %1616 = vmatmul.mubr.bf16.gmra.mrb[8].mxu1 %v1684_v19 }
  0x33   :  { %1587 = vmatprep.mubr.bf16.mxu0 %v1669_v20  ;;  %1619 = vmatprep.mubr.bf16.mxu1 %v1685_v21 }
  0x3a   :  { %1588 = vmatmul.mubr.bf16.gmra.mrb[12].mxu0 %v1670_v22  ;;  %1620 = vmatmul.mubr.bf16.gmra.mrb[12].mxu1 %v1686_v23 }
  0x3b   :  { %1591 = vmatprep.mubr.bf16.mxu0 %v1671_v24  ;;  %1623 = vmatprep.mubr.bf16.mxu1 %v1687_v25 }
  0x42   :  { %1592 = vmatmul.mubr.bf16.gmra.mrb[16].mxu0 %v1672_v26  ;;  %1624 = vmatmul.mubr.bf16.gmra.mrb[16].mxu1 %v1688_v27 }
  0x43   :  { %1595 = vmatprep.mubr.bf16.mxu0 %v1673_v28  ;;  %1627 = vmatprep.mubr.bf16.mxu1 %v1689_v29 }
  0x4a   :  { %1596 = vmatmul.mubr.bf16.gmra.mrb[20].mxu0 %v1674_v30  ;;  %1628 = vmatmul.mubr.bf16.gmra.mrb[20].mxu1 %v1690_v31 }
  0x4b   :  { %1599 = vmatprep.mubr.bf16.mxu0 %v1675_v32  ;;  %1631 = vmatprep.mubr.bf16.mxu1 %v1691_v33 }
  0x52   :  { %1600 = vmatmul.mubr.bf16.gmra.mrb[24].mxu0 %v1676_v34  ;;  %1632 = vmatmul.mubr.bf16.gmra.mrb[24].mxu1 %v1692_v35 }
  0x53   :  { %1603 = vmatprep.mubr.bf16.mxu0 %v1677_v36  ;;  %1635 = vmatprep.mubr.bf16.mxu1 %v1693_v37 }
  0x5a   :  { %1604 = vmatmul.mubr.bf16.gmra.mrb[28].mxu0 %v1678_v38  ;;  %1636 = vmatmul.mubr.bf16.gmra.mrb[28].mxu1 %v1694_v39 }
  0xf5   :  { %v1577_v40 = vpop.f32.mrb[0].mxu0  ;;  %v1840_v41 = vpop.f32.mrb[0].mxu1 }
  0xf6   :  { %v369_v42 = vpop.f32.mrb[1].mxu0  ;;  %v1842_v43 = vpop.f32.mrb[1].mxu1  ;;  %v1016_v55 = vmul.f32 %v1577_v40, %v1577_v40 }
  0xf7   :  { %v1578_v44 = vpop.f32.mrb[2].mxu0  ;;  %v1844_v45 = vpop.f32.mrb[2].mxu1  ;;  %v1014_v46 = vmul.f32 %v369_v42, %v369_v42 }
  0xf8   :  { %v1336_v47 = vpack.c.bf16 %v1578_v44, %v1577_v40  ;;  %v372_v48 = vpop.f32.mrb[3].mxu0  ;;  %v1416_v49 = vpack.c.bf16 %v1844_v45, %v1840_v41  ;;  %v1848_v50 = vpop.f32.mrb[3].mxu1  ;;  %v1017_v58 = vmul.f32 %v1578_v44, %v1578_v44 }
  0xf9   :  { %v1331_v51 = vpack.c.bf16 %v372_v48, %v369_v42  ;;  %v944_v52 = vadd.f32 %v372_v48, %v369_v42  ;;  %v1015_v53 = vmul.f32 %v372_v48, %v372_v48  ;;  %v1411_v54 = vpack.c.bf16 %v1848_v50, %v1842_v43 }
  0xfa   :  { %1488 = vst [vmem:[%s2136_s2 + $0x8] sm:$0xff] %v1336_v47   ;;  %1504 = vst [vmem:[%s2136_s2 + $0x88] sm:$0xff] %v1416_v49  }
  0xfb   :  { %1332 = vst [vmem:[%s2136_s2] sm:$0xff] %v1331_v51   ;;  %v945_v56 = vadd.f32 %v1577_v40, %v944_v52  ;;  %v1078_v57 = vadd.f32 %v1015_v53, %v1014_v46  ;;  %1503 = vst [vmem:[%s2136_s2 + $0x80] sm:$0xff] %v1411_v54  }
  0xfd   :  { %v1079_v59 = vadd.f32 %v1078_v57, %v1016_v55  ;;  %v1581_v60 = vpop.f32.mrb[4].mxu0  ;;  %v946_v61 = vadd.f32 %v1578_v44, %v945_v56  ;;  %v1864_v62 = vpop.f32.mrb[4].mxu1 }
  0xfe   :  { %v385_v63 = vpop.f32.mrb[5].mxu0  ;;  %v1866_v0 = vpop.f32.mrb[5].mxu1  ;;  %v1020_v15 = vmul.f32 %v1581_v60, %v1581_v60 }
  0xff   :  { %v947_v1 = vadd.f32 %v946_v61, %v385_v63  ;;  %v1018_v2 = vmul.f32 %v385_v63, %v385_v63  ;;  %v1080_v3 = vadd.f32 %v1079_v59, %v1017_v58  ;;  %v1582_v4 = vpop.f32.mrb[6].mxu0  ;;  %v1868_v5 = vpop.f32.mrb[6].mxu1 }
 0x100   :  { %v1346_v6 = vpack.c.bf16 %v1582_v4, %v1581_v60  ;;  %v388_v7 = vpop.f32.mrb[7].mxu0  ;;  %v1426_v8 = vpack.c.bf16 %v1868_v5, %v1864_v62  ;;  %v1872_v9 = vpop.f32.mrb[7].mxu1  ;;  %v1021_v18 = vmul.f32 %v1582_v4, %v1582_v4 }
 0x101   :  { %v1081_v10 = vadd.f32 %v1080_v3, %v1018_v2  ;;  %v1341_v11 = vpack.c.bf16 %v388_v7, %v385_v63  ;;  %v948_v12 = vadd.f32 %v947_v1, %v388_v7  ;;  %v1019_v13 = vmul.f32 %v388_v7, %v388_v7 }
 0x102   :  { %1490 = vst [vmem:[%s2136_s2 + $0x18] sm:$0xff] %v1346_v6   ;;  %1506 = vst [vmem:[%s2136_s2 + $0x98] sm:$0xff] %v1426_v8   ;;  %v1421_v14 = vpack.c.bf16 %v1872_v9, %v1866_v0 }
 0x103   :  { %1489 = vst [vmem:[%s2136_s2 + $0x10] sm:$0xff] %v1341_v11   ;;  %v949_v16 = vadd.f32 %v1581_v60, %v948_v12  ;;  %v1082_v17 = vadd.f32 %v1081_v10, %v1019_v13 }
 0x104   :  { %1505 = vst [vmem:[%s2136_s2 + $0x90] sm:$0xff] %v1421_v14  }
 0x105   :  { %v1083_v19 = vadd.f32 %v1082_v17, %v1020_v15  ;;  %v1585_v20 = vpop.f32.mrb[8].mxu0  ;;  %v950_v21 = vadd.f32 %v1582_v4, %v949_v16  ;;  %v1888_v22 = vpop.f32.mrb[8].mxu1 }
 0x106   :  { %v401_v23 = vpop.f32.mrb[9].mxu0  ;;  %v1890_v24 = vpop.f32.mrb[9].mxu1  ;;  %v1024_v39 = vmul.f32 %v1585_v20, %v1585_v20 }
 0x107   :  { %v951_v25 = vadd.f32 %v950_v21, %v401_v23  ;;  %v1022_v26 = vmul.f32 %v401_v23, %v401_v23  ;;  %v1084_v27 = vadd.f32 %v1083_v19, %v1021_v18  ;;  %v1586_v28 = vpop.f32.mrb[10].mxu0  ;;  %v1892_v29 = vpop.f32.mrb[10].mxu1 }
 0x108   :  { %v1356_v30 = vpack.c.bf16 %v1586_v28, %v1585_v20  ;;  %v404_v31 = vpop.f32.mrb[11].mxu0  ;;  %v1436_v32 = vpack.c.bf16 %v1892_v29, %v1888_v22  ;;  %v1896_v33 = vpop.f32.mrb[11].mxu1  ;;  %v1025_v44 = vmul.f32 %v1586_v28, %v1586_v28 }
 0x109   :  { %v1085_v34 = vadd.f32 %v1084_v27, %v1022_v26  ;;  %v1351_v35 = vpack.c.bf16 %v404_v31, %v401_v23  ;;  %v952_v36 = vadd.f32 %v951_v25, %v404_v31  ;;  %v1023_v37 = vmul.f32 %v404_v31, %v404_v31 }
 0x10a   :  { %1492 = vst [vmem:[%s2136_s2 + $0x28] sm:$0xff] %v1356_v30   ;;  %1508 = vst [vmem:[%s2136_s2 + $0xa8] sm:$0xff] %v1436_v32   ;;  %v1431_v38 = vpack.c.bf16 %v1896_v33, %v1890_v24 }
 0x10b   :  { %1491 = vst [vmem:[%s2136_s2 + $0x20] sm:$0xff] %v1351_v35   ;;  %v953_v40 = vadd.f32 %v1585_v20, %v952_v36  ;;  %v1086_v42 = vadd.f32 %v1085_v34, %v1023_v37 }
 0x10c   :  { %1507 = vst [vmem:[%s2136_s2 + $0xa0] sm:$0xff] %v1431_v38  }
 0x10d   :  { %v1087_v46 = vadd.f32 %v1086_v42, %v1024_v39  ;;  %v1589_v47 = vpop.f32.mrb[12].mxu0  ;;  %v954_v48 = vadd.f32 %v1586_v28, %v953_v40  ;;  %v1912_v49 = vpop.f32.mrb[12].mxu1 }
 0x10e   :  { %v417_v51 = vpop.f32.mrb[13].mxu0  ;;  %v1914_v52 = vpop.f32.mrb[13].mxu1  ;;  %v1028_v6 = vmul.f32 %v1589_v47, %v1589_v47 }
 0x10f   :  { %v955_v53 = vadd.f32 %v954_v48, %v417_v51  ;;  %v1026_v54 = vmul.f32 %v417_v51, %v417_v51  ;;  %v1088_v55 = vadd.f32 %v1087_v46, %v1025_v44  ;;  %v1590_v56 = vpop.f32.mrb[14].mxu0  ;;  %v1916_v57 = vpop.f32.mrb[14].mxu1 }
 0x110   :  { %v1366_v58 = vpack.c.bf16 %v1590_v56, %v1589_v47  ;;  %v420_v59 = vpop.f32.mrb[15].mxu0  ;;  %v1446_v60 = vpack.c.bf16 %v1916_v57, %v1912_v49  ;;  %v1920_v61 = vpop.f32.mrb[15].mxu1  ;;  %v1029_v10 = vmul.f32 %v1590_v56, %v1590_v56 }
 0x111   :  { %v1089_v63 = vadd.f32 %v1088_v55, %v1026_v54  ;;  %v1361_v1 = vpack.c.bf16 %v420_v59, %v417_v51  ;;  %v956_v2 = vadd.f32 %v955_v53, %v420_v59  ;;  %v1027_v3 = vmul.f32 %v420_v59, %v420_v59 }
 0x112   :  { %1494 = vst [vmem:[%s2136_s2 + $0x38] sm:$0xff] %v1366_v58   ;;  %1510 = vst [vmem:[%s2136_s2 + $0xb8] sm:$0xff] %v1446_v60   ;;  %v1441_v4 = vpack.c.bf16 %v1920_v61, %v1914_v52 }
 0x113   :  { %1493 = vst [vmem:[%s2136_s2 + $0x30] sm:$0xff] %v1361_v1   ;;  %v957_v7 = vadd.f32 %v1589_v47, %v956_v2  ;;  %v1090_v8 = vadd.f32 %v1089_v63, %v1027_v3 }
 0x114   :  { %1509 = vst [vmem:[%s2136_s2 + $0xb0] sm:$0xff] %v1441_v4  }
 0x115   :  { %v1091_v11 = vadd.f32 %v1090_v8, %v1028_v6  ;;  %v1593_v12 = vpop.f32.mrb[16].mxu0  ;;  %v958_v13 = vadd.f32 %v1590_v56, %v957_v7  ;;  %v1936_v14 = vpop.f32.mrb[16].mxu1 }
 0x116   :  { %v433_v15 = vpop.f32.mrb[17].mxu0  ;;  %v1938_v16 = vpop.f32.mrb[17].mxu1  ;;  %v1032_v35 = vmul.f32 %v1593_v12, %v1593_v12 }
 0x117   :  { %v959_v17 = vadd.f32 %v958_v13, %v433_v15  ;;  %v1030_v18 = vmul.f32 %v433_v15, %v433_v15  ;;  %v1092_v19 = vadd.f32 %v1091_v11, %v1029_v10  ;;  %v1594_v20 = vpop.f32.mrb[18].mxu0  ;;  %v1940_v21 = vpop.f32.mrb[18].mxu1 }
 0x118   :  { %v1376_v23 = vpack.c.bf16 %v1594_v20, %v1593_v12  ;;  %v436_v25 = vpop.f32.mrb[19].mxu0  ;;  %v1456_v26 = vpack.c.bf16 %v1940_v21, %v1936_v14  ;;  %v1944_v27 = vpop.f32.mrb[19].mxu1  ;;  %v1033_v38 = vmul.f32 %v1594_v20, %v1594_v20 }
 0x119   :  { %v1093_v28 = vadd.f32 %v1092_v19, %v1030_v18  ;;  %v1371_v30 = vpack.c.bf16 %v436_v25, %v433_v15  ;;  %v960_v31 = vadd.f32 %v959_v17, %v436_v25  ;;  %v1031_v32 = vmul.f32 %v436_v25, %v436_v25 }
 0x11a   :  { %1496 = vst [vmem:[%s2136_s2 + $0x48] sm:$0xff] %v1376_v23   ;;  %1512 = vst [vmem:[%s2136_s2 + $0xc8] sm:$0xff] %v1456_v26   ;;  %v1451_v34 = vpack.c.bf16 %v1944_v27, %v1938_v16 }
 0x11b   :  { %1495 = vst [vmem:[%s2136_s2 + $0x40] sm:$0xff] %v1371_v30   ;;  %v961_v36 = vadd.f32 %v1593_v12, %v960_v31  ;;  %v1094_v37 = vadd.f32 %v1093_v28, %v1031_v32 }
 0x11c   :  { %1511 = vst [vmem:[%s2136_s2 + $0xc0] sm:$0xff] %v1451_v34  }
 0x11d   :  { %v1095_v39 = vadd.f32 %v1094_v37, %v1032_v35  ;;  %v1597_v40 = vpop.f32.mrb[20].mxu0  ;;  %v962_v42 = vadd.f32 %v1594_v20, %v961_v36  ;;  %v1960_v44 = vpop.f32.mrb[20].mxu1 }
 0x11e   :  { %v449_v46 = vpop.f32.mrb[21].mxu0  ;;  %v1962_v47 = vpop.f32.mrb[21].mxu1  ;;  %v1036_v6 = vmul.f32 %v1597_v40, %v1597_v40 }
 0x11f   :  { %v963_v48 = vadd.f32 %v962_v42, %v449_v46  ;;  %v1034_v51 = vmul.f32 %v449_v46, %v449_v46  ;;  %v1096_v53 = vadd.f32 %v1095_v39, %v1033_v38  ;;  %v1598_v54 = vpop.f32.mrb[22].mxu0  ;;  %v1964_v55 = vpop.f32.mrb[22].mxu1 }
 0x120   :  { %v1386_v56 = vpack.c.bf16 %v1598_v54, %v1597_v40  ;;  %v452_v58 = vpop.f32.mrb[23].mxu0  ;;  %v1466_v59 = vpack.c.bf16 %v1964_v55, %v1960_v44  ;;  %v1968_v60 = vpop.f32.mrb[23].mxu1  ;;  %v1037_v10 = vmul.f32 %v1598_v54, %v1598_v54 }
 0x121   :  { %v1097_v63 = vadd.f32 %v1096_v53, %v1034_v51  ;;  %v1381_v1 = vpack.c.bf16 %v452_v58, %v449_v46  ;;  %v964_v2 = vadd.f32 %v963_v48, %v452_v58  ;;  %v1035_v3 = vmul.f32 %v452_v58, %v452_v58 }
 0x122   :  { %1498 = vst [vmem:[%s2136_s2 + $0x58] sm:$0xff] %v1386_v56   ;;  %1514 = vst [vmem:[%s2136_s2 + $0xd8] sm:$0xff] %v1466_v59   ;;  %v1461_v4 = vpack.c.bf16 %v1968_v60, %v1962_v47 }
 0x123   :  { %1497 = vst [vmem:[%s2136_s2 + $0x50] sm:$0xff] %v1381_v1   ;;  %v965_v7 = vadd.f32 %v1597_v40, %v964_v2  ;;  %v1098_v8 = vadd.f32 %v1097_v63, %v1035_v3 }
 0x124   :  { %1513 = vst [vmem:[%s2136_s2 + $0xd0] sm:$0xff] %v1461_v4  }
 0x125   :  { %v1099_v11 = vadd.f32 %v1098_v8, %v1036_v6  ;;  %v1601_v12 = vpop.f32.mrb[24].mxu0  ;;  %v966_v13 = vadd.f32 %v1598_v54, %v965_v7  ;;  %v1984_v15 = vpop.f32.mrb[24].mxu1 }
 0x126   :  { %v465_v17 = vpop.f32.mrb[25].mxu0  ;;  %v1986_v18 = vpop.f32.mrb[25].mxu1  ;;  %v1040_v39 = vmul.f32 %v1601_v12, %v1601_v12 }
 0x127   :  { %v967_v19 = vadd.f32 %v966_v13, %v465_v17  ;;  %v1038_v20 = vmul.f32 %v465_v17, %v465_v17  ;;  %v1100_v23 = vadd.f32 %v1099_v11, %v1037_v10  ;;  %v1602_v25 = vpop.f32.mrb[26].mxu0  ;;  %v1988_v26 = vpop.f32.mrb[26].mxu1 }
 0x128   :  { %v1396_v28 = vpack.c.bf16 %v1602_v25, %v1601_v12  ;;  %v468_v30 = vpop.f32.mrb[27].mxu0  ;;  %v1476_v31 = vpack.c.bf16 %v1988_v26, %v1984_v15  ;;  %v1992_v32 = vpop.f32.mrb[27].mxu1  ;;  %v1041_v46 = vmul.f32 %v1602_v25, %v1602_v25 }
 0x129   :  { %v1101_v34 = vadd.f32 %v1100_v23, %v1038_v20  ;;  %v1391_v35 = vpack.c.bf16 %v468_v30, %v465_v17  ;;  %v968_v36 = vadd.f32 %v967_v19, %v468_v30  ;;  %v1039_v37 = vmul.f32 %v468_v30, %v468_v30 }
 0x12a   :  { %1500 = vst [vmem:[%s2136_s2 + $0x68] sm:$0xff] %v1396_v28   ;;  %1516 = vst [vmem:[%s2136_s2 + $0xe8] sm:$0xff] %v1476_v31   ;;  %v1471_v38 = vpack.c.bf16 %v1992_v32, %v1986_v18  ;;  %v1046_v31 = vmul.f32 %v1842_v43, %v1842_v43 }
 0x12b   :  { %1499 = vst [vmem:[%s2136_s2 + $0x60] sm:$0xff] %v1391_v35   ;;  %v969_v40 = vadd.f32 %v1601_v12, %v968_v36  ;;  %v1102_v42 = vadd.f32 %v1101_v34, %v1039_v37 }
 0x12c   :  { %1515 = vst [vmem:[%s2136_s2 + $0xe0] sm:$0xff] %v1471_v38   ;;  %v1047_v38 = vmul.f32 %v1848_v50, %v1848_v50 }
 0x12d   :  { %v1103_v48 = vadd.f32 %v1102_v42, %v1040_v39  ;;  %v1605_v51 = vpop.f32.mrb[28].mxu0  ;;  %v970_v53 = vadd.f32 %v1602_v25, %v969_v40  ;;  %v2008_v54 = vpop.f32.mrb[28].mxu1  ;;  %v1048_v39 = vmul.f32 %v1840_v41, %v1840_v41 }
 0x12e   :  { %v481_v56 = vpop.f32.mrb[29].mxu0  ;;  %v2010_v58 = vpop.f32.mrb[29].mxu1  ;;  %v1044_v19 = vmul.f32 %v1605_v51, %v1605_v51 }
 0x12f   :  { %v971_v59 = vadd.f32 %v970_v53, %v481_v56  ;;  %v1042_v63 = vmul.f32 %v481_v56, %v481_v56  ;;  %v1104_v1 = vadd.f32 %v1103_v48, %v1041_v46  ;;  %v1606_v2 = vpop.f32.mrb[30].mxu0  ;;  %v2012_v3 = vpop.f32.mrb[30].mxu1  ;;  %v1049_v46 = vmul.f32 %v1844_v45, %v1844_v45 }
 0x130   :  { %v1406_v4 = vpack.c.bf16 %v1606_v2, %v1605_v51  ;;  %v484_v6 = vpop.f32.mrb[31].mxu0  ;;  %v1486_v7 = vpack.c.bf16 %v2012_v3, %v2008_v54  ;;  %v2016_v8 = vpop.f32.mrb[31].mxu1  ;;  %v1045_v25 = vmul.f32 %v1606_v2, %v1606_v2 }
 0x131   :  { %v1105_v10 = vadd.f32 %v1104_v1, %v1042_v63  ;;  %v1401_v11 = vpack.c.bf16 %v484_v6, %v481_v56  ;;  %v972_v12 = vadd.f32 %v971_v59, %v484_v6  ;;  %v1043_v13 = vmul.f32 %v484_v6, %v484_v6 }
 0x132   :  { %1502 = vst [vmem:[%s2136_s2 + $0x78] sm:$0xff] %v1406_v4   ;;  %1518 = vst [vmem:[%s2136_s2 + $0xf8] sm:$0xff] %v1486_v7   ;;  %v1481_v17 = vpack.c.bf16 %v2016_v8, %v2010_v58  ;;  %v1051_v63 = vmul.f32 %v1872_v9, %v1872_v9 }
 0x133   :  { %1501 = vst [vmem:[%s2136_s2 + $0x70] sm:$0xff] %v1401_v11   ;;  %v973_v20 = vadd.f32 %v1605_v51, %v972_v12  ;;  %v1106_v23 = vadd.f32 %v1105_v10, %v1043_v13  ;;  %v1055_v12 = vmul.f32 %v1896_v33, %v1896_v33 }
 0x134   :  { %1517 = vst [vmem:[%s2136_s2 + $0xf0] sm:$0xff] %v1481_v17  }
 0x135   :  { %v1107_v28 = vadd.f32 %v1106_v23, %v1044_v19  ;;  %v974_v30 = vadd.f32 %v1606_v2, %v973_v20 }
 0x137   :  { %v975_v34 = vadd.f32 %v974_v30, %v1842_v43  ;;  %v1108_v35 = vadd.f32 %v1107_v28, %v1045_v25  ;;  %v1050_v43 = vmul.f32 %v1866_v0, %v1866_v0  ;;  %v1059_v30 = vmul.f32 %v1920_v61, %v1920_v61 }
 0x139   :  { %v1109_v36 = vadd.f32 %v1108_v35, %v1046_v31  ;;  %v976_v37 = vadd.f32 %v975_v34, %v1848_v50 }
 0x13b   :  { %v977_v40 = vadd.f32 %v1840_v41, %v976_v37  ;;  %v1110_v42 = vadd.f32 %v1109_v36, %v1047_v38  ;;  %v1052_v41 = vmul.f32 %v1864_v62, %v1864_v62 }
 0x13d   :  { %v1111_v48 = vadd.f32 %v1110_v42, %v1048_v39  ;;  %v978_v51 = vadd.f32 %v1844_v45, %v977_v40  ;;  %v1053_v45 = vmul.f32 %v1868_v5, %v1868_v5  ;;  %v1063_v40 = vmul.f32 %v1944_v27, %v1944_v27 }
 0x13f   :  { %v979_v53 = vadd.f32 %v978_v51, %v1866_v0  ;;  %v1112_v56 = vadd.f32 %v1111_v48, %v1049_v46  ;;  %v1054_v0 = vmul.f32 %v1890_v24, %v1890_v24 }
 0x141   :  { %v1113_v59 = vadd.f32 %v1112_v56, %v1050_v43  ;;  %v980_v50 = vadd.f32 %v979_v53, %v1872_v9 }
 0x143   :  { %v981_v1 = vadd.f32 %v1864_v62, %v980_v50  ;;  %v1114_v2 = vadd.f32 %v1113_v59, %v1051_v63  ;;  %v1056_v62 = vmul.f32 %v1888_v22, %v1888_v22  ;;  %v1067_v59 = vmul.f32 %v1968_v60, %v1968_v60 }
 0x145   :  { %v1115_v4 = vadd.f32 %v1114_v2, %v1052_v41  ;;  %v982_v6 = vadd.f32 %v1868_v5, %v981_v1  ;;  %v1057_v5 = vmul.f32 %v1892_v29, %v1892_v29 }
 0x147   :  { %v983_v7 = vadd.f32 %v982_v6, %v1890_v24  ;;  %v1116_v10 = vadd.f32 %v1115_v4, %v1053_v45  ;;  %v1058_v24 = vmul.f32 %v1914_v52, %v1914_v52  ;;  %v1071_v6 = vmul.f32 %v1992_v32, %v1992_v32 }
 0x149   :  { %v1117_v11 = vadd.f32 %v1116_v10, %v1054_v0  ;;  %v984_v9 = vadd.f32 %v983_v7, %v1896_v33 }
 0x14b   :  { %v985_v13 = vadd.f32 %v1888_v22, %v984_v9  ;;  %v1118_v17 = vadd.f32 %v1117_v11, %v1055_v12  ;;  %v1060_v22 = vmul.f32 %v1912_v49, %v1912_v49 }
 0x14d   :  { %v1119_v19 = vadd.f32 %v1118_v17, %v1056_v62  ;;  %v986_v20 = vadd.f32 %v1892_v29, %v985_v13  ;;  %v1061_v29 = vmul.f32 %v1916_v57, %v1916_v57  ;;  %v1075_v13 = vmul.f32 %v2016_v8, %v2016_v8 }
 0x14f   :  { %v987_v23 = vadd.f32 %v986_v20, %v1914_v52  ;;  %v1120_v25 = vadd.f32 %v1119_v19, %v1057_v5  ;;  %v1062_v52 = vmul.f32 %v1938_v16, %v1938_v16 }
 0x151   :  { %v1121_v28 = vadd.f32 %v1120_v25, %v1058_v24  ;;  %v988_v33 = vadd.f32 %v987_v23, %v1920_v61 }
 0x153   :  { %v989_v31 = vadd.f32 %v1912_v49, %v988_v33  ;;  %v1122_v34 = vadd.f32 %v1121_v28, %v1059_v30  ;;  %v1064_v49 = vmul.f32 %v1936_v14, %v1936_v14 }
 0x155   :  { %v1123_v35 = vadd.f32 %v1122_v34, %v1060_v22  ;;  %v990_v36 = vadd.f32 %v1916_v57, %v989_v31  ;;  %v1065_v57 = vmul.f32 %v1940_v21, %v1940_v21 }
 0x157   :  { %v991_v37 = vadd.f32 %v990_v36, %v1938_v16  ;;  %v1124_v38 = vadd.f32 %v1123_v35, %v1061_v29  ;;  %v1066_v16 = vmul.f32 %v1962_v47, %v1962_v47 }
 0x159   :  { %v1125_v39 = vadd.f32 %v1124_v38, %v1062_v52  ;;  %v992_v61 = vadd.f32 %v991_v37, %v1944_v27 }
 0x15b   :  { %v993_v42 = vadd.f32 %v1936_v14, %v992_v61  ;;  %v1126_v46 = vadd.f32 %v1125_v39, %v1063_v40  ;;  %v1068_v14 = vmul.f32 %v1960_v44, %v1960_v44 }
 0x15d   :  { %v1127_v48 = vadd.f32 %v1126_v46, %v1064_v49  ;;  %v994_v51 = vadd.f32 %v1940_v21, %v993_v42  ;;  %v1069_v21 = vmul.f32 %v1964_v55, %v1964_v55 }
 0x15f   :  { %v995_v43 = vadd.f32 %v994_v51, %v1962_v47  ;;  %v1128_v53 = vadd.f32 %v1127_v48, %v1065_v57  ;;  %v1070_v47 = vmul.f32 %v1986_v18, %v1986_v18 }
 0x161   :  { %v1129_v56 = vadd.f32 %v1128_v53, %v1066_v16  ;;  %v996_v27 = vadd.f32 %v995_v43, %v1968_v60 }
 0x163   :  { %v997_v50 = vadd.f32 %v1960_v44, %v996_v27  ;;  %v1130_v63 = vadd.f32 %v1129_v56, %v1067_v59  ;;  %v1072_v44 = vmul.f32 %v1984_v15, %v1984_v15 }
 0x165   :  { %v1131_v41 = vadd.f32 %v1130_v63, %v1068_v14  ;;  %v998_v1 = vadd.f32 %v1964_v55, %v997_v50  ;;  %v1073_v55 = vmul.f32 %v1988_v26, %v1988_v26 }
 0x167   :  { %v999_v2 = vadd.f32 %v998_v1, %v1986_v18  ;;  %v1132_v45 = vadd.f32 %v1131_v41, %v1069_v21  ;;  %v1074_v18 = vmul.f32 %v2010_v58, %v2010_v58 }
 0x169   :  { %v1133_v4 = vadd.f32 %v1132_v45, %v1070_v47  ;;  %v1000_v60 = vadd.f32 %v999_v2, %v1992_v32 }
 0x16b   :  { %v1001_v0 = vadd.f32 %v1984_v15, %v1000_v60  ;;  %v1134_v7 = vadd.f32 %v1133_v4, %v1071_v6  ;;  %v1076_v15 = vmul.f32 %v2008_v54, %v2008_v54 }
 0x16d   :  { %v1135_v10 = vadd.f32 %v1134_v7, %v1072_v44  ;;  %v1002_v11 = vadd.f32 %v1988_v26, %v1001_v0  ;;  %v1077_v26 = vmul.f32 %v2012_v3, %v2012_v3 }
 0x16f   :  { %v1003_v9 = vadd.f32 %v1002_v11, %v2010_v58  ;;  %v1136_v12 = vadd.f32 %v1135_v10, %v1073_v55 }
 0x171   :  { %v1137_v62 = vadd.f32 %v1136_v12, %v1074_v18  ;;  %v1004_v32 = vadd.f32 %v1003_v9, %v2016_v8 }
 0x173   :  { %v1005_v17 = vadd.f32 %v2008_v54, %v1004_v32  ;;  %v1138_v5 = vadd.f32 %v1137_v62, %v1075_v13 }
 0x175   :  { %v1006_v19 = vadd.f32 %v2012_v3, %v1005_v17  ;;  %v1139_v20 = vadd.f32 %v1138_v5, %v1076_v15 }
 0x177   :  { %v1007_v58 = vrot.slane %v1006_v19, 4  ;;  %v1140_v24 = vadd.f32 %v1139_v20, %v1077_v26 }
 0x179   :  { %v1008_v23 = vadd.f32 %v1007_v58, %v1006_v19  ;;  %v1141_v25 = vrot.slane %v1140_v24, 4 }
 0x17b   :  { %v1009_v28 = vrot.slane %v1008_v23, 2  ;;  %v1142_v33 = vadd.f32 %v1141_v25, %v1140_v24 }
 0x17d   :  { %v1010_v30 = vadd.f32 %v1009_v28, %v1008_v23  ;;  %v1143_v8 = vrot.slane %v1142_v33, 2 }
 0x17f   :  { %v1011_v22 = vrot.slane %v1010_v30, 1  ;;  %v1144_v31 = vadd.f32 %v1143_v8, %v1142_v33 }
 0x181   :  { %v1012_v34 = vadd.f32 %v1011_v22, %v1010_v30  ;;  %v1145_v29 = vrot.slane %v1144_v31, 1 }
 0x183   :  { %1013 = vst [vmem:[%s2137_s3] sm:$0x1] %v1012_v34  ;;  %v1146_v54 = vadd.f32 %v1145_v29, %v1144_v31 }
 0x185   :  { %1147 = vst [vmem:[%s2138_s4] sm:$0x1] %v1146_v54 }

// kernel: block_group_forward.12
= control target key start
LH: loop header
LB: loop body
LE: loop exit
PB: predicated region body
PF: predicated region fallthrough
CT: control target
= control target key end

     0   :  { %s791_s3 = inlined_call_operand.vmem [shape: bf16[128,128], index: 3, kind: input, shape index: {}]   ;;  %s792_s0 = inlined_call_operand.vmem [shape: bf16[128,128], index: 0, kind: input, shape index: {}]   ;;  %s793_s1 = inlined_call_operand.vmem [shape: f32[1,128], index: 1, kind: input, shape index: {}]   ;;  %s794_s2 = inlined_call_operand.vmem [shape: f32[1,128], index: 2, kind: input, shape index: {}]   ;;  %s795_s4 = inlined_call_operand.vmem [shape: bf16[128,128], index: 4, kind: output, shape index: {0}]   ;;  %s796_s5 = inlined_call_operand.vmem [shape: f32[1,1,128], index: 5, kind: output, shape index: {1}]   ;;  %s797_s6 = inlined_call_operand.vmem [shape: f32[1,1,128], index: 6, kind: output, shape index: {2}]  }
   0x1   :  { %v628_v0 = vld [vmem:[%s791_s3] sm:$0xff]   ;;  %v629_v1 = vld [vmem:[%s791_s3 + $0x8] sm:$0xff]   ;;  %v630_v2 = vld [vmem:[%s791_s3 + $0x10] sm:$0xff]  }
   0x2   :  { %580 = vmatprep.subr.bf16.mxu0 %v628_v0  ;;  %612 = vmatprep.subr.bf16.mxu1 %v628_v0  ;;  %v631_v3 = vld [vmem:[%s791_s3 + $0x18] sm:$0xff]   ;;  %v479_v4 = vld [vmem:[%s792_s0] sm:$0xff]   ;;  %v550_v8 = vld [vmem:[%s792_s0 + $0x8] sm:$0xff]  }
   0x3   :  { %581 = vmatpush3.bf16.msra.mxu0 %v628_v0  ;;  %620 = vmatpush3.bf16.msra.mxu1 %v628_v0  ;;  %v689_v5 = vld [vmem:[%s793_s1] ss:$0 sm:$0xff]  ;;  %v480_v6 = vunpack.c.l.bf16 %v479_v4  ;;  %v481_v7 = vunpack.c.h.bf16 %v479_v4  ;;  %v551_v9 = vld [vmem:[%s792_s0 + $0x10] sm:$0xff]   ;;  %v484_v11 = vunpack.c.l.bf16 %v550_v8  ;;  %v485_v14 = vunpack.c.h.bf16 %v550_v8  ;;  %v552_v22 = vld [vmem:[%s792_s0 + $0x18] sm:$0xff]  }
   0x4   :  { %582 = vmatprep.subr.bf16.mxu0 %v629_v1  ;;  %613 = vmatprep.subr.bf16.mxu1 %v629_v1  ;;  %v700_v10 = vld [vmem:[%s794_s2] ss:$0 sm:$0xff]  ;;  %v488_v17 = vunpack.c.l.bf16 %v551_v9  ;;  %v489_v21 = vunpack.c.h.bf16 %v551_v9  ;;  %v554_v27 = vld [vmem:[%s792_s0 + $0x28] sm:$0xff]   ;;  %v555_v30 = vld [vmem:[%s792_s0 + $0x30] sm:$0xff]   ;;  %v492_v32 = vunpack.c.l.bf16 %v552_v22  ;;  %v493_v33 = vunpack.c.h.bf16 %v552_v22 }
   0x5   :  { %v60_v12 = vmul.f32 %v480_v6, %v689_v5  ;;  %v61_v13 = vmul.f32 %v481_v7, %v689_v5  ;;  %v553_v15 = vld [vmem:[%s792_s0 + $0x20] sm:$0xff]   ;;  %v62_v20 = vmul.f32 %v484_v11, %v689_v5  ;;  %v63_v26 = vmul.f32 %v485_v14, %v689_v5  ;;  %v633_v28 = vld [vmem:[%s791_s3 + $0x28] sm:$0xff]   ;;  %v556_v39 = vld [vmem:[%s792_s0 + $0x38] sm:$0xff]  }
   0x6   :  { %v632_v16 = vld [vmem:[%s791_s3 + $0x20] sm:$0xff]   ;;  %v496_v23 = vunpack.c.l.bf16 %v553_v15  ;;  %v64_v29 = vmul.f32 %v488_v17, %v689_v5  ;;  %v497_v34 = vunpack.c.h.bf16 %v553_v15  ;;  %v65_v36 = vmul.f32 %v489_v21, %v689_v5  ;;  %v634_v44 = vld [vmem:[%s791_s3 + $0x30] sm:$0xff]   ;;  %v635_v61 = vld [vmem:[%s791_s3 + $0x38] sm:$0xff]  }
   0x7   :  { %583 = vmatpush3.bf16.msra.mxu0 %v629_v1  ;;  %621 = vmatpush3.bf16.msra.mxu1 %v629_v1  ;;  %v83_v18 = vadd.f32 %v700_v10, %v60_v12  ;;  %v84_v19 = vadd.f32 %v700_v10, %v61_v13  ;;  %v85_v35 = vadd.f32 %v700_v10, %v62_v20  ;;  %v500_v38 = vunpack.c.l.bf16 %v554_v27 }
   0x8   :  { %584 = vmatprep.subr.bf16.mxu0 %v630_v2  ;;  %614 = vmatprep.subr.bf16.mxu1 %v630_v2  ;;  %v68_v37 = vmul.f32 %v496_v23, %v689_v5  ;;  %v86_v40 = vadd.f32 %v700_v10, %v63_v26  ;;  %v69_v41 = vmul.f32 %v497_v34, %v689_v5  ;;  %v501_v42 = vunpack.c.h.bf16 %v554_v27 }
   0x9   :  { %v99_v24 = vmax.f32 %v83_v18, 0.0  ;;  %v100_v25 = vmax.f32 %v84_v19, 0.0  ;;  %v504_v43 = vunpack.c.l.bf16 %v555_v30  ;;  %v87_v45 = vadd.f32 %v700_v10, %v64_v29 }
   0xa   :  { %v91_v46 = vadd.f32 %v700_v10, %v68_v37  ;;  %v70_v47 = vmul.f32 %v500_v38, %v689_v5  ;;  %v505_v48 = vunpack.c.h.bf16 %v555_v30  ;;  %v92_v49 = vadd.f32 %v700_v10, %v69_v41 }
   0xb   :  { %585 = vmatpush3.bf16.msra.mxu0 %v630_v2  ;;  %622 = vmatpush3.bf16.msra.mxu1 %v630_v2  ;;  %v115_v31 = vpack.c.bf16 %v100_v25, %v99_v24  ;;  %v71_v50 = vmul.f32 %v501_v42, %v689_v5  ;;  %v72_v51 = vmul.f32 %v504_v43, %v689_v5  ;;  %v508_v52 = vunpack.c.l.bf16 %v556_v39 }
   0xc   :  { %586 = vmatprep.subr.bf16.mxu0 %v631_v3  ;;  %615 = vmatprep.subr.bf16.mxu1 %v631_v3  ;;  %v107_v53 = vmax.f32 %v91_v46, 0.0  ;;  %v93_v54 = vadd.f32 %v700_v10, %v70_v47  ;;  %v73_v55 = vmul.f32 %v505_v48, %v689_v5  ;;  %v509_v56 = vunpack.c.h.bf16 %v556_v39 }
   0xd   :  { %596 = vmatprep.mubr.bf16.mxu0 %v115_v31  ;;  %v88_v57 = vadd.f32 %v700_v10, %v65_v36  ;;  %v108_v58 = vmax.f32 %v92_v49, 0.0  ;;  %v94_v59 = vadd.f32 %v700_v10, %v71_v50  ;;  %v95_v60 = vadd.f32 %v700_v10, %v72_v51 }
   0xe   :  { %v66_v62 = vmul.f32 %v492_v32, %v689_v5  ;;  %v96_v63 = vadd.f32 %v700_v10, %v73_v55  ;;  %v101_v0 = vmax.f32 %v85_v35, 0.0  ;;  %v102_v1 = vmax.f32 %v86_v40, 0.0 }
   0xf   :  { %587 = vmatpush3.bf16.msra.mxu0 %v631_v3  ;;  %623 = vmatpush3.bf16.msra.mxu1 %v631_v3  ;;  %v67_v2 = vmul.f32 %v493_v33, %v689_v5  ;;  %v119_v3 = vpack.c.bf16 %v108_v58, %v107_v53  ;;  %v109_v4 = vmax.f32 %v93_v54, 0.0  ;;  %v110_v6 = vmax.f32 %v94_v59, 0.0 }
  0x10   :  { %588 = vmatprep.subr.bf16.mxu0 %v632_v16  ;;  %616 = vmatprep.subr.bf16.mxu1 %v632_v16  ;;  %v74_v7 = vmul.f32 %v508_v52, %v689_v5  ;;  %v75_v8 = vmul.f32 %v509_v56, %v689_v5  ;;  %v103_v9 = vmax.f32 %v87_v45, 0.0  ;;  %v104_v11 = vmax.f32 %v88_v57, 0.0 }
  0x11   :  { %v111_v12 = vmax.f32 %v95_v60, 0.0  ;;  %v112_v13 = vmax.f32 %v96_v63, 0.0  ;;  %v89_v14 = vadd.f32 %v700_v10, %v66_v62  ;;  %v90_v15 = vadd.f32 %v700_v10, %v67_v2  ;;  %604 = vmatprep.mubr.bf16.mxu1 %v119_v3 }
  0x12   :  { %v120_v17 = vpack.c.bf16 %v110_v6, %v109_v4  ;;  %v97_v18 = vadd.f32 %v700_v10, %v74_v7  ;;  %v98_v19 = vadd.f32 %v700_v10, %v75_v8  ;;  %v117_v5 = vpack.c.bf16 %v104_v11, %v103_v9 }
  0x13   :  { %589 = vmatpush3.bf16.msra.mxu0 %v632_v16  ;;  %624 = vmatpush3.bf16.msra.mxu1 %v632_v16  ;;  %v116_v16 = vpack.c.bf16 %v102_v1, %v101_v0  ;;  %v121_v20 = vpack.c.bf16 %v112_v13, %v111_v12  ;;  %v105_v21 = vmax.f32 %v89_v14, 0.0  ;;  %v106_v22 = vmax.f32 %v90_v15, 0.0 }
  0x14   :  { %590 = vmatprep.subr.bf16.mxu0 %v633_v28  ;;  %617 = vmatprep.subr.bf16.mxu1 %v633_v28  ;;  %v113_v23 = vmax.f32 %v97_v18, 0.0  ;;  %v114_v24 = vmax.f32 %v98_v19, 0.0 }
  0x15   :  { %v118_v25 = vpack.c.bf16 %v106_v22, %v105_v21 }
  0x16   :  { %v122_v26 = vpack.c.bf16 %v114_v24, %v113_v23 }
  0x17   :  { %591 = vmatpush3.bf16.msra.mxu0 %v633_v28  ;;  %625 = vmatpush3.bf16.msra.mxu1 %v633_v28 }
  0x18   :  { %592 = vmatprep.subr.bf16.mxu0 %v634_v44  ;;  %618 = vmatprep.subr.bf16.mxu1 %v634_v44 }
  0x1b   :  { %593 = vmatpush3.bf16.msra.mxu0 %v634_v44  ;;  %626 = vmatpush3.bf16.msra.mxu1 %v634_v44 }
  0x1c   :  { %594 = vmatprep.subr.bf16.mxu0 %v635_v61  ;;  %619 = vmatprep.subr.bf16.mxu1 %v635_v61 }
  0x1f   :  { %595 = vmatpush3.bf16.msra.mxu0 %v635_v61  ;;  %627 = vmatpush3.bf16.msra.mxu1 %v635_v61 }
  0x22   :  { %597 = vmatmul.mubr.bf16.vlgmr.msra.gmra.mrb[0].mxu0 %v116_v16  ;;  %605 = vmatmul.mubr.bf16.vlgmr.msra.gmra.mrb[0].mxu1 %v120_v17 }
  0x23   :  { %600 = vmatprep.mubr.bf16.mxu0 %v117_v5  ;;  %608 = vmatprep.mubr.bf16.mxu1 %v121_v20 }
  0x2a   :  { %601 = vmatmul.mubr.bf16.gmra.mrb[4].mxu0 %v118_v25  ;;  %609 = vmatmul.mubr.bf16.gmra.mrb[4].mxu1 %v122_v26 }
  0xf5   :  { %v598_v27 = vpop.f32.mrb[0].mxu0  ;;  %v606_v28 = vpop.f32.mrb[0].mxu1 }
  0xf6   :  { %v221_v29 = vpop.f32.mrb[1].mxu0  ;;  %v253_v10 = vpop.f32.mrb[1].mxu1  ;;  %v388_v41 = vmul.f32 %v598_v27, %v598_v27  ;;  %v396_v15 = vmul.f32 %v606_v28, %v606_v28 }
  0xf7   :  { %v599_v30 = vpop.f32.mrb[2].mxu0  ;;  %v607_v31 = vpop.f32.mrb[2].mxu1  ;;  %v386_v32 = vmul.f32 %v221_v29, %v221_v29  ;;  %v394_v8 = vmul.f32 %v253_v10, %v253_v10 }
  0xf8   :  { %v518_v33 = vpack.c.bf16 %v599_v30, %v598_v27  ;;  %v224_v34 = vpop.f32.mrb[3].mxu0  ;;  %v538_v35 = vpack.c.bf16 %v607_v31, %v606_v28  ;;  %v256_v36 = vpop.f32.mrb[3].mxu1  ;;  %v389_v44 = vmul.f32 %v599_v30, %v599_v30  ;;  %v397_v18 = vmul.f32 %v607_v31, %v607_v31 }
  0xf9   :  { %v513_v37 = vpack.c.bf16 %v224_v34, %v221_v29  ;;  %v364_v38 = vadd.f32 %v224_v34, %v221_v29  ;;  %v387_v39 = vmul.f32 %v224_v34, %v224_v34  ;;  %v533_v40 = vpack.c.bf16 %v256_v36, %v253_v10 }
  0xfa   :  { %557 = vst [vmem:[%s795_s4 + $0x8] sm:$0xff] %v518_v33   ;;  %561 = vst [vmem:[%s795_s4 + $0x28] sm:$0xff] %v538_v35   ;;  %v395_v14 = vmul.f32 %v256_v36, %v256_v36 }
  0xfb   :  { %514 = vst [vmem:[%s795_s4] sm:$0xff] %v513_v37   ;;  %v365_v42 = vadd.f32 %v598_v27, %v364_v38  ;;  %v402_v43 = vadd.f32 %v387_v39, %v386_v32  ;;  %560 = vst [vmem:[%s795_s4 + $0x20] sm:$0xff] %v533_v40  }
  0xfd   :  { %v403_v45 = vadd.f32 %v402_v43, %v388_v41  ;;  %v602_v46 = vpop.f32.mrb[4].mxu0  ;;  %v366_v47 = vadd.f32 %v599_v30, %v365_v42  ;;  %v610_v48 = vpop.f32.mrb[4].mxu1 }
  0xfe   :  { %v237_v49 = vpop.f32.mrb[5].mxu0  ;;  %v269_v50 = vpop.f32.mrb[5].mxu1  ;;  %v392_v1 = vmul.f32 %v602_v46, %v602_v46  ;;  %v400_v26 = vmul.f32 %v610_v48, %v610_v48 }
  0xff   :  { %v367_v51 = vadd.f32 %v366_v47, %v237_v49  ;;  %v390_v52 = vmul.f32 %v237_v49, %v237_v49  ;;  %v404_v53 = vadd.f32 %v403_v45, %v389_v44  ;;  %v603_v54 = vpop.f32.mrb[6].mxu0  ;;  %v611_v55 = vpop.f32.mrb[6].mxu1  ;;  %v398_v20 = vmul.f32 %v269_v50, %v269_v50 }
 0x100   :  { %v528_v56 = vpack.c.bf16 %v603_v54, %v602_v46  ;;  %v240_v57 = vpop.f32.mrb[7].mxu0  ;;  %v548_v58 = vpack.c.bf16 %v611_v55, %v610_v48  ;;  %v272_v59 = vpop.f32.mrb[7].mxu1  ;;  %v393_v4 = vmul.f32 %v603_v54, %v603_v54 }
 0x101   :  { %v405_v60 = vadd.f32 %v404_v53, %v390_v52  ;;  %v523_v61 = vpack.c.bf16 %v240_v57, %v237_v49  ;;  %v368_v62 = vadd.f32 %v367_v51, %v240_v57  ;;  %v391_v63 = vmul.f32 %v240_v57, %v240_v57 }
 0x102   :  { %559 = vst [vmem:[%s795_s4 + $0x18] sm:$0xff] %v528_v56   ;;  %563 = vst [vmem:[%s795_s4 + $0x38] sm:$0xff] %v548_v58   ;;  %v543_v0 = vpack.c.bf16 %v272_v59, %v269_v50  ;;  %v399_v25 = vmul.f32 %v272_v59, %v272_v59 }
 0x103   :  { %558 = vst [vmem:[%s795_s4 + $0x10] sm:$0xff] %v523_v61   ;;  %v369_v2 = vadd.f32 %v602_v46, %v368_v62  ;;  %v406_v3 = vadd.f32 %v405_v60, %v391_v63 }
 0x104   :  { %562 = vst [vmem:[%s795_s4 + $0x30] sm:$0xff] %v543_v0  }
 0x105   :  { %v407_v6 = vadd.f32 %v406_v3, %v392_v1  ;;  %v370_v7 = vadd.f32 %v603_v54, %v369_v2 }
 0x107   :  { %v371_v9 = vadd.f32 %v370_v7, %v253_v10  ;;  %v408_v11 = vadd.f32 %v407_v6, %v393_v4  ;;  %v401_v10 = vmul.f32 %v611_v55, %v611_v55 }
 0x109   :  { %v409_v12 = vadd.f32 %v408_v11, %v394_v8  ;;  %v372_v13 = vadd.f32 %v371_v9, %v256_v36 }
 0x10b   :  { %v373_v16 = vadd.f32 %v606_v28, %v372_v13  ;;  %v410_v17 = vadd.f32 %v409_v12, %v395_v14 }
 0x10d   :  { %v411_v19 = vadd.f32 %v410_v17, %v396_v15  ;;  %v374_v5 = vadd.f32 %v607_v31, %v373_v16 }
 0x10f   :  { %v375_v21 = vadd.f32 %v374_v5, %v269_v50  ;;  %v412_v22 = vadd.f32 %v411_v19, %v397_v18 }
 0x111   :  { %v413_v23 = vadd.f32 %v412_v22, %v398_v20  ;;  %v376_v24 = vadd.f32 %v375_v21, %v272_v59 }
 0x113   :  { %v377_v27 = vadd.f32 %v610_v48, %v376_v24  ;;  %v414_v29 = vadd.f32 %v413_v23, %v399_v25 }
 0x115   :  { %v378_v30 = vadd.f32 %v611_v55, %v377_v27  ;;  %v415_v32 = vadd.f32 %v414_v29, %v400_v26 }
 0x117   :  { %v379_v33 = vrot.slane %v378_v30, 4  ;;  %v416_v34 = vadd.f32 %v415_v32, %v401_v10 }
 0x119   :  { %v380_v35 = vadd.f32 %v379_v33, %v378_v30  ;;  %v417_v28 = vrot.slane %v416_v34, 4 }
 0x11b   :  { %v381_v36 = vrot.slane %v380_v35, 2  ;;  %v418_v37 = vadd.f32 %v417_v28, %v416_v34 }
 0x11d   :  { %v382_v38 = vadd.f32 %v381_v36, %v380_v35  ;;  %v419_v31 = vrot.slane %v418_v37, 2 }
 0x11f   :  { %v383_v39 = vrot.slane %v382_v38, 1  ;;  %v420_v40 = vadd.f32 %v419_v31, %v418_v37 }
 0x121   :  { %v384_v41 = vadd.f32 %v383_v39, %v382_v38  ;;  %v421_v42 = vrot.slane %v420_v40, 1 }
 0x123   :  { %385 = vst [vmem:[%s796_s5] sm:$0x1] %v384_v41  ;;  %v422_v43 = vadd.f32 %v421_v42, %v420_v40 }
 0x125   :  { %423 = vst [vmem:[%s797_s6] sm:$0x1] %v422_v43 }

// kernel: block_group_forward.13
= control target key start
LH: loop header
LB: loop body
LE: loop exit
PB: predicated region body
PF: predicated region fallthrough
CT: control target
= control target key end

     0   :  { %s647_s0 = inlined_call_operand.vmem [shape: bf16[128,128], index: 0, kind: input, shape index: {}]   ;;  %s648_s1 = inlined_call_operand.vmem [shape: f32[1,128], index: 1, kind: input, shape index: {}]   ;;  %s649_s2 = inlined_call_operand.vmem [shape: f32[1,128], index: 2, kind: input, shape index: {}]   ;;  %s650_s3 = inlined_call_operand.vmem [shape: bf16[128,128], index: 3, kind: input, shape index: {}]   ;;  %s651_s4 = inlined_call_operand.vmem [shape: f32[1,128], index: 4, kind: input, shape index: {}]   ;;  %s652_s5 = inlined_call_operand.vmem [shape: f32[1,128], index: 5, kind: input, shape index: {}]   ;;  %s653_s6 = inlined_call_operand.vmem [shape: bf16[128,128], index: 6, kind: output, shape index: {}]  }
   0x1   :  { %v332_v0 = vld [vmem:[%s647_s0] sm:$0xff]   ;;  %v435_v9 = vld [vmem:[%s647_s0 + $0x8] sm:$0xff]   ;;  %v436_v11 = vld [vmem:[%s647_s0 + $0x10] sm:$0xff]  }
   0x2   :  { %v364_v1 = vld [vmem:[%s650_s3] sm:$0xff]   ;;  %v333_v3 = vunpack.c.l.bf16 %v332_v0  ;;  %v334_v4 = vunpack.c.h.bf16 %v332_v0  ;;  %v442_v10 = vld [vmem:[%s650_s3 + $0x8] sm:$0xff]   ;;  %v337_v16 = vunpack.c.l.bf16 %v435_v9  ;;  %v338_v17 = vunpack.c.h.bf16 %v435_v9  ;;  %v443_v20 = vld [vmem:[%s650_s3 + $0x10] sm:$0xff]  }
   0x3   :  { %v500_v2 = vld [vmem:[%s648_s1] ss:$0 sm:$0xff]  ;;  %v365_v5 = vunpack.c.l.bf16 %v364_v1  ;;  %v366_v6 = vunpack.c.h.bf16 %v364_v1  ;;  %v369_v18 = vunpack.c.l.bf16 %v442_v10  ;;  %v370_v19 = vunpack.c.h.bf16 %v442_v10  ;;  %v437_v38 = vld [vmem:[%s647_s0 + $0x18] sm:$0xff]   ;;  %v439_v9 = vld [vmem:[%s647_s0 + $0x28] sm:$0xff]  }
   0x4   :  { %v505_v7 = vld [vmem:[%s649_s2] ss:$0 sm:$0xff]  ;;  %v94_v12 = vmul.f32 %v333_v3, %v500_v2  ;;  %v95_v13 = vmul.f32 %v334_v4, %v500_v2  ;;  %v341_v23 = vunpack.c.l.bf16 %v436_v11  ;;  %v342_v24 = vunpack.c.h.bf16 %v436_v11  ;;  %v444_v47 = vld [vmem:[%s650_s3 + $0x18] sm:$0xff]  }
   0x5   :  { %v510_v8 = vld [vmem:[%s651_s4] ss:$0 sm:$0xff]  ;;  %v96_v26 = vmul.f32 %v337_v16, %v500_v2  ;;  %v97_v27 = vmul.f32 %v338_v17, %v500_v2  ;;  %v373_v32 = vunpack.c.l.bf16 %v443_v20  ;;  %v374_v33 = vunpack.c.h.bf16 %v443_v20 }
   0x6   :  { %v140_v14 = vmul.f32 %v365_v5, %v510_v8  ;;  %v141_v15 = vmul.f32 %v366_v6, %v510_v8  ;;  %v117_v21 = vadd.f32 %v505_v7, %v94_v12  ;;  %v118_v22 = vadd.f32 %v505_v7, %v95_v13  ;;  %v533_v25 = vld [vmem:[%s652_s5] ss:$0 sm:$0xff] }
   0x7   :  { %v142_v28 = vmul.f32 %v369_v18, %v510_v8  ;;  %v143_v29 = vmul.f32 %v370_v19, %v510_v8  ;;  %v119_v34 = vadd.f32 %v505_v7, %v96_v26  ;;  %v120_v35 = vadd.f32 %v505_v7, %v97_v27  ;;  %v438_v60 = vld [vmem:[%s647_s0 + $0x20] sm:$0xff]   ;;  %v446_v18 = vld [vmem:[%s650_s3 + $0x28] sm:$0xff]  }
   0x8   :  { %v156_v30 = vadd.f32 %v140_v14, %v117_v21  ;;  %v157_v31 = vadd.f32 %v141_v15, %v118_v22  ;;  %v98_v36 = vmul.f32 %v341_v23, %v500_v2  ;;  %v99_v37 = vmul.f32 %v342_v24, %v500_v2  ;;  %v445_v1 = vld [vmem:[%s650_s3 + $0x20] sm:$0xff]  }
   0x9   :  { %v144_v41 = vmul.f32 %v373_v32, %v510_v8  ;;  %v145_v42 = vmul.f32 %v374_v33, %v510_v8  ;;  %v158_v43 = vadd.f32 %v142_v28, %v119_v34  ;;  %v159_v44 = vadd.f32 %v143_v29, %v120_v35  ;;  %v440_v32 = vld [vmem:[%s647_s0 + $0x30] sm:$0xff]  }
   0xa   :  { %v179_v39 = vadd.f32 %v533_v25, %v156_v30  ;;  %v180_v40 = vadd.f32 %v533_v25, %v157_v31  ;;  %v121_v45 = vadd.f32 %v505_v7, %v98_v36  ;;  %v122_v46 = vadd.f32 %v505_v7, %v99_v37 }
   0xb   :  { %v345_v50 = vunpack.c.l.bf16 %v437_v38  ;;  %v346_v51 = vunpack.c.h.bf16 %v437_v38  ;;  %v181_v52 = vadd.f32 %v533_v25, %v158_v43  ;;  %v182_v53 = vadd.f32 %v533_v25, %v159_v44 }
   0xc   :  { %v195_v48 = vmax.f32 %v179_v39, 0.0  ;;  %v196_v49 = vmax.f32 %v180_v40, 0.0  ;;  %v160_v54 = vadd.f32 %v144_v41, %v121_v45  ;;  %v161_v55 = vadd.f32 %v145_v42, %v122_v46  ;;  %v447_v41 = vld [vmem:[%s650_s3 + $0x30] sm:$0xff]  }
   0xd   :  { %v377_v57 = vunpack.c.l.bf16 %v444_v47  ;;  %v378_v58 = vunpack.c.h.bf16 %v444_v47  ;;  %v100_v59 = vmul.f32 %v345_v50, %v500_v2  ;;  %v197_v61 = vmax.f32 %v181_v52, 0.0 }
   0xe   :  { %v398_v56 = vpack.c.bf16 %v196_v49, %v195_v48  ;;  %v198_v62 = vmax.f32 %v182_v53, 0.0  ;;  %v183_v63 = vadd.f32 %v533_v25, %v160_v54  ;;  %v184_v0 = vadd.f32 %v533_v25, %v161_v55  ;;  %v441_v54 = vld [vmem:[%s647_s0 + $0x38] sm:$0xff]  }
   0xf   :  { %v101_v3 = vmul.f32 %v346_v51, %v500_v2  ;;  %v123_v4 = vadd.f32 %v505_v7, %v100_v59  ;;  %v146_v5 = vmul.f32 %v377_v57, %v510_v8  ;;  %v147_v6 = vmul.f32 %v378_v58, %v510_v8  ;;  %v448_v59 = vld [vmem:[%s650_s3 + $0x38] sm:$0xff]  }
  0x10   :  { %399 = vst [vmem:[%s653_s6] sm:$0xff] %v398_v56   ;;  %v403_v10 = vpack.c.bf16 %v198_v62, %v197_v61  ;;  %v199_v11 = vmax.f32 %v183_v63, 0.0  ;;  %v200_v12 = vmax.f32 %v184_v0, 0.0  ;;  %v349_v13 = vunpack.c.l.bf16 %v438_v60 }
  0x11   :  { %v124_v14 = vadd.f32 %v505_v7, %v101_v3  ;;  %v162_v15 = vadd.f32 %v146_v5, %v123_v4  ;;  %v350_v16 = vunpack.c.h.bf16 %v438_v60  ;;  %v381_v17 = vunpack.c.l.bf16 %v445_v1 }
  0x12   :  { %449 = vst [vmem:[%s653_s6 + $0x8] sm:$0xff] %v403_v10   ;;  %v408_v19 = vpack.c.bf16 %v200_v12, %v199_v11  ;;  %v382_v20 = vunpack.c.h.bf16 %v445_v1  ;;  %v102_v21 = vmul.f32 %v349_v13, %v500_v2  ;;  %v353_v22 = vunpack.c.l.bf16 %v439_v9 }
  0x13   :  { %v163_v23 = vadd.f32 %v147_v6, %v124_v14  ;;  %v185_v24 = vadd.f32 %v533_v25, %v162_v15  ;;  %v103_v26 = vmul.f32 %v350_v16, %v500_v2  ;;  %v148_v27 = vmul.f32 %v381_v17, %v510_v8 }
  0x14   :  { %450 = vst [vmem:[%s653_s6 + $0x10] sm:$0xff] %v408_v19   ;;  %v125_v28 = vadd.f32 %v505_v7, %v102_v21  ;;  %v149_v29 = vmul.f32 %v382_v20, %v510_v8  ;;  %v354_v30 = vunpack.c.h.bf16 %v439_v9  ;;  %v385_v31 = vunpack.c.l.bf16 %v446_v18 }
  0x15   :  { %v186_v33 = vadd.f32 %v533_v25, %v163_v23  ;;  %v201_v34 = vmax.f32 %v185_v24, 0.0  ;;  %v126_v35 = vadd.f32 %v505_v7, %v103_v26  ;;  %v386_v36 = vunpack.c.h.bf16 %v446_v18 }
  0x16   :  { %v164_v37 = vadd.f32 %v148_v27, %v125_v28  ;;  %v104_v38 = vmul.f32 %v353_v22, %v500_v2  ;;  %v105_v39 = vmul.f32 %v354_v30, %v500_v2  ;;  %v150_v40 = vmul.f32 %v385_v31, %v510_v8 }
  0x17   :  { %v202_v42 = vmax.f32 %v186_v33, 0.0  ;;  %v165_v43 = vadd.f32 %v149_v29, %v126_v35  ;;  %v151_v44 = vmul.f32 %v386_v36, %v510_v8  ;;  %v357_v45 = vunpack.c.l.bf16 %v440_v32 }
  0x18   :  { %v187_v46 = vadd.f32 %v533_v25, %v164_v37  ;;  %v127_v47 = vadd.f32 %v505_v7, %v104_v38  ;;  %v128_v48 = vadd.f32 %v505_v7, %v105_v39  ;;  %v358_v49 = vunpack.c.h.bf16 %v440_v32 }
  0x19   :  { %v413_v50 = vpack.c.bf16 %v202_v42, %v201_v34  ;;  %v188_v51 = vadd.f32 %v533_v25, %v165_v43  ;;  %v389_v52 = vunpack.c.l.bf16 %v447_v41  ;;  %v390_v53 = vunpack.c.h.bf16 %v447_v41 }
  0x1a   :  { %v203_v55 = vmax.f32 %v187_v46, 0.0  ;;  %v166_v56 = vadd.f32 %v150_v40, %v127_v47  ;;  %v167_v57 = vadd.f32 %v151_v44, %v128_v48  ;;  %v106_v58 = vmul.f32 %v357_v45, %v500_v2 }
  0x1b   :  { %451 = vst [vmem:[%s653_s6 + $0x18] sm:$0xff] %v413_v50   ;;  %v204_v60 = vmax.f32 %v188_v51, 0.0  ;;  %v107_v61 = vmul.f32 %v358_v49, %v500_v2  ;;  %v152_v62 = vmul.f32 %v389_v52, %v510_v8  ;;  %v153_v63 = vmul.f32 %v390_v53, %v510_v8 }
  0x1c   :  { %v189_v0 = vadd.f32 %v533_v25, %v166_v56  ;;  %v190_v1 = vadd.f32 %v533_v25, %v167_v57  ;;  %v129_v3 = vadd.f32 %v505_v7, %v106_v58  ;;  %v361_v4 = vunpack.c.l.bf16 %v441_v54 }
  0x1d   :  { %v418_v5 = vpack.c.bf16 %v204_v60, %v203_v55  ;;  %v130_v6 = vadd.f32 %v505_v7, %v107_v61  ;;  %v362_v9 = vunpack.c.h.bf16 %v441_v54  ;;  %v393_v10 = vunpack.c.l.bf16 %v448_v59 }
  0x1e   :  { %v205_v11 = vmax.f32 %v189_v0, 0.0  ;;  %v206_v12 = vmax.f32 %v190_v1, 0.0  ;;  %v168_v13 = vadd.f32 %v152_v62, %v129_v3  ;;  %v394_v14 = vunpack.c.h.bf16 %v448_v59 }
  0x1f   :  { %452 = vst [vmem:[%s653_s6 + $0x20] sm:$0xff] %v418_v5   ;;  %v169_v15 = vadd.f32 %v153_v63, %v130_v6  ;;  %v108_v16 = vmul.f32 %v361_v4, %v500_v2  ;;  %v109_v17 = vmul.f32 %v362_v9, %v500_v2  ;;  %v154_v18 = vmul.f32 %v393_v10, %v510_v8 }
  0x20   :  { %v423_v19 = vpack.c.bf16 %v206_v12, %v205_v11  ;;  %v191_v20 = vadd.f32 %v533_v25, %v168_v13  ;;  %v155_v21 = vmul.f32 %v394_v14, %v510_v8 }
  0x21   :  { %v192_v22 = vadd.f32 %v533_v25, %v169_v15  ;;  %v131_v23 = vadd.f32 %v505_v7, %v108_v16  ;;  %v132_v24 = vadd.f32 %v505_v7, %v109_v17 }
  0x22   :  { %453 = vst [vmem:[%s653_s6 + $0x28] sm:$0xff] %v423_v19   ;;  %v207_v26 = vmax.f32 %v191_v20, 0.0 }
  0x23   :  { %v208_v27 = vmax.f32 %v192_v22, 0.0  ;;  %v170_v2 = vadd.f32 %v154_v18, %v131_v23  ;;  %v171_v28 = vadd.f32 %v155_v21, %v132_v24 }
  0x25   :  { %v428_v29 = vpack.c.bf16 %v208_v27, %v207_v26  ;;  %v193_v30 = vadd.f32 %v533_v25, %v170_v2  ;;  %v194_v31 = vadd.f32 %v533_v25, %v171_v28 }
  0x27   :  { %454 = vst [vmem:[%s653_s6 + $0x30] sm:$0xff] %v428_v29   ;;  %v209_v8 = vmax.f32 %v193_v30, 0.0  ;;  %v210_v32 = vmax.f32 %v194_v31, 0.0 }
  0x29   :  { %v433_v7 = vpack.c.bf16 %v210_v32, %v209_v8 }
  0x2b   :  { %455 = vst [vmem:[%s653_s6 + $0x38] sm:$0xff] %v433_v7  }

// kernel: block_group_forward.9
= control target key start
LH: loop header
LB: loop body
LE: loop exit
PB: predicated region body
PF: predicated region fallthrough
CT: control target
= control target key end

     0   :  { %s670_s1 = inlined_call_operand.vmem [shape: bf16[128,128], index: 1, kind: input, shape index: {}]   ;;  %s671_s0 = inlined_call_operand.vmem [shape: bf16[128,128], index: 0, kind: input, shape index: {}]   ;;  %s672_s2 = inlined_call_operand.vmem [shape: bf16[128,128], index: 2, kind: output, shape index: {0}]   ;;  %s673_s3 = inlined_call_operand.vmem [shape: f32[1,1,128], index: 3, kind: output, shape index: {1}]   ;;  %s674_s4 = inlined_call_operand.vmem [shape: f32[1,1,128], index: 4, kind: output, shape index: {2}]  }
   0x1   :  { %v551_v0 = vld [vmem:[%s670_s1] sm:$0xff]   ;;  %v552_v1 = vld [vmem:[%s670_s1 + $0x8] sm:$0xff]   ;;  %v553_v2 = vld [vmem:[%s670_s1 + $0x10] sm:$0xff]  }
   0x2   :  { %503 = vmatprep.subr.bf16.mxu0 %v551_v0  ;;  %535 = vmatprep.subr.bf16.mxu1 %v551_v0  ;;  %v554_v3 = vld [vmem:[%s670_s1 + $0x18] sm:$0xff]   ;;  %v559_v4 = vld [vmem:[%s671_s0] sm:$0xff]   ;;  %v556_v7 = vld [vmem:[%s670_s1 + $0x28] sm:$0xff]  }
   0x3   :  { %504 = vmatpush3.bf16.msra.mxu0 %v551_v0  ;;  %543 = vmatpush3.bf16.msra.mxu1 %v551_v0  ;;  %v555_v5 = vld [vmem:[%s670_s1 + $0x20] sm:$0xff]   ;;  %v557_v8 = vld [vmem:[%s670_s1 + $0x30] sm:$0xff]   ;;  %v558_v9 = vld [vmem:[%s670_s1 + $0x38] sm:$0xff]  }
   0x4   :  { %505 = vmatprep.subr.bf16.mxu0 %v552_v1  ;;  %536 = vmatprep.subr.bf16.mxu1 %v552_v1  ;;  %v563_v6 = vld [vmem:[%s671_s0 + $0x20] sm:$0xff]   ;;  %v560_v10 = vld [vmem:[%s671_s0 + $0x8] sm:$0xff]   ;;  %v561_v12 = vld [vmem:[%s671_s0 + $0x10] sm:$0xff]  }
   0x5   :  { %519 = vmatprep.mubr.bf16.mxu0 %v559_v4  ;;  %527 = vmatprep.mubr.bf16.mxu1 %v563_v6  ;;  %v564_v11 = vld [vmem:[%s671_s0 + $0x28] sm:$0xff]   ;;  %v565_v13 = vld [vmem:[%s671_s0 + $0x30] sm:$0xff]   ;;  %v562_v14 = vld [vmem:[%s671_s0 + $0x18] sm:$0xff]  }
   0x6   :  { %v566_v15 = vld [vmem:[%s671_s0 + $0x38] sm:$0xff]  }
   0x7   :  { %506 = vmatpush3.bf16.msra.mxu0 %v552_v1  ;;  %544 = vmatpush3.bf16.msra.mxu1 %v552_v1 }
   0x8   :  { %507 = vmatprep.subr.bf16.mxu0 %v553_v2  ;;  %537 = vmatprep.subr.bf16.mxu1 %v553_v2 }
   0xb   :  { %508 = vmatpush3.bf16.msra.mxu0 %v553_v2  ;;  %545 = vmatpush3.bf16.msra.mxu1 %v553_v2 }
   0xc   :  { %509 = vmatprep.subr.bf16.mxu0 %v554_v3  ;;  %538 = vmatprep.subr.bf16.mxu1 %v554_v3 }
   0xf   :  { %510 = vmatpush3.bf16.msra.mxu0 %v554_v3  ;;  %546 = vmatpush3.bf16.msra.mxu1 %v554_v3 }
  0x10   :  { %511 = vmatprep.subr.bf16.mxu0 %v555_v5  ;;  %539 = vmatprep.subr.bf16.mxu1 %v555_v5 }
  0x13   :  { %512 = vmatpush3.bf16.msra.mxu0 %v555_v5  ;;  %547 = vmatpush3.bf16.msra.mxu1 %v555_v5 }
  0x14   :  { %513 = vmatprep.subr.bf16.mxu0 %v556_v7  ;;  %540 = vmatprep.subr.bf16.mxu1 %v556_v7 }
  0x17   :  { %514 = vmatpush3.bf16.msra.mxu0 %v556_v7  ;;  %548 = vmatpush3.bf16.msra.mxu1 %v556_v7 }
  0x18   :  { %515 = vmatprep.subr.bf16.mxu0 %v557_v8  ;;  %541 = vmatprep.subr.bf16.mxu1 %v557_v8 }
  0x1b   :  { %516 = vmatpush3.bf16.msra.mxu0 %v557_v8  ;;  %549 = vmatpush3.bf16.msra.mxu1 %v557_v8 }
  0x1c   :  { %517 = vmatprep.subr.bf16.mxu0 %v558_v9  ;;  %542 = vmatprep.subr.bf16.mxu1 %v558_v9 }
  0x1f   :  { %518 = vmatpush3.bf16.msra.mxu0 %v558_v9  ;;  %550 = vmatpush3.bf16.msra.mxu1 %v558_v9 }
  0x22   :  { %520 = vmatmul.mubr.bf16.vlgmr.msra.gmra.mrb[0].mxu0 %v560_v10  ;;  %528 = vmatmul.mubr.bf16.vlgmr.msra.gmra.mrb[0].mxu1 %v564_v11 }
  0x23   :  { %523 = vmatprep.mubr.bf16.mxu0 %v561_v12  ;;  %531 = vmatprep.mubr.bf16.mxu1 %v565_v13 }
  0x2a   :  { %524 = vmatmul.mubr.bf16.gmra.mrb[4].mxu0 %v562_v14  ;;  %532 = vmatmul.mubr.bf16.gmra.mrb[4].mxu1 %v566_v15 }
  0xf5   :  { %v521_v16 = vpop.f32.mrb[0].mxu0  ;;  %v529_v17 = vpop.f32.mrb[0].mxu1 }
  0xf6   :  { %v177_v18 = vpop.f32.mrb[1].mxu0  ;;  %v209_v19 = vpop.f32.mrb[1].mxu1  ;;  %v344_v31 = vmul.f32 %v521_v16, %v521_v16  ;;  %v352_v3 = vmul.f32 %v529_v17, %v529_v17 }
  0xf7   :  { %v522_v20 = vpop.f32.mrb[2].mxu0  ;;  %v530_v21 = vpop.f32.mrb[2].mxu1  ;;  %v342_v22 = vmul.f32 %v177_v18, %v177_v18  ;;  %v350_v61 = vmul.f32 %v209_v19, %v209_v19 }
  0xf8   :  { %v448_v23 = vpack.c.bf16 %v522_v20, %v521_v16  ;;  %v180_v24 = vpop.f32.mrb[3].mxu0  ;;  %v468_v25 = vpack.c.bf16 %v530_v21, %v529_v17  ;;  %v212_v26 = vpop.f32.mrb[3].mxu1  ;;  %v345_v34 = vmul.f32 %v522_v20, %v522_v20  ;;  %v353_v6 = vmul.f32 %v530_v21, %v530_v21 }
  0xf9   :  { %v443_v27 = vpack.c.bf16 %v180_v24, %v177_v18  ;;  %v320_v28 = vadd.f32 %v180_v24, %v177_v18  ;;  %v343_v29 = vmul.f32 %v180_v24, %v180_v24  ;;  %v463_v30 = vpack.c.bf16 %v212_v26, %v209_v19 }
  0xfa   :  { %480 = vst [vmem:[%s672_s2 + $0x8] sm:$0xff] %v448_v23   ;;  %484 = vst [vmem:[%s672_s2 + $0x28] sm:$0xff] %v468_v25   ;;  %v351_v2 = vmul.f32 %v212_v26, %v212_v26 }
  0xfb   :  { %444 = vst [vmem:[%s672_s2] sm:$0xff] %v443_v27   ;;  %v321_v32 = vadd.f32 %v521_v16, %v320_v28  ;;  %v358_v33 = vadd.f32 %v343_v29, %v342_v22  ;;  %483 = vst [vmem:[%s672_s2 + $0x20] sm:$0xff] %v463_v30  }
  0xfd   :  { %v359_v35 = vadd.f32 %v358_v33, %v344_v31  ;;  %v525_v36 = vpop.f32.mrb[4].mxu0  ;;  %v322_v37 = vadd.f32 %v522_v20, %v321_v32  ;;  %v533_v38 = vpop.f32.mrb[4].mxu1 }
  0xfe   :  { %v193_v39 = vpop.f32.mrb[5].mxu0  ;;  %v225_v40 = vpop.f32.mrb[5].mxu1  ;;  %v348_v55 = vmul.f32 %v525_v36, %v525_v36  ;;  %v356_v15 = vmul.f32 %v533_v38, %v533_v38 }
  0xff   :  { %v323_v41 = vadd.f32 %v322_v37, %v193_v39  ;;  %v346_v42 = vmul.f32 %v193_v39, %v193_v39  ;;  %v360_v43 = vadd.f32 %v359_v35, %v345_v34  ;;  %v526_v44 = vpop.f32.mrb[6].mxu0  ;;  %v534_v45 = vpop.f32.mrb[6].mxu1  ;;  %v354_v9 = vmul.f32 %v225_v40, %v225_v40 }
 0x100   :  { %v458_v46 = vpack.c.bf16 %v526_v44, %v525_v36  ;;  %v196_v47 = vpop.f32.mrb[7].mxu0  ;;  %v478_v48 = vpack.c.bf16 %v534_v45, %v533_v38  ;;  %v228_v49 = vpop.f32.mrb[7].mxu1  ;;  %v349_v58 = vmul.f32 %v526_v44, %v526_v44 }
 0x101   :  { %v361_v50 = vadd.f32 %v360_v43, %v346_v42  ;;  %v453_v51 = vpack.c.bf16 %v196_v47, %v193_v39  ;;  %v324_v52 = vadd.f32 %v323_v41, %v196_v47  ;;  %v347_v53 = vmul.f32 %v196_v47, %v196_v47 }
 0x102   :  { %482 = vst [vmem:[%s672_s2 + $0x18] sm:$0xff] %v458_v46   ;;  %486 = vst [vmem:[%s672_s2 + $0x38] sm:$0xff] %v478_v48   ;;  %v473_v54 = vpack.c.bf16 %v228_v49, %v225_v40  ;;  %v355_v14 = vmul.f32 %v228_v49, %v228_v49 }
 0x103   :  { %481 = vst [vmem:[%s672_s2 + $0x10] sm:$0xff] %v453_v51   ;;  %v325_v56 = vadd.f32 %v525_v36, %v324_v52  ;;  %v362_v57 = vadd.f32 %v361_v50, %v347_v53 }
 0x104   :  { %485 = vst [vmem:[%s672_s2 + $0x30] sm:$0xff] %v473_v54  }
 0x105   :  { %v363_v59 = vadd.f32 %v362_v57, %v348_v55  ;;  %v326_v60 = vadd.f32 %v526_v44, %v325_v56 }
 0x107   :  { %v327_v62 = vadd.f32 %v326_v60, %v209_v19  ;;  %v364_v63 = vadd.f32 %v363_v59, %v349_v58  ;;  %v357_v19 = vmul.f32 %v534_v45, %v534_v45 }
 0x109   :  { %v365_v0 = vadd.f32 %v364_v63, %v350_v61  ;;  %v328_v1 = vadd.f32 %v327_v62, %v212_v26 }
 0x10b   :  { %v329_v4 = vadd.f32 %v529_v17, %v328_v1  ;;  %v366_v5 = vadd.f32 %v365_v0, %v351_v2 }
 0x10d   :  { %v367_v7 = vadd.f32 %v366_v5, %v352_v3  ;;  %v330_v8 = vadd.f32 %v530_v21, %v329_v4 }
 0x10f   :  { %v331_v10 = vadd.f32 %v330_v8, %v225_v40  ;;  %v368_v11 = vadd.f32 %v367_v7, %v353_v6 }
 0x111   :  { %v369_v12 = vadd.f32 %v368_v11, %v354_v9  ;;  %v332_v13 = vadd.f32 %v331_v10, %v228_v49 }
 0x113   :  { %v333_v16 = vadd.f32 %v533_v38, %v332_v13  ;;  %v370_v18 = vadd.f32 %v369_v12, %v355_v14 }
 0x115   :  { %v334_v20 = vadd.f32 %v534_v45, %v333_v16  ;;  %v371_v22 = vadd.f32 %v370_v18, %v356_v15 }
 0x117   :  { %v335_v23 = vrot.slane %v334_v20, 4  ;;  %v372_v24 = vadd.f32 %v371_v22, %v357_v19 }
 0x119   :  { %v336_v25 = vadd.f32 %v335_v23, %v334_v20  ;;  %v373_v17 = vrot.slane %v372_v24, 4 }
 0x11b   :  { %v337_v26 = vrot.slane %v336_v25, 2  ;;  %v374_v27 = vadd.f32 %v373_v17, %v372_v24 }
 0x11d   :  { %v338_v28 = vadd.f32 %v337_v26, %v336_v25  ;;  %v375_v21 = vrot.slane %v374_v27, 2 }
 0x11f   :  { %v339_v29 = vrot.slane %v338_v28, 1  ;;  %v376_v30 = vadd.f32 %v375_v21, %v374_v27 }
 0x121   :  { %v340_v31 = vadd.f32 %v339_v29, %v338_v28  ;;  %v377_v32 = vrot.slane %v376_v30, 1 }
 0x123   :  { %341 = vst [vmem:[%s673_s3] sm:$0x1] %v340_v31  ;;  %v378_v33 = vadd.f32 %v377_v32, %v376_v30 }
 0x125   :  { %379 = vst [vmem:[%s674_s4] sm:$0x1] %v378_v33 }

// kernel: block_group_forward.17
= control target key start
LH: loop header
LB: loop body
LE: loop exit
PB: predicated region body
PF: predicated region fallthrough
CT: control target
= control target key end

     0   :  { %s541_s0 = inlined_call_operand.vmem [shape: bf16[128,128], index: 0, kind: input, shape index: {}]   ;;  %s542_s1 = inlined_call_operand.vmem [shape: f32[1,128], index: 1, kind: input, shape index: {}]   ;;  %s543_s2 = inlined_call_operand.vmem [shape: f32[1,128], index: 2, kind: input, shape index: {}]   ;;  %s544_s3 = inlined_call_operand.vmem [shape: bf16[128,128], index: 3, kind: input, shape index: {}]   ;;  %s545_s4 = inlined_call_operand.vmem [shape: bf16[128,128], index: 4, kind: output, shape index: {}]  }
   0x1   :  { %v278_v0 = vld [vmem:[%s541_s0] sm:$0xff]   ;;  %v381_v5 = vld [vmem:[%s541_s0 + $0x8] sm:$0xff]   ;;  %v382_v12 = vld [vmem:[%s541_s0 + $0x10] sm:$0xff]  }
   0x2   :  { %v433_v1 = vld [vmem:[%s542_s1] ss:$0 sm:$0xff]  ;;  %v279_v2 = vunpack.c.l.bf16 %v278_v0  ;;  %v280_v3 = vunpack.c.h.bf16 %v278_v0  ;;  %v388_v6 = vld [vmem:[%s544_s3 + $0x8] sm:$0xff]   ;;  %v283_v10 = vunpack.c.l.bf16 %v381_v5  ;;  %v284_v11 = vunpack.c.h.bf16 %v381_v5  ;;  %v389_v13 = vld [vmem:[%s544_s3 + $0x10] sm:$0xff]  }
   0x3   :  { %v310_v4 = vld [vmem:[%s544_s3] sm:$0xff]   ;;  %v315_v16 = vunpack.c.l.bf16 %v388_v6  ;;  %v316_v17 = vunpack.c.h.bf16 %v388_v6  ;;  %v287_v20 = vunpack.c.l.bf16 %v382_v12  ;;  %v288_v21 = vunpack.c.h.bf16 %v382_v12  ;;  %v383_v22 = vld [vmem:[%s541_s0 + $0x18] sm:$0xff]   ;;  %v385_v54 = vld [vmem:[%s541_s0 + $0x28] sm:$0xff]  }
   0x4   :  { %v447_v7 = vld [vmem:[%s543_s2] ss:$0 sm:$0xff]  ;;  %v311_v8 = vunpack.c.l.bf16 %v310_v4  ;;  %v312_v9 = vunpack.c.h.bf16 %v310_v4  ;;  %v56_v14 = vmul.f32 %v279_v2, %v433_v1  ;;  %v57_v15 = vmul.f32 %v280_v3, %v433_v1  ;;  %v390_v39 = vld [vmem:[%s544_s3 + $0x18] sm:$0xff]   ;;  %v392_v63 = vld [vmem:[%s544_s3 + $0x28] sm:$0xff]  }
   0x5   :  { %v58_v18 = vmul.f32 %v283_v10, %v433_v1  ;;  %v59_v19 = vmul.f32 %v284_v11, %v433_v1  ;;  %v319_v25 = vunpack.c.l.bf16 %v389_v13  ;;  %v320_v26 = vunpack.c.h.bf16 %v389_v13  ;;  %v384_v48 = vld [vmem:[%s541_s0 + $0x20] sm:$0xff]   ;;  %v386_v5 = vld [vmem:[%s541_s0 + $0x30] sm:$0xff]  }
   0x6   :  { %v79_v23 = vadd.f32 %v447_v7, %v56_v14  ;;  %v80_v24 = vadd.f32 %v447_v7, %v57_v15  ;;  %v60_v29 = vmul.f32 %v287_v20, %v433_v1  ;;  %v61_v30 = vmul.f32 %v288_v21, %v433_v1  ;;  %v391_v49 = vld [vmem:[%s544_s3 + $0x20] sm:$0xff]   ;;  %v393_v11 = vld [vmem:[%s544_s3 + $0x30] sm:$0xff]   ;;  %v387_v20 = vld [vmem:[%s541_s0 + $0x38] sm:$0xff]  }
   0x7   :  { %v81_v27 = vadd.f32 %v447_v7, %v58_v18  ;;  %v82_v28 = vadd.f32 %v447_v7, %v59_v19  ;;  %v291_v33 = vunpack.c.l.bf16 %v383_v22  ;;  %v292_v34 = vunpack.c.h.bf16 %v383_v22 }
   0x8   :  { %v127_v31 = vadd.f32 %v311_v8, %v79_v23  ;;  %v128_v32 = vadd.f32 %v312_v9, %v80_v24  ;;  %v83_v37 = vadd.f32 %v447_v7, %v60_v29  ;;  %v84_v38 = vadd.f32 %v447_v7, %v61_v30 }
   0x9   :  { %v129_v35 = vadd.f32 %v315_v16, %v81_v27  ;;  %v130_v36 = vadd.f32 %v316_v17, %v82_v28  ;;  %v62_v42 = vmul.f32 %v291_v33, %v433_v1  ;;  %v63_v43 = vmul.f32 %v292_v34, %v433_v1  ;;  %v394_v33 = vld [vmem:[%s544_s3 + $0x38] sm:$0xff]  }
   0xa   :  { %v143_v40 = vmax.f32 %v127_v31, 0.0  ;;  %v144_v41 = vmax.f32 %v128_v32, 0.0  ;;  %v131_v46 = vadd.f32 %v319_v25, %v83_v37  ;;  %v132_v47 = vadd.f32 %v320_v26, %v84_v38 }
   0xb   :  { %v145_v44 = vmax.f32 %v129_v35, 0.0  ;;  %v146_v45 = vmax.f32 %v130_v36, 0.0  ;;  %v85_v51 = vadd.f32 %v447_v7, %v62_v42  ;;  %v86_v52 = vadd.f32 %v447_v7, %v63_v43 }
   0xc   :  { %v344_v50 = vpack.c.bf16 %v144_v41, %v143_v40  ;;  %v323_v53 = vunpack.c.l.bf16 %v390_v39  ;;  %v147_v56 = vmax.f32 %v131_v46, 0.0  ;;  %v148_v57 = vmax.f32 %v132_v47, 0.0 }
   0xd   :  { %v349_v55 = vpack.c.bf16 %v146_v45, %v145_v44  ;;  %v324_v58 = vunpack.c.h.bf16 %v390_v39  ;;  %v295_v60 = vunpack.c.l.bf16 %v384_v48  ;;  %v296_v61 = vunpack.c.h.bf16 %v384_v48 }
   0xe   :  { %345 = vst [vmem:[%s545_s4] sm:$0xff] %v344_v50   ;;  %v133_v59 = vadd.f32 %v323_v53, %v85_v51  ;;  %v327_v62 = vunpack.c.l.bf16 %v391_v49  ;;  %v354_v0 = vpack.c.bf16 %v148_v57, %v147_v56  ;;  %v328_v3 = vunpack.c.h.bf16 %v391_v49 }
   0xf   :  { %395 = vst [vmem:[%s545_s4 + $0x8] sm:$0xff] %v349_v55   ;;  %v134_v2 = vadd.f32 %v324_v58, %v86_v52  ;;  %v299_v4 = vunpack.c.l.bf16 %v385_v54  ;;  %v64_v8 = vmul.f32 %v295_v60, %v433_v1  ;;  %v65_v9 = vmul.f32 %v296_v61, %v433_v1 }
  0x10   :  { %v149_v6 = vmax.f32 %v133_v59, 0.0  ;;  %v300_v10 = vunpack.c.h.bf16 %v385_v54  ;;  %396 = vst [vmem:[%s545_s4 + $0x10] sm:$0xff] %v354_v0   ;;  %v331_v14 = vunpack.c.l.bf16 %v392_v63  ;;  %v332_v15 = vunpack.c.h.bf16 %v392_v63 }
  0x11   :  { %v150_v12 = vmax.f32 %v134_v2, 0.0  ;;  %v66_v13 = vmul.f32 %v299_v4, %v433_v1  ;;  %v87_v16 = vadd.f32 %v447_v7, %v64_v8  ;;  %v88_v17 = vadd.f32 %v447_v7, %v65_v9 }
  0x12   :  { %v67_v18 = vmul.f32 %v300_v10, %v433_v1  ;;  %v303_v19 = vunpack.c.l.bf16 %v386_v5  ;;  %v304_v23 = vunpack.c.h.bf16 %v386_v5  ;;  %v335_v24 = vunpack.c.l.bf16 %v393_v11 }
  0x13   :  { %v359_v21 = vpack.c.bf16 %v150_v12, %v149_v6  ;;  %v89_v22 = vadd.f32 %v447_v7, %v66_v13  ;;  %v135_v25 = vadd.f32 %v327_v62, %v87_v16  ;;  %v136_v26 = vadd.f32 %v328_v3, %v88_v17 }
  0x14   :  { %v90_v27 = vadd.f32 %v447_v7, %v67_v18  ;;  %v68_v28 = vmul.f32 %v303_v19, %v433_v1  ;;  %v69_v30 = vmul.f32 %v304_v23, %v433_v1  ;;  %v336_v31 = vunpack.c.h.bf16 %v393_v11 }
  0x15   :  { %397 = vst [vmem:[%s545_s4 + $0x18] sm:$0xff] %v359_v21   ;;  %v137_v29 = vadd.f32 %v331_v14, %v89_v22  ;;  %v307_v32 = vunpack.c.l.bf16 %v387_v20  ;;  %v151_v34 = vmax.f32 %v135_v25, 0.0  ;;  %v152_v35 = vmax.f32 %v136_v26, 0.0 }
  0x16   :  { %v138_v36 = vadd.f32 %v332_v15, %v90_v27  ;;  %v91_v37 = vadd.f32 %v447_v7, %v68_v28  ;;  %v92_v39 = vadd.f32 %v447_v7, %v69_v30  ;;  %v308_v40 = vunpack.c.h.bf16 %v387_v20 }
  0x17   :  { %v153_v38 = vmax.f32 %v137_v29, 0.0  ;;  %v70_v41 = vmul.f32 %v307_v32, %v433_v1  ;;  %v364_v42 = vpack.c.bf16 %v152_v35, %v151_v34  ;;  %v339_v45 = vunpack.c.l.bf16 %v394_v33 }
  0x18   :  { %v154_v43 = vmax.f32 %v138_v36, 0.0  ;;  %v139_v44 = vadd.f32 %v335_v24, %v91_v37  ;;  %v140_v46 = vadd.f32 %v336_v31, %v92_v39  ;;  %v71_v47 = vmul.f32 %v308_v40, %v433_v1 }
  0x19   :  { %v93_v48 = vadd.f32 %v447_v7, %v70_v41  ;;  %v340_v49 = vunpack.c.h.bf16 %v394_v33  ;;  %398 = vst [vmem:[%s545_s4 + $0x20] sm:$0xff] %v364_v42  }
  0x1a   :  { %v369_v50 = vpack.c.bf16 %v154_v43, %v153_v38  ;;  %v155_v51 = vmax.f32 %v139_v44, 0.0  ;;  %v156_v52 = vmax.f32 %v140_v46, 0.0  ;;  %v94_v53 = vadd.f32 %v447_v7, %v71_v47 }
  0x1b   :  { %v141_v54 = vadd.f32 %v339_v45, %v93_v48 }
  0x1c   :  { %399 = vst [vmem:[%s545_s4 + $0x28] sm:$0xff] %v369_v50   ;;  %v374_v55 = vpack.c.bf16 %v156_v52, %v155_v51  ;;  %v142_v56 = vadd.f32 %v340_v49, %v94_v53 }
  0x1d   :  { %v157_v1 = vmax.f32 %v141_v54, 0.0 }
  0x1e   :  { %400 = vst [vmem:[%s545_s4 + $0x30] sm:$0xff] %v374_v55   ;;  %v158_v57 = vmax.f32 %v142_v56, 0.0 }
  0x20   :  { %v379_v58 = vpack.c.bf16 %v158_v57, %v157_v1 }
  0x22   :  { %401 = vst [vmem:[%s545_s4 + $0x38] sm:$0xff] %v379_v58  }

// kernel: block_group_forward.11
= control target key start
LH: loop header
LB: loop body
LE: loop exit
PB: predicated region body
PF: predicated region fallthrough
CT: control target
= control target key end

     0   :  { %vm577_vm0 = vsmask.f32 3328  ;;  %vm578_vm1 = vsmask.f32 7440  ;;  %s5308_s4 = inlined_call_operand.vmem [shape: bf16[9,128,128], index: 4, kind: input, shape index: {}]   ;;  %s5309_s0 = inlined_call_operand.vmem [shape: bf16[2,9,9,128], index: 0, kind: input, shape index: {}]   ;;  %s5310_s3 = inlined_call_operand.vmem [shape: bf16[2,9,9,128], index: 3, kind: input, shape index: {}]   ;;  %s5311_s2 = inlined_call_operand.vmem [shape: bf16[2,9,9,128], index: 2, kind: input, shape index: {}]   ;;  %s5312_s1 = inlined_call_operand.vmem [shape: bf16[2,9,9,128], index: 1, kind: input, shape index: {}]   ;;  %s5313_s5 = inlined_call_operand.vmem [shape: bf16[1,1,128,128], index: 5, kind: output, shape index: {0}]   ;;  %s5314_s6 = inlined_call_operand.vmem [shape: f32[1,1,1,128], index: 6, kind: output, shape index: {1}]   ;;  %s5315_s7 = inlined_call_operand.vmem [shape: f32[1,1,1,128], index: 7, kind: output, shape index: {2}]  }
   0x1   :  { %v4309_v0 = vld [vmem:[%s5308_s4] sm:$0xff]   ;;  %v4311_v2 = vld [vmem:[%s5308_s4 + $0x8] sm:$0xff]   ;;  %v4313_v4 = vld [vmem:[%s5308_s4 + $0x10] sm:$0xff]  }
   0x2   :  { %v4310_v1 = vld [vmem:[%s5308_s4 + $0x100] sm:$0xff]   ;;  %3877 = vmatprep.subr.bf16.mxu1 %v4309_v0  ;;  %v4312_v3 = vld [vmem:[%s5308_s4 + $0x108] sm:$0xff]   ;;  %v4314_v5 = vld [vmem:[%s5308_s4 + $0x110] sm:$0xff]  }
   0x3   :  { %4005 = vmatprep.subr.bf16.mxu0 %v4310_v1  ;;  %3878 = vmatpush3.bf16.msra.mxu1 %v4309_v0  ;;  %v4315_v6 = vld [vmem:[%s5308_s4 + $0x18] sm:$0xff]   ;;  %v4317_v8 = vld [vmem:[%s5308_s4 + $0x20] sm:$0xff]   ;;  %v4319_v10 = vld [vmem:[%s5308_s4 + $0x28] sm:$0xff]  }
   0x4   :  { %4006 = vmatpush3.bf16.msra.mxu0 %v4310_v1  ;;  %3879 = vmatprep.subr.bf16.mxu1 %v4311_v2  ;;  %v4316_v7 = vld [vmem:[%s5308_s4 + $0x118] sm:$0xff]   ;;  %v4318_v9 = vld [vmem:[%s5308_s4 + $0x120] sm:$0xff]   ;;  %v4320_v11 = vld [vmem:[%s5308_s4 + $0x128] sm:$0xff]  }
   0x5   :  { %4007 = vmatprep.subr.bf16.mxu0 %v4312_v3  ;;  %v4325_v12 = vld [vmem:[%s5309_s0] ss:$8 sps:$4 sm:$0xff]   ;;  %v4321_v14 = vld [vmem:[%s5308_s4 + $0x30] sm:$0xff]   ;;  %v4323_v16 = vld [vmem:[%s5308_s4 + $0x38] sm:$0xff]  }
   0x6   :  { %v4326_v13 = vld [vmem:[%s5310_s3] ss:$8 sps:$4 sm:$0xff]   ;;  %3893 = vmatprep.mubr.bf16.mxu1 %v4325_v12  ;;  %v4322_v15 = vld [vmem:[%s5308_s4 + $0x130] sm:$0xff]   ;;  %v4324_v17 = vld [vmem:[%s5308_s4 + $0x138] sm:$0xff]  }
   0x7   :  { %3880 = vmatpush3.bf16.msra.mxu1 %v4311_v2  ;;  %4021 = vmatprep.mubr.bf16.mxu0 %v4326_v13  ;;  %v4327_v18 = vld [vmem:[%s5309_s0 + $0x10] ss:$8 sps:$4 sm:$0xff]   ;;  %v4328_v19 = vld [vmem:[%s5308_s4 + $0x40] sm:$0xff]   ;;  %v4331_v22 = vld [vmem:[%s5308_s4 + $0x48] sm:$0xff]  }
   0x8   :  { %4008 = vmatpush3.bf16.msra.mxu0 %v4312_v3  ;;  %3881 = vmatprep.subr.bf16.mxu1 %v4313_v4  ;;  %v4330_v20 = vld [vmem:[%s5308_s4 + $0x140] sm:$0xff]   ;;  %v4329_v21 = vld [vmem:[%s5310_s3 + $0x10] ss:$8 sps:$4 sm:$0xff]   ;;  %v4332_v23 = vld [vmem:[%s5308_s4 + $0x148] sm:$0xff]  }
   0x9   :  { %4009 = vmatprep.subr.bf16.mxu0 %v4314_v5  ;;  %v4333_v24 = vld [vmem:[%s5309_s0 + $0x20] ss:$8 sps:$4 sm:$0xff]   ;;  %v4335_v26 = vld [vmem:[%s5309_s0 + $0x30] ss:$8 sps:$4 sm:$0xff]   ;;  %v1599_v43 = vld [vmem:[%s5311_s2 + $0x4] sm:$0x1] }
   0xa   :  { %v4334_v25 = vld [vmem:[%s5310_s3 + $0x20] ss:$8 sps:$4 sm:$0xff]   ;;  %v4336_v27 = vld [vmem:[%s5308_s4 + $0x50] sm:$0xff]   ;;  %v4339_v30 = vld [vmem:[%s5308_s4 + $0x58] sm:$0xff]   ;;  %v1640_v48 = vshll.u32 %v1599_v43, 16 }
   0xb   :  { %3882 = vmatpush3.bf16.msra.mxu1 %v4313_v4  ;;  %v4338_v28 = vld [vmem:[%s5308_s4 + $0x150] sm:$0xff]   ;;  %v4340_v31 = vld [vmem:[%s5308_s4 + $0x158] sm:$0xff]   ;;  %v4344_v35 = vld [vmem:[%s5308_s4 + $0x60] sm:$0xff]  }
   0xc   :  { %4010 = vmatpush3.bf16.msra.mxu0 %v4314_v5  ;;  %3883 = vmatprep.subr.bf16.mxu1 %v4315_v6  ;;  %v4337_v29 = vld [vmem:[%s5310_s3 + $0x30] ss:$8 sps:$4 sm:$0xff]   ;;  %v4346_v37 = vld [vmem:[%s5308_s4 + $0x160] sm:$0xff]   ;;  %v4347_v38 = vld [vmem:[%s5308_s4 + $0x68] sm:$0xff]   ;;  %v1642_v63 = vrot.slane %v1640_v48, 5 }
   0xd   :  { %4011 = vmatprep.subr.bf16.mxu0 %v4316_v7  ;;  %v4341_v32 = vld [vmem:[%s5309_s0 + $0x48] ss:$8 sps:$4 sm:$0xff]   ;;  %v4343_v34 = vld [vmem:[%s5309_s0 + $0x58] ss:$8 sps:$4 sm:$0xff]   ;;  %v1601_v45 = vld [vmem:[%s5311_s2 + $0xc] sm:$0x1] }
   0xe   :  { %v4342_v33 = vld [vmem:[%s5310_s3 + $0x48] ss:$8 sps:$4 sm:$0xff]   ;;  %v4345_v36 = vld [vmem:[%s5310_s3 + $0x58] ss:$8 sps:$4 sm:$0xff]   ;;  %v1654_v51 = vshll.u32 %v1601_v45, 16  ;;  %vm4624_vm2 = vmor %vm577_vm0, %vm578_vm1 }
   0xf   :  { %3884 = vmatpush3.bf16.msra.mxu1 %v4315_v6  ;;  %v4348_v39 = vld [vmem:[%s5308_s4 + $0x168] sm:$0xff]   ;;  %v1598_v42 = vld [vmem:[%s5311_s2] sm:$0xf]  ;;  %v4352_v53 = vld [vmem:[%s5308_s4 + $0x70] sm:$0xff]  }
  0x10   :  { %4012 = vmatpush3.bf16.msra.mxu0 %v4316_v7  ;;  %3885 = vmatprep.subr.bf16.mxu1 %v4317_v8  ;;  %v4349_v40 = vld [vmem:[%s5309_s0 + $0x68] ss:$8 sps:$4 sm:$0xff]   ;;  %v1631_v46 = vshrl.u32 %v1598_v42, 16  ;;  %v1634_v47 = vshll.u32 %v1598_v42, 16  ;;  %v4351_v52 = vld [vmem:[%s5309_s0 + $0x78] ss:$8 sps:$4 sm:$0xff]  }
  0x11   :  { %4013 = vmatprep.subr.bf16.mxu0 %v4318_v9  ;;  %v4350_v41 = vld [vmem:[%s5310_s3 + $0x68] ss:$8 sps:$4 sm:$0xff]   ;;  %v4353_v56 = vld [vmem:[%s5310_s3 + $0x78] ss:$8 sps:$4 sm:$0xff]   ;;  %v1656_v0 = vrot.slane %v1654_v51, 5 }
  0x12   :  { %v1600_v44 = vld [vmem:[%s5311_s2 + $0x8] sm:$0xf]  ;;  %v1633_v54 = vrot.slane %v1631_v46, 4  ;;  %v1636_v55 = vrot.slane %v1634_v47, 5  ;;  %v4354_v57 = vld [vmem:[%s5308_s4 + $0x170] sm:$0xff]   ;;  %v4355_v60 = vld [vmem:[%s5308_s4 + $0x78] sm:$0xff]  }
  0x13   :  { %3886 = vmatpush3.bf16.msra.mxu1 %v4317_v8  ;;  %v1645_v49 = vshrl.u32 %v1600_v44, 16  ;;  %v1648_v50 = vshll.u32 %v1600_v44, 16  ;;  %v1602_v1 = vld [vmem:[%s5311_s2 + $0x10] sm:$0xf]  ;;  %v4356_v2 = vld [vmem:[%s5308_s4 + $0x178] sm:$0xff]   ;;  %v4362_v48 = vld [vmem:[%s5308_s4 + $0x188] sm:$0xff]  }
  0x14   :  { %4014 = vmatpush3.bf16.msra.mxu0 %v4318_v9  ;;  %3887 = vmatprep.subr.bf16.mxu1 %v4319_v10  ;;  %v1637_v62 = vor.u32 %v1636_v55, %v1633_v54  ;;  %v4357_v3 = vld [vmem:[%s5312_s1] ss:$8 sps:$4 sm:$0xff]   ;;  %v1603_v5 = vld [vmem:[%s5311_s2 + $0x14] sm:$0x1]  ;;  %v1604_v6 = vld [vmem:[%s5311_s2 + $0x18] sm:$0xf] }
  0x15   :  { %4015 = vmatprep.subr.bf16.mxu0 %v4320_v11  ;;  %v1647_v58 = vrot.slane %v1645_v49, 4  ;;  %v1650_v59 = vrot.slane %v1648_v50, 5  ;;  %v1605_v7 = vld [vmem:[%s5311_s2 + $0x1c] sm:$0x1]  ;;  %v1659_v9 = vshrl.u32 %v1602_v1, 16  ;;  %v1673_v13 = vshrl.u32 %v1604_v6, 16 }
  0x16   :  { %v1638_v8 = vrot.slane %v1637_v62, 4  ;;  %v1613_v62 = vld [vmem:[%s5311_s2 + $0x3c] sm:$0x1] }
  0x17   :  { %3888 = vmatpush3.bf16.msra.mxu1 %v4319_v10  ;;  %v1651_v4 = vor.u32 %v1650_v59, %v1647_v58  ;;  %v1662_v10 = vshll.u32 %v1602_v1, 16  ;;  %v1611_v58 = vld [vmem:[%s5311_s2 + $0x34] sm:$0x1]  ;;  %v1612_v59 = vld [vmem:[%s5311_s2 + $0x38] sm:$0xf] }
  0x18   :  { %4016 = vmatpush3.bf16.msra.mxu0 %v4320_v11  ;;  %3889 = vmatprep.subr.bf16.mxu1 %v4321_v14  ;;  %v1668_v11 = vshll.u32 %v1603_v5, 16  ;;  %v1724_v1 = vshll.u32 %v1611_v58, 16  ;;  %v1732_v5 = vshll.u32 %v1612_v59, 16 }
  0x19   :  { %4017 = vmatprep.subr.bf16.mxu0 %v4322_v15  ;;  %v1652_v12 = vrot.slane %v1651_v4, 4  ;;  %v1729_v4 = vshrl.u32 %v1612_v59, 16 }
  0x1b   :  { %3890 = vmatpush3.bf16.msra.mxu1 %v4321_v14  ;;  %v1676_v14 = vshll.u32 %v1604_v6, 16  ;;  %v1738_v6 = vshll.u32 %v1613_v62, 16 }
  0x1c   :  { %4018 = vmatpush3.bf16.msra.mxu0 %v4322_v15  ;;  %3891 = vmatprep.subr.bf16.mxu1 %v4323_v16  ;;  %v1682_v15 = vshll.u32 %v1605_v7, 16  ;;  %v4367_v7 = vld [vmem:[%s5308_s4 + $0x98] sm:$0xff]  }
  0x1d   :  { %4019 = vmatprep.subr.bf16.mxu0 %v4324_v17 }
  0x1f   :  { %3892 = vmatpush3.bf16.msra.mxu1 %v4323_v16  ;;  %v1643_v16 = vsel %vm4624_vm2, %v1638_v8, %v1642_v63 }
  0x20   :  { %4020 = vmatpush3.bf16.msra.mxu0 %v4324_v17  ;;  %3909 = vmatprep.subr.bf16.mxu1 %v4328_v19  ;;  %v1661_v17 = vrot.slane %v1659_v9, 4 }
  0x21   :  { %4037 = vmatprep.subr.bf16.mxu0 %v4330_v20 }
  0x22   :  { %3894 = vmatmul.mubr.bf16.vlgmr.msra.gmra.mrb[0].mxu1 %v4327_v18  ;;  %v1664_v18 = vrot.slane %v1662_v10, 5 }
  0x23   :  { %4022 = vmatmul.mubr.bf16.vlgmr.msra.gmra.mrb[0].mxu0 %v4329_v21  ;;  %3910 = vmatpush3.bf16.msra.mxu1 %v4328_v19  ;;  %v1657_v19 = vsel %vm4624_vm2, %v1652_v12, %v1656_v0  ;;  %v1670_v21 = vrot.slane %v1668_v11, 5  ;;  %v1726_v11 = vrot.slane %v1724_v1, 5 }
  0x24   :  { %4038 = vmatpush3.bf16.msra.mxu0 %v4330_v20  ;;  %3911 = vmatprep.subr.bf16.mxu1 %v4331_v22  ;;  %v4359_v20 = vld [vmem:[%s5308_s4 + $0x80] sm:$0xff]  }
  0x25   :  { %4039 = vmatprep.subr.bf16.mxu0 %v4332_v23  ;;  %3897 = vmatprep.mubr.bf16.mxu1 %v4333_v24  ;;  %v3478_v24 = vcombine.low %v1643_v16, %v1657_v19  ;;  %v4368_v16 = vld [vmem:[%s5308_s4 + $0x198] sm:$0xff]  }
  0x26   :  { %4025 = vmatprep.mubr.bf16.mxu0 %v4334_v25  ;;  %v4358_v25 = vld [vmem:[%s5312_s1 + $0x10] ss:$8 sps:$4 sm:$0xff]  }
  0x27   :  { %3912 = vmatpush3.bf16.msra.mxu1 %v4331_v22  ;;  %v1675_v22 = vrot.slane %v1673_v13, 4  ;;  %v1731_v13 = vrot.slane %v1729_v4, 4 }
  0x28   :  { %4040 = vmatpush3.bf16.msra.mxu0 %v4332_v23  ;;  %3913 = vmatprep.subr.bf16.mxu1 %v4336_v27  ;;  %v1678_v23 = vrot.slane %v1676_v14, 5  ;;  %v1734_v14 = vrot.slane %v1732_v5, 5 }
  0x29   :  { %4041 = vmatprep.subr.bf16.mxu0 %v4338_v28 }
  0x2a   :  { %3898 = vmatmul.mubr.bf16.gmra.mrb[4].mxu1 %v4335_v26  ;;  %v1665_v26 = vor.u32 %v1664_v18, %v1661_v17 }
  0x2b   :  { %4026 = vmatmul.mubr.bf16.gmra.mrb[4].mxu0 %v4337_v29  ;;  %3914 = vmatpush3.bf16.msra.mxu1 %v4336_v27  ;;  %v1684_v27 = vrot.slane %v1682_v15, 5  ;;  %v1679_v29 = vor.u32 %v1678_v23, %v1675_v22  ;;  %v1740_v15 = vrot.slane %v1738_v6, 5  ;;  %v1614_v23 = vld [vmem:[%s5311_s2 + $0x48] sm:$0xf] }
  0x2c   :  { %4042 = vmatpush3.bf16.msra.mxu0 %v4338_v28  ;;  %3915 = vmatprep.subr.bf16.mxu1 %v4339_v30  ;;  %v4360_v28 = vld [vmem:[%s5308_s4 + $0x180] sm:$0xff]  }
  0x2d   :  { %4043 = vmatprep.subr.bf16.mxu0 %v4340_v31  ;;  %3901 = vmatprep.mubr.bf16.mxu1 %v4341_v32  ;;  %v1606_v32 = vld [vmem:[%s5311_s2 + $0x20] sm:$0xf] }
  0x2e   :  { %4029 = vmatprep.mubr.bf16.mxu0 %v4342_v33  ;;  %v1607_v33 = vld [vmem:[%s5311_s2 + $0x24] sm:$0x1] }
  0x2f   :  { %3916 = vmatpush3.bf16.msra.mxu1 %v4339_v30  ;;  %v4363_v30 = vld [vmem:[%s5312_s1 + $0x20] ss:$8 sps:$4 sm:$0xff]  }
  0x30   :  { %4044 = vmatpush3.bf16.msra.mxu0 %v4340_v31  ;;  %3917 = vmatprep.subr.bf16.mxu1 %v4344_v35  ;;  %v1666_v31 = vrot.slane %v1665_v26, 4 }
  0x31   :  { %4045 = vmatprep.subr.bf16.mxu0 %v4346_v37 }
  0x32   :  { %3902 = vmatmul.mubr.bf16.gmra.mrb[8].mxu1 %v4343_v34  ;;  %v1680_v34 = vrot.slane %v1679_v29, 4  ;;  %v1743_v29 = vshrl.u32 %v1614_v23, 16 }
  0x33   :  { %4030 = vmatmul.mubr.bf16.gmra.mrb[8].mxu0 %v4345_v36  ;;  %3918 = vmatpush3.bf16.msra.mxu1 %v4344_v35  ;;  %v1608_v35 = vld [vmem:[%s5311_s2 + $0x28] sm:$0xf]  ;;  %v1609_v36 = vld [vmem:[%s5311_s2 + $0x2c] sm:$0x1] }
  0x34   :  { %4046 = vmatpush3.bf16.msra.mxu0 %v4346_v37  ;;  %3919 = vmatprep.subr.bf16.mxu1 %v4347_v38  ;;  %v1687_v37 = vshrl.u32 %v1606_v32, 16  ;;  %v1701_v42 = vshrl.u32 %v1608_v35, 16  ;;  %v1685_v43 = vsel %vm4624_vm2, %v1680_v34, %v1684_v27  ;;  %v1704_v45 = vshll.u32 %v1608_v35, 16  ;;  %v1616_v27 = vld [vmem:[%s5311_s2 + $0x50] sm:$0xf] }
  0x35   :  { %4047 = vmatprep.subr.bf16.mxu0 %v4348_v39  ;;  %3905 = vmatprep.mubr.bf16.mxu1 %v4349_v40  ;;  %v1690_v40 = vshll.u32 %v1606_v32, 16  ;;  %v1710_v46 = vshll.u32 %v1609_v36, 16  ;;  %v1745_v35 = vrot.slane %v1743_v29, 4  ;;  %v1760_v36 = vshll.u32 %v1616_v27, 16  ;;  %v4380_v29 = vld [vmem:[%s5308_s4 + $0x1b8] sm:$0xff]  }
  0x36   :  { %4033 = vmatprep.mubr.bf16.mxu0 %v4350_v41  ;;  %v1696_v41 = vshll.u32 %v1607_v33, 16  ;;  %v1689_v44 = vrot.slane %v1687_v37, 4  ;;  %v1703_v51 = vrot.slane %v1701_v42, 4  ;;  %v1757_v33 = vshrl.u32 %v1616_v27, 16 }
  0x37   :  { %3920 = vmatpush3.bf16.msra.mxu1 %v4347_v38  ;;  %v1671_v38 = vsel %vm4624_vm2, %v1666_v31, %v1670_v21  ;;  %v1692_v49 = vrot.slane %v1690_v40, 5  ;;  %v1712_v54 = vrot.slane %v1710_v46, 5  ;;  %v4369_v21 = vld [vmem:[%s5312_s1 + $0x48] ss:$8 sps:$4 sm:$0xff]   ;;  %v1746_v31 = vshll.u32 %v1614_v23, 16 }
  0x38   :  { %4048 = vmatpush3.bf16.msra.mxu0 %v4348_v39  ;;  %3921 = vmatprep.subr.bf16.mxu1 %v4352_v53  ;;  %v4361_v39 = vld [vmem:[%s5308_s4 + $0x88] sm:$0xff]   ;;  %v3479_v47 = vcombine.low %v1671_v38, %v1685_v43  ;;  %v1698_v50 = vrot.slane %v1696_v41, 5  ;;  %v4372_v38 = vld [vmem:[%s5308_s4 + $0x1a0] sm:$0xff]   ;;  %v1759_v42 = vrot.slane %v1757_v33, 4 }
  0x39   :  { %4049 = vmatprep.subr.bf16.mxu0 %v4354_v57  ;;  %v1693_v55 = vor.u32 %v1692_v49, %v1689_v44  ;;  %v1748_v40 = vrot.slane %v1746_v31, 5  ;;  %v4370_v43 = vld [vmem:[%s5312_s1 + $0x58] ss:$8 sps:$4 sm:$0xff]   ;;  %v4373_v44 = vld [vmem:[%s5308_s4 + $0xa8] sm:$0xff]   ;;  %v1619_v49 = vld [vmem:[%s5311_s2 + $0x5c] sm:$0x1] }
  0x3a   :  { %3906 = vmatmul.mubr.bf16.gmra.mrb[12].mxu1 %v4351_v52  ;;  %v4365_v52 = vld [vmem:[%s5308_s4 + $0x90] sm:$0xff]  }
  0x3b   :  { %4034 = vmatmul.mubr.bf16.gmra.mrb[12].mxu0 %v4353_v56  ;;  %3922 = vmatpush3.bf16.msra.mxu1 %v4352_v53  ;;  %v1706_v53 = vrot.slane %v1704_v45, 5  ;;  %v4364_v56 = vld [vmem:[%s5312_s1 + $0x30] ss:$8 sps:$4 sm:$0xff]   ;;  %v1762_v45 = vrot.slane %v1760_v36, 5 }
  0x3c   :  { %4050 = vmatpush3.bf16.msra.mxu0 %v4354_v57  ;;  %3923 = vmatprep.subr.bf16.mxu1 %v4355_v60  ;;  %v1610_v57 = vld [vmem:[%s5311_s2 + $0x30] sm:$0xf] }
  0x3d   :  { %4051 = vmatprep.subr.bf16.mxu0 %v4356_v2  ;;  %3925 = vmatprep.mubr.bf16.mxu1 %v4357_v3  ;;  %v1715_v63 = vshrl.u32 %v1610_v57, 16  ;;  %v1718_v0 = vshll.u32 %v1610_v57, 16  ;;  %v1694_v3 = vrot.slane %v1693_v55, 4  ;;  %v4377_v57 = vld [vmem:[%s5308_s4 + $0xb0] sm:$0xff]  }
  0x3e   :  { %4053 = vmatprep.mubr.bf16.mxu0 %v3478_v24  ;;  %v1615_v24 = vld [vmem:[%s5311_s2 + $0x4c] sm:$0x1] }
  0x3f   :  { %3924 = vmatpush3.bf16.msra.mxu1 %v4355_v60  ;;  %v1707_v60 = vor.u32 %v1706_v53, %v1703_v51  ;;  %v1717_v9 = vrot.slane %v1715_v63, 4  ;;  %v1720_v10 = vrot.slane %v1718_v0, 5  ;;  %v1699_v12 = vsel %vm4624_vm2, %v1694_v3, %v1698_v50  ;;  %v1620_v50 = vld [vmem:[%s5311_s2 + $0x60] sm:$0xf]  ;;  %v4374_v51 = vld [vmem:[%s5308_s4 + $0x1a8] sm:$0xff]  }
  0x40   :  { %4052 = vmatpush3.bf16.msra.mxu0 %v4356_v2  ;;  %3941 = vmatprep.subr.bf16.mxu1 %v4359_v20  ;;  %v4366_v2 = vld [vmem:[%s5308_s4 + $0x190] sm:$0xff]   ;;  %v1752_v32 = vshll.u32 %v1615_v24, 16  ;;  %v1621_v53 = vld [vmem:[%s5311_s2 + $0x64] sm:$0x1]  ;;  %v1785_v59 = vshrl.u32 %v1620_v50, 16 }
  0x41   :  { %4069 = vmatprep.subr.bf16.mxu0 %v4360_v28  ;;  %v1708_v8 = vrot.slane %v1707_v60, 4  ;;  %v1721_v18 = vor.u32 %v1720_v10, %v1717_v9  ;;  %v1788_v60 = vshll.u32 %v1620_v50, 16  ;;  %v1794_v62 = vshll.u32 %v1621_v53, 16 }
  0x42   :  { %3926 = vmatmul.mubr.bf16.vlgmr.msra.gmra.mrb[0].mxu1 %v4358_v25  ;;  %v4371_v25 = vld [vmem:[%s5308_s4 + $0xa0] sm:$0xff]   ;;  %v1754_v41 = vrot.slane %v1752_v32, 5  ;;  %v1787_v4 = vrot.slane %v1785_v59, 4 }
  0x43   :  { %3942 = vmatpush3.bf16.msra.mxu1 %v4359_v20  ;;  %3929 = vmatprep.mubr.bf16.mxu1 %v4363_v30  ;;  %v1713_v17 = vsel %vm4624_vm2, %v1708_v8, %v1712_v54  ;;  %v1735_v20 = vor.u32 %v1734_v14, %v1731_v13  ;;  %v1722_v22 = vrot.slane %v1721_v18, 4  ;;  %v1790_v5 = vrot.slane %v1788_v60, 5  ;;  %v1622_v14 = vld [vmem:[%s5311_s2 + $0x68] sm:$0xf]  ;;  %v1624_v18 = vld [vmem:[%s5311_s2 + $0x70] sm:$0xf] }
  0x44   :  { %4054 = vmatmul.mubr.bf16.vlgmr.msra.gmra.mrb[0].mxu0 %v3479_v47  ;;  %3943 = vmatprep.subr.bf16.mxu1 %v4361_v39  ;;  %v3480_v19 = vcombine.low %v1699_v12, %v1713_v17  ;;  %v1749_v47 = vor.u32 %v1748_v40, %v1745_v35  ;;  %v1796_v6 = vrot.slane %v1794_v62, 5  ;;  %v4375_v12 = vld [vmem:[%s5312_s1 + $0x68] ss:$8 sps:$4 sm:$0xff]   ;;  %v1813_v24 = vshrl.u32 %v1624_v18, 16  ;;  %v4802_v35 = vld [vmem:[%s5308_s4 + $0xc0] sm:$0xff]  }
  0x45   :  { %4070 = vmatpush3.bf16.msra.mxu0 %v4360_v28  ;;  %v1736_v26 = vrot.slane %v1735_v20, 4  ;;  %v1617_v28 = vld [vmem:[%s5311_s2 + $0x54] sm:$0x1]  ;;  %v1727_v30 = vsel %vm4624_vm2, %v1722_v22, %v1726_v11  ;;  %v1791_v11 = vor.u32 %v1790_v5, %v1787_v4  ;;  %v1799_v20 = vshrl.u32 %v1622_v14, 16  ;;  %v1627_v40 = vld [vmem:[%s5311_s2 + $0x7c] sm:$0x1] }
  0x46   :  { %4071 = vmatprep.subr.bf16.mxu0 %v4362_v48  ;;  %4057 = vmatprep.mubr.bf16.mxu0 %v3480_v19  ;;  %v1766_v37 = vshll.u32 %v1617_v28, 16  ;;  %v1750_v58 = vrot.slane %v1749_v47, 4  ;;  %v1625_v19 = vld [vmem:[%s5311_s2 + $0x74] sm:$0x1]  ;;  %v1802_v22 = vshll.u32 %v1622_v14, 16  ;;  %v1816_v27 = vshll.u32 %v1624_v18, 16 }
  0x47   :  { %3944 = vmatpush3.bf16.msra.mxu1 %v4361_v39  ;;  %v1741_v34 = vsel %vm4624_vm2, %v1736_v26, %v1740_v15  ;;  %v1623_v15 = vld [vmem:[%s5311_s2 + $0x6c] sm:$0x1]  ;;  %v1792_v17 = vrot.slane %v1791_v11, 4  ;;  %v1801_v26 = vrot.slane %v1799_v20, 4  ;;  %v1822_v28 = vshll.u32 %v1625_v19, 16  ;;  %v4819_v47 = vld [vmem:[%s5308_s4 + $0x1c0] sm:$0xff]  }
  0x48   :  { %3945 = vmatprep.subr.bf16.mxu1 %v4365_v52  ;;  %v3481_v39 = vcombine.low %v1727_v30, %v1741_v34  ;;  %v1768_v46 = vrot.slane %v1766_v37, 5  ;;  %v1755_v3 = vsel %vm4624_vm2, %v1750_v58, %v1754_v41  ;;  %v1808_v23 = vshll.u32 %v1623_v15, 16  ;;  %v4376_v34 = vld [vmem:[%s5312_s1 + $0x78] ss:$8 sps:$4 sm:$0xff]   ;;  %v548_v5 = vld [vmem:[%s5309_s0 + $0xc] sm:$0x1] }
  0x49   :  { %4072 = vmatpush3.bf16.msra.mxu0 %v4362_v48  ;;  %v1618_v48 = vld [vmem:[%s5311_s2 + $0x58] sm:$0xf]  ;;  %v1804_v31 = vrot.slane %v1802_v22, 5  ;;  %v1815_v33 = vrot.slane %v1813_v24, 4  ;;  %v1818_v36 = vrot.slane %v1816_v27, 5  ;;  %v1824_v37 = vrot.slane %v1822_v28, 5 }
  0x4a   :  { %3930 = vmatmul.mubr.bf16.gmra.mrb[4].mxu1 %v4364_v56  ;;  %4073 = vmatprep.subr.bf16.mxu0 %v4366_v2  ;;  %v1771_v54 = vshrl.u32 %v1618_v48, 16  ;;  %v1774_v55 = vshll.u32 %v1618_v48, 16  ;;  %v1780_v56 = vshll.u32 %v1619_v49, 16  ;;  %v1810_v32 = vrot.slane %v1808_v23, 5  ;;  %v1628_v41 = vld [vmem:[%s5311_s2 + $0x80] sm:$0xf] }
  0x4b   :  { %3946 = vmatpush3.bf16.msra.mxu1 %v4365_v52  ;;  %3933 = vmatprep.mubr.bf16.mxu1 %v4369_v21  ;;  %v1763_v52 = vor.u32 %v1762_v45, %v1759_v42  ;;  %v1819_v42 = vor.u32 %v1818_v36, %v1815_v33  ;;  %v1841_v49 = vshrl.u32 %v1628_v41, 16  ;;  %v1844_v50 = vshll.u32 %v1628_v41, 16  ;;  %v549_v24 = vld [vmem:[%s5309_s0 + $0x10] sm:$0xf]  ;;  %v552_v28 = vld [vmem:[%s5309_s0 + $0x1c] sm:$0x1] }
  0x4c   :  { %3947 = vmatprep.subr.bf16.mxu1 %v4367_v7  ;;  %4058 = vmatmul.mubr.bf16.gmra.mrb[4].mxu0 %v3481_v39  ;;  %v1773_v0 = vrot.slane %v1771_v54, 4  ;;  %v1776_v1 = vrot.slane %v1774_v55, 5  ;;  %v1626_v39 = vld [vmem:[%s5311_s2 + $0x78] sm:$0xf]  ;;  %v632_v36 = vshll.u32 %v552_v28, 16 }
  0x4d   :  { %4074 = vmatpush3.bf16.msra.mxu0 %v4366_v2  ;;  %v1764_v63 = vrot.slane %v1763_v52, 4  ;;  %v1782_v2 = vrot.slane %v1780_v56, 5  ;;  %v1830_v45 = vshll.u32 %v1626_v39, 16  ;;  %v1820_v52 = vrot.slane %v1819_v42, 4 }
  0x4e   :  { %4075 = vmatprep.subr.bf16.mxu0 %v4368_v16  ;;  %v1777_v9 = vor.u32 %v1776_v1, %v1773_v0  ;;  %v1846_v58 = vrot.slane %v1844_v50, 5  ;;  %v545_v1 = vld [vmem:[%s5309_s0] sm:$0xf] }
  0x4f   :  { %3948 = vmatpush3.bf16.msra.mxu1 %v4367_v7  ;;  %v4378_v7 = vld [vmem:[%s5308_s4 + $0x1b0] sm:$0xff]   ;;  %v1769_v8 = vsel %vm4624_vm2, %v1764_v63, %v1768_v46  ;;  %v1836_v46 = vshll.u32 %v1627_v40, 16  ;;  %v1832_v54 = vrot.slane %v1830_v45, 5  ;;  %v1825_v60 = vsel %vm4624_vm2, %v1820_v52, %v1824_v37 }
  0x50   :  { %3949 = vmatprep.subr.bf16.mxu1 %v4371_v25  ;;  %v3482_v10 = vcombine.low %v1755_v3, %v1769_v8  ;;  %v1778_v13 = vrot.slane %v1777_v9, 4  ;;  %v547_v3 = vld [vmem:[%s5309_s0 + $0x8] sm:$0xf] }
  0x51   :  { %4076 = vmatpush3.bf16.msra.mxu0 %v4368_v16  ;;  %v4379_v16 = vld [vmem:[%s5308_s4 + $0xb8] sm:$0xff]   ;;  %v1838_v55 = vrot.slane %v1836_v46, 5  ;;  %v598_v11 = vshll.u32 %v547_v3, 16 }
  0x52   :  { %3934 = vmatmul.mubr.bf16.gmra.mrb[8].mxu1 %v4370_v43  ;;  %4077 = vmatprep.subr.bf16.mxu0 %v4372_v38  ;;  %v1783_v21 = vsel %vm4624_vm2, %v1778_v13, %v1782_v2  ;;  %v1629_v43 = vld [vmem:[%s5311_s2 + $0x84] sm:$0x1] }
  0x53   :  { %3950 = vmatpush3.bf16.msra.mxu1 %v4371_v25  ;;  %4061 = vmatprep.mubr.bf16.mxu0 %v3482_v10  ;;  %v1797_v25 = vsel %vm4624_vm2, %v1792_v17, %v1796_v6  ;;  %v546_v2 = vld [vmem:[%s5309_s0 + $0x4] sm:$0x1]  ;;  %v581_v6 = vshrl.u32 %v545_v1, 16  ;;  %v595_v10 = vshrl.u32 %v547_v3, 16  ;;  %v600_v19 = vrot.slane %v598_v11, 5  ;;  %v4385_v3 = vld [vmem:[%s5308_s4 + $0xc8] sm:$0xff]  }
  0x54   :  { %3951 = vmatprep.subr.bf16.mxu1 %v4373_v44  ;;  %3937 = vmatprep.mubr.bf16.mxu1 %v4375_v12  ;;  %v3483_v30 = vcombine.low %v1783_v21, %v1797_v25  ;;  %v590_v8 = vshll.u32 %v546_v2, 16  ;;  %v604_v12 = vshll.u32 %v548_v5, 16  ;;  %v4381_v21 = vld [vmem:[%s5309_s0 + $0x8] ss:$8 sps:$4 sm:$0xff]   ;;  %v550_v25 = vld [vmem:[%s5309_s0 + $0x14] sm:$0x1] }
  0x55   :  { %4078 = vmatpush3.bf16.msra.mxu0 %v4372_v38  ;;  %v1805_v38 = vor.u32 %v1804_v31, %v1801_v26  ;;  %v583_v14 = vrot.slane %v581_v6, 4  ;;  %v597_v18 = vrot.slane %v595_v10, 4  ;;  %v551_v26 = vld [vmem:[%s5309_s0 + $0x18] sm:$0xf]  ;;  %v618_v31 = vshll.u32 %v550_v25, 16  ;;  %v4390_v10 = vld [vmem:[%s5308_s4 + $0x1d0] sm:$0xff]  }
  0x56   :  { %4079 = vmatprep.subr.bf16.mxu0 %v4374_v51  ;;  %4062 = vmatmul.mubr.bf16.gmra.mrb[8].mxu0 %v3483_v30  ;;  %v606_v20 = vrot.slane %v604_v12, 5  ;;  %v612_v30 = vshll.u32 %v549_v24, 16  ;;  %v623_v33 = vshrl.u32 %v551_v26, 16 }
  0x57   :  { %3952 = vmatpush3.bf16.msra.mxu1 %v4373_v44  ;;  %v1827_v44 = vshrl.u32 %v1626_v39, 16  ;;  %v1806_v48 = vrot.slane %v1805_v38, 4  ;;  %v601_v27 = vor.u32 %v600_v19, %v597_v18  ;;  %v620_v40 = vrot.slane %v618_v31, 5  ;;  %v560_v18 = vld [vmem:[%s5309_s0 + $0x3c] sm:$0x1] }
  0x58   :  { %3953 = vmatprep.subr.bf16.mxu1 %v4377_v57  ;;  %v614_v39 = vrot.slane %v612_v30, 5  ;;  %v625_v42 = vrot.slane %v623_v33, 4  ;;  %v688_v28 = vshll.u32 %v560_v18, 16 }
  0x59   :  { %4080 = vmatpush3.bf16.msra.mxu0 %v4374_v51  ;;  %v1850_v51 = vshll.u32 %v1629_v43, 16  ;;  %v1829_v53 = vrot.slane %v1827_v44, 4  ;;  %v1811_v56 = vsel %vm4624_vm2, %v1806_v48, %v1810_v32  ;;  %v602_v37 = vrot.slane %v601_v27, 4  ;;  %v4383_v48 = vld [vmem:[%s5309_s0 + $0x18] ss:$8 sps:$4 sm:$0xff]  }
  0x5a   :  { %4081 = vmatprep.subr.bf16.mxu0 %v4378_v7  ;;  %3938 = vmatmul.mubr.bf16.gmra.mrb[12].mxu1 %v4376_v34  ;;  %v3484_v63 = vcombine.low %v1811_v56, %v1825_v60  ;;  %v626_v34 = vshll.u32 %v551_v26, 16  ;;  %v634_v44 = vrot.slane %v632_v36, 5 }
  0x5b   :  { %3954 = vmatpush3.bf16.msra.mxu1 %v4377_v57  ;;  %v1843_v57 = vrot.slane %v1841_v49, 4  ;;  %v1852_v59 = vrot.slane %v1850_v51, 5  ;;  %v1833_v62 = vor.u32 %v1832_v54, %v1829_v53  ;;  %v607_v45 = vsel %vm4624_vm2, %v602_v37, %v606_v20  ;;  %v4386_v53 = vld [vmem:[%s5308_s4 + $0x1c8] sm:$0xff]   ;;  %v553_v54 = vld [vmem:[%s5309_s0 + $0x20] sm:$0xf] }
  0x5c   :  { %3955 = vmatprep.subr.bf16.mxu1 %v4379_v16  ;;  %4065 = vmatprep.mubr.bf16.mxu0 %v3484_v63  ;;  %v628_v43 = vrot.slane %v626_v34, 5  ;;  %v640_v60 = vshll.u32 %v553_v54, 16  ;;  %v690_v37 = vrot.slane %v688_v28, 5 }
  0x5d   :  { %4082 = vmatpush3.bf16.msra.mxu0 %v4378_v7  ;;  %v1847_v0 = vor.u32 %v1846_v58, %v1843_v57  ;;  %v1834_v4 = vrot.slane %v1833_v62, 4  ;;  %v584_v7 = vshll.u32 %v545_v1, 16  ;;  %v555_v57 = vld [vmem:[%s5309_s0 + $0x28] sm:$0xf]  ;;  %v556_v58 = vld [vmem:[%s5309_s0 + $0x2c] sm:$0x1] }
  0x5e   :  { %4083 = vmatprep.subr.bf16.mxu0 %v4380_v29  ;;  %v629_v50 = vor.u32 %v628_v43, %v625_v42  ;;  %v654_v1 = vshll.u32 %v555_v57, 16  ;;  %v642_v5 = vrot.slane %v640_v60, 5  ;;  %v660_v6 = vshll.u32 %v556_v58, 16  ;;  %v4396_v42 = vld [vmem:[%s5308_s4 + $0x1e0] sm:$0xff]  }
  0x5f   :  { %3956 = vmatpush3.bf16.msra.mxu1 %v4379_v16  ;;  %v1848_v9 = vrot.slane %v1847_v0, 4  ;;  %v1839_v13 = vsel %vm4624_vm2, %v1834_v4, %v1838_v55  ;;  %v586_v15 = vrot.slane %v584_v7, 5  ;;  %v592_v16 = vrot.slane %v590_v8, 5  ;;  %v554_v55 = vld [vmem:[%s5309_s0 + $0x24] sm:$0x1] }
  0x60   :  { %3973 = vmatprep.subr.bf16.mxu1 %v4802_v35  ;;  %v630_v52 = vrot.slane %v629_v50, 4  ;;  %v646_v63 = vshll.u32 %v554_v55, 16  ;;  %v651_v0 = vshrl.u32 %v555_v57, 16  ;;  %v656_v8 = vrot.slane %v654_v1, 5  ;;  %v4394_v58 = vld [vmem:[%s5308_s4 + $0xe0] sm:$0xff]  }
  0x61   :  { %4084 = vmatpush3.bf16.msra.mxu0 %v4380_v29  ;;  %v1853_v17 = vsel %vm4624_vm2, %v1848_v9, %v1852_v59  ;;  %v587_v23 = vor.u32 %v586_v15, %v583_v14  ;;  %v609_v29 = vshrl.u32 %v549_v24, 16  ;;  %v637_v59 = vshrl.u32 %v553_v54, 16  ;;  %v4387_v9 = vld [vmem:[%s5309_s0 + $0x28] ss:$8 sps:$4 sm:$0xff]   ;;  %v558_v14 = vld [vmem:[%s5309_s0 + $0x34] sm:$0x1] }
  0x62   :  { %4101 = vmatprep.subr.bf16.mxu0 %v4819_v47  ;;  %v3485_v22 = vcombine.low %v1839_v13, %v1853_v17  ;;  %v635_v62 = vsel %vm4624_vm2, %v630_v52, %v634_v44  ;;  %v653_v7 = vrot.slane %v651_v0, 4  ;;  %v648_v11 = vrot.slane %v646_v63, 5  ;;  %v557_v13 = vld [vmem:[%s5309_s0 + $0x30] sm:$0xf]  ;;  %v559_v17 = vld [vmem:[%s5309_s0 + $0x38] sm:$0xf] }
  0x63   :  { %v588_v32 = vrot.slane %v587_v23, 4  ;;  %v611_v38 = vrot.slane %v609_v29, 4  ;;  %v639_v4 = vrot.slane %v637_v59, 4  ;;  %v662_v12 = vrot.slane %v660_v6, 5  ;;  %v4388_v15 = vld [vmem:[%s5308_s4 + $0xd0] sm:$0xff]   ;;  %v4398_v63 = vld [vmem:[%s5308_s4 + $0x1e8] sm:$0xff]  }
  0x64   :  { %4066 = vmatmul.mubr.bf16.gmra.mrb[12].mxu0 %v3485_v22  ;;  %v665_v19 = vshrl.u32 %v557_v13, 16  ;;  %v668_v20 = vshll.u32 %v557_v13, 16  ;;  %v679_v23 = vshrl.u32 %v559_v17, 16  ;;  %v682_v24 = vshll.u32 %v559_v17, 16  ;;  %v561_v44 = vld [vmem:[%s5309_s0 + $0x48] sm:$0xf] }
  0x65   :  { %4085 = vmatprep.mubr.bf16.mxu0 %v4381_v21  ;;  %v593_v41 = vsel %vm4624_vm2, %v588_v32, %v592_v16  ;;  %v615_v46 = vor.u32 %v614_v39, %v611_v38  ;;  %v657_v16 = vor.u32 %v656_v8, %v653_v7  ;;  %v4392_v21 = vld [vmem:[%s5308_s4 + $0x1d8] sm:$0xff]   ;;  %v696_v52 = vshll.u32 %v561_v44, 16  ;;  %v567_v8 = vld [vmem:[%s5309_s0 + $0x60] sm:$0xf]  ;;  %v4402_v13 = vld [vmem:[%s5308_s4 + $0x1f0] sm:$0xff]  }
  0x66   :  { %v3382_v49 = vcombine.low %v593_v41, %v607_v45  ;;  %v667_v26 = vrot.slane %v665_v19, 4  ;;  %v670_v27 = vrot.slane %v668_v20, 5  ;;  %v681_v30 = vrot.slane %v679_v23, 4  ;;  %v4391_v32 = vld [vmem:[%s5308_s4 + $0xd8] sm:$0xff]  }
  0x67   :  { %v616_v51 = vrot.slane %v615_v46, 4  ;;  %v658_v25 = vrot.slane %v657_v16, 4  ;;  %v684_v31 = vrot.slane %v682_v24, 5  ;;  %v4389_v38 = vld [vmem:[%s5309_s0 + $0x38] ss:$8 sps:$4 sm:$0xff]   ;;  %v698_v60 = vrot.slane %v696_v52, 5 }
  0x68   :  { %3957 = vmatprep.mubr.bf16.mxu1 %v3382_v49  ;;  %v671_v34 = vor.u32 %v670_v27, %v667_v26  ;;  %v562_v46 = vld [vmem:[%s5309_s0 + $0x4c] sm:$0x1]  ;;  %v564_v49 = vld [vmem:[%s5309_s0 + $0x54] sm:$0x1]  ;;  %v566_v7 = vld [vmem:[%s5309_s0 + $0x5c] sm:$0x1] }
  0x69   :  { %v621_v56 = vsel %vm4624_vm2, %v616_v51, %v620_v40  ;;  %v663_v33 = vsel %vm4624_vm2, %v658_v25, %v662_v12  ;;  %v685_v40 = vor.u32 %v684_v31, %v681_v30  ;;  %v693_v51 = vshrl.u32 %v561_v44, 16  ;;  %v4404_v26 = vld [vmem:[%s5308_s4 + $0x1f8] sm:$0xff]  }
  0x6a   :  { %v3383_v2 = vcombine.low %v621_v56, %v635_v62  ;;  %v672_v41 = vrot.slane %v671_v34, 4  ;;  %v716_v57 = vshll.u32 %v564_v49, 16  ;;  %v4393_v62 = vld [vmem:[%s5309_s0 + $0x50] ss:$8 sps:$4 sm:$0xff]   ;;  %v730_v12 = vshll.u32 %v566_v7, 16 }
  0x6b   :  { %v686_v43 = vrot.slane %v685_v40, 4  ;;  %v695_v59 = vrot.slane %v693_v51, 4  ;;  %v738_v16 = vshll.u32 %v567_v8, 16  ;;  %v572_v40 = vld [vmem:[%s5309_s0 + $0x74] sm:$0x1]  ;;  %v4403_v44 = vld [vmem:[%s5308_s4 + $0xf8] sm:$0xff]  }
  0x6c   :  { %4086 = vmatmul.mubr.bf16.vlgmr.msra.gmra.mrb[0].mxu0 %v4383_v48  ;;  %3958 = vmatmul.mubr.bf16.vlgmr.msra.gmra.mrb[0].mxu1 %v3383_v2  ;;  %v563_v48 = vld [vmem:[%s5309_s0 + $0x50] sm:$0xf]  ;;  %v772_v49 = vshll.u32 %v572_v40, 16  ;;  %v5086_v40 = vld [vmem:[%s5308_s4 + $0x228] sm:$0xff]  }
  0x6d   :  { %4102 = vmatpush3.bf16.msra.mxu0 %v4819_v47  ;;  %v643_v47 = vor.u32 %v642_v5, %v639_v4  ;;  %3974 = vmatpush3.bf16.msra.mxu1 %v4802_v35  ;;  %v674_v35 = vshll.u32 %v558_v14, 16  ;;  %v691_v50 = vsel %vm4624_vm2, %v686_v43, %v690_v37  ;;  %v707_v55 = vshrl.u32 %v563_v48, 16  ;;  %v565_v4 = vld [vmem:[%s5309_s0 + $0x58] sm:$0xf]  ;;  %v4397_v5 = vld [vmem:[%s5308_s4 + $0xe8] sm:$0xff]  }
  0x6e   :  { %4103 = vmatprep.subr.bf16.mxu0 %v4386_v53  ;;  %4089 = vmatprep.mubr.bf16.mxu0 %v4387_v9  ;;  %v710_v56 = vshll.u32 %v563_v48, 16  ;;  %v699_v6 = vor.u32 %v698_v60, %v695_v59  ;;  %v568_v9 = vld [vmem:[%s5309_s0 + $0x64] sm:$0x1]  ;;  %v740_v24 = vrot.slane %v738_v16, 5  ;;  %v571_v37 = vld [vmem:[%s5309_s0 + $0x70] sm:$0xf] }
  0x6f   :  { %3975 = vmatprep.subr.bf16.mxu1 %v4385_v3  ;;  %v644_v22 = vrot.slane %v643_v47, 4  ;;  %v676_v36 = vrot.slane %v674_v35, 5  ;;  %v709_v1 = vrot.slane %v707_v55, 4  ;;  %v721_v47 = vshrl.u32 %v565_v4, 16  ;;  %v574_v60 = vld [vmem:[%s5309_s0 + $0x7c] sm:$0x1] }
  0x70   :  { %v712_v2 = vrot.slane %v710_v56, 5  ;;  %v700_v14 = vrot.slane %v699_v6, 4  ;;  %v744_v17 = vshll.u32 %v568_v9, 16  ;;  %v763_v43 = vshrl.u32 %v571_v37, 16 }
  0x71   :  { %4104 = vmatpush3.bf16.msra.mxu0 %v4386_v53  ;;  %v649_v29 = vsel %vm4624_vm2, %v644_v22, %v648_v11  ;;  %3976 = vmatpush3.bf16.msra.mxu1 %v4385_v3  ;;  %v677_v45 = vsel %vm4624_vm2, %v672_v41, %v676_v36  ;;  %v702_v53 = vshll.u32 %v562_v46, 16  ;;  %v718_v3 = vrot.slane %v716_v57, 5  ;;  %v4400_v22 = vld [vmem:[%s5308_s4 + $0xf0] sm:$0xff]   ;;  %v570_v36 = vld [vmem:[%s5309_s0 + $0x6c] sm:$0x1] }
  0x72   :  { %4105 = vmatprep.subr.bf16.mxu0 %v4390_v10  ;;  %v3384_v39 = vcombine.low %v649_v29, %v663_v33  ;;  %3977 = vmatprep.subr.bf16.mxu1 %v4388_v15  ;;  %v3385_v54 = vcombine.low %v677_v45, %v691_v50  ;;  %v724_v11 = vshll.u32 %v565_v4, 16  ;;  %v723_v19 = vrot.slane %v721_v47, 4  ;;  %v4395_v29 = vld [vmem:[%s5309_s0 + $0x60] ss:$8 sps:$4 sm:$0xff]   ;;  %v4399_v57 = vld [vmem:[%s5309_s0 + $0x70] ss:$8 sps:$4 sm:$0xff]  }
  0x73   :  { %v704_v0 = vrot.slane %v702_v53, 5  ;;  %v746_v25 = vrot.slane %v744_v17, 5  ;;  %v569_v33 = vld [vmem:[%s5309_s0 + $0x68] sm:$0xf]  ;;  %v766_v48 = vshll.u32 %v571_v37, 16  ;;  %v765_v53 = vrot.slane %v763_v43, 4 }
  0x74   :  { %4090 = vmatmul.mubr.bf16.gmra.mrb[4].mxu0 %v4389_v38  ;;  %3961 = vmatprep.mubr.bf16.mxu1 %v3384_v39  ;;  %v726_v20 = vrot.slane %v724_v11, 5  ;;  %v749_v38 = vshrl.u32 %v569_v33, 16  ;;  %v752_v41 = vshll.u32 %v569_v33, 16  ;;  %v774_v56 = vrot.slane %v772_v49, 5  ;;  %v4401_v17 = vld [vmem:[%s5309_s0 + $0x80] ss:$8 sps:$4 sm:$0xff]  }
  0x75   :  { %4106 = vmatpush3.bf16.msra.mxu0 %v4390_v10  ;;  %3978 = vmatpush3.bf16.msra.mxu1 %v4388_v15  ;;  %v713_v10 = vor.u32 %v712_v2, %v709_v1  ;;  %v735_v15 = vshrl.u32 %v567_v8, 16  ;;  %v705_v35 = vsel %vm4624_vm2, %v700_v14, %v704_v0  ;;  %v768_v55 = vrot.slane %v766_v48, 5  ;;  %v4418_v33 = vld [vmem:[%s5312_s1 + $0x50] ss:$8 sps:$4 sm:$0xff]   ;;  %v3591_v43 = vld [vmem:[%s5309_s0 + $0xc] sm:$0x1] }
  0x76   :  { %4107 = vmatprep.subr.bf16.mxu0 %v4392_v21  ;;  %3979 = vmatprep.subr.bf16.mxu1 %v4391_v32  ;;  %v727_v28 = vor.u32 %v726_v20, %v723_v19  ;;  %v751_v46 = vrot.slane %v749_v38, 4  ;;  %v754_v51 = vrot.slane %v752_v41, 5  ;;  %v4413_v37 = vld [vmem:[%s5311_s2 + $0x30] ss:$8 sps:$4 sm:$0xff]  }
  0x77   :  { %3962 = vmatmul.mubr.bf16.gmra.mrb[4].mxu1 %v3385_v54  ;;  %4093 = vmatprep.mubr.bf16.mxu0 %v4393_v62  ;;  %v714_v18 = vrot.slane %v713_v10, 4  ;;  %v737_v23 = vrot.slane %v735_v15, 4  ;;  %v5004_v54 = vld [vmem:[%s5308_s4 + $0x200] sm:$0xff]   ;;  %v769_v0 = vor.u32 %v768_v55, %v765_v53  ;;  %v4417_v38 = vld [vmem:[%s5311_s2 + $0x48] ss:$8 sps:$4 sm:$0xff]  }
  0x78   :  { %v755_v59 = vor.u32 %v754_v51, %v751_v46  ;;  %v575_v62 = vld [vmem:[%s5309_s0 + $0x80] sm:$0xf]  ;;  %v4424_v41 = vld [vmem:[%s5312_s1 + $0x70] ss:$8 sps:$4 sm:$0xff]   ;;  %v2692_v51 = vshll.u32 %v3591_v43, 16 }
  0x79   :  { %4108 = vmatpush3.bf16.msra.mxu0 %v4392_v21  ;;  %3980 = vmatpush3.bf16.msra.mxu1 %v4391_v32  ;;  %v732_v21 = vrot.slane %v730_v12, 5  ;;  %v719_v27 = vsel %vm4624_vm2, %v714_v18, %v718_v3  ;;  %v741_v31 = vor.u32 %v740_v24, %v737_v23  ;;  %v728_v32 = vrot.slane %v727_v28, 4  ;;  %v4405_v24 = vld [vmem:[%s5311_s2] ss:$8 sps:$4 sm:$0xff]   ;;  %v3606_v55 = vld [vmem:[%s5309_s0 + $0x50] sm:$0xf] }
  0x7a   :  { %4109 = vmatprep.subr.bf16.mxu0 %v4396_v42  ;;  %3981 = vmatprep.subr.bf16.mxu1 %v4394_v58  ;;  %v3386_v30 = vcombine.low %v705_v35, %v719_v27  ;;  %v786_v3 = vshll.u32 %v574_v60, 16  ;;  %v756_v4 = vrot.slane %v755_v59, 4  ;;  %v794_v6 = vshll.u32 %v575_v62, 16  ;;  %v4406_v35 = vld [vmem:[%s5312_s1 + $0x8] ss:$8 sps:$4 sm:$0xff]  }
  0x7b   :  { %v742_v34 = vrot.slane %v741_v31, 4  ;;  %v733_v39 = vsel %vm4624_vm2, %v728_v32, %v732_v21  ;;  %v770_v8 = vrot.slane %v769_v0, 4  ;;  %v4410_v27 = vld [vmem:[%s5308_s4 + $0x208] sm:$0xff]   ;;  %v4414_v32 = vld [vmem:[%s5312_s1 + $0x38] ss:$8 sps:$4 sm:$0xff]  }
  0x7c   :  { %4094 = vmatmul.mubr.bf16.gmra.mrb[8].mxu0 %v4395_v29  ;;  %3965 = vmatprep.mubr.bf16.mxu1 %v3386_v30  ;;  %v788_v47 = vrot.slane %v786_v3, 5  ;;  %v4412_v28 = vld [vmem:[%s5312_s1 + $0x28] ss:$8 sps:$4 sm:$0xff]   ;;  %v4419_v49 = vld [vmem:[%s5311_s2 + $0x58] ss:$8 sps:$4 sm:$0xff]  }
  0x7d   :  { %4110 = vmatpush3.bf16.msra.mxu0 %v4396_v42  ;;  %3982 = vmatpush3.bf16.msra.mxu1 %v4394_v58  ;;  %v758_v42 = vshll.u32 %v570_v36, 16  ;;  %v747_v45 = vsel %vm4624_vm2, %v742_v34, %v746_v25  ;;  %v573_v58 = vld [vmem:[%s5309_s0 + $0x78] sm:$0xf]  ;;  %v775_v15 = vsel %vm4624_vm2, %v770_v8, %v774_v56  ;;  %v4415_v29 = vld [vmem:[%s5308_s4 + $0x210] sm:$0xff]   ;;  %v4411_v31 = vld [vmem:[%s5311_s2 + $0x20] ss:$8 sps:$4 sm:$0xff]  }
  0x7e   :  { %4111 = vmatprep.subr.bf16.mxu0 %v4398_v63  ;;  %3983 = vmatprep.subr.bf16.mxu1 %v4397_v5  ;;  %v3387_v50 = vcombine.low %v733_v39, %v747_v45  ;;  %v777_v1 = vshrl.u32 %v573_v58, 16  ;;  %v780_v2 = vshll.u32 %v573_v58, 16  ;;  %v4407_v30 = vld [vmem:[%s5311_s2 + $0x10] ss:$8 sps:$4 sm:$0xff]   ;;  %v5072_v36 = vld [vmem:[%s5308_s4 + $0x220] sm:$0xff]  }
  0x7f   :  { %v760_v52 = vrot.slane %v758_v42, 5  ;;  %4097 = vmatprep.mubr.bf16.mxu0 %v4399_v57  ;;  %v4416_v34 = vld [vmem:[%s5308_s4 + $0x218] sm:$0xff]   ;;  %v4420_v39 = vld [vmem:[%s5312_s1 + $0x60] ss:$8 sps:$4 sm:$0xff]   ;;  %v3593_v45 = vld [vmem:[%s5309_s0 + $0x14] sm:$0x1] }
  0x80   :  { %3966 = vmatmul.mubr.bf16.gmra.mrb[8].mxu1 %v3387_v50  ;;  %v779_v9 = vrot.slane %v777_v1, 4  ;;  %v782_v10 = vrot.slane %v780_v2, 5  ;;  %v3590_v42 = vld [vmem:[%s5309_s0 + $0x8] sm:$0xf]  ;;  %v5110_v50 = vld [vmem:[%s5308_s4 + $0x230] sm:$0xff]  }
  0x81   :  { %4112 = vmatpush3.bf16.msra.mxu0 %v4398_v63  ;;  %3984 = vmatpush3.bf16.msra.mxu1 %v4397_v5  ;;  %v576_v63 = vld [vmem:[%s5309_s0 + $0x84] sm:$0x1]  ;;  %v791_v5 = vshrl.u32 %v575_v62, 16  ;;  %v761_v11 = vsel %vm4624_vm2, %v756_v4, %v760_v52  ;;  %v2683_v46 = vshrl.u32 %v3590_v42, 16  ;;  %v2686_v48 = vshll.u32 %v3590_v42, 16 }
  0x82   :  { %4113 = vmatprep.subr.bf16.mxu0 %v4402_v13  ;;  %3985 = vmatprep.subr.bf16.mxu1 %v4400_v22  ;;  %v800_v7 = vshll.u32 %v576_v63, 16  ;;  %v783_v16 = vor.u32 %v782_v10, %v779_v9  ;;  %v3388_v18 = vcombine.low %v761_v11, %v775_v15  ;;  %v4423_v56 = vld [vmem:[%s5311_s2 + $0x68] ss:$8 sps:$4 sm:$0xff]   ;;  %v3607_v59 = vld [vmem:[%s5309_s0 + $0x54] sm:$0x1]  ;;  %v2694_v63 = vrot.slane %v2692_v51, 5 }
  0x83   :  { %v793_v12 = vrot.slane %v791_v5, 4  ;;  %v2685_v57 = vrot.slane %v2683_v46, 4  ;;  %v2688_v58 = vrot.slane %v2686_v48, 5  ;;  %v3608_v60 = vld [vmem:[%s5309_s0 + $0x58] sm:$0xf]  ;;  %v2795_v5 = vshrl.u32 %v3606_v55, 16 }
  0x84   :  { %v802_v14 = vrot.slane %v800_v7, 5  ;;  %v784_v20 = vrot.slane %v783_v16, 4  ;;  %4098 = vmatmul.mubr.bf16.gmra.mrb[12].mxu0 %v4401_v17  ;;  %3969 = vmatprep.mubr.bf16.mxu1 %v3388_v18  ;;  %v4426_v62 = vld [vmem:[%s5312_s1 + $0x80] ss:$8 sps:$4 sm:$0xff]   ;;  %v3609_v3 = vld [vmem:[%s5309_s0 + $0x5c] sm:$0x1] }
  0x85   :  { %4114 = vmatpush3.bf16.msra.mxu0 %v4402_v13  ;;  %3986 = vmatpush3.bf16.msra.mxu1 %v4400_v22  ;;  %v796_v13 = vrot.slane %v794_v6, 5  ;;  %v2689_v4 = vor.u32 %v2688_v58, %v2685_v57  ;;  %v2798_v6 = vshll.u32 %v3606_v55, 16  ;;  %v2804_v7 = vshll.u32 %v3607_v59, 16  ;;  %v3594_v8 = vld [vmem:[%s5309_s0 + $0x18] sm:$0xf] }
  0x86   :  { %4115 = vmatprep.subr.bf16.mxu0 %v4404_v26  ;;  %3987 = vmatprep.subr.bf16.mxu1 %v4403_v44  ;;  %v789_v22 = vsel %vm4624_vm2, %v784_v20, %v788_v47  ;;  %v2809_v10 = vshrl.u32 %v3608_v60, 16  ;;  %v2812_v47 = vshll.u32 %v3608_v60, 16  ;;  %v2818_v11 = vshll.u32 %v3609_v3, 16  ;;  %v3596_v17 = vld [vmem:[%s5309_s0 + $0x20] sm:$0xf]  ;;  %v5147_v18 = vld [vmem:[%s5308_s4 + $0x238] sm:$0xff]  }
  0x87   :  { %v797_v19 = vor.u32 %v796_v13, %v793_v12  ;;  %4117 = vmatprep.mubr.bf16.mxu0 %v4406_v35  ;;  %v3595_v12 = vld [vmem:[%s5309_s0 + $0x1c] sm:$0x1]  ;;  %v2690_v13 = vrot.slane %v2689_v4, 4  ;;  %v2800_v15 = vrot.slane %v2798_v6, 5  ;;  %v2806_v16 = vrot.slane %v2804_v7, 5 }
  0x88   :  { %v2811_v20 = vrot.slane %v2809_v10, 4  ;;  %v2728_v43 = vshll.u32 %v3596_v17, 16  ;;  %v3612_v48 = vld [vmem:[%s5309_s0 + $0x68] sm:$0xf] }
  0x89   :  { %4116 = vmatpush3.bf16.msra.mxu0 %v4404_v26  ;;  %3988 = vmatpush3.bf16.msra.mxu1 %v4403_v44  ;;  %v798_v21 = vrot.slane %v797_v19, 4  ;;  %v4408_v26 = vld [vmem:[%s5312_s1 + $0x18] ss:$8 sps:$4 sm:$0xff]   ;;  %v3592_v44 = vld [vmem:[%s5309_s0 + $0x10] sm:$0xf]  ;;  %v2695_v35 = vsel %vm4624_vm2, %v2690_v13, %v2694_v63  ;;  %v2840_v3 = vshll.u32 %v3612_v48, 16 }
  0x8a   :  { %4133 = vmatprep.subr.bf16.mxu0 %v5004_v54  ;;  %4165 = vmatprep.subr.bf16.mxu1 %v5004_v54  ;;  %v2697_v52 = vshrl.u32 %v3592_v44, 16  ;;  %v2700_v53 = vshll.u32 %v3592_v44, 16  ;;  %v3598_v55 = vld [vmem:[%s5309_s0 + $0x28] sm:$0xf] }
  0x8b   :  { %v803_v23 = vsel %vm4624_vm2, %v798_v21, %v802_v14  ;;  %v2797_v14 = vrot.slane %v2795_v5, 4  ;;  %v2814_v21 = vrot.slane %v2812_v47, 5  ;;  %v3600_v5 = vld [vmem:[%s5309_s0 + $0x30] sm:$0xf]  ;;  %v2739_v6 = vshrl.u32 %v3598_v55, 16 }
  0x8c   :  { %v3389_v25 = vcombine.low %v789_v22, %v803_v23  ;;  %4118 = vmatmul.mubr.bf16.vlgmr.msra.gmra.mrb[0].mxu0 %v4408_v26  ;;  %v2699_v0 = vrot.slane %v2697_v52, 4  ;;  %v2702_v1 = vrot.slane %v2700_v53, 5  ;;  %v2820_v22 = vrot.slane %v2818_v11, 5 }
  0x8d   :  { %4134 = vmatpush3.bf16.msra.mxu0 %v5004_v54  ;;  %4121 = vmatprep.mubr.bf16.mxu0 %v4412_v28  ;;  %v2801_v23 = vor.u32 %v2800_v15, %v2797_v14  ;;  %v3597_v28 = vld [vmem:[%s5309_s0 + $0x24] sm:$0x1]  ;;  %v2730_v52 = vrot.slane %v2728_v43, 5  ;;  %v2742_v10 = vshll.u32 %v3598_v55, 16  ;;  %v2842_v47 = vrot.slane %v2840_v3, 5 }
  0x8e   :  { %3970 = vmatmul.mubr.bf16.gmra.mrb[12].mxu1 %v3389_v25  ;;  %4135 = vmatprep.subr.bf16.mxu0 %v4410_v27  ;;  %v2703_v9 = vor.u32 %v2702_v1, %v2699_v0  ;;  %v2714_v25 = vshll.u32 %v3594_v8, 16  ;;  %v2734_v46 = vshll.u32 %v3597_v28, 16  ;;  %v2837_v0 = vshrl.u32 %v3612_v48, 16  ;;  %v3599_v1 = vld [vmem:[%s5309_s0 + $0x2c] sm:$0x1] }
  0x8f   :  { %3989 = vmatprep.mubr.bf16.mxu1 %v4405_v24  ;;  %v2711_v24 = vshrl.u32 %v3594_v8, 16  ;;  %v2748_v13 = vshll.u32 %v3599_v1, 16 }
  0x90   :  { %v2704_v19 = vrot.slane %v2703_v9, 4  ;;  %v2736_v58 = vrot.slane %v2734_v46, 5  ;;  %v2839_v9 = vrot.slane %v2837_v0, 4  ;;  %v3618_v0 = vld [vmem:[%s5309_s0 + $0x80] sm:$0xf] }
  0x91   :  { %4136 = vmatpush3.bf16.msra.mxu0 %v4410_v27 }
  0x92   :  { %4137 = vmatprep.subr.bf16.mxu0 %v4415_v29 }
  0x94   :  { %4122 = vmatmul.mubr.bf16.gmra.mrb[4].mxu0 %v4414_v32 }
  0x95   :  { %4138 = vmatpush3.bf16.msra.mxu0 %v4415_v29  ;;  %4125 = vmatprep.mubr.bf16.mxu0 %v4418_v33  ;;  %v2802_v33 = vrot.slane %v2801_v23, 4  ;;  %v3615_v23 = vld [vmem:[%s5309_s0 + $0x74] sm:$0x1] }
  0x96   :  { %3990 = vmatmul.mubr.bf16.vlgmr.msra.gmra.mrb[0].mxu1 %v4407_v30  ;;  %4139 = vmatprep.subr.bf16.mxu0 %v4416_v34  ;;  %v2725_v30 = vshrl.u32 %v3596_v17, 16  ;;  %v2753_v17 = vshrl.u32 %v3600_v5, 16 }
  0x97   :  { %4173 = vmatpush3.bf16.msra.mxu1 %v5004_v54  ;;  %3993 = vmatprep.mubr.bf16.mxu1 %v4411_v31  ;;  %v2706_v54 = vshll.u32 %v3593_v45, 16  ;;  %v3610_v31 = vld [vmem:[%s5309_s0 + $0x60] sm:$0xf]  ;;  %v2807_v44 = vsel %vm4624_vm2, %v2802_v33, %v2806_v16  ;;  %v2744_v16 = vrot.slane %v2742_v10, 5  ;;  %v3619_v10 = vld [vmem:[%s5309_s0 + $0x84] sm:$0x1] }
  0x98   :  { %4166 = vmatprep.subr.bf16.mxu1 %v4410_v27  ;;  %v2727_v42 = vrot.slane %v2725_v30, 4  ;;  %v2823_v51 = vshrl.u32 %v3610_v31, 16  ;;  %v2826_v53 = vshll.u32 %v3610_v31, 16  ;;  %v3617_v30 = vld [vmem:[%s5309_s0 + $0x7c] sm:$0x1] }
  0x99   :  { %4140 = vmatpush3.bf16.msra.mxu0 %v4416_v34  ;;  %v2708_v2 = vrot.slane %v2706_v54, 5 }
  0x9a   :  { %4141 = vmatprep.subr.bf16.mxu0 %v5072_v36  ;;  %v2825_v59 = vrot.slane %v2823_v51, 4  ;;  %v2731_v60 = vor.u32 %v2730_v52, %v2727_v42 }
  0x9b   :  { %4174 = vmatpush3.bf16.msra.mxu1 %v4410_v27  ;;  %v2709_v26 = vsel %vm4624_vm2, %v2704_v19, %v2708_v2  ;;  %v2815_v27 = vor.u32 %v2814_v21, %v2811_v20  ;;  %v3614_v19 = vld [vmem:[%s5309_s0 + $0x70] sm:$0xf]  ;;  %v2843_v21 = vor.u32 %v2842_v47, %v2839_v9 }
  0x9c   :  { %4167 = vmatprep.subr.bf16.mxu1 %v4415_v29  ;;  %4126 = vmatmul.mubr.bf16.gmra.mrb[8].mxu0 %v4420_v39  ;;  %v3638_v32 = vcombine.low %v2695_v35, %v2709_v26  ;;  %v2732_v7 = vrot.slane %v2731_v60, 4  ;;  %v2756_v35 = vshll.u32 %v3600_v5, 16  ;;  %v2851_v31 = vshrl.u32 %v3614_v19, 16  ;;  %v3620_v5 = vld [vmem:[%s5309_s0 + $0x88] sm:$0xf] }
  0x9d   :  { %4142 = vmatpush3.bf16.msra.mxu0 %v5072_v36  ;;  %4129 = vmatprep.mubr.bf16.mxu0 %v4424_v41  ;;  %v2816_v39 = vrot.slane %v2815_v27, 4  ;;  %v2755_v27 = vrot.slane %v2753_v17, 4 }
  0x9e   :  { %3994 = vmatmul.mubr.bf16.gmra.mrb[4].mxu1 %v4413_v37  ;;  %4143 = vmatprep.subr.bf16.mxu0 %v5086_v40  ;;  %v3611_v37 = vld [vmem:[%s5309_s0 + $0x64] sm:$0x1]  ;;  %v2737_v14 = vsel %vm4624_vm2, %v2732_v7, %v2736_v58  ;;  %v2853_v42 = vrot.slane %v2851_v31, 4 }
  0x9f   :  { %4175 = vmatpush3.bf16.msra.mxu1 %v4415_v29  ;;  %3997 = vmatprep.mubr.bf16.mxu1 %v4417_v38  ;;  %v2720_v29 = vshll.u32 %v3595_v12, 16  ;;  %v4425_v38 = vld [vmem:[%s5311_s2 + $0x78] ss:$8 sps:$4 sm:$0xff]   ;;  %v2832_v54 = vshll.u32 %v3611_v37, 16  ;;  %v2741_v12 = vrot.slane %v2739_v6, 4 }
  0xa0   :  { %4168 = vmatprep.subr.bf16.mxu1 %v4416_v34 }
  0xa1   :  { %4144 = vmatpush3.bf16.msra.mxu0 %v5086_v40  ;;  %v2722_v41 = vrot.slane %v2720_v29, 5  ;;  %v2834_v63 = vrot.slane %v2832_v54, 5  ;;  %v2745_v26 = vor.u32 %v2744_v16, %v2741_v12  ;;  %v2758_v29 = vrot.slane %v2756_v35, 5  ;;  %v3605_v54 = vld [vmem:[%s5309_s0 + $0x44] sm:$0x1] }
  0xa2   :  { %4145 = vmatprep.subr.bf16.mxu0 %v5110_v50  ;;  %v2882_v12 = vshll.u32 %v3618_v0, 16  ;;  %v2893_v16 = vshrl.u32 %v3620_v5, 16 }
  0xa3   :  { %4176 = vmatpush3.bf16.msra.mxu1 %v4416_v34  ;;  %v2713_v34 = vrot.slane %v2711_v24, 4  ;;  %v3616_v24 = vld [vmem:[%s5309_s0 + $0x78] sm:$0xf]  ;;  %v2746_v33 = vrot.slane %v2745_v26, 4 }
  0xa4   :  { %4169 = vmatprep.subr.bf16.mxu1 %v5072_v36  ;;  %4130 = vmatmul.mubr.bf16.gmra.mrb[12].mxu0 %v4426_v62  ;;  %v2828_v62 = vrot.slane %v2826_v53, 5  ;;  %v2865_v37 = vshrl.u32 %v3616_v24, 16  ;;  %v2868_v52 = vshll.u32 %v3616_v24, 16  ;;  %v2874_v53 = vshll.u32 %v3617_v30, 16 }
  0xa5   :  { %4146 = vmatpush3.bf16.msra.mxu0 %v5110_v50  ;;  %4149 = vmatprep.mubr.bf16.mxu0 %v3638_v32  ;;  %v2854_v32 = vshll.u32 %v3614_v19, 16  ;;  %v3621_v19 = vld [vmem:[%s5309_s0 + $0x8c] sm:$0x1] }
  0xa6   :  { %3998 = vmatmul.mubr.bf16.gmra.mrb[8].mxu1 %v4419_v49  ;;  %4147 = vmatprep.subr.bf16.mxu0 %v5147_v18  ;;  %v3613_v49 = vld [vmem:[%s5309_s0 + $0x6c] sm:$0x1]  ;;  %v2829_v8 = vor.u32 %v2828_v62, %v2825_v59  ;;  %v2902_v30 = vshll.u32 %v3621_v19, 16 }
  0xa7   :  { %4177 = vmatpush3.bf16.msra.mxu1 %v5072_v36  ;;  %4001 = vmatprep.mubr.bf16.mxu1 %v4423_v56  ;;  %v2716_v36 = vrot.slane %v2714_v25, 5  ;;  %v2846_v4 = vshll.u32 %v3613_v49, 16  ;;  %v2856_v43 = vrot.slane %v2854_v32, 5  ;;  %v2867_v49 = vrot.slane %v2865_v37, 4 }
  0xa8   :  { %4170 = vmatprep.subr.bf16.mxu1 %v5086_v40  ;;  %v2830_v15 = vrot.slane %v2829_v8, 4 }
  0xa9   :  { %v2717_v45 = vor.u32 %v2716_v36, %v2713_v34  ;;  %4148 = vmatpush3.bf16.msra.mxu0 %v5147_v18  ;;  %v2848_v11 = vrot.slane %v2846_v4, 5  ;;  %v2860_v36 = vshll.u32 %v3615_v23, 16 }
  0xaa   :  { %v2835_v25 = vsel %vm4624_vm2, %v2830_v15, %v2834_v63  ;;  %v2870_v63 = vrot.slane %v2868_v52, 5 }
  0xab   :  { %4178 = vmatpush3.bf16.msra.mxu1 %v5086_v40  ;;  %v2821_v40 = vsel %vm4624_vm2, %v2816_v39, %v2820_v22  ;;  %v2718_v57 = vrot.slane %v2717_v45, 4  ;;  %v2750_v22 = vrot.slane %v2748_v13, 5  ;;  %v3604_v45 = vld [vmem:[%s5309_s0 + $0x40] sm:$0xf]  ;;  %v2862_v62 = vrot.slane %v2860_v36, 5 }
  0xac   :  { %4171 = vmatprep.subr.bf16.mxu1 %v5110_v50  ;;  %v3642_v56 = vcombine.low %v2807_v44, %v2821_v40  ;;  %v3603_v44 = vld [vmem:[%s5309_s0 + $0x3c] sm:$0x1]  ;;  %v2857_v40 = vor.u32 %v2856_v43, %v2853_v42  ;;  %v2781_v58 = vshrl.u32 %v3604_v45, 16  ;;  %v2871_v6 = vor.u32 %v2870_v63, %v2867_v49 }
  0xad   :  { %v2723_v2 = vsel %vm4624_vm2, %v2718_v57, %v2722_v41  ;;  %v2759_v41 = vor.u32 %v2758_v29, %v2755_v27  ;;  %v2751_v48 = vsel %vm4624_vm2, %v2746_v33, %v2750_v22  ;;  %v2776_v57 = vshll.u32 %v3603_v44, 16 }
  0xae   :  { %4002 = vmatmul.mubr.bf16.gmra.mrb[12].mxu1 %v4425_v38  ;;  %v3639_v20 = vcombine.low %v2723_v2, %v2737_v14  ;;  %v3602_v38 = vld [vmem:[%s5309_s0 + $0x38] sm:$0xf]  ;;  %v2858_v60 = vrot.slane %v2857_v40, 4  ;;  %v2876_v2 = vrot.slane %v2874_v53, 5  ;;  %v2783_v8 = vrot.slane %v2781_v58, 4 }
  0xaf   :  { %4179 = vmatpush3.bf16.msra.mxu1 %v5110_v50  ;;  %4157 = vmatprep.mubr.bf16.mxu1 %v3642_v56  ;;  %v3601_v50 = vld [vmem:[%s5309_s0 + $0x34] sm:$0x1]  ;;  %v2760_v51 = vrot.slane %v2759_v41, 4  ;;  %v2767_v55 = vshrl.u32 %v3602_v38, 16  ;;  %v2770_v56 = vshll.u32 %v3602_v38, 16  ;;  %v2778_v7 = vrot.slane %v2776_v57, 5 }
  0xb0   :  { %4172 = vmatprep.subr.bf16.mxu1 %v5147_v18  ;;  %v2762_v28 = vshll.u32 %v3601_v50, 16  ;;  %4150 = vmatmul.mubr.bf16.vlgmr.msra.gmra.mrb[0].mxu0 %v3639_v20  ;;  %v2784_v9 = vshll.u32 %v3604_v45, 16  ;;  %v2879_v50 = vshrl.u32 %v3618_v0, 16  ;;  %v2863_v13 = vsel %vm4624_vm2, %v2858_v60, %v2862_v62 }
  0xb1   :  { %v2769_v3 = vrot.slane %v2767_v55, 4  ;;  %v2772_v4 = vrot.slane %v2770_v56, 5  ;;  %v2872_v14 = vrot.slane %v2871_v6, 4  ;;  %v2888_v22 = vshll.u32 %v3619_v10, 16 }
  0xb2   :  { %v2764_v34 = vrot.slane %v2762_v28, 5  ;;  %v2786_v15 = vrot.slane %v2784_v9, 5  ;;  %v2881_v20 = vrot.slane %v2879_v50, 4  ;;  %v2895_v27 = vrot.slane %v2893_v16, 4 }
  0xb3   :  { %4180 = vmatpush3.bf16.msra.mxu1 %v5147_v18  ;;  %v2844_v18 = vrot.slane %v2843_v21, 4  ;;  %v2773_v47 = vor.u32 %v2772_v4, %v2769_v3  ;;  %v2884_v21 = vrot.slane %v2882_v12, 5  ;;  %v2877_v35 = vsel %vm4624_vm2, %v2872_v14, %v2876_v2 }
  0xb4   :  { %v2765_v59 = vsel %vm4624_vm2, %v2760_v51, %v2764_v34  ;;  %v2787_v23 = vor.u32 %v2786_v15, %v2783_v8  ;;  %v2896_v28 = vshll.u32 %v3620_v5, 16  ;;  %v2890_v32 = vrot.slane %v2888_v22, 5 }
  0xb5   :  { %v2849_v39 = vsel %vm4624_vm2, %v2844_v18, %v2848_v11  ;;  %v3640_v1 = vcombine.low %v2751_v48, %v2765_v59  ;;  %v2790_v11 = vshll.u32 %v3605_v54, 16  ;;  %v2774_v17 = vrot.slane %v2773_v47, 4 }
  0xb6   :  { %v3643_v46 = vcombine.low %v2835_v25, %v2849_v39  ;;  %v3644_v25 = vcombine.low %v2863_v13, %v2877_v35  ;;  %v2885_v26 = vor.u32 %v2884_v21, %v2881_v20  ;;  %v2788_v29 = vrot.slane %v2787_v23, 4 }
  0xb7   :  { %4153 = vmatprep.mubr.bf16.mxu0 %v3640_v1  ;;  %v2792_v24 = vrot.slane %v2790_v11, 5  ;;  %v2779_v18 = vsel %vm4624_vm2, %v2774_v17, %v2778_v7  ;;  %v2898_v33 = vrot.slane %v2896_v28, 5  ;;  %v2904_v38 = vrot.slane %v2902_v30, 5 }
  0xb8   :  { %4158 = vmatmul.mubr.bf16.vlgmr.msra.gmra.mrb[16].mxu1 %v3643_v46  ;;  %v2886_v31 = vrot.slane %v2885_v26, 4 }
  0xb9   :  { %4161 = vmatprep.mubr.bf16.mxu1 %v3644_v25  ;;  %v2793_v34 = vsel %vm4624_vm2, %v2788_v29, %v2792_v24  ;;  %v2899_v37 = vor.u32 %v2898_v33, %v2895_v27 }
  0xba   :  { %v3641_v36 = vcombine.low %v2779_v18, %v2793_v34  ;;  %v2891_v39 = vsel %vm4624_vm2, %v2886_v31, %v2890_v32 }
  0xbb   :  { %v2900_v41 = vrot.slane %v2899_v37, 4 }
  0xbc   :  { %4154 = vmatmul.mubr.bf16.gmra.mrb[4].mxu0 %v3641_v36 }
  0xbd   :  { %v2905_v42 = vsel %vm4624_vm2, %v2900_v41, %v2904_v38 }
  0xbe   :  { %v3645_v43 = vcombine.low %v2891_v39, %v2905_v42 }
  0xc0   :  { %4162 = vmatmul.mubr.bf16.gmra.mrb[20].mxu1 %v3645_v43 }
 0x169   :  { %v3991_v44 = vpop.f32.mrb[0].mxu1 }
 0x16a   :  { %v1211_v45 = vpop.f32.mrb[1].mxu1 }
 0x16b   :  { %v3992_v46 = vpop.f32.mrb[2].mxu1 }
 0x16c   :  { %v1214_v48 = vpop.f32.mrb[3].mxu1 }
 0x16f   :  { %v4127_v52 = vpop.f32.mrb[8].mxu0 }
 0x170   :  { %v2571_v54 = vpop.f32.mrb[9].mxu0 }
 0x171   :  { %v5257_v49 = vpop.f32.mrb[4].mxu1  ;;  %v4128_v55 = vpop.f32.mrb[10].mxu0 }
 0x172   :  { %v5259_v51 = vpop.f32.mrb[5].mxu1  ;;  %v2574_v56 = vpop.f32.mrb[11].mxu0 }
 0x173   :  { %v5261_v40 = vpop.f32.mrb[6].mxu1 }
 0x174   :  { %v5263_v53 = vpop.f32.mrb[7].mxu1 }
 0x177   :  { %v4131_v62 = vpop.f32.mrb[12].mxu0 }
 0x178   :  { %v2587_v1 = vpop.f32.mrb[13].mxu0 }
 0x179   :  { %v3999_v61 = vpop.f32.mrb[8].mxu1  ;;  %v4132_v3 = vpop.f32.mrb[14].mxu0 }
 0x17a   :  { %v4189_v57 = vadd.f32 %v4127_v52, %v3999_v61  ;;  %v1243_v58 = vpop.f32.mrb[9].mxu1  ;;  %v2590_v4 = vpop.f32.mrb[15].mxu0 }
 0x17b   :  { %v4191_v59 = vadd.f32 %v2571_v54, %v1243_v58  ;;  %v4000_v60 = vpop.f32.mrb[10].mxu1 }
 0x17c   :  { %v4193_v63 = vadd.f32 %v4128_v55, %v4000_v60  ;;  %v1246_v0 = vpop.f32.mrb[11].mxu1 }
 0x17d   :  { %v4195_v2 = vadd.f32 %v2574_v56, %v1246_v0 }
 0x181   :  { %v4003_v5 = vpop.f32.mrb[12].mxu1 }
 0x182   :  { %v4197_v6 = vadd.f32 %v4131_v62, %v4003_v5  ;;  %v1259_v7 = vpop.f32.mrb[13].mxu1 }
 0x183   :  { %v4199_v8 = vadd.f32 %v2587_v1, %v1259_v7  ;;  %v4004_v9 = vpop.f32.mrb[14].mxu1  ;;  %v4151_v50 = vpop.f32.mrb[0].mxu0 }
 0x184   :  { %v4201_v10 = vadd.f32 %v4132_v3, %v4004_v9  ;;  %v1262_v47 = vpop.f32.mrb[15].mxu1  ;;  %v4181_v12 = vadd.f32 %v4151_v50, %v3991_v44  ;;  %v3037_v13 = vpop.f32.mrb[1].mxu0 }
 0x185   :  { %v5265_v11 = vadd.f32 %v2590_v4, %v1262_v47  ;;  %v4182_v14 = vadd.f32 %v3037_v13, %v1211_v45  ;;  %v4152_v15 = vpop.f32.mrb[2].mxu0 }
 0x186   :  { %v4183_v16 = vadd.f32 %v4152_v15, %v3992_v46  ;;  %v3040_v17 = vpop.f32.mrb[3].mxu0  ;;  %v3268_v18 = vmul.f32 %v4181_v12, %v4181_v12 }
 0x187   :  { %v4184_v19 = vadd.f32 %v3040_v17, %v1214_v48  ;;  %v3266_v21 = vmul.f32 %v4182_v14, %v4182_v14 }
 0x188   :  { %v3694_v22 = vpack.c.bf16 %v4183_v16, %v4181_v12  ;;  %v3269_v34 = vmul.f32 %v4183_v16, %v4183_v16 }
 0x189   :  { %v3689_v24 = vpack.c.bf16 %v4184_v19, %v4182_v14  ;;  %v3244_v25 = vadd.f32 %v4184_v19, %v4182_v14  ;;  %v3267_v26 = vmul.f32 %v4184_v19, %v4184_v19 }
 0x18a   :  { %3726 = vst [vmem:[%s5313_s5 + $0x8] sm:$0xff] %v3694_v22  }
 0x18b   :  { %v4159_v20 = vpop.f32.mrb[16].mxu1  ;;  %3690 = vst [vmem:[%s5313_s5] sm:$0xff] %v3689_v24   ;;  %v3245_v30 = vadd.f32 %v4181_v12, %v3244_v25  ;;  %v3282_v31 = vadd.f32 %v3267_v26, %v3266_v21 }
 0x18c   :  { %v5267_v35 = vadd.f32 %v4189_v57, %v4159_v20  ;;  %v3069_v23 = vpop.f32.mrb[17].mxu1 }
 0x18d   :  { %v4192_v27 = vadd.f32 %v4191_v59, %v3069_v23  ;;  %v4160_v28 = vpop.f32.mrb[18].mxu1  ;;  %v3283_v37 = vadd.f32 %v3282_v31, %v3268_v18  ;;  %v3246_v38 = vadd.f32 %v4183_v16, %v3245_v30 }
 0x18e   :  { %v4194_v29 = vadd.f32 %v4193_v63, %v4160_v28  ;;  %v3072_v32 = vpop.f32.mrb[19].mxu1  ;;  %v3276_v15 = vmul.f32 %v5267_v35, %v5267_v35 }
 0x18f   :  { %v4196_v33 = vadd.f32 %v4195_v2, %v3072_v32  ;;  %v3284_v41 = vadd.f32 %v3283_v37, %v3269_v34  ;;  %v4155_v42 = vpop.f32.mrb[4].mxu0  ;;  %v3274_v47 = vmul.f32 %v4192_v27, %v4192_v27 }
 0x190   :  { %v3714_v36 = vpack.c.bf16 %v4194_v29, %v5267_v35  ;;  %v4185_v43 = vadd.f32 %v4155_v42, %v5257_v49  ;;  %v3053_v44 = vpop.f32.mrb[5].mxu0  ;;  %v3277_v19 = vmul.f32 %v4194_v29, %v4194_v29 }
 0x191   :  { %v3709_v39 = vpack.c.bf16 %v4196_v33, %v4192_v27  ;;  %v4186_v45 = vadd.f32 %v3053_v44, %v5259_v51  ;;  %v4156_v46 = vpop.f32.mrb[6].mxu0  ;;  %v3275_v13 = vmul.f32 %v4196_v33, %v4196_v33 }
 0x192   :  { %3730 = vst [vmem:[%s5313_s5 + $0x28] sm:$0xff] %v3714_v36   ;;  %v4187_v48 = vadd.f32 %v4156_v46, %v5261_v40  ;;  %v3056_v52 = vpop.f32.mrb[7].mxu0  ;;  %v3272_v2 = vmul.f32 %v4185_v43, %v4185_v43 }
 0x193   :  { %3729 = vst [vmem:[%s5313_s5 + $0x20] sm:$0xff] %v3709_v39   ;;  %v3247_v54 = vadd.f32 %v4186_v45, %v3246_v38  ;;  %v3270_v55 = vmul.f32 %v4186_v45, %v4186_v45  ;;  %v4188_v56 = vadd.f32 %v3056_v52, %v5263_v53  ;;  %v4163_v61 = vpop.f32.mrb[20].mxu1 }
 0x194   :  { %v3704_v57 = vpack.c.bf16 %v4187_v48, %v4185_v43  ;;  %v4198_v58 = vadd.f32 %v4197_v6, %v4163_v61  ;;  %v3085_v60 = vpop.f32.mrb[21].mxu1  ;;  %v3273_v7 = vmul.f32 %v4187_v48, %v4187_v48 }
 0x195   :  { %v3285_v59 = vadd.f32 %v3284_v41, %v3270_v55  ;;  %v3699_v62 = vpack.c.bf16 %v4188_v56, %v4186_v45  ;;  %v3248_v63 = vadd.f32 %v4188_v56, %v3247_v54  ;;  %v4200_v0 = vadd.f32 %v4199_v8, %v3085_v60  ;;  %v4164_v49 = vpop.f32.mrb[22].mxu1 }
 0x196   :  { %3728 = vst [vmem:[%s5313_s5 + $0x18] sm:$0xff] %v3704_v57   ;;  %v3271_v51 = vmul.f32 %v4188_v56, %v4188_v56  ;;  %v4202_v40 = vadd.f32 %v4201_v10, %v4164_v49  ;;  %v3088_v1 = vpop.f32.mrb[23].mxu1  ;;  %v3280_v28 = vmul.f32 %v4198_v58, %v4198_v58 }
 0x197   :  { %3727 = vst [vmem:[%s5313_s5 + $0x10] sm:$0xff] %v3699_v62   ;;  %v3249_v53 = vadd.f32 %v4185_v43, %v3248_v63  ;;  %v4204_v4 = vadd.f32 %v5265_v11, %v3088_v1  ;;  %v3278_v22 = vmul.f32 %v4200_v0, %v4200_v0 }
 0x198   :  { %v3286_v3 = vadd.f32 %v3285_v59, %v3271_v51  ;;  %v3724_v5 = vpack.c.bf16 %v4202_v40, %v4198_v58  ;;  %v3281_v31 = vmul.f32 %v4202_v40, %v4202_v40 }
 0x199   :  { %v3250_v6 = vadd.f32 %v4187_v48, %v3249_v53  ;;  %v3719_v9 = vpack.c.bf16 %v4204_v4, %v4200_v0  ;;  %v3279_v25 = vmul.f32 %v4204_v4, %v4204_v4 }
 0x19a   :  { %v3287_v8 = vadd.f32 %v3286_v3, %v3272_v2  ;;  %3732 = vst [vmem:[%s5313_s5 + $0x38] sm:$0xff] %v3724_v5  }
 0x19b   :  { %v3251_v10 = vadd.f32 %v4192_v27, %v3250_v6  ;;  %3731 = vst [vmem:[%s5313_s5 + $0x30] sm:$0xff] %v3719_v9  }
 0x19c   :  { %v3288_v50 = vadd.f32 %v3287_v8, %v3273_v7 }
 0x19d   :  { %v3252_v12 = vadd.f32 %v4196_v33, %v3251_v10 }
 0x19e   :  { %v3289_v14 = vadd.f32 %v3288_v50, %v3274_v47 }
 0x19f   :  { %v3253_v11 = vadd.f32 %v5267_v35, %v3252_v12 }
 0x1a0   :  { %v3290_v16 = vadd.f32 %v3289_v14, %v3275_v13 }
 0x1a1   :  { %v3254_v17 = vadd.f32 %v4194_v29, %v3253_v11 }
 0x1a2   :  { %v3291_v20 = vadd.f32 %v3290_v16, %v3276_v15 }
 0x1a3   :  { %v3255_v21 = vadd.f32 %v4200_v0, %v3254_v17 }
 0x1a4   :  { %v3292_v23 = vadd.f32 %v3291_v20, %v3277_v19 }
 0x1a5   :  { %v3256_v24 = vadd.f32 %v4204_v4, %v3255_v21 }
 0x1a6   :  { %v3293_v26 = vadd.f32 %v3292_v23, %v3278_v22 }
 0x1a7   :  { %v3257_v27 = vadd.f32 %v4198_v58, %v3256_v24 }
 0x1a8   :  { %v3294_v18 = vadd.f32 %v3293_v26, %v3279_v25 }
 0x1a9   :  { %v3258_v30 = vadd.f32 %v4202_v40, %v3257_v27 }
 0x1aa   :  { %v3295_v32 = vadd.f32 %v3294_v18, %v3280_v28 }
 0x1ab   :  { %v3259_v33 = vrot.slane %v3258_v30, 4 }
 0x1ac   :  { %v3296_v34 = vadd.f32 %v3295_v32, %v3281_v31 }
 0x1ad   :  { %v3260_v36 = vadd.f32 %v3259_v33, %v3258_v30 }
 0x1ae   :  { %v3297_v35 = vrot.slane %v3296_v34, 4 }
 0x1af   :  { %v3261_v37 = vrot.slane %v3260_v36, 2 }
 0x1b0   :  { %v3298_v38 = vadd.f32 %v3297_v35, %v3296_v34 }
 0x1b1   :  { %v3262_v29 = vadd.f32 %v3261_v37, %v3260_v36 }
 0x1b2   :  { %v3299_v39 = vrot.slane %v3298_v38, 2 }
 0x1b3   :  { %v3263_v41 = vrot.slane %v3262_v29, 1 }
 0x1b4   :  { %v3300_v42 = vadd.f32 %v3299_v39, %v3298_v38 }
 0x1b5   :  { %v3264_v43 = vadd.f32 %v3263_v41, %v3262_v29 }
 0x1b6   :  { %v3301_v44 = vrot.slane %v3300_v42, 1 }
 0x1b7   :  { %3265 = vst [vmem:[%s5314_s6] sm:$0x1] %v3264_v43 }
 0x1b8   :  { %v3302_v45 = vadd.f32 %v3301_v44, %v3300_v42 }
 0x1ba   :  { %3303 = vst [vmem:[%s5315_s7] sm:$0x1] %v3302_v45 }

// kernel: block_group_forward.15
= control target key start
LH: loop header
LB: loop body
LE: loop exit
PB: predicated region body
PF: predicated region fallthrough
CT: control target
= control target key end

     0   :  { %vm292_vm0 = vsmask.f32 3328  ;;  %vm293_vm1 = vsmask.f32 7440  ;;  %vm825_vm3 = vcmask 1042432   ;;  %vm826_vm4 = vcmask 1046532   ;;  %s6044_s1 = inlined_call_operand.vmem [shape: bf16[9,128,128], index: 1, kind: input, shape index: {}]   ;;  %s6045_s0 = inlined_call_operand.vmem [shape: bf16[2,10,10,128], index: 0, kind: input, shape index: {}]   ;;  %s6046_s2 = inlined_call_operand.vmem [shape: bf16[1,1,128,128], index: 2, kind: output, shape index: {0}]   ;;  %s6047_s3 = inlined_call_operand.vmem [shape: f32[1,1,1,128], index: 3, kind: output, shape index: {1}]   ;;  %s6048_s4 = inlined_call_operand.vmem [shape: f32[1,1,1,128], index: 4, kind: output, shape index: {2}]  }
   0x1   :  { %v4731_v0 = vld [vmem:[%s6044_s1] sm:$0xff]   ;;  %v4733_v2 = vld [vmem:[%s6044_s1 + $0x8] sm:$0xff]   ;;  %v4735_v4 = vld [vmem:[%s6044_s1 + $0x10] sm:$0xff]  }
   0x2   :  { %v4732_v1 = vld [vmem:[%s6044_s1 + $0x100] sm:$0xff]   ;;  %4299 = vmatprep.subr.bf16.mxu1 %v4731_v0  ;;  %v4734_v3 = vld [vmem:[%s6044_s1 + $0x108] sm:$0xff]   ;;  %v4736_v5 = vld [vmem:[%s6044_s1 + $0x110] sm:$0xff]  }
   0x3   :  { %4427 = vmatprep.subr.bf16.mxu0 %v4732_v1  ;;  %4300 = vmatpush3.bf16.msra.mxu1 %v4731_v0  ;;  %v4737_v6 = vld [vmem:[%s6044_s1 + $0x18] sm:$0xff]   ;;  %v4739_v8 = vld [vmem:[%s6044_s1 + $0x20] sm:$0xff]   ;;  %v4741_v10 = vld [vmem:[%s6044_s1 + $0x28] sm:$0xff]  }
   0x4   :  { %4428 = vmatpush3.bf16.msra.mxu0 %v4732_v1  ;;  %4301 = vmatprep.subr.bf16.mxu1 %v4733_v2  ;;  %v4738_v7 = vld [vmem:[%s6044_s1 + $0x118] sm:$0xff]   ;;  %v4740_v9 = vld [vmem:[%s6044_s1 + $0x120] sm:$0xff]   ;;  %v4742_v12 = vld [vmem:[%s6044_s1 + $0x128] sm:$0xff]  }
   0x5   :  { %4429 = vmatprep.subr.bf16.mxu0 %v4734_v3  ;;  %v4747_v11 = vld [vmem:[%s6045_s0] ss:$8 sps:$4 sm:$0xff]   ;;  %v3741_v14 = vld [vmem:[%s6045_s0 + $0xc] sm:$0x1]  ;;  %v3742_v15 = vld [vmem:[%s6045_s0 + $0x10] sm:$0xf] }
   0x6   :  { %v3740_v13 = vld [vmem:[%s6045_s0 + $0x8] sm:$0xf]  ;;  %4315 = vmatprep.mubr.bf16.mxu1 %v4747_v11  ;;  %v3743_v16 = vld [vmem:[%s6045_s0 + $0x14] sm:$0x1]  ;;  %v1454_v19 = vshll.u32 %v3741_v14, 16  ;;  %v1459_v20 = vshrl.u32 %v3742_v15, 16  ;;  %vm4914_vm2 = vmor %vm292_vm0, %vm293_vm1 }
   0x7   :  { %4302 = vmatpush3.bf16.msra.mxu1 %v4733_v2  ;;  %v1445_v17 = vshrl.u32 %v3740_v13, 16  ;;  %v1448_v18 = vshll.u32 %v3740_v13, 16  ;;  %v1462_v21 = vshll.u32 %v3742_v15, 16  ;;  %v1468_v22 = vshll.u32 %v3743_v16, 16  ;;  %v4743_v23 = vld [vmem:[%s6044_s1 + $0x30] sm:$0xff]   ;;  %v4745_v29 = vld [vmem:[%s6044_s1 + $0x38] sm:$0xff]   ;;  %vm5138_vm5 = vmor %vm825_vm3, %vm826_vm4 }
   0x8   :  { %4430 = vmatpush3.bf16.msra.mxu0 %v4734_v3  ;;  %4303 = vmatprep.subr.bf16.mxu1 %v4735_v4  ;;  %v4744_v26 = vld [vmem:[%s6044_s1 + $0x130] sm:$0xff]   ;;  %v1461_v27 = vrot.slane %v1459_v20, 4  ;;  %v1456_v32 = vrot.slane %v1454_v19, 5  ;;  %v3744_v34 = vld [vmem:[%s6045_s0 + $0x18] sm:$0xf]  ;;  %v4749_v52 = vld [vmem:[%s6044_s1 + $0x40] sm:$0xff]  }
   0x9   :  { %4431 = vmatprep.subr.bf16.mxu0 %v4736_v5  ;;  %v1447_v24 = vrot.slane %v1445_v17, 4  ;;  %v1450_v25 = vrot.slane %v1448_v18, 5  ;;  %v1464_v28 = vrot.slane %v1462_v21, 5  ;;  %v1470_v33 = vrot.slane %v1468_v22, 5  ;;  %v4746_v35 = vld [vmem:[%s6044_s1 + $0x138] sm:$0xff]   ;;  %v4750_v60 = vld [vmem:[%s6044_s1 + $0x140] sm:$0xff]  }
   0xa   :  { %v3745_v37 = vld [vmem:[%s6045_s0 + $0x1c] sm:$0x1]  ;;  %v3746_v38 = vld [vmem:[%s6045_s0 + $0x20] sm:$0xf]  ;;  %v3747_v39 = vld [vmem:[%s6045_s0 + $0x24] sm:$0x1] }
   0xb   :  { %4304 = vmatpush3.bf16.msra.mxu1 %v4735_v4  ;;  %v1451_v31 = vor.u32 %v1450_v25, %v1447_v24  ;;  %v1465_v36 = vor.u32 %v1464_v28, %v1461_v27  ;;  %v1473_v41 = vshrl.u32 %v3744_v34, 16  ;;  %v1476_v42 = vshll.u32 %v3744_v34, 16  ;;  %v4748_v57 = vld [vmem:[%s6045_s0 + $0x10] ss:$8 sps:$4 sm:$0xff]   ;;  %v4753_v62 = vld [vmem:[%s6045_s0 + $0x20] ss:$8 sps:$4 sm:$0xff]  }
   0xc   :  { %4432 = vmatpush3.bf16.msra.mxu0 %v4736_v5  ;;  %4305 = vmatprep.subr.bf16.mxu1 %v4737_v6  ;;  %v1482_v43 = vshll.u32 %v3745_v37, 16  ;;  %v1487_v45 = vshrl.u32 %v3746_v38, 16  ;;  %v1490_v46 = vshll.u32 %v3746_v38, 16  ;;  %v1496_v47 = vshll.u32 %v3747_v39, 16  ;;  %v3748_v0 = vld [vmem:[%s6045_s0 + $0x28] sm:$0xf] }
   0xd   :  { %4433 = vmatprep.subr.bf16.mxu0 %v4738_v7  ;;  %v1452_v40 = vrot.slane %v1451_v31, 4  ;;  %v1466_v44 = vrot.slane %v1465_v36, 4  ;;  %v1475_v49 = vrot.slane %v1473_v41, 4  ;;  %v1478_v50 = vrot.slane %v1476_v42, 5  ;;  %v3749_v1 = vld [vmem:[%s6045_s0 + $0x2c] sm:$0x1] }
   0xe   :  { %v1484_v53 = vrot.slane %v1482_v43, 5  ;;  %v1489_v54 = vrot.slane %v1487_v45, 4  ;;  %v1492_v55 = vrot.slane %v1490_v46, 5  ;;  %v1498_v59 = vrot.slane %v1496_v47, 5  ;;  %v3750_v3 = vld [vmem:[%s6045_s0 + $0x30] sm:$0xf] }
   0xf   :  { %4306 = vmatpush3.bf16.msra.mxu1 %v4737_v6  ;;  %v1457_v48 = vsel %vm4914_vm2, %v1452_v40, %v1456_v32  ;;  %v1471_v51 = vsel %vm4914_vm2, %v1466_v44, %v1470_v33  ;;  %v1479_v58 = vor.u32 %v1478_v50, %v1475_v49  ;;  %v3751_v4 = vld [vmem:[%s6045_s0 + $0x34] sm:$0x1]  ;;  %v1501_v5 = vshrl.u32 %v3748_v0, 16  ;;  %v4752_v16 = vld [vmem:[%s6044_s1 + $0x148] sm:$0xff]   ;;  %v4754_v24 = vld [vmem:[%s6045_s0 + $0x30] ss:$8 sps:$4 sm:$0xff]  }
  0x10   :  { %4434 = vmatpush3.bf16.msra.mxu0 %v4738_v7  ;;  %4307 = vmatprep.subr.bf16.mxu1 %v4739_v8  ;;  %v3788_v56 = vcombine.low %v1457_v48, %v1471_v51  ;;  %v1493_v61 = vor.u32 %v1492_v55, %v1489_v54  ;;  %v4751_v7 = vld [vmem:[%s6044_s1 + $0x48] sm:$0xff]   ;;  %v1518_v13 = vshll.u32 %v3750_v3, 16  ;;  %v1524_v14 = vshll.u32 %v3751_v4, 16  ;;  %v4755_v20 = vld [vmem:[%s6044_s1 + $0x50] sm:$0xff]   ;;  %v3752_v25 = vld [vmem:[%s6045_s0 + $0x38] sm:$0xf] }
  0x11   :  { %4435 = vmatprep.subr.bf16.mxu0 %v4740_v9  ;;  %v1480_v63 = vrot.slane %v1479_v58, 4  ;;  %v3754_v27 = vld [vmem:[%s6045_s0 + $0x40] sm:$0xf]  ;;  %v1529_v31 = vshrl.u32 %v3752_v25, 16  ;;  %v1532_v32 = vshll.u32 %v3752_v25, 16  ;;  %v4756_v34 = vld [vmem:[%s6044_s1 + $0x150] sm:$0xff]  }
  0x12   :  { %4443 = vmatprep.mubr.bf16.mxu0 %v3788_v56  ;;  %v1494_v2 = vrot.slane %v1493_v61, 4  ;;  %v1520_v21 = vrot.slane %v1518_v13, 5  ;;  %v1526_v22 = vrot.slane %v1524_v14, 5  ;;  %v1543_v36 = vshrl.u32 %v3754_v27, 16  ;;  %v4757_v39 = vld [vmem:[%s6044_s1 + $0x58] sm:$0xff]   ;;  %v4767_v25 = vld [vmem:[%s6044_s1 + $0x70] sm:$0xff]  }
  0x13   :  { %4308 = vmatpush3.bf16.msra.mxu1 %v4739_v8  ;;  %v1485_v6 = vsel %vm4914_vm2, %v1480_v63, %v1484_v53  ;;  %v1504_v8 = vshll.u32 %v3748_v0, 16  ;;  %v1546_v37 = vshll.u32 %v3754_v27, 16  ;;  %v1531_v41 = vrot.slane %v1529_v31, 4  ;;  %v4758_v48 = vld [vmem:[%s6044_s1 + $0x158] sm:$0xff]   ;;  %v4002_v30 = vld [vmem:[%s6045_s0 + $0x28] sm:$0xe] }
  0x14   :  { %4436 = vmatpush3.bf16.msra.mxu0 %v4740_v9  ;;  %4309 = vmatprep.subr.bf16.mxu1 %v4741_v10  ;;  %v1510_v9 = vshll.u32 %v3749_v1, 16  ;;  %v1499_v11 = vsel %vm4914_vm2, %v1494_v2, %v1498_v59  ;;  %v1534_v42 = vrot.slane %v1532_v32, 5  ;;  %v1545_v45 = vrot.slane %v1543_v36, 4  ;;  %v4759_v53 = vld [vmem:[%s6045_s0 + $0x50] ss:$8 sps:$4 sm:$0xff]  }
  0x15   :  { %4437 = vmatprep.subr.bf16.mxu0 %v4742_v12  ;;  %v3789_v15 = vcombine.low %v1485_v6, %v1499_v11  ;;  %v1506_v17 = vrot.slane %v1504_v8, 5  ;;  %v1548_v46 = vrot.slane %v1546_v37, 5  ;;  %v3756_v55 = vld [vmem:[%s6045_s0 + $0x58] sm:$0xf]  ;;  %v3757_v56 = vld [vmem:[%s6045_s0 + $0x5c] sm:$0x1] }
  0x16   :  { %v1512_v18 = vrot.slane %v1510_v9, 5  ;;  %v1535_v50 = vor.u32 %v1534_v42, %v1531_v41  ;;  %v3758_v59 = vld [vmem:[%s6045_s0 + $0x60] sm:$0xf]  ;;  %v1557_v61 = vshrl.u32 %v3756_v55, 16  ;;  %v1560_v63 = vshll.u32 %v3756_v55, 16 }
  0x17   :  { %4310 = vmatpush3.bf16.msra.mxu1 %v4741_v10  ;;  %v1515_v10 = vshrl.u32 %v3750_v3, 16  ;;  %v1566_v0 = vshll.u32 %v3757_v56, 16  ;;  %v1571_v1 = vshrl.u32 %v3758_v59, 16  ;;  %v1574_v4 = vshll.u32 %v3758_v59, 16  ;;  %v4762_v6 = vld [vmem:[%s6044_s1 + $0x160] sm:$0xff]  }
  0x18   :  { %4438 = vmatpush3.bf16.msra.mxu0 %v4742_v12  ;;  %4311 = vmatprep.subr.bf16.mxu1 %v4743_v23  ;;  %v1503_v12 = vrot.slane %v1501_v5, 4  ;;  %v1536_v54 = vrot.slane %v1535_v50, 4  ;;  %v1559_v3 = vrot.slane %v1557_v61, 4  ;;  %v1562_v8 = vrot.slane %v1560_v63, 5  ;;  %v4760_v11 = vld [vmem:[%s6045_s0 + $0x60] ss:$8 sps:$4 sm:$0xff]  }
  0x19   :  { %4439 = vmatprep.subr.bf16.mxu0 %v4744_v26  ;;  %v1517_v19 = vrot.slane %v1515_v10, 4  ;;  %v1568_v9 = vrot.slane %v1566_v0, 5  ;;  %v1573_v10 = vrot.slane %v1571_v1, 4  ;;  %v1576_v13 = vrot.slane %v1574_v4, 5  ;;  %v3766_v50 = vld [vmem:[%s6045_s0 + $0x80] sm:$0xf] }
  0x1a   :  { %v1627_v56 = vshrl.u32 %v3766_v50, 16  ;;  %v1630_v59 = vshll.u32 %v3766_v50, 16  ;;  %v4770_v61 = vld [vmem:[%s6044_s1 + $0x178] sm:$0xff]   ;;  %v3805_v50 = vld [vmem:[%s6045_s0 + $0xc] sm:$0x1] }
  0x1b   :  { %4312 = vmatpush3.bf16.msra.mxu1 %v4743_v23  ;;  %v1507_v23 = vor.u32 %v1506_v17, %v1503_v12  ;;  %v1521_v28 = vor.u32 %v1520_v21, %v1517_v19  ;;  %v4763_v12 = vld [vmem:[%s6044_s1 + $0x68] sm:$0xff]   ;;  %v3763_v21 = vld [vmem:[%s6045_s0 + $0x74] sm:$0x1] }
  0x1c   :  { %4440 = vmatpush3.bf16.msra.mxu0 %v4744_v26  ;;  %4313 = vmatprep.subr.bf16.mxu1 %v4745_v29  ;;  %v3753_v26 = vld [vmem:[%s6045_s0 + $0x3c] sm:$0x1]  ;;  %v3761_v17 = vld [vmem:[%s6045_s0 + $0x6c] sm:$0x1]  ;;  %v1629_v1 = vrot.slane %v1627_v56, 4  ;;  %v1632_v4 = vrot.slane %v1630_v59, 5 }
  0x1d   :  { %4441 = vmatprep.subr.bf16.mxu0 %v4746_v35  ;;  %v1538_v33 = vshll.u32 %v3753_v26, 16  ;;  %v1522_v40 = vrot.slane %v1521_v28, 4  ;;  %v4764_v19 = vld [vmem:[%s6044_s1 + $0x168] sm:$0xff]   ;;  %v3806_v56 = vld [vmem:[%s6045_s0 + $0x10] sm:$0xe] }
  0x1e   :  { %v3807_v59 = vld [vmem:[%s6045_s0 + $0x14] sm:$0x1] }
  0x1f   :  { %4314 = vmatpush3.bf16.msra.mxu1 %v4745_v29  ;;  %v3755_v29 = vld [vmem:[%s6045_s0 + $0x44] sm:$0x1]  ;;  %v1540_v43 = vrot.slane %v1538_v33, 5  ;;  %v1527_v49 = vsel %vm4914_vm2, %v1522_v40, %v1526_v22 }
  0x20   :  { %4442 = vmatpush3.bf16.msra.mxu0 %v4746_v35  ;;  %4331 = vmatprep.subr.bf16.mxu1 %v4749_v52  ;;  %v1508_v35 = vrot.slane %v1507_v23, 4  ;;  %v1552_v38 = vshll.u32 %v3755_v29, 16  ;;  %v1608_v29 = vshll.u32 %v3763_v21, 16 }
  0x21   :  { %4459 = vmatprep.subr.bf16.mxu0 %v4750_v60 }
  0x22   :  { %4316 = vmatmul.mubr.bf16.vlgmr.msra.gmra.mrb[0].mxu1 %v4748_v57  ;;  %v1513_v44 = vsel %vm4914_vm2, %v1508_v35, %v1512_v18  ;;  %v1554_v47 = vrot.slane %v1552_v38, 5  ;;  %v4761_v57 = vld [vmem:[%s6044_s1 + $0x60] sm:$0xff]   ;;  %v3762_v18 = vld [vmem:[%s6045_s0 + $0x70] sm:$0xf]  ;;  %v1610_v38 = vrot.slane %v1608_v29, 5 }
  0x23   :  { %4332 = vmatpush3.bf16.msra.mxu1 %v4749_v52  ;;  %4319 = vmatprep.mubr.bf16.mxu1 %v4753_v62  ;;  %v3790_v51 = vcombine.low %v1513_v44, %v1527_v49  ;;  %v1549_v52 = vor.u32 %v1548_v46, %v1545_v45  ;;  %v1541_v62 = vsel %vm4914_vm2, %v1536_v54, %v1540_v43  ;;  %v1599_v27 = vshrl.u32 %v3762_v18, 16  ;;  %v4765_v44 = vld [vmem:[%s6045_s0 + $0x70] ss:$8 sps:$4 sm:$0xff]  }
  0x24   :  { %4444 = vmatmul.mubr.bf16.vlgmr.msra.gmra.mrb[0].mxu0 %v3789_v15  ;;  %4333 = vmatprep.subr.bf16.mxu1 %v4751_v7  ;;  %v1563_v15 = vor.u32 %v1562_v8, %v1559_v3  ;;  %v1602_v28 = vshll.u32 %v3762_v18, 16  ;;  %v3764_v46 = vld [vmem:[%s6045_s0 + $0x78] sm:$0xf]  ;;  %v5089_v3 = vld [vmem:[%s6044_s1 + $0x80] sm:$0xff]   ;;  %v3769_v8 = vld [vmem:[%s6045_s0 + $0x8c] sm:$0x1] }
  0x25   :  { %4460 = vmatpush3.bf16.msra.mxu0 %v4750_v60  ;;  %4447 = vmatprep.mubr.bf16.mxu0 %v3790_v51  ;;  %v1550_v58 = vrot.slane %v1549_v52, 4  ;;  %v3759_v60 = vld [vmem:[%s6045_s0 + $0x64] sm:$0x1]  ;;  %v1601_v36 = vrot.slane %v1599_v27, 4  ;;  %v1613_v52 = vshrl.u32 %v3764_v46, 16  ;;  %v1616_v54 = vshll.u32 %v3764_v46, 16 }
  0x26   :  { %4461 = vmatprep.subr.bf16.mxu0 %v4752_v16  ;;  %v1580_v5 = vshll.u32 %v3759_v60, 16  ;;  %v1564_v26 = vrot.slane %v1563_v15, 4  ;;  %v1604_v37 = vrot.slane %v1602_v28, 5  ;;  %v3767_v51 = vld [vmem:[%s6045_s0 + $0x84] sm:$0x1] }
  0x27   :  { %4334 = vmatpush3.bf16.msra.mxu1 %v4751_v7  ;;  %v1555_v2 = vsel %vm4914_vm2, %v1550_v58, %v1554_v47  ;;  %v3765_v47 = vld [vmem:[%s6045_s0 + $0x7c] sm:$0x1]  ;;  %v1615_v58 = vrot.slane %v1613_v52, 4  ;;  %v1636_v60 = vshll.u32 %v3767_v51, 16  ;;  %v1618_v63 = vrot.slane %v1616_v54, 5  ;;  %v5106_v15 = vld [vmem:[%s6044_s1 + $0x180] sm:$0xff]  }
  0x28   :  { %4335 = vmatprep.subr.bf16.mxu1 %v4755_v20  ;;  %v3791_v7 = vcombine.low %v1541_v62, %v1555_v2  ;;  %v1582_v14 = vrot.slane %v1580_v5, 5  ;;  %v1569_v35 = vsel %vm4914_vm2, %v1564_v26, %v1568_v9  ;;  %v1605_v43 = vor.u32 %v1604_v37, %v1601_v36  ;;  %v4766_v2 = vld [vmem:[%s6045_s0 + $0x80] ss:$8 sps:$4 sm:$0xff]   ;;  %v3770_v9 = vld [vmem:[%s6045_s0 + $0x90] sm:$0xf] }
  0x29   :  { %4462 = vmatpush3.bf16.msra.mxu0 %v4752_v16  ;;  %v3760_v16 = vld [vmem:[%s6045_s0 + $0x68] sm:$0xf]  ;;  %v1622_v55 = vshll.u32 %v3765_v47, 16  ;;  %v1638_v5 = vrot.slane %v1636_v60, 5  ;;  %v1658_v18 = vshll.u32 %v3770_v9, 16 }
  0x2a   :  { %4320 = vmatmul.mubr.bf16.gmra.mrb[4].mxu1 %v4754_v24  ;;  %4463 = vmatprep.subr.bf16.mxu0 %v4756_v34  ;;  %v1585_v22 = vshrl.u32 %v3760_v16, 16  ;;  %v1588_v23 = vshll.u32 %v3760_v16, 16  ;;  %v1594_v24 = vshll.u32 %v3761_v17, 16  ;;  %v1606_v49 = vrot.slane %v1605_v43, 4  ;;  %v263_v37 = vld [vmem:[%s6045_s0 + $0xc] sm:$0x1] }
  0x2b   :  { %4336 = vmatpush3.bf16.msra.mxu1 %v4755_v20  ;;  %4323 = vmatprep.mubr.bf16.mxu1 %v4759_v53  ;;  %v1577_v20 = vor.u32 %v1576_v13, %v1573_v10  ;;  %v1624_v0 = vrot.slane %v1622_v55, 5  ;;  %v1633_v10 = vor.u32 %v1632_v4, %v1629_v1  ;;  %v1655_v17 = vshrl.u32 %v3770_v9, 16  ;;  %v266_v4 = vld [vmem:[%s6045_s0 + $0x18] sm:$0xf] }
  0x2c   :  { %4337 = vmatprep.subr.bf16.mxu1 %v4757_v39  ;;  %4448 = vmatmul.mubr.bf16.gmra.mrb[4].mxu0 %v3791_v7  ;;  %v1587_v32 = vrot.slane %v1585_v22, 4  ;;  %v1590_v33 = vrot.slane %v1588_v23, 5  ;;  %v3768_v7 = vld [vmem:[%s6045_s0 + $0x88] sm:$0xf]  ;;  %v1660_v26 = vrot.slane %v1658_v18, 5  ;;  %v1980_v1 = vrot.slane %v3807_v59, 5 }
  0x2d   :  { %4464 = vmatpush3.bf16.msra.mxu0 %v4756_v34  ;;  %v1578_v31 = vrot.slane %v1577_v20, 4  ;;  %v1596_v34 = vrot.slane %v1594_v24, 5  ;;  %v1644_v13 = vshll.u32 %v3768_v7, 16  ;;  %v1634_v20 = vrot.slane %v1633_v10, 4 }
  0x2e   :  { %4465 = vmatprep.subr.bf16.mxu0 %v4758_v48  ;;  %v1591_v41 = vor.u32 %v1590_v33, %v1587_v32  ;;  %v260_v33 = vld [vmem:[%s6045_s0] sm:$0xf] }
  0x2f   :  { %4338 = vmatpush3.bf16.msra.mxu1 %v4757_v39  ;;  %v4768_v39 = vld [vmem:[%s6044_s1 + $0x170] sm:$0xff]   ;;  %v1583_v40 = vsel %vm4914_vm2, %v1578_v31, %v1582_v14  ;;  %v1650_v14 = vshll.u32 %v3769_v8, 16  ;;  %v1646_v22 = vrot.slane %v1644_v13, 5  ;;  %v1639_v28 = vsel %vm4914_vm2, %v1634_v20, %v1638_v5 }
  0x30   :  { %4339 = vmatprep.subr.bf16.mxu1 %v4761_v57  ;;  %v3792_v42 = vcombine.low %v1569_v35, %v1583_v40  ;;  %v1592_v45 = vrot.slane %v1591_v41, 4  ;;  %v262_v35 = vld [vmem:[%s6045_s0 + $0x8] sm:$0xf]  ;;  %v338_v13 = vshrl.u32 %v266_v4, 16 }
  0x31   :  { %4466 = vmatpush3.bf16.msra.mxu0 %v4758_v48  ;;  %v4769_v48 = vld [vmem:[%s6044_s1 + $0x78] sm:$0xff]   ;;  %v1652_v23 = vrot.slane %v1650_v14, 5  ;;  %v313_v43 = vshll.u32 %v262_v35, 16 }
  0x32   :  { %4324 = vmatmul.mubr.bf16.gmra.mrb[8].mxu1 %v4760_v11  ;;  %4467 = vmatprep.subr.bf16.mxu0 %v4762_v6  ;;  %v1597_v53 = vsel %vm4914_vm2, %v1592_v45, %v1596_v34  ;;  %v3771_v11 = vld [vmem:[%s6045_s0 + $0x94] sm:$0x1]  ;;  %v261_v34 = vld [vmem:[%s6045_s0 + $0x4] sm:$0x1]  ;;  %v3804_v45 = vld [vmem:[%s6045_s0 + $0x8] sm:$0xe] }
  0x33   :  { %4340 = vmatpush3.bf16.msra.mxu1 %v4761_v57  ;;  %4451 = vmatprep.mubr.bf16.mxu0 %v3792_v42  ;;  %v1611_v57 = vsel %vm4914_vm2, %v1606_v49, %v1610_v38  ;;  %v296_v38 = vshrl.u32 %v260_v33, 16  ;;  %v305_v40 = vshll.u32 %v261_v34, 16  ;;  %v310_v42 = vshrl.u32 %v262_v35, 16 }
  0x34   :  { %4341 = vmatprep.subr.bf16.mxu1 %v4763_v12  ;;  %4327 = vmatprep.mubr.bf16.mxu1 %v4765_v44  ;;  %v3793_v62 = vcombine.low %v1597_v53, %v1611_v57  ;;  %v319_v44 = vshll.u32 %v263_v37, 16  ;;  %v315_v53 = vrot.slane %v313_v43, 5  ;;  %v3836_v60 = vrot.slane %v3804_v45, 9  ;;  %v269_v45 = vld [vmem:[%s6045_s0 + $0x24] sm:$0x1] }
  0x35   :  { %4468 = vmatpush3.bf16.msra.mxu0 %v4762_v6  ;;  %v1619_v6 = vor.u32 %v1618_v63, %v1615_v58  ;;  %v298_v47 = vrot.slane %v296_v38, 4  ;;  %v307_v49 = vrot.slane %v305_v40, 5  ;;  %v312_v52 = vrot.slane %v310_v42, 4  ;;  %v4774_v38 = vld [vmem:[%s6044_s1 + $0x188] sm:$0xff]  }
  0x36   :  { %4469 = vmatprep.subr.bf16.mxu0 %v4764_v19  ;;  %4452 = vmatmul.mubr.bf16.gmra.mrb[8].mxu0 %v3793_v62  ;;  %v321_v54 = vrot.slane %v319_v44, 5  ;;  %v264_v62 = vld [vmem:[%s6045_s0 + $0x10] sm:$0xf]  ;;  %v268_v44 = vld [vmem:[%s6045_s0 + $0x20] sm:$0xf] }
  0x37   :  { %4342 = vmatpush3.bf16.msra.mxu1 %v4763_v12  ;;  %v1641_v12 = vshrl.u32 %v3768_v7, 16  ;;  %v1620_v16 = vrot.slane %v1619_v6, 4  ;;  %v316_v63 = vor.u32 %v315_v53, %v312_v52  ;;  %v267_v7 = vld [vmem:[%s6045_s0 + $0x1c] sm:$0x1]  ;;  %v324_v8 = vshrl.u32 %v264_v62, 16 }
  0x38   :  { %4343 = vmatprep.subr.bf16.mxu1 %v4767_v25  ;;  %v327_v9 = vshll.u32 %v264_v62, 16 }
  0x39   :  { %4470 = vmatpush3.bf16.msra.mxu0 %v4764_v19  ;;  %v1664_v19 = vshll.u32 %v3771_v11, 16  ;;  %v1643_v21 = vrot.slane %v1641_v12, 4  ;;  %v1625_v24 = vsel %vm4914_vm2, %v1620_v16, %v1624_v0  ;;  %v3837_v0 = vrot.slane %v3806_v56, 9  ;;  %v3812_v56 = vld [vmem:[%s6045_s0 + $0x28] sm:$0xe] }
  0x3a   :  { %4471 = vmatprep.subr.bf16.mxu0 %v4768_v39  ;;  %4328 = vmatmul.mubr.bf16.gmra.mrb[12].mxu1 %v4766_v2  ;;  %v3794_v31 = vcombine.low %v1625_v24, %v1639_v28  ;;  %v265_v2 = vld [vmem:[%s6045_s0 + $0x14] sm:$0x1]  ;;  %v317_v10 = vrot.slane %v316_v63, 4  ;;  %v329_v18 = vrot.slane %v327_v9, 5  ;;  %v3809_v24 = vld [vmem:[%s6045_s0 + $0x1c] sm:$0x1] }
  0x3b   :  { %4344 = vmatpush3.bf16.msra.mxu1 %v4767_v25  ;;  %v1657_v25 = vrot.slane %v1655_v17, 4  ;;  %v1666_v27 = vrot.slane %v1664_v19, 5  ;;  %v1647_v29 = vor.u32 %v1646_v22, %v1643_v21  ;;  %v1981_v11 = vsel %vm5138_vm5, %v3837_v0, %v1980_v1  ;;  %v3808_v19 = vld [vmem:[%s6045_s0 + $0x18] sm:$0xe]  ;;  %v3810_v28 = vld [vmem:[%s6045_s0 + $0x20] sm:$0xe] }
  0x3c   :  { %4345 = vmatprep.subr.bf16.mxu1 %v4769_v48  ;;  %4455 = vmatprep.mubr.bf16.mxu0 %v3794_v31  ;;  %v333_v12 = vshll.u32 %v265_v2, 16  ;;  %v326_v17 = vrot.slane %v324_v8, 4  ;;  %v322_v20 = vsel %vm4914_vm2, %v317_v10, %v321_v54  ;;  %v340_v22 = vrot.slane %v338_v13, 4  ;;  %v3814_v2 = vld [vmem:[%s6045_s0 + $0x30] sm:$0xe] }
  0x3d   :  { %4472 = vmatpush3.bf16.msra.mxu0 %v4768_v39  ;;  %v1661_v32 = vor.u32 %v1660_v26, %v1657_v25  ;;  %v1648_v36 = vrot.slane %v1647_v29, 4  ;;  %v299_v39 = vshll.u32 %v260_v33, 16  ;;  %v3811_v29 = vld [vmem:[%s6045_s0 + $0x24] sm:$0x1]  ;;  %v3838_v31 = vrot.slane %v3808_v19, 9 }
  0x3e   :  { %4473 = vmatprep.subr.bf16.mxu0 %v4770_v61  ;;  %v335_v21 = vrot.slane %v333_v12, 5  ;;  %v330_v26 = vor.u32 %v329_v18, %v326_v17  ;;  %v1984_v33 = vrot.slane %v3809_v24, 5  ;;  %v3839_v34 = vrot.slane %v3810_v28, 9  ;;  %v272_v12 = vld [vmem:[%s6045_s0 + $0x30] sm:$0xf]  ;;  %v4778_v24 = vld [vmem:[%s6044_s1 + $0x198] sm:$0xff]  }
  0x3f   :  { %4346 = vmatpush3.bf16.msra.mxu1 %v4769_v48  ;;  %v1662_v41 = vrot.slane %v1661_v32, 4  ;;  %v1653_v46 = vsel %vm4914_vm2, %v1648_v36, %v1652_v23  ;;  %v301_v48 = vrot.slane %v299_v39, 5  ;;  %v341_v23 = vshll.u32 %v266_v4, 16  ;;  %v273_v13 = vld [vmem:[%s6045_s0 + $0x34] sm:$0x1] }
  0x40   :  { %4363 = vmatprep.subr.bf16.mxu1 %v5089_v3  ;;  %v1988_v35 = vrot.slane %v3811_v29, 5  ;;  %v331_v36 = vrot.slane %v330_v26, 4  ;;  %v1985_v40 = vsel %vm5138_vm5, %v3838_v31, %v1984_v33  ;;  %v3841_v8 = vrot.slane %v3814_v2, 9  ;;  %v274_v18 = vld [vmem:[%s6045_s0 + $0x38] sm:$0xf] }
  0x41   :  { %4474 = vmatpush3.bf16.msra.mxu0 %v4770_v61  ;;  %v1667_v51 = vsel %vm4914_vm2, %v1662_v41, %v1666_v27  ;;  %v302_v58 = vor.u32 %v301_v48, %v298_v47  ;;  %v1976_v61 = vrot.slane %v3805_v50, 5  ;;  %v347_v27 = vshll.u32 %v267_v7, 16  ;;  %v271_v48 = vld [vmem:[%s6045_s0 + $0x2c] sm:$0x1]  ;;  %v275_v19 = vld [vmem:[%s6045_s0 + $0x3c] sm:$0x1] }
  0x42   :  { %4491 = vmatprep.subr.bf16.mxu0 %v5106_v15  ;;  %v3795_v57 = vcombine.low %v1653_v46, %v1667_v51  ;;  %v343_v32 = vrot.slane %v341_v23, 5  ;;  %v1989_v41 = vsel %vm5138_vm5, %v3839_v34, %v1988_v35  ;;  %v336_v42 = vsel %vm4914_vm2, %v331_v36, %v335_v21  ;;  %v270_v46 = vld [vmem:[%s6045_s0 + $0x28] sm:$0xf]  ;;  %v3816_v29 = vld [vmem:[%s6045_s0 + $0x38] sm:$0xe] }
  0x43   :  { %v303_v5 = vrot.slane %v302_v58, 4  ;;  %v1977_v6 = vsel %vm5138_vm5, %v3836_v60, %v1976_v61  ;;  %v349_v37 = vrot.slane %v347_v27, 5  ;;  %v3869_v43 = vcombine.low %v1985_v40, %v1989_v41  ;;  %v4773_v58 = vld [vmem:[%s6044_s1 + $0x88] sm:$0xff]   ;;  %v3817_v35 = vld [vmem:[%s6045_s0 + $0x3c] sm:$0x1] }
  0x44   :  { %4456 = vmatmul.mubr.bf16.gmra.mrb[12].mxu0 %v3795_v57  ;;  %v3868_v16 = vcombine.low %v1977_v6, %v1981_v11  ;;  %v344_v39 = vor.u32 %v343_v32, %v340_v22  ;;  %v355_v50 = vshll.u32 %v268_v44, 16  ;;  %v361_v51 = vshll.u32 %v269_v45, 16  ;;  %v3813_v61 = vld [vmem:[%s6045_s0 + $0x2c] sm:$0x1]  ;;  %v3819_v40 = vld [vmem:[%s6045_s0 + $0x44] sm:$0x1] }
  0x45   :  { %v308_v14 = vsel %vm4914_vm2, %v303_v5, %v307_v49  ;;  %v352_v49 = vshrl.u32 %v268_v44, 16  ;;  %v366_v52 = vshrl.u32 %v270_v46, 16  ;;  %v369_v53 = vshll.u32 %v270_v46, 16  ;;  %v3815_v5 = vld [vmem:[%s6045_s0 + $0x34] sm:$0x1]  ;;  %v4777_v45 = vld [vmem:[%s6044_s1 + $0x98] sm:$0xff]  }
  0x46   :  { %v3628_v25 = vcombine.low %v308_v14, %v322_v20  ;;  %4475 = vmatprep.mubr.bf16.mxu0 %v3868_v16  ;;  %v345_v47 = vrot.slane %v344_v39, 4  ;;  %v375_v54 = vshll.u32 %v271_v48, 16  ;;  %v357_v60 = vrot.slane %v355_v50, 5  ;;  %v4775_v14 = vld [vmem:[%s6044_s1 + $0x90] sm:$0xff]   ;;  %v3818_v39 = vld [vmem:[%s6045_s0 + $0x40] sm:$0xe] }
  0x47   :  { %v354_v59 = vrot.slane %v352_v49, 4  ;;  %v363_v63 = vrot.slane %v361_v51, 5  ;;  %v368_v0 = vrot.slane %v366_v52, 4  ;;  %v371_v1 = vrot.slane %v369_v53, 5  ;;  %v4780_v48 = vld [vmem:[%s6044_s1 + $0x1a0] sm:$0xff]  }
  0x48   :  { %4347 = vmatprep.mubr.bf16.mxu1 %v3628_v25  ;;  %v350_v57 = vsel %vm4914_vm2, %v345_v47, %v349_v37  ;;  %v3840_v6 = vrot.slane %v3812_v56, 9  ;;  %v1992_v7 = vrot.slane %v3813_v61, 5  ;;  %v377_v10 = vrot.slane %v375_v54, 5  ;;  %v4779_v53 = vld [vmem:[%s6044_s1 + $0xa0] sm:$0xff]   ;;  %v276_v56 = vld [vmem:[%s6045_s0 + $0x50] sm:$0xf] }
  0x49   :  { %v3629_v62 = vcombine.low %v336_v42, %v350_v57  ;;  %v358_v4 = vor.u32 %v357_v60, %v354_v59  ;;  %v372_v9 = vor.u32 %v371_v1, %v368_v0  ;;  %v1996_v11 = vrot.slane %v3815_v5, 5  ;;  %v4782_v57 = vld [vmem:[%s6044_s1 + $0x1a8] sm:$0xff]   ;;  %v277_v61 = vld [vmem:[%s6045_s0 + $0x54] sm:$0x1]  ;;  %v279_v0 = vld [vmem:[%s6045_s0 + $0x5c] sm:$0x1] }
  0x4a   :  { %v1993_v17 = vsel %vm5138_vm5, %v3840_v6, %v1992_v7  ;;  %v380_v20 = vshrl.u32 %v272_v12, 16  ;;  %v389_v23 = vshll.u32 %v273_v13, 16  ;;  %v394_v28 = vshrl.u32 %v274_v18, 16 }
  0x4b   :  { %4348 = vmatmul.mubr.bf16.vlgmr.msra.gmra.mrb[0].mxu1 %v3629_v62  ;;  %v359_v16 = vrot.slane %v358_v4, 4  ;;  %v373_v21 = vrot.slane %v372_v9, 4  ;;  %v1997_v22 = vsel %vm5138_vm5, %v3841_v8, %v1996_v11  ;;  %v397_v34 = vshll.u32 %v274_v18, 16  ;;  %v278_v62 = vld [vmem:[%s6045_s0 + $0x58] sm:$0xf] }
  0x4c   :  { %4476 = vmatmul.mubr.bf16.vlgmr.msra.gmra.mrb[0].mxu0 %v3869_v43  ;;  %4364 = vmatpush3.bf16.msra.mxu1 %v5089_v3  ;;  %v383_v3 = vshll.u32 %v272_v12, 16  ;;  %v3870_v26 = vcombine.low %v1993_v17, %v1997_v22  ;;  %v382_v27 = vrot.slane %v380_v20, 4  ;;  %v391_v33 = vrot.slane %v389_v23, 5  ;;  %v3820_v8 = vld [vmem:[%s6045_s0 + $0x58] sm:$0xe]  ;;  %v4784_v17 = vld [vmem:[%s6044_s1 + $0x1b0] sm:$0xff]  }
  0x4d   :  { %4492 = vmatpush3.bf16.msra.mxu0 %v5106_v15  ;;  %v4776_v15 = vld [vmem:[%s6044_s1 + $0x190] sm:$0xff]   ;;  %4365 = vmatprep.subr.bf16.mxu1 %v4773_v58  ;;  %v364_v25 = vsel %vm4914_vm2, %v359_v16, %v363_v63  ;;  %v378_v31 = vsel %vm4914_vm2, %v373_v21, %v377_v10  ;;  %v396_v37 = vrot.slane %v394_v28, 4  ;;  %v399_v42 = vrot.slane %v397_v34, 5  ;;  %v3821_v9 = vld [vmem:[%s6045_s0 + $0x5c] sm:$0x1]  ;;  %v4781_v10 = vld [vmem:[%s6044_s1 + $0xa8] sm:$0xff]  }
  0x4e   :  { %4493 = vmatprep.subr.bf16.mxu0 %v4774_v38  ;;  %v385_v32 = vrot.slane %v383_v3, 5  ;;  %v3630_v36 = vcombine.low %v364_v25, %v378_v31  ;;  %4479 = vmatprep.mubr.bf16.mxu0 %v3870_v26  ;;  %v3842_v43 = vrot.slane %v3816_v29, 9  ;;  %v2000_v44 = vrot.slane %v3817_v35, 5  ;;  %v3822_v16 = vld [vmem:[%s6045_s0 + $0x60] sm:$0xe] }
  0x4f   :  { %v3843_v46 = vrot.slane %v3818_v39, 9  ;;  %v2004_v47 = vrot.slane %v3819_v40, 5  ;;  %v400_v50 = vor.u32 %v399_v42, %v396_v37  ;;  %v408_v63 = vshrl.u32 %v276_v56, 16  ;;  %v3823_v20 = vld [vmem:[%s6045_s0 + $0x64] sm:$0x1]  ;;  %v4783_v42 = vld [vmem:[%s6044_s1 + $0xb0] sm:$0xff]  }
  0x50   :  { %4366 = vmatpush3.bf16.msra.mxu1 %v4773_v58  ;;  %v386_v41 = vor.u32 %v385_v32, %v382_v27  ;;  %4351 = vmatprep.mubr.bf16.mxu1 %v3630_v36  ;;  %v2001_v52 = vsel %vm5138_vm5, %v3842_v43, %v2000_v44  ;;  %v411_v1 = vshll.u32 %v276_v56, 16  ;;  %v417_v2 = vshll.u32 %v277_v61, 16  ;;  %v280_v25 = vld [vmem:[%s6045_s0 + $0x60] sm:$0xf]  ;;  %v281_v26 = vld [vmem:[%s6045_s0 + $0x64] sm:$0x1] }
  0x51   :  { %4494 = vmatpush3.bf16.msra.mxu0 %v4774_v38  ;;  %v403_v38 = vshll.u32 %v275_v19, 16  ;;  %4367 = vmatprep.subr.bf16.mxu1 %v4775_v14  ;;  %v2005_v54 = vsel %vm5138_vm5, %v3843_v46, %v2004_v47  ;;  %v401_v59 = vrot.slane %v400_v50, 4  ;;  %v425_v4 = vshll.u32 %v278_v62, 16  ;;  %v282_v29 = vld [vmem:[%s6045_s0 + $0x68] sm:$0xf]  ;;  %v4785_v61 = vld [vmem:[%s6044_s1 + $0xb8] sm:$0xff]  }
  0x52   :  { %4495 = vmatprep.subr.bf16.mxu0 %v4776_v15  ;;  %v387_v49 = vrot.slane %v386_v41, 4  ;;  %v3871_v60 = vcombine.low %v2001_v52, %v2005_v54  ;;  %v410_v6 = vrot.slane %v408_v63, 4  ;;  %v431_v7 = vshll.u32 %v279_v0, 16  ;;  %v283_v31 = vld [vmem:[%s6045_s0 + $0x6c] sm:$0x1] }
  0x53   :  { %v405_v51 = vrot.slane %v403_v38, 5  ;;  %v413_v12 = vrot.slane %v411_v1, 5  ;;  %v419_v13 = vrot.slane %v417_v2, 5  ;;  %v427_v18 = vrot.slane %v425_v4, 5  ;;  %v3824_v47 = vld [vmem:[%s6045_s0 + $0x68] sm:$0xe] }
  0x54   :  { %4368 = vmatpush3.bf16.msra.mxu1 %v4775_v14  ;;  %v392_v58 = vsel %vm4914_vm2, %v387_v49, %v391_v33  ;;  %4480 = vmatmul.mubr.bf16.gmra.mrb[4].mxu0 %v3871_v60  ;;  %v433_v19 = vrot.slane %v431_v7, 5  ;;  %v3844_v21 = vrot.slane %v3820_v8, 9  ;;  %v2008_v22 = vrot.slane %v3821_v9, 5  ;;  %v3825_v52 = vld [vmem:[%s6045_s0 + $0x6c] sm:$0x1]  ;;  %v5355_v1 = vld [vmem:[%s6044_s1 + $0x1c0] sm:$0xff]  }
  0x55   :  { %4496 = vmatpush3.bf16.msra.mxu0 %v4776_v15  ;;  %4369 = vmatprep.subr.bf16.mxu1 %v4777_v45  ;;  %v422_v15 = vshrl.u32 %v278_v62, 16  ;;  %v406_v5 = vsel %vm4914_vm2, %v401_v59, %v405_v51  ;;  %v414_v3 = vor.u32 %v413_v12, %v410_v6  ;;  %v3845_v23 = vrot.slane %v3822_v16, 9  ;;  %v5367_v6 = vld [vmem:[%s6044_s1 + $0xc0] sm:$0xff]  }
  0x56   :  { %4497 = vmatprep.subr.bf16.mxu0 %v4778_v24  ;;  %v3631_v11 = vcombine.low %v392_v58, %v406_v5  ;;  %v2009_v28 = vsel %vm5138_vm5, %v3844_v21, %v2008_v22  ;;  %v436_v32 = vshrl.u32 %v280_v25, 16  ;;  %v439_v33 = vshll.u32 %v280_v25, 16  ;;  %v3827_v58 = vld [vmem:[%s6045_s0 + $0x74] sm:$0x1]  ;;  %v284_v5 = vld [vmem:[%s6045_s0 + $0x70] sm:$0xf] }
  0x57   :  { %v424_v14 = vrot.slane %v422_v15, 4  ;;  %v415_v34 = vrot.slane %v414_v3, 4  ;;  %v445_v36 = vshll.u32 %v281_v26, 16  ;;  %v450_v37 = vshrl.u32 %v282_v29, 16  ;;  %v3828_v22 = vld [vmem:[%s6045_s0 + $0x78] sm:$0xe] }
  0x58   :  { %4370 = vmatpush3.bf16.msra.mxu1 %v4777_v45  ;;  %v438_v40 = vrot.slane %v436_v32, 4  ;;  %v441_v41 = vrot.slane %v439_v33, 5  ;;  %v453_v46 = vshll.u32 %v282_v29, 16  ;;  %v459_v51 = vshll.u32 %v283_v31, 16  ;;  %v3829_v3 = vld [vmem:[%s6045_s0 + $0x7c] sm:$0x1] }
  0x59   :  { %4498 = vmatpush3.bf16.msra.mxu0 %v4778_v24  ;;  %4371 = vmatprep.subr.bf16.mxu1 %v4779_v53  ;;  %v2012_v24 = vrot.slane %v3823_v20, 5  ;;  %v428_v27 = vor.u32 %v427_v18, %v424_v14  ;;  %v420_v43 = vsel %vm4914_vm2, %v415_v34, %v419_v13  ;;  %v447_v44 = vrot.slane %v445_v36, 5  ;;  %v287_v13 = vld [vmem:[%s6045_s0 + $0x7c] sm:$0x1]  ;;  %v3831_v31 = vld [vmem:[%s6045_s0 + $0x84] sm:$0x1] }
  0x5a   :  { %4499 = vmatprep.subr.bf16.mxu0 %v4780_v48  ;;  %4352 = vmatmul.mubr.bf16.gmra.mrb[4].mxu1 %v3631_v11  ;;  %v452_v45 = vrot.slane %v450_v37, 4  ;;  %v442_v50 = vor.u32 %v441_v41, %v438_v40  ;;  %v3846_v54 = vrot.slane %v3824_v47, 9  ;;  %v2016_v59 = vrot.slane %v3825_v52, 5  ;;  %v286_v11 = vld [vmem:[%s6045_s0 + $0x78] sm:$0xf] }
  0x5b   :  { %v2013_v35 = vsel %vm5138_vm5, %v3845_v23, %v2012_v24  ;;  %v429_v38 = vrot.slane %v428_v27, 4  ;;  %v461_v63 = vrot.slane %v459_v51, 5  ;;  %v2020_v0 = vrot.slane %v3827_v58, 5  ;;  %v3830_v27 = vld [vmem:[%s6045_s0 + $0x80] sm:$0xe] }
  0x5c   :  { %4372 = vmatpush3.bf16.msra.mxu1 %v4779_v53  ;;  %v3872_v39 = vcombine.low %v2009_v28, %v2013_v35  ;;  %v3826_v53 = vld [vmem:[%s6045_s0 + $0x70] sm:$0xe]  ;;  %v443_v62 = vrot.slane %v442_v50, 4  ;;  %v2017_v15 = vsel %vm5138_vm5, %v3846_v54, %v2016_v59  ;;  %v464_v12 = vshrl.u32 %v284_v5, 16  ;;  %v288_v37 = vld [vmem:[%s6045_s0 + $0x80] sm:$0xf] }
  0x5d   :  { %4500 = vmatpush3.bf16.msra.mxu0 %v4780_v48  ;;  %4373 = vmatprep.subr.bf16.mxu1 %v4781_v10  ;;  %v4786_v48 = vld [vmem:[%s6044_s1 + $0x1b8] sm:$0xff]   ;;  %v434_v49 = vsel %vm4914_vm2, %v429_v38, %v433_v19  ;;  %v3847_v60 = vrot.slane %v3826_v53, 9  ;;  %v467_v14 = vshll.u32 %v284_v5, 16  ;;  %v481_v18 = vshll.u32 %v286_v11, 16  ;;  %v289_v38 = vld [vmem:[%s6045_s0 + $0x84] sm:$0x1] }
  0x5e   :  { %4501 = vmatprep.subr.bf16.mxu0 %v4782_v57  ;;  %4483 = vmatprep.mubr.bf16.mxu0 %v3872_v39  ;;  %v3632_v56 = vcombine.low %v420_v43, %v434_v49  ;;  %v448_v7 = vsel %vm4914_vm2, %v443_v62, %v447_v44  ;;  %v466_v20 = vrot.slane %v464_v12, 4  ;;  %v487_v21 = vshll.u32 %v287_v13, 16  ;;  %v290_v41 = vld [vmem:[%s6045_s0 + $0x88] sm:$0xf]  ;;  %v3833_v62 = vld [vmem:[%s6045_s0 + $0x8c] sm:$0x1] }
  0x5f   :  { %v2021_v4 = vsel %vm5138_vm5, %v3847_v60, %v2020_v0  ;;  %v469_v24 = vrot.slane %v467_v14, 5  ;;  %v483_v28 = vrot.slane %v481_v18, 5  ;;  %v3848_v32 = vrot.slane %v3828_v22, 9  ;;  %v3832_v58 = vld [vmem:[%s6045_s0 + $0x88] sm:$0xe] }
  0x60   :  { %4374 = vmatpush3.bf16.msra.mxu1 %v4781_v10  ;;  %4355 = vmatprep.mubr.bf16.mxu1 %v3632_v56  ;;  %v3873_v9 = vcombine.low %v2017_v15, %v2021_v4  ;;  %v285_v10 = vld [vmem:[%s6045_s0 + $0x74] sm:$0x1]  ;;  %v489_v29 = vrot.slane %v487_v21, 5  ;;  %v2024_v33 = vrot.slane %v3829_v3, 5  ;;  %v3849_v35 = vrot.slane %v3830_v27, 9 }
  0x61   :  { %4502 = vmatpush3.bf16.msra.mxu0 %v4782_v57  ;;  %v455_v57 = vrot.slane %v453_v46, 5  ;;  %4375 = vmatprep.subr.bf16.mxu1 %v4783_v42  ;;  %v473_v16 = vshll.u32 %v285_v10, 16  ;;  %v470_v34 = vor.u32 %v469_v24, %v466_v20  ;;  %v2028_v36 = vrot.slane %v3831_v31, 5  ;;  %v3835_v4 = vld [vmem:[%s6045_s0 + $0x94] sm:$0x1] }
  0x62   :  { %4503 = vmatprep.subr.bf16.mxu0 %v4784_v17  ;;  %4484 = vmatmul.mubr.bf16.gmra.mrb[8].mxu0 %v3873_v9  ;;  %v2025_v40 = vsel %vm5138_vm5, %v3848_v32, %v2024_v33  ;;  %v492_v43 = vshrl.u32 %v288_v37, 16  ;;  %v495_v44 = vshll.u32 %v288_v37, 16  ;;  %v501_v47 = vshll.u32 %v289_v38, 16  ;;  %v761_v14 = vld [vmem:[%s6045_s0] sm:$0xe] }
  0x63   :  { %v456_v2 = vor.u32 %v455_v57, %v452_v45  ;;  %v475_v25 = vrot.slane %v473_v16, 5  ;;  %v471_v45 = vrot.slane %v470_v34, 4  ;;  %v2029_v46 = vsel %vm5138_vm5, %v3849_v35, %v2028_v36  ;;  %v763_v20 = vld [vmem:[%s6045_s0 + $0x8] sm:$0xe]  ;;  %v764_v22 = vld [vmem:[%s6045_s0 + $0xc] sm:$0x1] }
  0x64   :  { %4376 = vmatpush3.bf16.msra.mxu1 %v4783_v42  ;;  %v291_v42 = vld [vmem:[%s6045_s0 + $0x8c] sm:$0x1]  ;;  %v3874_v50 = vcombine.low %v2025_v40, %v2029_v46  ;;  %v494_v51 = vrot.slane %v492_v43, 4  ;;  %v497_v52 = vrot.slane %v495_v44, 5  ;;  %v503_v54 = vrot.slane %v501_v47, 5 }
  0x65   :  { %4504 = vmatpush3.bf16.msra.mxu0 %v4784_v17  ;;  %v457_v8 = vrot.slane %v456_v2, 4  ;;  %v478_v17 = vshrl.u32 %v286_v11, 16  ;;  %4377 = vmatprep.subr.bf16.mxu1 %v4785_v61  ;;  %v476_v53 = vsel %vm4914_vm2, %v471_v45, %v475_v25  ;;  %v509_v57 = vshll.u32 %v290_v41, 16  ;;  %v766_v31 = vld [vmem:[%s6045_s0 + $0x14] sm:$0x1] }
  0x66   :  { %4505 = vmatprep.subr.bf16.mxu0 %v4786_v48  ;;  %4487 = vmatprep.mubr.bf16.mxu0 %v3874_v50  ;;  %v498_v60 = vor.u32 %v497_v52, %v494_v51  ;;  %v3850_v0 = vrot.slane %v3832_v58, 9  ;;  %v2032_v5 = vrot.slane %v3833_v62, 5  ;;  %v2036_v10 = vrot.slane %v3835_v4, 5  ;;  %v767_v32 = vld [vmem:[%s6045_s0 + $0x18] sm:$0xe] }
  0x67   :  { %v462_v19 = vsel %vm4914_vm2, %v457_v8, %v461_v63  ;;  %v480_v26 = vrot.slane %v478_v17, 4  ;;  %v3834_v63 = vld [vmem:[%s6045_s0 + $0x90] sm:$0xe]  ;;  %v511_v15 = vrot.slane %v509_v57, 5  ;;  %v3644_v21 = vrot.slane %v761_v14, 9 }
  0x68   :  { %v3633_v23 = vcombine.low %v448_v7, %v462_v19  ;;  %4378 = vmatpush3.bf16.msra.mxu1 %v4785_v61  ;;  %v515_v61 = vshll.u32 %v291_v42, 16  ;;  %v3851_v7 = vrot.slane %v3834_v63, 9  ;;  %v499_v8 = vrot.slane %v498_v60, 4  ;;  %v762_v19 = vld [vmem:[%s6045_s0 + $0x4] sm:$0x1]  ;;  %v4792_v42 = vld [vmem:[%s6044_s1 + $0x1c8] sm:$0xff]  }
  0x69   :  { %4506 = vmatpush3.bf16.msra.mxu0 %v4786_v48  ;;  %4395 = vmatprep.subr.bf16.mxu1 %v5367_v6  ;;  %v484_v39 = vor.u32 %v483_v28, %v480_v26  ;;  %v506_v48 = vshrl.u32 %v290_v41, 16  ;;  %v2033_v12 = vsel %vm5138_vm5, %v3850_v0, %v2032_v5  ;;  %v830_v3 = vrot.slane %v762_v19, 5  ;;  %v4787_v26 = vld [vmem:[%s6045_s0 + $0x10] ss:$8 sps:$4 sm:$0xff]   ;;  %v768_v34 = vld [vmem:[%s6045_s0 + $0x1c] sm:$0x1] }
  0x6a   :  { %4523 = vmatprep.subr.bf16.mxu0 %v5355_v1  ;;  %4356 = vmatmul.mubr.bf16.gmra.mrb[8].mxu1 %v3633_v23  ;;  %v517_v9 = vrot.slane %v515_v61, 5  ;;  %v2037_v13 = vsel %vm5138_vm5, %v3851_v7, %v2036_v10  ;;  %v504_v16 = vsel %vm4914_vm2, %v499_v8, %v503_v54  ;;  %v3645_v23 = vrot.slane %v763_v20, 9  ;;  %v4789_v41 = vld [vmem:[%s6045_s0 + $0x20] ss:$8 sps:$4 sm:$0xff]   ;;  %v770_v46 = vld [vmem:[%s6045_s0 + $0x24] sm:$0x1] }
  0x6b   :  { %v485_v49 = vrot.slane %v484_v39, 4  ;;  %v508_v56 = vrot.slane %v506_v48, 4  ;;  %v3875_v18 = vcombine.low %v2033_v12, %v2037_v13  ;;  %v834_v25 = vrot.slane %v764_v22, 5  ;;  %v769_v45 = vld [vmem:[%s6045_s0 + $0x20] sm:$0xe]  ;;  %v4791_v48 = vld [vmem:[%s6044_s1 + $0xc8] sm:$0xff]  }
  0x6c   :  { %v831_v28 = vsel %vm5138_vm5, %v3644_v21, %v830_v3  ;;  %v838_v36 = vrot.slane %v766_v31, 5  ;;  %v3647_v37 = vrot.slane %v767_v32, 9  ;;  %v842_v39 = vrot.slane %v768_v34, 5  ;;  %v771_v47 = vld [vmem:[%s6045_s0 + $0x28] sm:$0xe]  ;;  %v4796_v54 = vld [vmem:[%s6044_s1 + $0x1d0] sm:$0xff]  }
  0x6d   :  { %v490_v59 = vsel %vm4914_vm2, %v485_v49, %v489_v29  ;;  %v512_v11 = vor.u32 %v511_v15, %v508_v56  ;;  %4488 = vmatmul.mubr.bf16.gmra.mrb[12].mxu0 %v3875_v18  ;;  %v765_v29 = vld [vmem:[%s6045_s0 + $0x10] sm:$0xe]  ;;  %v835_v33 = vsel %vm5138_vm5, %v3645_v23, %v834_v25  ;;  %v772_v49 = vld [vmem:[%s6045_s0 + $0x2c] sm:$0x1]  ;;  %v3648_v50 = vrot.slane %v769_v45, 9  ;;  %v4798_v5 = vld [vmem:[%s6044_s1 + $0x1d8] sm:$0xff]  }
  0x6e   :  { %v3634_v2 = vcombine.low %v476_v53, %v490_v59  ;;  %4507 = vmatprep.mubr.bf16.mxu0 %v4787_v26  ;;  %v3646_v35 = vrot.slane %v765_v29, 9  ;;  %v3676_v38 = vcombine.low %v831_v28, %v835_v33  ;;  %v843_v43 = vsel %vm5138_vm5, %v3647_v37, %v842_v39  ;;  %v4793_v57 = vld [vmem:[%s6045_s0 + $0x30] ss:$8 sps:$4 sm:$0xff]   ;;  %v776_v61 = vld [vmem:[%s6045_s0 + $0x3c] sm:$0x1]  ;;  %v4802_v20 = vld [vmem:[%s6044_s1 + $0x1e0] sm:$0xff]  }
  0x6f   :  { %v513_v17 = vrot.slane %v512_v11, 4  ;;  %v846_v51 = vrot.slane %v770_v46, 5  ;;  %v3649_v52 = vrot.slane %v771_v47, 9  ;;  %v850_v53 = vrot.slane %v772_v49, 5  ;;  %v773_v58 = vld [vmem:[%s6045_s0 + $0x30] sm:$0xe] }
  0x70   :  { %4359 = vmatprep.mubr.bf16.mxu1 %v3634_v2  ;;  %v839_v40 = vsel %vm5138_vm5, %v3646_v35, %v838_v36  ;;  %v775_v60 = vld [vmem:[%s6045_s0 + $0x38] sm:$0xe]  ;;  %v3650_v62 = vrot.slane %v773_v58, 9  ;;  %v4794_v0 = vld [vmem:[%s6044_s1 + $0xd0] sm:$0xff]   ;;  %v858_v4 = vrot.slane %v776_v61, 5  ;;  %v4804_v31 = vld [vmem:[%s6044_s1 + $0x1e8] sm:$0xff]  }
  0x71   :  { %v518_v24 = vsel %vm4914_vm2, %v513_v17, %v517_v9  ;;  %v3677_v44 = vcombine.low %v839_v40, %v843_v43  ;;  %v847_v56 = vsel %vm5138_vm5, %v3648_v50, %v846_v51  ;;  %v851_v59 = vsel %vm5138_vm5, %v3649_v52, %v850_v53  ;;  %v4795_v8 = vld [vmem:[%s6045_s0 + $0x40] ss:$8 sps:$4 sm:$0xff]   ;;  %v777_v10 = vld [vmem:[%s6045_s0 + $0x50] sm:$0xe]  ;;  %v778_v11 = vld [vmem:[%s6045_s0 + $0x54] sm:$0x1] }
  0x72   :  { %v3635_v27 = vcombine.low %v504_v16, %v518_v24  ;;  %v3678_v2 = vcombine.low %v847_v56, %v851_v59  ;;  %v3651_v15 = vrot.slane %v775_v60, 9  ;;  %v779_v12 = vld [vmem:[%s6045_s0 + $0x58] sm:$0xe]  ;;  %v780_v14 = vld [vmem:[%s6045_s0 + $0x5c] sm:$0x1]  ;;  %v3652_v16 = vrot.slane %v777_v10, 9 }
  0x73   :  { %v4797_v13 = vld [vmem:[%s6044_s1 + $0xd8] sm:$0xff]   ;;  %v862_v17 = vrot.slane %v778_v11, 5  ;;  %v3653_v18 = vrot.slane %v779_v12, 9  ;;  %v866_v19 = vrot.slane %v780_v14, 5  ;;  %v4799_v22 = vld [vmem:[%s6045_s0 + $0x60] ss:$8 sps:$4 sm:$0xff]  }
  0x74   :  { %4360 = vmatmul.mubr.bf16.gmra.mrb[12].mxu1 %v3635_v27  ;;  %v781_v3 = vld [vmem:[%s6045_s0 + $0x60] sm:$0xe]  ;;  %v782_v23 = vld [vmem:[%s6045_s0 + $0x64] sm:$0x1]  ;;  %v783_v26 = vld [vmem:[%s6045_s0 + $0x68] sm:$0xe] }
  0x75   :  { %4379 = vmatprep.mubr.bf16.mxu1 %v3676_v38  ;;  %4508 = vmatmul.mubr.bf16.vlgmr.msra.gmra.mrb[0].mxu0 %v4789_v41  ;;  %v863_v21 = vsel %vm5138_vm5, %v3652_v16, %v862_v17  ;;  %v4800_v24 = vld [vmem:[%s6044_s1 + $0xe0] sm:$0xff]   ;;  %v867_v25 = vsel %vm5138_vm5, %v3653_v18, %v866_v19  ;;  %v784_v27 = vld [vmem:[%s6045_s0 + $0x6c] sm:$0x1]  ;;  %v3654_v28 = vrot.slane %v781_v3, 9  ;;  %v870_v29 = vrot.slane %v782_v23, 5  ;;  %v4808_v47 = vld [vmem:[%s6044_s1 + $0x1f0] sm:$0xff]  }
  0x76   :  { %4524 = vmatpush3.bf16.msra.mxu0 %v5355_v1  ;;  %v774_v1 = vld [vmem:[%s6045_s0 + $0x34] sm:$0x1]  ;;  %4511 = vmatprep.mubr.bf16.mxu0 %v4793_v57  ;;  %v3680_v32 = vcombine.low %v863_v21, %v867_v25  ;;  %v3655_v33 = vrot.slane %v783_v26, 9  ;;  %v874_v34 = vrot.slane %v784_v27, 5  ;;  %v4801_v36 = vld [vmem:[%s6045_s0 + $0x70] ss:$8 sps:$4 sm:$0xff]  }
  0x77   :  { %4525 = vmatprep.subr.bf16.mxu0 %v4792_v42  ;;  %v854_v63 = vrot.slane %v774_v1, 5  ;;  %v871_v35 = vsel %vm5138_vm5, %v3654_v28, %v870_v29  ;;  %v4803_v38 = vld [vmem:[%s6044_s1 + $0xe8] sm:$0xff]   ;;  %v785_v40 = vld [vmem:[%s6045_s0 + $0x70] sm:$0xe]  ;;  %v786_v41 = vld [vmem:[%s6045_s0 + $0x74] sm:$0x1] }
  0x78   :  { %v875_v37 = vsel %vm5138_vm5, %v3655_v33, %v874_v34  ;;  %v788_v43 = vld [vmem:[%s6045_s0 + $0x7c] sm:$0x1]  ;;  %v878_v45 = vrot.slane %v786_v41, 5  ;;  %v4806_v49 = vld [vmem:[%s6044_s1 + $0xf0] sm:$0xff]   ;;  %v4805_v51 = vld [vmem:[%s6045_s0 + $0x80] ss:$8 sps:$4 sm:$0xff]  }
  0x79   :  { %v855_v7 = vsel %vm5138_vm5, %v3650_v62, %v854_v63  ;;  %v3681_v39 = vcombine.low %v871_v35, %v875_v37  ;;  %v789_v52 = vld [vmem:[%s6045_s0 + $0x80] sm:$0xe]  ;;  %v790_v53 = vld [vmem:[%s6045_s0 + $0x84] sm:$0x1]  ;;  %v791_v56 = vld [vmem:[%s6045_s0 + $0x88] sm:$0xe] }
  0x7a   :  { %4526 = vmatpush3.bf16.msra.mxu0 %v4792_v42  ;;  %v787_v42 = vld [vmem:[%s6045_s0 + $0x78] sm:$0xe]  ;;  %v792_v57 = vld [vmem:[%s6045_s0 + $0x8c] sm:$0x1]  ;;  %v3658_v58 = vrot.slane %v789_v52, 9  ;;  %v886_v1 = vrot.slane %v790_v53, 5 }
  0x7b   :  { %4527 = vmatprep.subr.bf16.mxu0 %v4796_v54  ;;  %v3657_v46 = vrot.slane %v787_v42, 9  ;;  %v4810_v59 = vld [vmem:[%s6044_s1 + $0x1f8] sm:$0xff]   ;;  %v3659_v61 = vrot.slane %v791_v56, 9  ;;  %v890_v62 = vrot.slane %v792_v57, 5  ;;  %v3937_v25 = vld [vmem:[%s6045_s0 + $0x24] sm:$0x1] }
  0x7c   :  { %4380 = vmatmul.mubr.bf16.vlgmr.msra.gmra.mrb[0].mxu1 %v3677_v44  ;;  %v3656_v44 = vrot.slane %v785_v40, 9  ;;  %v887_v63 = vsel %vm5138_vm5, %v3658_v58, %v886_v1  ;;  %v3935_v10 = vld [vmem:[%s6045_s0 + $0x1c] sm:$0x1]  ;;  %v3938_v27 = vld [vmem:[%s6045_s0 + $0x28] sm:$0xf]  ;;  %v2628_v33 = vshll.u32 %v3937_v25, 16 }
  0x7d   :  { %4396 = vmatpush3.bf16.msra.mxu1 %v5367_v6  ;;  %4383 = vmatprep.mubr.bf16.mxu1 %v3678_v2  ;;  %v859_v6 = vsel %vm5138_vm5, %v3651_v15, %v858_v4  ;;  %v4809_v2 = vld [vmem:[%s6044_s1 + $0xf8] sm:$0xff]   ;;  %v891_v15 = vsel %vm5138_vm5, %v3659_v61, %v890_v62  ;;  %v2614_v17 = vshll.u32 %v3935_v10, 16  ;;  %v3939_v28 = vld [vmem:[%s6045_s0 + $0x2c] sm:$0x1]  ;;  %v2633_v34 = vshrl.u32 %v3938_v27, 16 }
  0x7e   :  { %4397 = vmatprep.subr.bf16.mxu1 %v4791_v48  ;;  %v3679_v9 = vcombine.low %v855_v7, %v859_v6  ;;  %4512 = vmatmul.mubr.bf16.gmra.mrb[4].mxu0 %v4795_v8  ;;  %v879_v50 = vsel %vm5138_vm5, %v3656_v44, %v878_v45  ;;  %v3683_v4 = vcombine.low %v887_v63, %v891_v15  ;;  %v4811_v7 = vld [vmem:[%s6045_s0 + $0x8] ss:$8 sps:$4 sm:$0xff]   ;;  %v3933_v6 = vld [vmem:[%s6045_s0 + $0x14] sm:$0x1]  ;;  %v2636_v35 = vshll.u32 %v3938_v27, 16 }
  0x7f   :  { %4528 = vmatpush3.bf16.msra.mxu0 %v4796_v54  ;;  %4515 = vmatprep.mubr.bf16.mxu0 %v4799_v22  ;;  %v3932_v8 = vld [vmem:[%s6045_s0 + $0x10] sm:$0xf]  ;;  %v4812_v22 = vld [vmem:[%s6045_s0 + $0x18] ss:$8 sps:$4 sm:$0xff]   ;;  %v2616_v23 = vrot.slane %v2614_v17, 5  ;;  %v2642_v40 = vshll.u32 %v3939_v28, 16 }
  0x80   :  { %4529 = vmatprep.subr.bf16.mxu0 %v4798_v5  ;;  %v2591_v11 = vshrl.u32 %v3932_v8, 16  ;;  %v2594_v12 = vshll.u32 %v3932_v8, 16  ;;  %v2635_v42 = vrot.slane %v2633_v34, 4  ;;  %v5677_v44 = vld [vmem:[%s6044_s1 + $0x210] sm:$0xff]   ;;  %v3942_v57 = vld [vmem:[%s6045_s0 + $0x38] sm:$0xf] }
  0x81   :  { %4398 = vmatpush3.bf16.msra.mxu1 %v4791_v48  ;;  %v882_v48 = vrot.slane %v788_v43, 5  ;;  %v2638_v43 = vrot.slane %v2636_v35, 5  ;;  %v3940_v52 = vld [vmem:[%s6045_s0 + $0x30] sm:$0xf]  ;;  %v3941_v56 = vld [vmem:[%s6045_s0 + $0x34] sm:$0x1] }
  0x82   :  { %4399 = vmatprep.subr.bf16.mxu1 %v4794_v0  ;;  %v2593_v18 = vrot.slane %v2591_v11, 4  ;;  %v2596_v19 = vrot.slane %v2594_v12, 5  ;;  %v2647_v58 = vshrl.u32 %v3940_v52, 16  ;;  %v2656_v61 = vshll.u32 %v3941_v56, 16  ;;  %v3945_v17 = vld [vmem:[%s6045_s0 + $0x44] sm:$0x1] }
  0x83   :  { %4530 = vmatpush3.bf16.msra.mxu0 %v4798_v5  ;;  %v883_v54 = vsel %vm5138_vm5, %v3657_v46, %v882_v48  ;;  %v5635_v5 = vld [vmem:[%s6044_s1 + $0x200] sm:$0xff]   ;;  %v2644_v48 = vrot.slane %v2642_v40, 5  ;;  %v2661_v62 = vshrl.u32 %v3942_v57, 16  ;;  %v5745_v40 = vld [vmem:[%s6044_s1 + $0x228] sm:$0xff]  }
  0x84   :  { %4384 = vmatmul.mubr.bf16.gmra.mrb[4].mxu1 %v3679_v9  ;;  %4531 = vmatprep.subr.bf16.mxu0 %v4802_v20  ;;  %v3682_v60 = vcombine.low %v879_v50, %v883_v54  ;;  %v3934_v9 = vld [vmem:[%s6045_s0 + $0x18] sm:$0xf]  ;;  %v2597_v26 = vor.u32 %v2596_v19, %v2593_v18  ;;  %v2639_v50 = vor.u32 %v2638_v43, %v2635_v42  ;;  %v2658_v8 = vrot.slane %v2656_v61, 5  ;;  %v3946_v18 = vld [vmem:[%s6045_s0 + $0x48] sm:$0xf]  ;;  %v5735_v35 = vld [vmem:[%s6044_s1 + $0x220] sm:$0xff]  }
  0x85   :  { %4400 = vmatpush3.bf16.msra.mxu1 %v4794_v0  ;;  %4387 = vmatprep.mubr.bf16.mxu1 %v3680_v32  ;;  %v4807_v0 = vld [vmem:[%s6045_s0 + $0x90] ss:$8 sps:$4 sm:$0xff]   ;;  %v2605_v14 = vshrl.u32 %v3934_v9, 16  ;;  %v2608_v16 = vshll.u32 %v3934_v9, 16  ;;  %v3947_v19 = vld [vmem:[%s6045_s0 + $0x4c] sm:$0x1] }
  0x86   :  { %4401 = vmatprep.subr.bf16.mxu1 %v4797_v13  ;;  %4516 = vmatmul.mubr.bf16.gmra.mrb[8].mxu0 %v4801_v36  ;;  %v5672_v36 = vld [vmem:[%s6044_s1 + $0x208] sm:$0xff]   ;;  %v2598_v37 = vrot.slane %v2597_v26, 4  ;;  %v2640_v1 = vrot.slane %v2639_v50, 4  ;;  %v5709_v9 = vld [vmem:[%s6044_s1 + $0x218] sm:$0xff]   ;;  %v2692_v25 = vshll.u32 %v3946_v18, 16  ;;  %v2698_v26 = vshll.u32 %v3947_v19, 16 }
  0x87   :  { %4532 = vmatpush3.bf16.msra.mxu0 %v4802_v20  ;;  %4519 = vmatprep.mubr.bf16.mxu0 %v4805_v51  ;;  %v2607_v21 = vrot.slane %v2605_v14, 4  ;;  %v2610_v3 = vrot.slane %v2608_v16, 5  ;;  %v4815_v51 = vld [vmem:[%s6045_s0 + $0x28] ss:$8 sps:$4 sm:$0xff]   ;;  %v3944_v14 = vld [vmem:[%s6045_s0 + $0x40] sm:$0xf] }
  0x88   :  { %4533 = vmatprep.subr.bf16.mxu0 %v4804_v31  ;;  %v2694_v34 = vrot.slane %v2692_v25, 5  ;;  %v3948_v43 = vld [vmem:[%s6045_s0 + $0x60] sm:$0xf] }
  0x89   :  { %4402 = vmatpush3.bf16.msra.mxu1 %v4797_v13  ;;  %v2600_v13 = vshll.u32 %v3933_v6, 16  ;;  %v2611_v32 = vor.u32 %v2610_v3, %v2607_v21  ;;  %v2663_v6 = vrot.slane %v2661_v62, 4  ;;  %v2675_v21 = vshrl.u32 %v3944_v14, 16 }
  0x8a   :  { %4403 = vmatprep.subr.bf16.mxu1 %v4800_v24  ;;  %v2684_v3 = vshll.u32 %v3945_v17, 16 }
  0x8b   :  { %4534 = vmatpush3.bf16.msra.mxu0 %v4804_v31  ;;  %v2602_v20 = vrot.slane %v2600_v13, 5  ;;  %v2612_v41 = vrot.slane %v2611_v32, 4  ;;  %v4816_v13 = vld [vmem:[%s6045_s0 + $0x38] ss:$8 sps:$4 sm:$0xff]   ;;  %v2677_v28 = vrot.slane %v2675_v21, 4 }
  0x8c   :  { %4388 = vmatmul.mubr.bf16.gmra.mrb[8].mxu1 %v3681_v39  ;;  %4535 = vmatprep.subr.bf16.mxu0 %v4808_v47 }
  0x8d   :  { %4404 = vmatpush3.bf16.msra.mxu1 %v4800_v24  ;;  %4391 = vmatprep.mubr.bf16.mxu1 %v3682_v60  ;;  %v3936_v24 = vld [vmem:[%s6045_s0 + $0x20] sm:$0xf]  ;;  %v2603_v45 = vsel %vm4914_vm2, %v2598_v37, %v2602_v20  ;;  %v2650_v60 = vshll.u32 %v3940_v52, 16 }
  0x8e   :  { %4405 = vmatprep.subr.bf16.mxu1 %v4803_v38  ;;  %4520 = vmatmul.mubr.bf16.gmra.mrb[12].mxu0 %v4807_v0  ;;  %v2619_v29 = vshrl.u32 %v3936_v24, 16  ;;  %v2622_v31 = vshll.u32 %v3936_v24, 16  ;;  %v2649_v0 = vrot.slane %v2647_v58, 4  ;;  %v2689_v24 = vshrl.u32 %v3946_v18, 16 }
  0x8f   :  { %4536 = vmatpush3.bf16.msra.mxu0 %v4808_v47  ;;  %v2630_v47 = vrot.slane %v2628_v33, 5 }
  0x90   :  { %4537 = vmatprep.subr.bf16.mxu0 %v4810_v59  ;;  %v2624_v39 = vrot.slane %v2622_v31, 5  ;;  %v2686_v31 = vrot.slane %v2684_v3, 5  ;;  %v2691_v33 = vrot.slane %v2689_v24, 4 }
  0x91   :  { %4406 = vmatpush3.bf16.msra.mxu1 %v4803_v38  ;;  %v2621_v38 = vrot.slane %v2619_v29, 4 }
  0x92   :  { %4407 = vmatprep.subr.bf16.mxu1 %v4806_v49  ;;  %v2695_v42 = vor.u32 %v2694_v34, %v2691_v33  ;;  %v3958_v34 = vld [vmem:[%s6045_s0 + $0x88] sm:$0xf] }
  0x93   :  { %4538 = vmatpush3.bf16.msra.mxu0 %v4810_v59  ;;  %v2625_v46 = vor.u32 %v2624_v39, %v2621_v38  ;;  %v3943_v59 = vld [vmem:[%s6045_s0 + $0x3c] sm:$0x1]  ;;  %v4819_v39 = vld [vmem:[%s6045_s0 + $0x58] ss:$8 sps:$4 sm:$0xff]  }
  0x94   :  { %4392 = vmatmul.mubr.bf16.gmra.mrb[12].mxu1 %v3683_v4  ;;  %4555 = vmatprep.subr.bf16.mxu0 %v5635_v5  ;;  %v2670_v15 = vshll.u32 %v3943_v59, 16  ;;  %v2645_v4 = vsel %vm4914_vm2, %v2640_v1, %v2644_v48  ;;  %v2703_v48 = vshrl.u32 %v3948_v43, 16 }
  0x95   :  { %4408 = vmatpush3.bf16.msra.mxu1 %v4806_v49  ;;  %4411 = vmatprep.mubr.bf16.mxu1 %v4811_v7  ;;  %v2617_v49 = vsel %vm4914_vm2, %v2612_v41, %v2616_v23  ;;  %v2626_v54 = vrot.slane %v2625_v46, 4  ;;  %v2652_v7 = vrot.slane %v2650_v60, 5  ;;  %v3950_v46 = vld [vmem:[%s6045_s0 + $0x68] sm:$0xf] }
  0x96   :  { %4409 = vmatprep.subr.bf16.mxu1 %v4809_v2  ;;  %v3980_v53 = vcombine.low %v2603_v45, %v2617_v49  ;;  %v2672_v12 = vrot.slane %v2670_v15, 5  ;;  %v3949_v45 = vld [vmem:[%s6045_s0 + $0x64] sm:$0x1]  ;;  %v2706_v49 = vshll.u32 %v3948_v43, 16  ;;  %v2717_v52 = vshrl.u32 %v3950_v46, 16 }
  0x97   :  { %v2631_v63 = vsel %vm4914_vm2, %v2626_v54, %v2630_v47  ;;  %v2653_v16 = vor.u32 %v2652_v7, %v2649_v0  ;;  %v2712_v50 = vshll.u32 %v3949_v45, 16  ;;  %v5775_v0 = vld [vmem:[%s6044_s1 + $0x230] sm:$0xff]   ;;  %v3954_v7 = vld [vmem:[%s6045_s0 + $0x78] sm:$0xf]  ;;  %v2776_v45 = vshll.u32 %v3958_v34, 16 }
  0x98   :  { %4539 = vmatprep.mubr.bf16.mxu0 %v3980_v53  ;;  %v3981_v10 = vcombine.low %v2631_v63, %v2645_v4  ;;  %v2720_v53 = vshll.u32 %v3950_v46, 16  ;;  %v2708_v58 = vrot.slane %v2706_v49, 5  ;;  %v2719_v60 = vrot.slane %v2717_v52, 4  ;;  %v4820_v63 = vld [vmem:[%s6045_s0 + $0x68] ss:$8 sps:$4 sm:$0xff]  }
  0x99   :  { %4410 = vmatpush3.bf16.msra.mxu1 %v4809_v2  ;;  %v2664_v2 = vshll.u32 %v3942_v57, 16  ;;  %v2654_v23 = vrot.slane %v2653_v16, 4  ;;  %v2705_v57 = vrot.slane %v2703_v48, 4  ;;  %v2714_v1 = vrot.slane %v2712_v50, 5  ;;  %v3953_v4 = vld [vmem:[%s6045_s0 + $0x74] sm:$0x1] }
  0x9a   :  { %4587 = vmatprep.subr.bf16.mxu1 %v5635_v5  ;;  %4540 = vmatmul.mubr.bf16.vlgmr.msra.gmra.mrb[0].mxu0 %v3981_v10  ;;  %v2722_v61 = vrot.slane %v2720_v53, 5  ;;  %v2748_v16 = vshll.u32 %v3954_v7, 16  ;;  %v4824_v50 = vld [vmem:[%s6045_s0 + $0x88] ss:$8 sps:$4 sm:$0xff]   ;;  %v2778_v52 = vrot.slane %v2776_v45, 5 }
  0x9b   :  { %v2666_v11 = vrot.slane %v2664_v2, 5  ;;  %4556 = vmatpush3.bf16.msra.mxu0 %v5635_v5  ;;  %v2659_v32 = vsel %vm4914_vm2, %v2654_v23, %v2658_v8  ;;  %v2709_v15 = vor.u32 %v2708_v58, %v2705_v57  ;;  %v3962_v58 = vld [vmem:[%s6045_s0 + $0x98] sm:$0xf]  ;;  %v4003_v45 = vld [vmem:[%s6045_s0 + $0x2c] sm:$0x1] }
  0x9c   :  { %4412 = vmatmul.mubr.bf16.vlgmr.msra.gmra.mrb[0].mxu1 %v4812_v22  ;;  %v2678_v22 = vshll.u32 %v3944_v14, 16  ;;  %4557 = vmatprep.subr.bf16.mxu0 %v5672_v36  ;;  %v2723_v8 = vor.u32 %v2722_v61, %v2719_v60  ;;  %v2745_v14 = vshrl.u32 %v3954_v7, 16  ;;  %v2750_v23 = vrot.slane %v2748_v16, 5 }
  0x9d   :  { %4595 = vmatpush3.bf16.msra.mxu1 %v5635_v5  ;;  %4415 = vmatprep.mubr.bf16.mxu1 %v4815_v51  ;;  %v2667_v20 = vor.u32 %v2666_v11, %v2663_v6  ;;  %v2700_v5 = vrot.slane %v2698_v26, 5  ;;  %v2696_v51 = vrot.slane %v2695_v42, 4  ;;  %v3955_v6 = vld [vmem:[%s6045_s0 + $0x7c] sm:$0x1]  ;;  %v2773_v42 = vshrl.u32 %v3958_v34, 16 }
  0x9e   :  { %4588 = vmatprep.subr.bf16.mxu1 %v5672_v36  ;;  %v2680_v29 = vrot.slane %v2678_v22, 5  ;;  %v2754_v17 = vshll.u32 %v3955_v6, 16  ;;  %v2724_v18 = vrot.slane %v2723_v8, 4  ;;  %v2747_v3 = vrot.slane %v2745_v14, 4  ;;  %v3996_v14 = vld [vmem:[%s6045_s0 + $0x10] sm:$0xe] }
  0x9f   :  { %v2668_v27 = vrot.slane %v2667_v20, 4  ;;  %4558 = vmatpush3.bf16.msra.mxu0 %v5672_v36  ;;  %v2701_v59 = vsel %vm4914_vm2, %v2696_v51, %v2700_v5  ;;  %v3959_v5 = vld [vmem:[%s6045_s0 + $0x8c] sm:$0x1]  ;;  %v2775_v49 = vrot.slane %v2773_v42, 4 }
  0xa0   :  { %v2681_v38 = vor.u32 %v2680_v29, %v2677_v28  ;;  %4559 = vmatprep.subr.bf16.mxu0 %v5677_v44  ;;  %v2756_v24 = vrot.slane %v2754_v17, 5  ;;  %v2751_v28 = vor.u32 %v2750_v23, %v2747_v3  ;;  %v4823_v29 = vld [vmem:[%s6045_s0 + $0x78] ss:$8 sps:$4 sm:$0xff]   ;;  %v2782_v46 = vshll.u32 %v3959_v5, 16 }
  0xa1   :  { %4596 = vmatpush3.bf16.msra.mxu1 %v5672_v36  ;;  %v2673_v37 = vsel %vm4914_vm2, %v2668_v27, %v2672_v12  ;;  %v3951_v36 = vld [vmem:[%s6045_s0 + $0x6c] sm:$0x1]  ;;  %v2740_v12 = vshll.u32 %v3953_v4, 16  ;;  %v2779_v60 = vor.u32 %v2778_v52, %v2775_v49  ;;  %v4012_v23 = vld [vmem:[%s6045_s0 + $0x60] sm:$0xe]  ;;  %v3134_v49 = vrot.slane %v4003_v45, 5 }
  0xa2   :  { %4589 = vmatprep.subr.bf16.mxu1 %v5677_v44  ;;  %v3982_v41 = vcombine.low %v2659_v32, %v2673_v37  ;;  %v2682_v47 = vrot.slane %v2681_v38, 4  ;;  %v2726_v54 = vshll.u32 %v3951_v36, 16  ;;  %v3957_v32 = vld [vmem:[%s6045_s0 + $0x84] sm:$0x1]  ;;  %v2752_v38 = vrot.slane %v2751_v28, 4 }
  0xa3   :  { %4560 = vmatpush3.bf16.msra.mxu0 %v5677_v44  ;;  %v2742_v21 = vrot.slane %v2740_v12, 5  ;;  %v2784_v53 = vrot.slane %v2782_v46, 5  ;;  %v2780_v7 = vrot.slane %v2779_v60, 4  ;;  %v4036_v28 = vrot.slane %v4012_v23, 9  ;;  %v4017_v52 = vld [vmem:[%s6045_s0 + $0x74] sm:$0x1] }
  0xa4   :  { %4416 = vmatmul.mubr.bf16.gmra.mrb[4].mxu1 %v4816_v13  ;;  %4543 = vmatprep.mubr.bf16.mxu0 %v3982_v41  ;;  %v2687_v56 = vsel %vm4914_vm2, %v2682_v47, %v2686_v31  ;;  %v2728_v62 = vrot.slane %v2726_v54, 5  ;;  %v2710_v13 = vrot.slane %v2709_v15, 4  ;;  %v3956_v31 = vld [vmem:[%s6045_s0 + $0x80] sm:$0xf]  ;;  %v2768_v41 = vshll.u32 %v3957_v32, 16 }
  0xa5   :  { %4597 = vmatpush3.bf16.msra.mxu1 %v5677_v44  ;;  %4419 = vmatprep.mubr.bf16.mxu1 %v4819_v39  ;;  %v3983_v2 = vcombine.low %v2687_v56, %v2701_v59  ;;  %v3952_v44 = vld [vmem:[%s6045_s0 + $0x70] sm:$0xf]  ;;  %v2759_v37 = vshrl.u32 %v3956_v31, 16  ;;  %v2762_v39 = vshll.u32 %v3956_v31, 16  ;;  %v2757_v47 = vsel %vm4914_vm2, %v2752_v38, %v2756_v24  ;;  %v3961_v56 = vld [vmem:[%s6045_s0 + $0x94] sm:$0x1] }
  0xa6   :  { %4590 = vmatprep.subr.bf16.mxu1 %v5709_v9  ;;  %4561 = vmatprep.subr.bf16.mxu0 %v5709_v9  ;;  %v2731_v10 = vshrl.u32 %v3952_v44, 16  ;;  %v2734_v11 = vshll.u32 %v3952_v44, 16  ;;  %v2715_v22 = vsel %vm4914_vm2, %v2710_v13, %v2714_v1  ;;  %v2729_v25 = vsel %vm4914_vm2, %v2724_v18, %v2728_v62  ;;  %v3960_v54 = vld [vmem:[%s6045_s0 + $0x90] sm:$0xf]  ;;  %v3998_v18 = vld [vmem:[%s6045_s0 + $0x18] sm:$0xe] }
  0xa7   :  { %4544 = vmatmul.mubr.bf16.gmra.mrb[4].mxu0 %v3983_v2  ;;  %v3984_v27 = vcombine.low %v2715_v22, %v2729_v25  ;;  %v2761_v43 = vrot.slane %v2759_v37, 4  ;;  %v2764_v36 = vrot.slane %v2762_v39, 5  ;;  %v2770_v48 = vrot.slane %v2768_v41, 5  ;;  %v4014_v32 = vld [vmem:[%s6045_s0 + $0x68] sm:$0xe] }
  0xa8   :  { %4562 = vmatpush3.bf16.msra.mxu0 %v5709_v9  ;;  %v2733_v19 = vrot.slane %v2731_v10, 4  ;;  %v2736_v20 = vrot.slane %v2734_v11, 5  ;;  %v2787_v1 = vshrl.u32 %v3960_v54, 16  ;;  %v2790_v59 = vshll.u32 %v3960_v54, 16  ;;  %v4000_v39 = vld [vmem:[%s6045_s0 + $0x20] sm:$0xe] }
  0xa9   :  { %4598 = vmatpush3.bf16.msra.mxu1 %v5709_v9  ;;  %4563 = vmatprep.subr.bf16.mxu0 %v5735_v35  ;;  %v5800_v9 = vld [vmem:[%s6044_s1 + $0x238] sm:$0xff]   ;;  %v2765_v57 = vor.u32 %v2764_v36, %v2761_v43  ;;  %v2796_v61 = vshll.u32 %v3961_v56, 16  ;;  %v2801_v62 = vshrl.u32 %v3962_v58, 16  ;;  %v2785_v16 = vsel %vm4914_vm2, %v2780_v7, %v2784_v53  ;;  %v4001_v41 = vld [vmem:[%s6045_s0 + $0x24] sm:$0x1] }
  0xaa   :  { %4591 = vmatprep.subr.bf16.mxu1 %v5735_v35  ;;  %v2737_v26 = vor.u32 %v2736_v20, %v2733_v19  ;;  %4547 = vmatprep.mubr.bf16.mxu0 %v3984_v27  ;;  %v2789_v15 = vrot.slane %v2787_v1, 4  ;;  %v2792_v44 = vrot.slane %v2790_v59, 5  ;;  %v3999_v19 = vld [vmem:[%s6045_s0 + $0x1c] sm:$0x1]  ;;  %v4028_v22 = vrot.slane %v3996_v14, 9 }
  0xab   :  { %v2766_v2 = vrot.slane %v2765_v57, 4  ;;  %v2803_v8 = vrot.slane %v2801_v62, 4  ;;  %v2798_v12 = vrot.slane %v2796_v61, 5  ;;  %v4029_v25 = vrot.slane %v3998_v18, 9  ;;  %v4013_v27 = vld [vmem:[%s6045_s0 + $0x64] sm:$0x1] }
  0xac   :  { %4420 = vmatmul.mubr.bf16.gmra.mrb[8].mxu1 %v4820_v63  ;;  %v2738_v33 = vrot.slane %v2737_v26, 4  ;;  %4564 = vmatpush3.bf16.msra.mxu0 %v5735_v35  ;;  %v2804_v63 = vshll.u32 %v3962_v58, 16  ;;  %v2793_v11 = vor.u32 %v2792_v44, %v2789_v15  ;;  %v3126_v26 = vrot.slane %v3999_v19, 5  ;;  %v4018_v53 = vld [vmem:[%s6045_s0 + $0x78] sm:$0xe] }
  0xad   :  { %4599 = vmatpush3.bf16.msra.mxu1 %v5735_v35  ;;  %4565 = vmatprep.subr.bf16.mxu0 %v5745_v40  ;;  %v2771_v10 = vsel %vm4914_vm2, %v2766_v2, %v2770_v48  ;;  %v4037_v37 = vrot.slane %v4014_v32, 9  ;;  %v4030_v46 = vrot.slane %v4000_v39, 9  ;;  %v3130_v36 = vrot.slane %v4001_v41, 5  ;;  %v4019_v54 = vld [vmem:[%s6045_s0 + $0x7c] sm:$0x1] }
  0xae   :  { %4592 = vmatprep.subr.bf16.mxu1 %v5745_v40  ;;  %v2743_v35 = vsel %vm4914_vm2, %v2738_v33, %v2742_v21  ;;  %4423 = vmatprep.mubr.bf16.mxu1 %v4823_v29  ;;  %v2806_v6 = vrot.slane %v2804_v63, 5  ;;  %v3986_v20 = vcombine.low %v2771_v10, %v2785_v16  ;;  %v2794_v21 = vrot.slane %v2793_v11, 4  ;;  %v4004_v1 = vld [vmem:[%s6045_s0 + $0x30] sm:$0xe]  ;;  %v4005_v59 = vld [vmem:[%s6045_s0 + $0x34] sm:$0x1] }
  0xaf   :  { %v3985_v51 = vcombine.low %v2743_v35, %v2757_v47  ;;  %v3154_v33 = vrot.slane %v4013_v27, 5  ;;  %v3127_v5 = vsel %vm5138_vm5, %v4029_v25, %v3126_v26  ;;  %v4031_v48 = vrot.slane %v4002_v30, 9  ;;  %v4006_v62 = vld [vmem:[%s6045_s0 + $0x38] sm:$0xe]  ;;  %v4007_v63 = vld [vmem:[%s6045_s0 + $0x3c] sm:$0x1] }
  0xb0   :  { %4566 = vmatpush3.bf16.msra.mxu0 %v5745_v40  ;;  %v2807_v17 = vor.u32 %v2806_v6, %v2803_v8  ;;  %v2799_v29 = vsel %vm4914_vm2, %v2794_v21, %v2798_v12  ;;  %v3131_v56 = vsel %vm5138_vm5, %v4030_v46, %v3130_v36  ;;  %v4039_v60 = vrot.slane %v4018_v53, 9  ;;  %v4020_v7 = vld [vmem:[%s6045_s0 + $0x80] sm:$0xe]  ;;  %v4021_v11 = vld [vmem:[%s6045_s0 + $0x84] sm:$0x1] }
  0xb1   :  { %4600 = vmatpush3.bf16.msra.mxu1 %v5745_v40  ;;  %v3963_v40 = vld [vmem:[%s6045_s0 + $0x9c] sm:$0x1]  ;;  %4567 = vmatprep.subr.bf16.mxu0 %v5775_v0  ;;  %v3155_v43 = vsel %vm5138_vm5, %v4036_v28, %v3154_v33  ;;  %v3135_v57 = vsel %vm5138_vm5, %v4031_v48, %v3134_v49  ;;  %v3166_v61 = vrot.slane %v4019_v54, 5  ;;  %v4032_v15 = vrot.slane %v4004_v1, 9  ;;  %v4022_v12 = vld [vmem:[%s6045_s0 + $0x88] sm:$0xe] }
  0xb2   :  { %4593 = vmatprep.subr.bf16.mxu1 %v5775_v0  ;;  %4548 = vmatmul.mubr.bf16.gmra.mrb[8].mxu0 %v3985_v51  ;;  %v2810_v4 = vshll.u32 %v3963_v40, 16  ;;  %v2808_v24 = vrot.slane %v2807_v17, 4  ;;  %v3162_v40 = vrot.slane %v4017_v52, 5  ;;  %v3138_v44 = vrot.slane %v4005_v59, 5  ;;  %v4023_v17 = vld [vmem:[%s6045_s0 + $0x8c] sm:$0x1] }
  0xb3   :  { %4551 = vmatprep.mubr.bf16.mxu0 %v3986_v20  ;;  %v4061_v8 = vcombine.low %v3131_v56, %v3135_v57  ;;  %v3167_v6 = vsel %vm5138_vm5, %v4039_v60, %v3166_v61  ;;  %v3142_v10 = vrot.slane %v4007_v63, 5  ;;  %v4041_v18 = vrot.slane %v4022_v12, 9  ;;  %v4008_v19 = vld [vmem:[%s6045_s0 + $0x40] sm:$0xe]  ;;  %v4011_v26 = vld [vmem:[%s6045_s0 + $0x4c] sm:$0x1] }
  0xb4   :  { %4424 = vmatmul.mubr.bf16.gmra.mrb[12].mxu1 %v4824_v50  ;;  %4568 = vmatpush3.bf16.msra.mxu0 %v5775_v0  ;;  %v2812_v13 = vrot.slane %v2810_v4, 5  ;;  %v4016_v50 = vld [vmem:[%s6045_s0 + $0x70] sm:$0xe]  ;;  %v4033_v4 = vrot.slane %v4006_v62, 9  ;;  %v3139_v16 = vsel %vm5138_vm5, %v4032_v15, %v3138_v44  ;;  %v3174_v21 = vrot.slane %v4023_v17, 5 }
  0xb5   :  { %4601 = vmatpush3.bf16.msra.mxu1 %v5775_v0  ;;  %4569 = vmatprep.subr.bf16.mxu0 %v5800_v9  ;;  %v3997_v0 = vld [vmem:[%s6045_s0 + $0x14] sm:$0x1]  ;;  %v4038_v58 = vrot.slane %v4016_v50, 9  ;;  %v4034_v23 = vrot.slane %v4008_v19, 9  ;;  %v3150_v32 = vrot.slane %v4011_v26, 5 }
  0xb6   :  { %4594 = vmatprep.subr.bf16.mxu1 %v5800_v9  ;;  %v3122_v3 = vrot.slane %v3997_v0, 5  ;;  %v2813_v34 = vsel %vm4914_vm2, %v2808_v24, %v2812_v13  ;;  %v4040_v13 = vrot.slane %v4020_v7, 9  ;;  %v3170_v0 = vrot.slane %v4021_v11, 5  ;;  %v4026_v33 = vld [vmem:[%s6045_s0 + $0x98] sm:$0xe] }
  0xb7   :  { %v3987_v42 = vcombine.low %v2799_v29, %v2813_v34  ;;  %v3163_v2 = vsel %vm5138_vm5, %v4038_v58, %v3162_v40  ;;  %v3143_v20 = vsel %vm5138_vm5, %v4033_v4, %v3142_v10  ;;  %v4024_v29 = vld [vmem:[%s6045_s0 + $0x90] sm:$0xe]  ;;  %v4043_v41 = vrot.slane %v4026_v33, 9 }
  0xb8   :  { %4570 = vmatpush3.bf16.msra.mxu0 %v5800_v9  ;;  %v3123_v31 = vsel %vm5138_vm5, %v4028_v22, %v3122_v3  ;;  %v4065_v14 = vcombine.low %v3163_v2, %v3167_v6  ;;  %v4009_v22 = vld [vmem:[%s6045_s0 + $0x44] sm:$0x1]  ;;  %v4010_v3 = vld [vmem:[%s6045_s0 + $0x48] sm:$0xe]  ;;  %v4062_v24 = vcombine.low %v3139_v16, %v3143_v20  ;;  %v3171_v25 = vsel %vm5138_vm5, %v4040_v13, %v3170_v0 }
  0xb9   :  { %4602 = vmatpush3.bf16.msra.mxu1 %v5800_v9  ;;  %v4015_v9 = vld [vmem:[%s6045_s0 + $0x6c] sm:$0x1]  ;;  %v4060_v35 = vcombine.low %v3123_v31, %v3127_v5  ;;  %v3146_v27 = vrot.slane %v4009_v22, 5  ;;  %v4035_v28 = vrot.slane %v4010_v3, 9  ;;  %v3175_v31 = vsel %vm5138_vm5, %v4041_v18, %v3174_v21 }
  0xba   :  { %v3158_v38 = vrot.slane %v4015_v9, 5  ;;  %4552 = vmatmul.mubr.bf16.gmra.mrb[12].mxu0 %v3987_v42  ;;  %v4025_v9 = vld [vmem:[%s6045_s0 + $0x94] sm:$0x1]  ;;  %v4042_v34 = vrot.slane %v4024_v29, 9  ;;  %v4066_v5 = vcombine.low %v3171_v25, %v3175_v31 }
  0xbb   :  { %4571 = vmatprep.mubr.bf16.mxu0 %v4060_v35  ;;  %v3178_v39 = vrot.slane %v4025_v9, 5  ;;  %v3151_v42 = vsel %vm5138_vm5, %v4035_v28, %v3150_v32 }
  0xbc   :  { %v3159_v47 = vsel %vm5138_vm5, %v4037_v37, %v3158_v38  ;;  %v3147_v37 = vsel %vm5138_vm5, %v4034_v23, %v3146_v27  ;;  %v4027_v38 = vld [vmem:[%s6045_s0 + $0x9c] sm:$0x1] }
  0xbd   :  { %v4064_v51 = vcombine.low %v3155_v43, %v3159_v47  ;;  %v3182_v35 = vrot.slane %v4027_v38, 5  ;;  %v3179_v43 = vsel %vm5138_vm5, %v4042_v34, %v3178_v39  ;;  %v4063_v30 = vcombine.low %v3147_v37, %v3151_v42 }
  0xbf   :  { %4579 = vmatprep.mubr.bf16.mxu1 %v4064_v51  ;;  %v3183_v45 = vsel %vm5138_vm5, %v4043_v41, %v3182_v35 }
  0xc0   :  { %4580 = vmatmul.mubr.bf16.vlgmr.msra.gmra.mrb[16].mxu1 %v4065_v14  ;;  %v4067_v46 = vcombine.low %v3179_v43, %v3183_v45 }
  0xc1   :  { %4583 = vmatprep.mubr.bf16.mxu1 %v4066_v5 }
  0xc2   :  { %4572 = vmatmul.mubr.bf16.vlgmr.msra.gmra.mrb[0].mxu0 %v4061_v8 }
  0xc3   :  { %4575 = vmatprep.mubr.bf16.mxu0 %v4062_v24 }
  0xc8   :  { %4584 = vmatmul.mubr.bf16.gmra.mrb[20].mxu1 %v4067_v46 }
  0xca   :  { %4576 = vmatmul.mubr.bf16.gmra.mrb[4].mxu0 %v4063_v30 }
 0x16f   :  { %v4413_v47 = vpop.f32.mrb[0].mxu1 }
 0x170   :  { %v1301_v36 = vpop.f32.mrb[1].mxu1 }
 0x171   :  { %v4414_v48 = vpop.f32.mrb[2].mxu1 }
 0x172   :  { %v1304_v49 = vpop.f32.mrb[3].mxu1 }
 0x177   :  { %v5984_v50 = vpop.f32.mrb[4].mxu1 }
 0x178   :  { %v5986_v51 = vpop.f32.mrb[5].mxu1 }
 0x179   :  { %v5988_v52 = vpop.f32.mrb[6].mxu1 }
 0x17a   :  { %v5990_v53 = vpop.f32.mrb[7].mxu1 }
 0x17f   :  { %v4421_v54 = vpop.f32.mrb[8].mxu1 }
 0x180   :  { %v1333_v56 = vpop.f32.mrb[9].mxu1 }
 0x181   :  { %v4422_v57 = vpop.f32.mrb[10].mxu1 }
 0x182   :  { %v1336_v55 = vpop.f32.mrb[11].mxu1 }
 0x185   :  { %v4549_v40 = vpop.f32.mrb[8].mxu0 }
 0x186   :  { %v4611_v59 = vadd.f32 %v4549_v40, %v4421_v54  ;;  %v2977_v60 = vpop.f32.mrb[9].mxu0 }
 0x187   :  { %v4425_v58 = vpop.f32.mrb[12].mxu1  ;;  %v4613_v62 = vadd.f32 %v2977_v60, %v1333_v56  ;;  %v4550_v63 = vpop.f32.mrb[10].mxu0 }
 0x188   :  { %v1349_v1 = vpop.f32.mrb[13].mxu1  ;;  %v4615_v15 = vadd.f32 %v4550_v63, %v4422_v57  ;;  %v2980_v44 = vpop.f32.mrb[11].mxu0 }
 0x189   :  { %v4426_v61 = vpop.f32.mrb[14].mxu1  ;;  %v4617_v4 = vadd.f32 %v2980_v44, %v1336_v55 }
 0x18a   :  { %v1352_v2 = vpop.f32.mrb[15].mxu1 }
 0x18d   :  { %v4553_v7 = vpop.f32.mrb[12].mxu0 }
 0x18e   :  { %v4619_v8 = vadd.f32 %v4553_v7, %v4425_v58  ;;  %v2993_v6 = vpop.f32.mrb[13].mxu0 }
 0x18f   :  { %v4621_v10 = vadd.f32 %v2993_v6, %v1349_v1  ;;  %v4554_v11 = vpop.f32.mrb[14].mxu0 }
 0x190   :  { %v4623_v12 = vadd.f32 %v4554_v11, %v4426_v61  ;;  %v2996_v13 = vpop.f32.mrb[15].mxu0 }
 0x191   :  { %v4625_v14 = vadd.f32 %v2996_v13, %v1352_v2 }
 0x193   :  { %v4581_v16 = vpop.f32.mrb[16].mxu1 }
 0x194   :  { %v5992_v0 = vadd.f32 %v4611_v59, %v4581_v16  ;;  %v3347_v18 = vpop.f32.mrb[17].mxu1 }
 0x195   :  { %v4573_v17 = vpop.f32.mrb[0].mxu0  ;;  %v5994_v21 = vadd.f32 %v4613_v62, %v3347_v18  ;;  %v4582_v22 = vpop.f32.mrb[18].mxu1 }
 0x196   :  { %v4603_v19 = vadd.f32 %v4573_v17, %v4413_v47  ;;  %v3315_v20 = vpop.f32.mrb[1].mxu0  ;;  %v5996_v24 = vadd.f32 %v4615_v15, %v4582_v22  ;;  %v3350_v25 = vpop.f32.mrb[19].mxu1 }
 0x197   :  { %v4604_v3 = vadd.f32 %v3315_v20, %v1301_v36  ;;  %v4574_v23 = vpop.f32.mrb[2].mxu0  ;;  %v4618_v28 = vadd.f32 %v4617_v4, %v3350_v25 }
 0x198   :  { %v4605_v26 = vadd.f32 %v4574_v23, %v4414_v48  ;;  %v3318_v27 = vpop.f32.mrb[3].mxu0  ;;  %v4136_v29 = vpack.c.bf16 %v5996_v24, %v5992_v0  ;;  %v3546_v39 = vmul.f32 %v4603_v19, %v4603_v19 }
 0x199   :  { %v4606_v31 = vadd.f32 %v3318_v27, %v1304_v49  ;;  %v4131_v9 = vpack.c.bf16 %v4618_v28, %v5994_v21  ;;  %v3544_v33 = vmul.f32 %v4604_v3, %v4604_v3  ;;  %v3553_v16 = vmul.f32 %v4618_v28, %v4618_v28 }
 0x19a   :  { %v4116_v32 = vpack.c.bf16 %v4605_v26, %v4603_v19  ;;  %4152 = vst [vmem:[%s6046_s2 + $0x28] sm:$0xff] %v4136_v29   ;;  %v3547_v48 = vmul.f32 %v4605_v26, %v4605_v26 }
 0x19b   :  { %v4111_v34 = vpack.c.bf16 %v4606_v31, %v4604_v3  ;;  %v3522_v5 = vadd.f32 %v4606_v31, %v4604_v3  ;;  %v3545_v37 = vmul.f32 %v4606_v31, %v4606_v31  ;;  %4151 = vst [vmem:[%s6046_s2 + $0x20] sm:$0xff] %v4131_v9   ;;  %v4585_v38 = vpop.f32.mrb[20].mxu1  ;;  %v3555_v3 = vmul.f32 %v5996_v24, %v5996_v24 }
 0x19c   :  { %4148 = vst [vmem:[%s6046_s2 + $0x8] sm:$0xff] %v4116_v32   ;;  %v4620_v43 = vadd.f32 %v4619_v8, %v4585_v38  ;;  %v3363_v30 = vpop.f32.mrb[21].mxu1 }
 0x19d   :  { %4112 = vst [vmem:[%s6046_s2] sm:$0xff] %v4111_v34   ;;  %v3523_v41 = vadd.f32 %v4603_v19, %v3522_v5  ;;  %v3560_v42 = vadd.f32 %v3545_v37, %v3544_v33  ;;  %v4577_v35 = vpop.f32.mrb[4].mxu0  ;;  %v4622_v47 = vadd.f32 %v4621_v10, %v3363_v30  ;;  %v4586_v36 = vpop.f32.mrb[22].mxu1  ;;  %v3554_v19 = vmul.f32 %v5992_v0, %v5992_v0 }
 0x19e   :  { %v4607_v45 = vadd.f32 %v4577_v35, %v5984_v50  ;;  %v3331_v46 = vpop.f32.mrb[5].mxu0  ;;  %v3366_v55 = vpop.f32.mrb[23].mxu1  ;;  %v4624_v40 = vadd.f32 %v4623_v12, %v4586_v36  ;;  %v3552_v12 = vmul.f32 %v5994_v21, %v5994_v21  ;;  %v3558_v9 = vmul.f32 %v4620_v43, %v4620_v43 }
 0x19f   :  { %v3561_v49 = vadd.f32 %v3560_v42, %v3546_v39  ;;  %v4608_v54 = vadd.f32 %v3331_v46, %v5986_v51  ;;  %v3524_v56 = vadd.f32 %v4605_v26, %v3523_v41  ;;  %v4578_v57 = vpop.f32.mrb[6].mxu0  ;;  %v4626_v51 = vadd.f32 %v4625_v14, %v3366_v55 }
 0x1a0   :  { %v4609_v58 = vadd.f32 %v4578_v57, %v5988_v52  ;;  %v3334_v1 = vpop.f32.mrb[7].mxu0  ;;  %v4146_v63 = vpack.c.bf16 %v4624_v40, %v4620_v43  ;;  %v3550_v52 = vmul.f32 %v4607_v45, %v4607_v45  ;;  %v3556_v26 = vmul.f32 %v4622_v47, %v4622_v47 }
 0x1a1   :  { %v3525_v59 = vadd.f32 %v4608_v54, %v3524_v56  ;;  %v3548_v60 = vmul.f32 %v4608_v54, %v4608_v54  ;;  %v3562_v61 = vadd.f32 %v3561_v49, %v3547_v48  ;;  %v4610_v62 = vadd.f32 %v3334_v1, %v5990_v53 }
 0x1a2   :  { %v4126_v50 = vpack.c.bf16 %v4609_v58, %v4607_v45  ;;  %4154 = vst [vmem:[%s6046_s2 + $0x38] sm:$0xff] %v4146_v63   ;;  %v4141_v8 = vpack.c.bf16 %v4626_v51, %v4622_v47  ;;  %v3551_v6 = vmul.f32 %v4609_v58, %v4609_v58  ;;  %v3557_v31 = vmul.f32 %v4626_v51, %v4626_v51 }
 0x1a3   :  { %v3563_v2 = vadd.f32 %v3562_v61, %v3548_v60  ;;  %v4121_v15 = vpack.c.bf16 %v4610_v62, %v4608_v54  ;;  %v3526_v44 = vadd.f32 %v4610_v62, %v3525_v59  ;;  %v3549_v4 = vmul.f32 %v4610_v62, %v4610_v62 }
 0x1a4   :  { %4150 = vst [vmem:[%s6046_s2 + $0x18] sm:$0xff] %v4126_v50   ;;  %4153 = vst [vmem:[%s6046_s2 + $0x30] sm:$0xff] %v4141_v8   ;;  %v3559_v34 = vmul.f32 %v4624_v40, %v4624_v40 }
 0x1a5   :  { %4149 = vst [vmem:[%s6046_s2 + $0x10] sm:$0xff] %v4121_v15   ;;  %v3527_v53 = vadd.f32 %v4607_v45, %v3526_v44  ;;  %v3564_v7 = vadd.f32 %v3563_v2, %v3549_v4 }
 0x1a7   :  { %v3528_v10 = vadd.f32 %v4609_v58, %v3527_v53  ;;  %v3565_v11 = vadd.f32 %v3564_v7, %v3550_v52 }
 0x1a9   :  { %v3529_v13 = vadd.f32 %v5994_v21, %v3528_v10  ;;  %v3566_v14 = vadd.f32 %v3565_v11, %v3551_v6 }
 0x1ab   :  { %v3567_v17 = vadd.f32 %v3566_v14, %v3552_v12  ;;  %v3530_v18 = vadd.f32 %v4618_v28, %v3529_v13 }
 0x1ad   :  { %v3531_v20 = vadd.f32 %v5992_v0, %v3530_v18  ;;  %v3568_v22 = vadd.f32 %v3567_v17, %v3553_v16 }
 0x1af   :  { %v3532_v23 = vadd.f32 %v5996_v24, %v3531_v20  ;;  %v3569_v25 = vadd.f32 %v3568_v22, %v3554_v19 }
 0x1b1   :  { %v3533_v27 = vadd.f32 %v4622_v47, %v3532_v23  ;;  %v3570_v29 = vadd.f32 %v3569_v25, %v3555_v3 }
 0x1b3   :  { %v3534_v21 = vadd.f32 %v4626_v51, %v3533_v27  ;;  %v3571_v32 = vadd.f32 %v3570_v29, %v3556_v26 }
 0x1b5   :  { %v3535_v28 = vadd.f32 %v4620_v43, %v3534_v21  ;;  %v3572_v33 = vadd.f32 %v3571_v32, %v3557_v31 }
 0x1b7   :  { %v3536_v5 = vadd.f32 %v4624_v40, %v3535_v28  ;;  %v3573_v37 = vadd.f32 %v3572_v33, %v3558_v9 }
 0x1b9   :  { %v3537_v0 = vrot.slane %v3536_v5, 4  ;;  %v3574_v38 = vadd.f32 %v3573_v37, %v3559_v34 }
 0x1bb   :  { %v3538_v39 = vadd.f32 %v3537_v0, %v3536_v5  ;;  %v3575_v41 = vrot.slane %v3574_v38, 4 }
 0x1bd   :  { %v3539_v42 = vrot.slane %v3538_v39, 2  ;;  %v3576_v35 = vadd.f32 %v3575_v41, %v3574_v38 }
 0x1bf   :  { %v3540_v24 = vadd.f32 %v3539_v42, %v3538_v39  ;;  %v3577_v30 = vrot.slane %v3576_v35, 2 }
 0x1c1   :  { %v3541_v45 = vrot.slane %v3540_v24, 1  ;;  %v3578_v46 = vadd.f32 %v3577_v30, %v3576_v35 }
 0x1c3   :  { %v3542_v47 = vadd.f32 %v3541_v45, %v3540_v24  ;;  %v3579_v36 = vrot.slane %v3578_v46, 1 }
 0x1c5   :  { %3543 = vst [vmem:[%s6047_s3] sm:$0x1] %v3542_v47  ;;  %v3580_v43 = vadd.f32 %v3579_v36, %v3578_v46 }
 0x1c7   :  { %3581 = vst [vmem:[%s6048_s4] sm:$0x1] %v3580_v43 }

</bundles_post_ra>
